<compile_context>
chip_gen: v5e
topology: v5e:2x2
jax: 0.10.0
libtpu: 0.0.40
codegen_flags: <defaults>
</compile_context>

<pallas_src>
import functools

import numpy as np
import jax
import jax.numpy as jnp
from jax.experimental import pallas as pl
from jax.experimental.pallas import tpu as pltpu


# ----------------------------------------------------------------------------
# Wrapper-side constant helpers (built once at trace time; all tiny)
# ----------------------------------------------------------------------------

def _im2col_3x3_s2(x):
    """(N, H, W, C) -> (N, (H//2)*(W//2), 9*C) patches of a 3x3 / stride-2 / pad-1 conv."""
    N, H, W, C = x.shape
    xp = jnp.pad(x, ((0, 0), (1, 1), (1, 1), (0, 0)))
    cols = [xp[:, i:i + H:2, j:j + W:2, :] for i in range(3) for j in range(3)]
    xcol = jnp.concatenate(cols, axis=-1)                    # (N, H//2, W//2, 9C)
    return xcol.reshape(N, (H // 2) * (W // 2), 9 * C)


def _edge_mask(M, W, left):
    """(M, 1) f32 mask zeroing the w==0 (left) / w==W-1 (right) image column."""
    col = np.arange(M) % W
    bad = (col == 0) if left else (col == W - 1)
    return jnp.asarray((~bad).astype(np.float32).reshape(M, 1))


def _make_sel(H, W):
    """(Ho*Wo, H*W) bf16 0/1 matrix selecting the even-row/even-col positions."""
    Ho, Wo = H // 2, W // 2
    rows = np.arange(Ho * Wo)
    src = (rows // Wo) * 2 * W + (rows % Wo) * 2
    sel = np.zeros((Ho * Wo, H * W), np.float32)
    sel[rows, src] = 1.0
    return jnp.asarray(sel, jnp.bfloat16)


# ----------------------------------------------------------------------------
# Deterministic parameter construction (mirrors QMobileNetV2.__init__)
# ----------------------------------------------------------------------------

def _fold_bn(key, w, cout):
    """Fold synthetic (deterministic) BatchNorm stats into conv weight/bias."""
    k1, k2, k3, k4 = jax.random.split(key, 4)
    gamma = 1.0 + 0.1 * jax.random.normal(k1, (cout,), jnp.float32)
    beta = 0.1 * jax.random.normal(k2, (cout,), jnp.float32)
    mean = 0.1 * jax.random.normal(k3, (cout,), jnp.float32)
    var = 1.0 + 0.1 * jax.random.uniform(k4, (cout,), jnp.float32)
    scale = gamma * jax.lax.rsqrt(var + 1e-5)
    return w * scale, beta - mean * scale


def _conv_w(key, shape, fan_in):
    return jax.random.normal(key, shape, jnp.float32) * (2.0 / fan_in) ** 0.5


def build_qmobilenetv2_params(key, in_channels=3, out_channels=128,
                              inverted_residual_settings=None,
                              residual_connections=True):
    if inverted_residual_settings is None:
        # Reduced settings (constructor parameter of QMobileNetV2) to keep shapes small.
        inverted_residual_settings = [[1, 16, 1, 1], [6, 24, 2, 2], [6, 32, 2, 2]]
    layers = []
    input_channel = 32

    # TODO(synk): brevitas QuantIdentity / weight & activation quantizers (and the
    # shared_act quant) are treated as identity; a faithful fake-quant path would need
    # per-generation dtypes (int8 on v5e/v6e, fp8 on v7x whose MXU has no int mode).
    # TODO(synk): activations use plain ReLU here; verify ReLU6 / QuantReLU clipping
    # against the PyTorch QConvBnAct / QInvertedResidual definitions.

    # First ConvBnAct: 3x3, stride 2, padding 1 (stored in im2col (9*Cin, Cout) form).
    key, kw, kb = jax.random.split(key, 3)
    w = _conv_w(kw, (3, 3, in_channels, input_channel), 9 * in_channels)
    w, b = _fold_bn(kb, w, input_channel)
    layers.append(dict(kind="first_conv",
                       w=w.reshape(9 * in_channels, input_channel).astype(jnp.bfloat16),
                       b=b.reshape(1, input_channel)))

    in_ch = input_channel
    for t, c, n, s in inverted_residual_settings:
        for i in range(n):
            stride = s if i == 0 else 1
            use_residual = stride == 1 and in_ch == c and residual_connections
            hidden = in_ch * t
            blk = dict(kind="block", stride=stride, use_residual=use_residual)
            if t != 1:  # expand 1x1 conv-bn-act
                key, kw, kb = jax.random.split(key, 3)
                we = _conv_w(kw, (in_ch, hidden), in_ch)
                we, be = _fold_bn(kb, we, hidden)
                blk["we"] = we.astype(jnp.bfloat16)
                blk["be"] = be.reshape(1, hidden)
            else:
                blk["we"] = None
                blk["be"] = None
            # depthwise 3x3 conv-bn-act (kept f32: VPU path, v5e-safe)
            key, kw, kb = jax.random.split(key, 3)
            wd = _conv_w(kw, (3, 3, hidden), 9)
            wd, bd = _fold_bn(kb, wd, hidden)
            blk["wd"] = wd.reshape(9, 1, hidden)
            blk["bd"] = bd.reshape(1, hidden)
            # linear projection 1x1 conv-bn (no activation)
            key, kw, kb = jax.random.split(key, 3)
            wp = _conv_w(kw, (hidden, c), hidden)
            wp, bp = _fold_bn(kb, wp, c)
            blk["wp"] = wp.astype(jnp.bfloat16)
            blk["bp"] = bp.reshape(1, c)
            layers.append(blk)
            in_ch = c

    # Last ConvBnAct: 1x1 to out_channels.
    key, kw, kb = jax.random.split(key, 3)
    wl = _conv_w(kw, (in_ch, out_channels), in_ch)
    wl, bl = _fold_bn(kb, wl, out_channels)
    layers.append(dict(kind="last_conv", w=wl.astype(jnp.bfloat16),
                       b=bl.reshape(1, out_channels)))
    return layers


# ----------------------------------------------------------------------------
# Fully fused forward pass (single pallas_call)
# ----------------------------------------------------------------------------

def qmobilenetv2_forward(params, x_nchw):
    """Forward pass.  Input NCHW (PyTorch convention), output NCHW (f32)."""
    x = jnp.transpose(x_nchw, (0, 2, 3, 1)).astype(jnp.bfloat16)   # NCHW -> NHWC, bf16
    N, H, W, _ = x.shape
    stem, blocks, last = params[0], params[1:-1], params[-1]

    # QuantIdentity on the image -> identity (see TODO in build_qmobilenetv2_params).
    # Stem 3x3/s2/p1 conv as one (M0, 9*Cin)x(9*Cin, 32) matmul: im2col here, once,
    # on the only tensor whose channel count (3) is too small for the 128-lane axis.
    xcol = _im2col_3x3_s2(x)
    cH, cW = H // 2, W // 2

    args = [xcol]
    in_specs = [pl.BlockSpec((1, cH * cW, xcol.shape[-1]), lambda n: (n, 0, 0))]
    scratch_shapes = []
    plans = []

    def add_w(a):
        args.append(a)
        in_specs.append(pl.BlockSpec(a.shape, lambda n, _nd=a.ndim: (0,) * _nd))

    add_w(stem["w"])
    add_w(stem["b"])
    for blk in blocks:
        s = blk["stride"]
        hid = blk["wd"].shape[-1]
        has_expand = blk["we"] is not None
        M = cH * cW
        plans.append(dict(H=cH, W=cW, s=s, hid=hid,
                          has_expand=has_expand, use_res=blk["use_residual"]))
        if has_expand:
            add_w(blk["we"])
            add_w(blk["be"])
        add_w(blk["wd"])
        add_w(blk["bd"])
        add_w(_edge_mask(M, cW, True))
        add_w(_edge_mask(M, cW, False))
        if s == 2:
            add_w(_make_sel(cH, cW))
        add_w(blk["wp"])
        add_w(blk["bp"])
        # Flat, vertically padded depthwise scratch: (H+2)*W rows + 2 guard elements.
        scratch_shapes.append(pltpu.VMEM(((cH + 2) * cW + 2, hid), jnp.float32))
        cH //= s
        cW //= s
    add_w(last["w"])
    add_w(last["b"])

    Mf, Cf = cH * cW, last["w"].shape[-1]
    n_in = len(args)

    def kernel(*refs):
        in_refs, o_ref, s_refs = refs[:n_in], refs[n_in], refs[n_in + 1:]
        cursor = iter(in_refs[1:])
        nw = lambda: next(cursor)

        # ---- stem conv + bias + ReLU (one im2col matmul) ----
        ws, bs = nw(), nw()
        xf = jnp.dot(in_refs[0][0], ws[...], preferred_element_type=jnp.float32)
        xf = jnp.maximum(xf + bs[...], 0.0)                 # (M0, 32) f32
        x_bf = xf.astype(jnp.bfloat16)

        # ---- inverted residual blocks (all intermediates stay in VMEM) ----
        for bi, p in enumerate(plans):
            Wc, hid, M = p["W"], p["hid"], p["H"] * p["W"]
            we = nw() if p["has_expand"] else None
            be = nw() if p["has_expand"] else None
            wd, bd, m_l, m_r = nw(), nw(), nw(), nw()
            sel = nw() if p["s"] == 2 else None
            wp, bp = nw(), nw()
            pref = s_refs[bi]

            # expand 1x1 conv (+bias+ReLU) or identity (t == 1)
            if we is not None:
                e = jnp.dot(x_bf, we[...], preferred_element_type=jnp.float32)
                e = jnp.maximum(e + be[...], 0.0)           # (M, hid) f32
            else:
                e = xf

            # depthwise 3x3 (+bias+ReLU): tap (i, j) of every output position is the
            # contiguous slab pref[i*W + j : i*W + j + M]; the only wrong values come
            # from row wrap-around at the left/right image border and are masked out.
            zrow = jnp.zeros((Wc + 1, hid), jnp.float32)
            pref[0:Wc + 1, :] = zrow                        # top pad row + guard
            pref[Wc + 1:Wc + 1 + M, :] = e                  # interior: one slab store
            pref[Wc + 1 + M:2 * Wc + 2 + M, :] = zrow       # bottom pad row + guard
            masks = (m_l[...], None, m_r[...])
            acc = None
            for j in range(3):
                accj = None
                for i in range(3):
                    term = pref[i * Wc + j:i * Wc + j + M, :] * wd[3 * i + j]
                    accj = term if accj is None else accj + term
                if masks[j] is not None:
                    accj = accj * masks[j]
                acc = accj if acc is None else acc + accj
            a_bf = jnp.maximum(acc + bd[...], 0.0).astype(jnp.bfloat16)

            # stride 2: even-row/even-col subsample via a constant 0/1 selection matmul
            if sel is not None:
                a_bf = jnp.dot(sel[...], a_bf,
                               preferred_element_type=jnp.float32).astype(jnp.bfloat16)

            # linear 1x1 projection (+bias) [+ residual]
            z = jnp.dot(a_bf, wp[...], preferred_element_type=jnp.float32) + bp[...]
            if p["use_res"]:
                z = z + x_bf.astype(jnp.float32)
            xf, x_bf = z, z.astype(jnp.bfloat16)

        # ---- shared-act QuantIdentity (identity) + final 1x1 conv + bias + ReLU ----
        wl, bl = nw(), nw()
        y = jnp.dot(x_bf, wl[...], preferred_element_type=jnp.float32)
        o_ref[0] = jnp.maximum(y + bl[...], 0.0).astype(o_ref.dtype)

    out = pl.pallas_call(
        kernel,
        out_shape=jax.ShapeDtypeStruct((N, Mf, Cf), jnp.float32),
        grid=(N,),
        in_specs=in_specs,
        out_specs=pl.BlockSpec((1, Mf, Cf), lambda n: (n, 0, 0)),
        scratch_shapes=scratch_shapes,
        compiler_params=pltpu.CompilerParams(dimension_semantics=("parallel",)),
    )(*args)

    out = out.reshape(N, cH, cW, Cf)
    return jnp.transpose(out, (0, 3, 1, 2))                  # NHWC -> NCHW


# ----------------------------------------------------------------------------
# Demo
# ----------------------------------------------------------------------------

if __name__ == "__main__":
    key = jax.random.PRNGKey(0)
    kp, kx = jax.random.split(key)
    params = build_qmobilenetv2_params(kp, in_channels=3, out_channels=128)
    x = jax.random.normal(kx, (2, 3, 32, 32), jnp.float32)   # NCHW, PyTorch-style

    fwd = jax.jit(functools.partial(qmobilenetv2_forward, params))
    y = jax.block_until_ready(fwd(x))

    assert y.shape == (2, 128, 4, 4), y.shape
    assert bool(jnp.all(jnp.isfinite(y)))
    print("KERNEL_OK")
</pallas_src>

<mosaic_0001>
module attributes {stable_mosaic.version = 11 : i64} {
  func.func @kernel(%arg0: i32, %arg1: memref<1x256x27xbf16, #tpu.memory_space<vmem>>, %arg2: memref<27x32xbf16, #tpu.memory_space<vmem>>, %arg3: memref<1x32xf32, #tpu.memory_space<vmem>>, %arg4: memref<9x1x32xf32, #tpu.memory_space<vmem>>, %arg5: memref<1x32xf32, #tpu.memory_space<vmem>>, %arg6: memref<256x1xf32, #tpu.memory_space<vmem>>, %arg7: memref<256x1xf32, #tpu.memory_space<vmem>>, %arg8: memref<32x16xbf16, #tpu.memory_space<vmem>>, %arg9: memref<1x16xf32, #tpu.memory_space<vmem>>, %arg10: memref<16x96xbf16, #tpu.memory_space<vmem>>, %arg11: memref<1x96xf32, #tpu.memory_space<vmem>>, %arg12: memref<9x1x96xf32, #tpu.memory_space<vmem>>, %arg13: memref<1x96xf32, #tpu.memory_space<vmem>>, %arg14: memref<256x1xf32, #tpu.memory_space<vmem>>, %arg15: memref<256x1xf32, #tpu.memory_space<vmem>>, %arg16: memref<64x256xbf16, #tpu.memory_space<vmem>>, %arg17: memref<96x24xbf16, #tpu.memory_space<vmem>>, %arg18: memref<1x24xf32, #tpu.memory_space<vmem>>, %arg19: memref<24x144xbf16, #tpu.memory_space<vmem>>, %arg20: memref<1x144xf32, #tpu.memory_space<vmem>>, %arg21: memref<9x1x144xf32, #tpu.memory_space<vmem>>, %arg22: memref<1x144xf32, #tpu.memory_space<vmem>>, %arg23: memref<64x1xf32, #tpu.memory_space<vmem>>, %arg24: memref<64x1xf32, #tpu.memory_space<vmem>>, %arg25: memref<144x24xbf16, #tpu.memory_space<vmem>>, %arg26: memref<1x24xf32, #tpu.memory_space<vmem>>, %arg27: memref<24x144xbf16, #tpu.memory_space<vmem>>, %arg28: memref<1x144xf32, #tpu.memory_space<vmem>>, %arg29: memref<9x1x144xf32, #tpu.memory_space<vmem>>, %arg30: memref<1x144xf32, #tpu.memory_space<vmem>>, %arg31: memref<64x1xf32, #tpu.memory_space<vmem>>, %arg32: memref<64x1xf32, #tpu.memory_space<vmem>>, %arg33: memref<16x64xbf16, #tpu.memory_space<vmem>>, %arg34: memref<144x32xbf16, #tpu.memory_space<vmem>>, %arg35: memref<1x32xf32, #tpu.memory_space<vmem>>, %arg36: memref<32x192xbf16, #tpu.memory_space<vmem>>, %arg37: memref<1x192xf32, #tpu.memory_space<vmem>>, %arg38: memref<9x1x192xf32, #tpu.memory_space<vmem>>, %arg39: memref<1x192xf32, #tpu.memory_space<vmem>>, %arg40: memref<16x1xf32, #tpu.memory_space<vmem>>, %arg41: memref<16x1xf32, #tpu.memory_space<vmem>>, %arg42: memref<192x32xbf16, #tpu.memory_space<vmem>>, %arg43: memref<1x32xf32, #tpu.memory_space<vmem>>, %arg44: memref<32x128xbf16, #tpu.memory_space<vmem>>, %arg45: memref<1x128xf32, #tpu.memory_space<vmem>>, %arg46: memref<1x16x128xf32, #tpu.memory_space<vmem>>, %arg47: memref<290x32xf32, #tpu.memory_space<vmem>>, %arg48: memref<290x96xf32, #tpu.memory_space<vmem>>, %arg49: memref<82x144xf32, #tpu.memory_space<vmem>>, %arg50: memref<82x144xf32, #tpu.memory_space<vmem>>, %arg51: memref<26x192xf32, #tpu.memory_space<vmem>>) attributes {dimension_semantics = [#tpu.dimension_semantics<parallel>], iteration_bounds = array<i64: 2>, scalar_prefetch = 0 : i64, scratch_operands = 5 : i64, tpu.core_type = #tpu.core_type<tc>, window_params = [{transform_indices = @transform_0, window_bounds = array<i64: 1, 256, 27>}, {pipeline_mode = #tpu.pipeline_mode<synchronous>, transform_indices = @transform_1, window_bounds = array<i64: 27, 32>}, {pipeline_mode = #tpu.pipeline_mode<synchronous>, transform_indices = @transform_2, window_bounds = array<i64: 1, 32>}, {pipeline_mode = #tpu.pipeline_mode<synchronous>, transform_indices = @transform_3, window_bounds = array<i64: 9, 1, 32>}, {pipeline_mode = #tpu.pipeline_mode<synchronous>, transform_indices = @transform_4, window_bounds = array<i64: 1, 32>}, {pipeline_mode = #tpu.pipeline_mode<synchronous>, transform_indices = @transform_5, window_bounds = array<i64: 256, 1>}, {pipeline_mode = #tpu.pipeline_mode<synchronous>, transform_indices = @transform_6, window_bounds = array<i64: 256, 1>}, {pipeline_mode = #tpu.pipeline_mode<synchronous>, transform_indices = @transform_7, window_bounds = array<i64: 32, 16>}, {pipeline_mode = #tpu.pipeline_mode<synchronous>, transform_indices = @transform_8, window_bounds = array<i64: 1, 16>}, {pipeline_mode = #tpu.pipeline_mode<synchronous>, transform_indices = @transform_9, window_bounds = array<i64: 16, 96>}, {pipeline_mode = #tpu.pipeline_mode<synchronous>, transform_indices = @transform_10, window_bounds = array<i64: 1, 96>}, {pipeline_mode = #tpu.pipeline_mode<synchronous>, transform_indices = @transform_11, window_bounds = array<i64: 9, 1, 96>}, {pipeline_mode = #tpu.pipeline_mode<synchronous>, transform_indices = @transform_12, window_bounds = array<i64: 1, 96>}, {pipeline_mode = #tpu.pipeline_mode<synchronous>, transform_indices = @transform_13, window_bounds = array<i64: 256, 1>}, {pipeline_mode = #tpu.pipeline_mode<synchronous>, transform_indices = @transform_14, window_bounds = array<i64: 256, 1>}, {pipeline_mode = #tpu.pipeline_mode<synchronous>, transform_indices = @transform_15, window_bounds = array<i64: 64, 256>}, {pipeline_mode = #tpu.pipeline_mode<synchronous>, transform_indices = @transform_16, window_bounds = array<i64: 96, 24>}, {pipeline_mode = #tpu.pipeline_mode<synchronous>, transform_indices = @transform_17, window_bounds = array<i64: 1, 24>}, {pipeline_mode = #tpu.pipeline_mode<synchronous>, transform_indices = @transform_18, window_bounds = array<i64: 24, 144>}, {pipeline_mode = #tpu.pipeline_mode<synchronous>, transform_indices = @transform_19, window_bounds = array<i64: 1, 144>}, {pipeline_mode = #tpu.pipeline_mode<synchronous>, transform_indices = @transform_20, window_bounds = array<i64: 9, 1, 144>}, {pipeline_mode = #tpu.pipeline_mode<synchronous>, transform_indices = @transform_21, window_bounds = array<i64: 1, 144>}, {pipeline_mode = #tpu.pipeline_mode<synchronous>, transform_indices = @transform_22, window_bounds = array<i64: 64, 1>}, {pipeline_mode = #tpu.pipeline_mode<synchronous>, transform_indices = @transform_23, window_bounds = array<i64: 64, 1>}, {pipeline_mode = #tpu.pipeline_mode<synchronous>, transform_indices = @transform_24, window_bounds = array<i64: 144, 24>}, {pipeline_mode = #tpu.pipeline_mode<synchronous>, transform_indices = @transform_25, window_bounds = array<i64: 1, 24>}, {pipeline_mode = #tpu.pipeline_mode<synchronous>, transform_indices = @transform_26, window_bounds = array<i64: 24, 144>}, {pipeline_mode = #tpu.pipeline_mode<synchronous>, transform_indices = @transform_27, window_bounds = array<i64: 1, 144>}, {pipeline_mode = #tpu.pipeline_mode<synchronous>, transform_indices = @transform_28, window_bounds = array<i64: 9, 1, 144>}, {pipeline_mode = #tpu.pipeline_mode<synchronous>, transform_indices = @transform_29, window_bounds = array<i64: 1, 144>}, {pipeline_mode = #tpu.pipeline_mode<synchronous>, transform_indices = @transform_30, window_bounds = array<i64: 64, 1>}, {pipeline_mode = #tpu.pipeline_mode<synchronous>, transform_indices = @transform_31, window_bounds = array<i64: 64, 1>}, {pipeline_mode = #tpu.pipeline_mode<synchronous>, transform_indices = @transform_32, window_bounds = array<i64: 16, 64>}, {pipeline_mode = #tpu.pipeline_mode<synchronous>, transform_indices = @transform_33, window_bounds = array<i64: 144, 32>}, {pipeline_mode = #tpu.pipeline_mode<synchronous>, transform_indices = @transform_34, window_bounds = array<i64: 1, 32>}, {pipeline_mode = #tpu.pipeline_mode<synchronous>, transform_indices = @transform_35, window_bounds = array<i64: 32, 192>}, {pipeline_mode = #tpu.pipeline_mode<synchronous>, transform_indices = @transform_36, window_bounds = array<i64: 1, 192>}, {pipeline_mode = #tpu.pipeline_mode<synchronous>, transform_indices = @transform_37, window_bounds = array<i64: 9, 1, 192>}, {pipeline_mode = #tpu.pipeline_mode<synchronous>, transform_indices = @transform_38, window_bounds = array<i64: 1, 192>}, {pipeline_mode = #tpu.pipeline_mode<synchronous>, transform_indices = @transform_39, window_bounds = array<i64: 16, 1>}, {pipeline_mode = #tpu.pipeline_mode<synchronous>, transform_indices = @transform_40, window_bounds = array<i64: 16, 1>}, {pipeline_mode = #tpu.pipeline_mode<synchronous>, transform_indices = @transform_41, window_bounds = array<i64: 192, 32>}, {pipeline_mode = #tpu.pipeline_mode<synchronous>, transform_indices = @transform_42, window_bounds = array<i64: 1, 32>}, {pipeline_mode = #tpu.pipeline_mode<synchronous>, transform_indices = @transform_43, window_bounds = array<i64: 32, 128>}, {pipeline_mode = #tpu.pipeline_mode<synchronous>, transform_indices = @transform_44, window_bounds = array<i64: 1, 128>}, {transform_indices = @transform_45, window_bounds = array<i64: 1, 16, 128>}]} {
    %c0 = arith.constant 0 : index
    %c0_0 = arith.constant 0 : index
    %c0_1 = arith.constant 0 : index
    %0 = vector.load %arg1[%c0, %c0_0, %c0_1] : memref<1x256x27xbf16, #tpu.memory_space<vmem>>, vector<1x256x27xbf16>
    %1 = vector.shape_cast %0 : vector<1x256x27xbf16> to vector<256x27xbf16>
    %c0_2 = arith.constant 0 : index
    %c0_3 = arith.constant 0 : index
    %2 = vector.load %arg2[%c0_2, %c0_3] : memref<27x32xbf16, #tpu.memory_space<vmem>>, vector<27x32xbf16>
    %cst = arith.constant dense<0.000000e+00> : vector<256x32xf32>
    %3 = tpu.matmul %1, %2, %cst {dimension_numbers = #tpu.dot_dimension_numbers<[1], [0], [0], [1], [0, 0, 1, 1], [], []>} : vector<256x27xbf16>, vector<27x32xbf16>, vector<256x32xf32> -> vector<256x32xf32>
    %c0_4 = arith.constant 0 : index
    %c0_5 = arith.constant 0 : index
    %4 = vector.load %arg3[%c0_4, %c0_5] : memref<1x32xf32, #tpu.memory_space<vmem>>, vector<1x32xf32>
    %5 = vector.broadcast %4 : vector<1x32xf32> to vector<256x32xf32>
    %6 = arith.addf %3, %5 : vector<256x32xf32>
    %cst_6 = arith.constant 0.000000e+00 : f32
    %7 = vector.broadcast %cst_6 : f32 to vector<256x32xf32>
    %8 = arith.maximumf %6, %7 : vector<256x32xf32>
    %cst_7 = arith.constant 0.000000e+00 : f32
    %9 = vector.broadcast %cst_7 : f32 to vector<17x32xf32>
    %c0_8 = arith.constant 0 : index
    %c0_9 = arith.constant 0 : index
    %10 = vector.load %arg47[%c0_8, %c0_9] : memref<290x32xf32, #tpu.memory_space<vmem>>, vector<17x32xf32>
    tpu.vector_store %arg47[%c0_8, %c0_9], %9 {strides = array<i32>} : memref<290x32xf32, #tpu.memory_space<vmem>>, vector<17x32xf32>,
    %c17 = arith.constant 17 : index
    %c0_10 = arith.constant 0 : index
    %11 = vector.load %arg47[%c17, %c0_10] : memref<290x32xf32, #tpu.memory_space<vmem>>, vector<256x32xf32>
    tpu.vector_store %arg47[%c17, %c0_10], %8 {strides = array<i32>} : memref<290x32xf32, #tpu.memory_space<vmem>>, vector<256x32xf32>,
    %c273 = arith.constant 273 : index
    %c0_11 = arith.constant 0 : index
    %12 = vector.load %arg47[%c273, %c0_11] : memref<290x32xf32, #tpu.memory_space<vmem>>, vector<17x32xf32>
    tpu.vector_store %arg47[%c273, %c0_11], %9 {strides = array<i32>} : memref<290x32xf32, #tpu.memory_space<vmem>>, vector<17x32xf32>,
    %c0_12 = arith.constant 0 : index
    %c0_13 = arith.constant 0 : index
    %13 = vector.load %arg6[%c0_12, %c0_13] : memref<256x1xf32, #tpu.memory_space<vmem>>, vector<256x1xf32>
    %c0_14 = arith.constant 0 : index
    %c0_15 = arith.constant 0 : index
    %14 = vector.load %arg7[%c0_14, %c0_15] : memref<256x1xf32, #tpu.memory_space<vmem>>, vector<256x1xf32>
    %c0_16 = arith.constant 0 : index
    %c0_17 = arith.constant 0 : index
    %15 = vector.load %arg47[%c0_16, %c0_17] : memref<290x32xf32, #tpu.memory_space<vmem>>, vector<256x32xf32>
    %c0_18 = arith.constant 0 : index
    %c0_19 = arith.constant 0 : index
    %c0_20 = arith.constant 0 : index
    %16 = vector.load %arg4[%c0_18, %c0_19, %c0_20] : memref<9x1x32xf32, #tpu.memory_space<vmem>>, vector<1x1x32xf32>
    %17 = vector.shape_cast %16 : vector<1x1x32xf32> to vector<1x32xf32>
    %18 = vector.broadcast %17 : vector<1x32xf32> to vector<256x32xf32>
    %19 = arith.mulf %15, %18 : vector<256x32xf32>
    %c16 = arith.constant 16 : index
    %c0_21 = arith.constant 0 : index
    %20 = vector.load %arg47[%c16, %c0_21] : memref<290x32xf32, #tpu.memory_space<vmem>>, vector<256x32xf32>
    %c3 = arith.constant 3 : index
    %c0_22 = arith.constant 0 : index
    %c0_23 = arith.constant 0 : index
    %21 = vector.load %arg4[%c3, %c0_22, %c0_23] : memref<9x1x32xf32, #tpu.memory_space<vmem>>, vector<1x1x32xf32>
    %22 = vector.shape_cast %21 : vector<1x1x32xf32> to vector<1x32xf32>
    %23 = vector.broadcast %22 : vector<1x32xf32> to vector<256x32xf32>
    %24 = arith.mulf %20, %23 : vector<256x32xf32>
    %25 = arith.addf %19, %24 : vector<256x32xf32>
    %c32 = arith.constant 32 : index
    %c0_24 = arith.constant 0 : index
    %26 = vector.load %arg47[%c32, %c0_24] : memref<290x32xf32, #tpu.memory_space<vmem>>, vector<256x32xf32>
    %c6 = arith.constant 6 : index
    %c0_25 = arith.constant 0 : index
    %c0_26 = arith.constant 0 : index
    %27 = vector.load %arg4[%c6, %c0_25, %c0_26] : memref<9x1x32xf32, #tpu.memory_space<vmem>>, vector<1x1x32xf32>
    %28 = vector.shape_cast %27 : vector<1x1x32xf32> to vector<1x32xf32>
    %29 = vector.broadcast %28 : vector<1x32xf32> to vector<256x32xf32>
    %30 = arith.mulf %26, %29 : vector<256x32xf32>
    %31 = arith.addf %25, %30 : vector<256x32xf32>
    %32 = vector.broadcast %13 : vector<256x1xf32> to vector<256x32xf32>
    %33 = arith.mulf %31, %32 : vector<256x32xf32>
    %c1 = arith.constant 1 : index
    %c0_27 = arith.constant 0 : index
    %34 = vector.load %arg47[%c1, %c0_27] : memref<290x32xf32, #tpu.memory_space<vmem>>, vector<256x32xf32>
    %c1_28 = arith.constant 1 : index
    %c0_29 = arith.constant 0 : index
    %c0_30 = arith.constant 0 : index
    %35 = vector.load %arg4[%c1_28, %c0_29, %c0_30] : memref<9x1x32xf32, #tpu.memory_space<vmem>>, vector<1x1x32xf32>
    %36 = vector.shape_cast %35 : vector<1x1x32xf32> to vector<1x32xf32>
    %37 = vector.broadcast %36 : vector<1x32xf32> to vector<256x32xf32>
    %38 = arith.mulf %34, %37 : vector<256x32xf32>
    %c17_31 = arith.constant 17 : index
    %c0_32 = arith.constant 0 : index
    %39 = vector.load %arg47[%c17_31, %c0_32] : memref<290x32xf32, #tpu.memory_space<vmem>>, vector<256x32xf32>
    %c4 = arith.constant 4 : index
    %c0_33 = arith.constant 0 : index
    %c0_34 = arith.constant 0 : index
    %40 = vector.load %arg4[%c4, %c0_33, %c0_34] : memref<9x1x32xf32, #tpu.memory_space<vmem>>, vector<1x1x32xf32>
    %41 = vector.shape_cast %40 : vector<1x1x32xf32> to vector<1x32xf32>
    %42 = vector.broadcast %41 : vector<1x32xf32> to vector<256x32xf32>
    %43 = arith.mulf %39, %42 : vector<256x32xf32>
    %44 = arith.addf %38, %43 : vector<256x32xf32>
    %c33 = arith.constant 33 : index
    %c0_35 = arith.constant 0 : index
    %45 = vector.load %arg47[%c33, %c0_35] : memref<290x32xf32, #tpu.memory_space<vmem>>, vector<256x32xf32>
    %c7 = arith.constant 7 : index
    %c0_36 = arith.constant 0 : index
    %c0_37 = arith.constant 0 : index
    %46 = vector.load %arg4[%c7, %c0_36, %c0_37] : memref<9x1x32xf32, #tpu.memory_space<vmem>>, vector<1x1x32xf32>
    %47 = vector.shape_cast %46 : vector<1x1x32xf32> to vector<1x32xf32>
    %48 = vector.broadcast %47 : vector<1x32xf32> to vector<256x32xf32>
    %49 = arith.mulf %45, %48 : vector<256x32xf32>
    %50 = arith.addf %44, %49 : vector<256x32xf32>
    %51 = arith.addf %33, %50 : vector<256x32xf32>
    %c2 = arith.constant 2 : index
    %c0_38 = arith.constant 0 : index
    %52 = vector.load %arg47[%c2, %c0_38] : memref<290x32xf32, #tpu.memory_space<vmem>>, vector<256x32xf32>
    %c2_39 = arith.constant 2 : index
    %c0_40 = arith.constant 0 : index
    %c0_41 = arith.constant 0 : index
    %53 = vector.load %arg4[%c2_39, %c0_40, %c0_41] : memref<9x1x32xf32, #tpu.memory_space<vmem>>, vector<1x1x32xf32>
    %54 = vector.shape_cast %53 : vector<1x1x32xf32> to vector<1x32xf32>
    %55 = vector.broadcast %54 : vector<1x32xf32> to vector<256x32xf32>
    %56 = arith.mulf %52, %55 : vector<256x32xf32>
    %c18 = arith.constant 18 : index
    %c0_42 = arith.constant 0 : index
    %57 = vector.load %arg47[%c18, %c0_42] : memref<290x32xf32, #tpu.memory_space<vmem>>, vector<256x32xf32>
    %c5 = arith.constant 5 : index
    %c0_43 = arith.constant 0 : index
    %c0_44 = arith.constant 0 : index
    %58 = vector.load %arg4[%c5, %c0_43, %c0_44] : memref<9x1x32xf32, #tpu.memory_space<vmem>>, vector<1x1x32xf32>
    %59 = vector.shape_cast %58 : vector<1x1x32xf32> to vector<1x32xf32>
    %60 = vector.broadcast %59 : vector<1x32xf32> to vector<256x32xf32>
    %61 = arith.mulf %57, %60 : vector<256x32xf32>
    %62 = arith.addf %56, %61 : vector<256x32xf32>
    %c34 = arith.constant 34 : index
    %c0_45 = arith.constant 0 : index
    %63 = vector.load %arg47[%c34, %c0_45] : memref<290x32xf32, #tpu.memory_space<vmem>>, vector<256x32xf32>
    %c8 = arith.constant 8 : index
    %c0_46 = arith.constant 0 : index
    %c0_47 = arith.constant 0 : index
    %64 = vector.load %arg4[%c8, %c0_46, %c0_47] : memref<9x1x32xf32, #tpu.memory_space<vmem>>, vector<1x1x32xf32>
    %65 = vector.shape_cast %64 : vector<1x1x32xf32> to vector<1x32xf32>
    %66 = vector.broadcast %65 : vector<1x32xf32> to vector<256x32xf32>
    %67 = arith.mulf %63, %66 : vector<256x32xf32>
    %68 = arith.addf %62, %67 : vector<256x32xf32>
    %69 = vector.broadcast %14 : vector<256x1xf32> to vector<256x32xf32>
    %70 = arith.mulf %68, %69 : vector<256x32xf32>
    %71 = arith.addf %51, %70 : vector<256x32xf32>
    %c0_48 = arith.constant 0 : index
    %c0_49 = arith.constant 0 : index
    %72 = vector.load %arg5[%c0_48, %c0_49] : memref<1x32xf32, #tpu.memory_space<vmem>>, vector<1x32xf32>
    %73 = vector.broadcast %72 : vector<1x32xf32> to vector<256x32xf32>
    %74 = arith.addf %71, %73 : vector<256x32xf32>
    %cst_50 = arith.constant 0.000000e+00 : f32
    %75 = vector.broadcast %cst_50 : f32 to vector<256x32xf32>
    %76 = arith.maximumf %74, %75 : vector<256x32xf32>
    %77 = arith.truncf %76 : vector<256x32xf32> to vector<256x32xbf16>
    %c0_51 = arith.constant 0 : index
    %c0_52 = arith.constant 0 : index
    %78 = vector.load %arg8[%c0_51, %c0_52] : memref<32x16xbf16, #tpu.memory_space<vmem>>, vector<32x16xbf16>
    %cst_53 = arith.constant dense<0.000000e+00> : vector<256x16xf32>
    %79 = tpu.matmul %77, %78, %cst_53 {dimension_numbers = #tpu.dot_dimension_numbers<[1], [0], [0], [1], [0, 0, 1, 1], [], []>} : vector<256x32xbf16>, vector<32x16xbf16>, vector<256x16xf32> -> vector<256x16xf32>
    %c0_54 = arith.constant 0 : index
    %c0_55 = arith.constant 0 : index
    %80 = vector.load %arg9[%c0_54, %c0_55] : memref<1x16xf32, #tpu.memory_space<vmem>>, vector<1x16xf32>
    %81 = vector.broadcast %80 : vector<1x16xf32> to vector<256x16xf32>
    %82 = arith.addf %79, %81 : vector<256x16xf32>
    %83 = arith.truncf %82 : vector<256x16xf32> to vector<256x16xbf16>
    %c0_56 = arith.constant 0 : index
    %c0_57 = arith.constant 0 : index
    %84 = vector.load %arg10[%c0_56, %c0_57] : memref<16x96xbf16, #tpu.memory_space<vmem>>, vector<16x96xbf16>
    %cst_58 = arith.constant dense<0.000000e+00> : vector<256x96xf32>
    %85 = tpu.matmul %83, %84, %cst_58 {dimension_numbers = #tpu.dot_dimension_numbers<[1], [0], [0], [1], [0, 0, 1, 1], [], []>} : vector<256x16xbf16>, vector<16x96xbf16>, vector<256x96xf32> -> vector<256x96xf32>
    %c0_59 = arith.constant 0 : index
    %c0_60 = arith.constant 0 : index
    %86 = vector.load %arg11[%c0_59, %c0_60] : memref<1x96xf32, #tpu.memory_space<vmem>>, vector<1x96xf32>
    %87 = vector.broadcast %86 : vector<1x96xf32> to vector<256x96xf32>
    %88 = arith.addf %85, %87 : vector<256x96xf32>
    %cst_61 = arith.constant 0.000000e+00 : f32
    %89 = vector.broadcast %cst_61 : f32 to vector<256x96xf32>
    %90 = arith.maximumf %88, %89 : vector<256x96xf32>
    %cst_62 = arith.constant 0.000000e+00 : f32
    %91 = vector.broadcast %cst_62 : f32 to vector<17x96xf32>
    %c0_63 = arith.constant 0 : index
    %c0_64 = arith.constant 0 : index
    %92 = vector.load %arg48[%c0_63, %c0_64] : memref<290x96xf32, #tpu.memory_space<vmem>>, vector<17x96xf32>
    tpu.vector_store %arg48[%c0_63, %c0_64], %91 {strides = array<i32>} : memref<290x96xf32, #tpu.memory_space<vmem>>, vector<17x96xf32>,
    %c17_65 = arith.constant 17 : index
    %c0_66 = arith.constant 0 : index
    %93 = vector.load %arg48[%c17_65, %c0_66] : memref<290x96xf32, #tpu.memory_space<vmem>>, vector<256x96xf32>
    tpu.vector_store %arg48[%c17_65, %c0_66], %90 {strides = array<i32>} : memref<290x96xf32, #tpu.memory_space<vmem>>, vector<256x96xf32>,
    %c273_67 = arith.constant 273 : index
    %c0_68 = arith.constant 0 : index
    %94 = vector.load %arg48[%c273_67, %c0_68] : memref<290x96xf32, #tpu.memory_space<vmem>>, vector<17x96xf32>
    tpu.vector_store %arg48[%c273_67, %c0_68], %91 {strides = array<i32>} : memref<290x96xf32, #tpu.memory_space<vmem>>, vector<17x96xf32>,
    %c0_69 = arith.constant 0 : index
    %c0_70 = arith.constant 0 : index
    %95 = vector.load %arg14[%c0_69, %c0_70] : memref<256x1xf32, #tpu.memory_space<vmem>>, vector<256x1xf32>
    %c0_71 = arith.constant 0 : index
    %c0_72 = arith.constant 0 : index
    %96 = vector.load %arg15[%c0_71, %c0_72] : memref<256x1xf32, #tpu.memory_space<vmem>>, vector<256x1xf32>
    %c0_73 = arith.constant 0 : index
    %c0_74 = arith.constant 0 : index
    %97 = vector.load %arg48[%c0_73, %c0_74] : memref<290x96xf32, #tpu.memory_space<vmem>>, vector<256x96xf32>
    %c0_75 = arith.constant 0 : index
    %c0_76 = arith.constant 0 : index
    %c0_77 = arith.constant 0 : index
    %98 = vector.load %arg12[%c0_75, %c0_76, %c0_77] : memref<9x1x96xf32, #tpu.memory_space<vmem>>, vector<1x1x96xf32>
    %99 = vector.shape_cast %98 : vector<1x1x96xf32> to vector<1x96xf32>
    %100 = vector.broadcast %99 : vector<1x96xf32> to vector<256x96xf32>
    %101 = arith.mulf %97, %100 : vector<256x96xf32>
    %c16_78 = arith.constant 16 : index
    %c0_79 = arith.constant 0 : index
    %102 = vector.load %arg48[%c16_78, %c0_79] : memref<290x96xf32, #tpu.memory_space<vmem>>, vector<256x96xf32>
    %c3_80 = arith.constant 3 : index
    %c0_81 = arith.constant 0 : index
    %c0_82 = arith.constant 0 : index
    %103 = vector.load %arg12[%c3_80, %c0_81, %c0_82] : memref<9x1x96xf32, #tpu.memory_space<vmem>>, vector<1x1x96xf32>
    %104 = vector.shape_cast %103 : vector<1x1x96xf32> to vector<1x96xf32>
    %105 = vector.broadcast %104 : vector<1x96xf32> to vector<256x96xf32>
    %106 = arith.mulf %102, %105 : vector<256x96xf32>
    %107 = arith.addf %101, %106 : vector<256x96xf32>
    %c32_83 = arith.constant 32 : index
    %c0_84 = arith.constant 0 : index
    %108 = vector.load %arg48[%c32_83, %c0_84] : memref<290x96xf32, #tpu.memory_space<vmem>>, vector<256x96xf32>
    %c6_85 = arith.constant 6 : index
    %c0_86 = arith.constant 0 : index
    %c0_87 = arith.constant 0 : index
    %109 = vector.load %arg12[%c6_85, %c0_86, %c0_87] : memref<9x1x96xf32, #tpu.memory_space<vmem>>, vector<1x1x96xf32>
    %110 = vector.shape_cast %109 : vector<1x1x96xf32> to vector<1x96xf32>
    %111 = vector.broadcast %110 : vector<1x96xf32> to vector<256x96xf32>
    %112 = arith.mulf %108, %111 : vector<256x96xf32>
    %113 = arith.addf %107, %112 : vector<256x96xf32>
    %114 = vector.broadcast %95 : vector<256x1xf32> to vector<256x96xf32>
    %115 = arith.mulf %113, %114 : vector<256x96xf32>
    %c1_88 = arith.constant 1 : index
    %c0_89 = arith.constant 0 : index
    %116 = vector.load %arg48[%c1_88, %c0_89] : memref<290x96xf32, #tpu.memory_space<vmem>>, vector<256x96xf32>
    %c1_90 = arith.constant 1 : index
    %c0_91 = arith.constant 0 : index
    %c0_92 = arith.constant 0 : index
    %117 = vector.load %arg12[%c1_90, %c0_91, %c0_92] : memref<9x1x96xf32, #tpu.memory_space<vmem>>, vector<1x1x96xf32>
    %118 = vector.shape_cast %117 : vector<1x1x96xf32> to vector<1x96xf32>
    %119 = vector.broadcast %118 : vector<1x96xf32> to vector<256x96xf32>
    %120 = arith.mulf %116, %119 : vector<256x96xf32>
    %c17_93 = arith.constant 17 : index
    %c0_94 = arith.constant 0 : index
    %121 = vector.load %arg48[%c17_93, %c0_94] : memref<290x96xf32, #tpu.memory_space<vmem>>, vector<256x96xf32>
    %c4_95 = arith.constant 4 : index
    %c0_96 = arith.constant 0 : index
    %c0_97 = arith.constant 0 : index
    %122 = vector.load %arg12[%c4_95, %c0_96, %c0_97] : memref<9x1x96xf32, #tpu.memory_space<vmem>>, vector<1x1x96xf32>
    %123 = vector.shape_cast %122 : vector<1x1x96xf32> to vector<1x96xf32>
    %124 = vector.broadcast %123 : vector<1x96xf32> to vector<256x96xf32>
    %125 = arith.mulf %121, %124 : vector<256x96xf32>
    %126 = arith.addf %120, %125 : vector<256x96xf32>
    %c33_98 = arith.constant 33 : index
    %c0_99 = arith.constant 0 : index
    %127 = vector.load %arg48[%c33_98, %c0_99] : memref<290x96xf32, #tpu.memory_space<vmem>>, vector<256x96xf32>
    %c7_100 = arith.constant 7 : index
    %c0_101 = arith.constant 0 : index
    %c0_102 = arith.constant 0 : index
    %128 = vector.load %arg12[%c7_100, %c0_101, %c0_102] : memref<9x1x96xf32, #tpu.memory_space<vmem>>, vector<1x1x96xf32>
    %129 = vector.shape_cast %128 : vector<1x1x96xf32> to vector<1x96xf32>
    %130 = vector.broadcast %129 : vector<1x96xf32> to vector<256x96xf32>
    %131 = arith.mulf %127, %130 : vector<256x96xf32>
    %132 = arith.addf %126, %131 : vector<256x96xf32>
    %133 = arith.addf %115, %132 : vector<256x96xf32>
    %c2_103 = arith.constant 2 : index
    %c0_104 = arith.constant 0 : index
    %134 = vector.load %arg48[%c2_103, %c0_104] : memref<290x96xf32, #tpu.memory_space<vmem>>, vector<256x96xf32>
    %c2_105 = arith.constant 2 : index
    %c0_106 = arith.constant 0 : index
    %c0_107 = arith.constant 0 : index
    %135 = vector.load %arg12[%c2_105, %c0_106, %c0_107] : memref<9x1x96xf32, #tpu.memory_space<vmem>>, vector<1x1x96xf32>
    %136 = vector.shape_cast %135 : vector<1x1x96xf32> to vector<1x96xf32>
    %137 = vector.broadcast %136 : vector<1x96xf32> to vector<256x96xf32>
    %138 = arith.mulf %134, %137 : vector<256x96xf32>
    %c18_108 = arith.constant 18 : index
    %c0_109 = arith.constant 0 : index
    %139 = vector.load %arg48[%c18_108, %c0_109] : memref<290x96xf32, #tpu.memory_space<vmem>>, vector<256x96xf32>
    %c5_110 = arith.constant 5 : index
    %c0_111 = arith.constant 0 : index
    %c0_112 = arith.constant 0 : index
    %140 = vector.load %arg12[%c5_110, %c0_111, %c0_112] : memref<9x1x96xf32, #tpu.memory_space<vmem>>, vector<1x1x96xf32>
    %141 = vector.shape_cast %140 : vector<1x1x96xf32> to vector<1x96xf32>
    %142 = vector.broadcast %141 : vector<1x96xf32> to vector<256x96xf32>
    %143 = arith.mulf %139, %142 : vector<256x96xf32>
    %144 = arith.addf %138, %143 : vector<256x96xf32>
    %c34_113 = arith.constant 34 : index
    %c0_114 = arith.constant 0 : index
    %145 = vector.load %arg48[%c34_113, %c0_114] : memref<290x96xf32, #tpu.memory_space<vmem>>, vector<256x96xf32>
    %c8_115 = arith.constant 8 : index
    %c0_116 = arith.constant 0 : index
    %c0_117 = arith.constant 0 : index
    %146 = vector.load %arg12[%c8_115, %c0_116, %c0_117] : memref<9x1x96xf32, #tpu.memory_space<vmem>>, vector<1x1x96xf32>
    %147 = vector.shape_cast %146 : vector<1x1x96xf32> to vector<1x96xf32>
    %148 = vector.broadcast %147 : vector<1x96xf32> to vector<256x96xf32>
    %149 = arith.mulf %145, %148 : vector<256x96xf32>
    %150 = arith.addf %144, %149 : vector<256x96xf32>
    %151 = vector.broadcast %96 : vector<256x1xf32> to vector<256x96xf32>
    %152 = arith.mulf %150, %151 : vector<256x96xf32>
    %153 = arith.addf %133, %152 : vector<256x96xf32>
    %c0_118 = arith.constant 0 : index
    %c0_119 = arith.constant 0 : index
    %154 = vector.load %arg13[%c0_118, %c0_119] : memref<1x96xf32, #tpu.memory_space<vmem>>, vector<1x96xf32>
    %155 = vector.broadcast %154 : vector<1x96xf32> to vector<256x96xf32>
    %156 = arith.addf %153, %155 : vector<256x96xf32>
    %cst_120 = arith.constant 0.000000e+00 : f32
    %157 = vector.broadcast %cst_120 : f32 to vector<256x96xf32>
    %158 = arith.maximumf %156, %157 : vector<256x96xf32>
    %159 = arith.truncf %158 : vector<256x96xf32> to vector<256x96xbf16>
    %c0_121 = arith.constant 0 : index
    %c0_122 = arith.constant 0 : index
    %160 = vector.load %arg16[%c0_121, %c0_122] : memref<64x256xbf16, #tpu.memory_space<vmem>>, vector<64x256xbf16>
    %cst_123 = arith.constant dense<0.000000e+00> : vector<64x96xf32>
    %161 = tpu.matmul %160, %159, %cst_123 {dimension_numbers = #tpu.dot_dimension_numbers<[1], [0], [0], [1], [0, 0, 1, 1], [], []>} : vector<64x256xbf16>, vector<256x96xbf16>, vector<64x96xf32> -> vector<64x96xf32>
    %162 = arith.truncf %161 : vector<64x96xf32> to vector<64x96xbf16>
    %c0_124 = arith.constant 0 : index
    %c0_125 = arith.constant 0 : index
    %163 = vector.load %arg17[%c0_124, %c0_125] : memref<96x24xbf16, #tpu.memory_space<vmem>>, vector<96x24xbf16>
    %cst_126 = arith.constant dense<0.000000e+00> : vector<64x24xf32>
    %164 = tpu.matmul %162, %163, %cst_126 {dimension_numbers = #tpu.dot_dimension_numbers<[1], [0], [0], [1], [0, 0, 1, 1], [], []>} : vector<64x96xbf16>, vector<96x24xbf16>, vector<64x24xf32> -> vector<64x24xf32>
    %c0_127 = arith.constant 0 : index
    %c0_128 = arith.constant 0 : index
    %165 = vector.load %arg18[%c0_127, %c0_128] : memref<1x24xf32, #tpu.memory_space<vmem>>, vector<1x24xf32>
    %166 = vector.broadcast %165 : vector<1x24xf32> to vector<64x24xf32>
    %167 = arith.addf %164, %166 : vector<64x24xf32>
    %168 = arith.truncf %167 : vector<64x24xf32> to vector<64x24xbf16>
    %c0_129 = arith.constant 0 : index
    %c0_130 = arith.constant 0 : index
    %169 = vector.load %arg19[%c0_129, %c0_130] : memref<24x144xbf16, #tpu.memory_space<vmem>>, vector<24x144xbf16>
    %cst_131 = arith.constant dense<0.000000e+00> : vector<64x144xf32>
    %170 = tpu.matmul %168, %169, %cst_131 {dimension_numbers = #tpu.dot_dimension_numbers<[1], [0], [0], [1], [0, 0, 1, 1], [], []>} : vector<64x24xbf16>, vector<24x144xbf16>, vector<64x144xf32> -> vector<64x144xf32>
    %c0_132 = arith.constant 0 : index
    %c0_133 = arith.constant 0 : index
    %171 = vector.load %arg20[%c0_132, %c0_133] : memref<1x144xf32, #tpu.memory_space<vmem>>, vector<1x144xf32>
    %172 = vector.broadcast %171 : vector<1x144xf32> to vector<64x144xf32>
    %173 = arith.addf %170, %172 : vector<64x144xf32>
    %cst_134 = arith.constant 0.000000e+00 : f32
    %174 = vector.broadcast %cst_134 : f32 to vector<64x144xf32>
    %175 = arith.maximumf %173, %174 : vector<64x144xf32>
    %cst_135 = arith.constant 0.000000e+00 : f32
    %176 = vector.broadcast %cst_135 : f32 to vector<9x144xf32>
    %c0_136 = arith.constant 0 : index
    %c0_137 = arith.constant 0 : index
    %177 = vector.load %arg49[%c0_136, %c0_137] : memref<82x144xf32, #tpu.memory_space<vmem>>, vector<9x144xf32>
    tpu.vector_store %arg49[%c0_136, %c0_137], %176 {strides = array<i32>} : memref<82x144xf32, #tpu.memory_space<vmem>>, vector<9x144xf32>,
    %c9 = arith.constant 9 : index
    %c0_138 = arith.constant 0 : index
    %178 = vector.load %arg49[%c9, %c0_138] : memref<82x144xf32, #tpu.memory_space<vmem>>, vector<64x144xf32>
    tpu.vector_store %arg49[%c9, %c0_138], %175 {strides = array<i32>} : memref<82x144xf32, #tpu.memory_space<vmem>>, vector<64x144xf32>,
    %c73 = arith.constant 73 : index
    %c0_139 = arith.constant 0 : index
    %179 = vector.load %arg49[%c73, %c0_139] : memref<82x144xf32, #tpu.memory_space<vmem>>, vector<9x144xf32>
    tpu.vector_store %arg49[%c73, %c0_139], %176 {strides = array<i32>} : memref<82x144xf32, #tpu.memory_space<vmem>>, vector<9x144xf32>,
    %c0_140 = arith.constant 0 : index
    %c0_141 = arith.constant 0 : index
    %180 = vector.load %arg23[%c0_140, %c0_141] : memref<64x1xf32, #tpu.memory_space<vmem>>, vector<64x1xf32>
    %c0_142 = arith.constant 0 : index
    %c0_143 = arith.constant 0 : index
    %181 = vector.load %arg24[%c0_142, %c0_143] : memref<64x1xf32, #tpu.memory_space<vmem>>, vector<64x1xf32>
    %c0_144 = arith.constant 0 : index
    %c0_145 = arith.constant 0 : index
    %182 = vector.load %arg49[%c0_144, %c0_145] : memref<82x144xf32, #tpu.memory_space<vmem>>, vector<64x144xf32>
    %c0_146 = arith.constant 0 : index
    %c0_147 = arith.constant 0 : index
    %c0_148 = arith.constant 0 : index
    %183 = vector.load %arg21[%c0_146, %c0_147, %c0_148] : memref<9x1x144xf32, #tpu.memory_space<vmem>>, vector<1x1x144xf32>
    %184 = vector.shape_cast %183 : vector<1x1x144xf32> to vector<1x144xf32>
    %185 = vector.broadcast %184 : vector<1x144xf32> to vector<64x144xf32>
    %186 = arith.mulf %182, %185 : vector<64x144xf32>
    %c8_149 = arith.constant 8 : index
    %c0_150 = arith.constant 0 : index
    %187 = vector.load %arg49[%c8_149, %c0_150] : memref<82x144xf32, #tpu.memory_space<vmem>>, vector<64x144xf32>
    %c3_151 = arith.constant 3 : index
    %c0_152 = arith.constant 0 : index
    %c0_153 = arith.constant 0 : index
    %188 = vector.load %arg21[%c3_151, %c0_152, %c0_153] : memref<9x1x144xf32, #tpu.memory_space<vmem>>, vector<1x1x144xf32>
    %189 = vector.shape_cast %188 : vector<1x1x144xf32> to vector<1x144xf32>
    %190 = vector.broadcast %189 : vector<1x144xf32> to vector<64x144xf32>
    %191 = arith.mulf %187, %190 : vector<64x144xf32>
    %192 = arith.addf %186, %191 : vector<64x144xf32>
    %c16_154 = arith.constant 16 : index
    %c0_155 = arith.constant 0 : index
    %193 = vector.load %arg49[%c16_154, %c0_155] : memref<82x144xf32, #tpu.memory_space<vmem>>, vector<64x144xf32>
    %c6_156 = arith.constant 6 : index
    %c0_157 = arith.constant 0 : index
    %c0_158 = arith.constant 0 : index
    %194 = vector.load %arg21[%c6_156, %c0_157, %c0_158] : memref<9x1x144xf32, #tpu.memory_space<vmem>>, vector<1x1x144xf32>
    %195 = vector.shape_cast %194 : vector<1x1x144xf32> to vector<1x144xf32>
    %196 = vector.broadcast %195 : vector<1x144xf32> to vector<64x144xf32>
    %197 = arith.mulf %193, %196 : vector<64x144xf32>
    %198 = arith.addf %192, %197 : vector<64x144xf32>
    %199 = vector.broadcast %180 : vector<64x1xf32> to vector<64x144xf32>
    %200 = arith.mulf %198, %199 : vector<64x144xf32>
    %c1_159 = arith.constant 1 : index
    %c0_160 = arith.constant 0 : index
    %201 = vector.load %arg49[%c1_159, %c0_160] : memref<82x144xf32, #tpu.memory_space<vmem>>, vector<64x144xf32>
    %c1_161 = arith.constant 1 : index
    %c0_162 = arith.constant 0 : index
    %c0_163 = arith.constant 0 : index
    %202 = vector.load %arg21[%c1_161, %c0_162, %c0_163] : memref<9x1x144xf32, #tpu.memory_space<vmem>>, vector<1x1x144xf32>
    %203 = vector.shape_cast %202 : vector<1x1x144xf32> to vector<1x144xf32>
    %204 = vector.broadcast %203 : vector<1x144xf32> to vector<64x144xf32>
    %205 = arith.mulf %201, %204 : vector<64x144xf32>
    %c9_164 = arith.constant 9 : index
    %c0_165 = arith.constant 0 : index
    %206 = vector.load %arg49[%c9_164, %c0_165] : memref<82x144xf32, #tpu.memory_space<vmem>>, vector<64x144xf32>
    %c4_166 = arith.constant 4 : index
    %c0_167 = arith.constant 0 : index
    %c0_168 = arith.constant 0 : index
    %207 = vector.load %arg21[%c4_166, %c0_167, %c0_168] : memref<9x1x144xf32, #tpu.memory_space<vmem>>, vector<1x1x144xf32>
    %208 = vector.shape_cast %207 : vector<1x1x144xf32> to vector<1x144xf32>
    %209 = vector.broadcast %208 : vector<1x144xf32> to vector<64x144xf32>
    %210 = arith.mulf %206, %209 : vector<64x144xf32>
    %211 = arith.addf %205, %210 : vector<64x144xf32>
    %c17_169 = arith.constant 17 : index
    %c0_170 = arith.constant 0 : index
    %212 = vector.load %arg49[%c17_169, %c0_170] : memref<82x144xf32, #tpu.memory_space<vmem>>, vector<64x144xf32>
    %c7_171 = arith.constant 7 : index
    %c0_172 = arith.constant 0 : index
    %c0_173 = arith.constant 0 : index
    %213 = vector.load %arg21[%c7_171, %c0_172, %c0_173] : memref<9x1x144xf32, #tpu.memory_space<vmem>>, vector<1x1x144xf32>
    %214 = vector.shape_cast %213 : vector<1x1x144xf32> to vector<1x144xf32>
    %215 = vector.broadcast %214 : vector<1x144xf32> to vector<64x144xf32>
    %216 = arith.mulf %212, %215 : vector<64x144xf32>
    %217 = arith.addf %211, %216 : vector<64x144xf32>
    %218 = arith.addf %200, %217 : vector<64x144xf32>
    %c2_174 = arith.constant 2 : index
    %c0_175 = arith.constant 0 : index
    %219 = vector.load %arg49[%c2_174, %c0_175] : memref<82x144xf32, #tpu.memory_space<vmem>>, vector<64x144xf32>
    %c2_176 = arith.constant 2 : index
    %c0_177 = arith.constant 0 : index
    %c0_178 = arith.constant 0 : index
    %220 = vector.load %arg21[%c2_176, %c0_177, %c0_178] : memref<9x1x144xf32, #tpu.memory_space<vmem>>, vector<1x1x144xf32>
    %221 = vector.shape_cast %220 : vector<1x1x144xf32> to vector<1x144xf32>
    %222 = vector.broadcast %221 : vector<1x144xf32> to vector<64x144xf32>
    %223 = arith.mulf %219, %222 : vector<64x144xf32>
    %c10 = arith.constant 10 : index
    %c0_179 = arith.constant 0 : index
    %224 = vector.load %arg49[%c10, %c0_179] : memref<82x144xf32, #tpu.memory_space<vmem>>, vector<64x144xf32>
    %c5_180 = arith.constant 5 : index
    %c0_181 = arith.constant 0 : index
    %c0_182 = arith.constant 0 : index
    %225 = vector.load %arg21[%c5_180, %c0_181, %c0_182] : memref<9x1x144xf32, #tpu.memory_space<vmem>>, vector<1x1x144xf32>
    %226 = vector.shape_cast %225 : vector<1x1x144xf32> to vector<1x144xf32>
    %227 = vector.broadcast %226 : vector<1x144xf32> to vector<64x144xf32>
    %228 = arith.mulf %224, %227 : vector<64x144xf32>
    %229 = arith.addf %223, %228 : vector<64x144xf32>
    %c18_183 = arith.constant 18 : index
    %c0_184 = arith.constant 0 : index
    %230 = vector.load %arg49[%c18_183, %c0_184] : memref<82x144xf32, #tpu.memory_space<vmem>>, vector<64x144xf32>
    %c8_185 = arith.constant 8 : index
    %c0_186 = arith.constant 0 : index
    %c0_187 = arith.constant 0 : index
    %231 = vector.load %arg21[%c8_185, %c0_186, %c0_187] : memref<9x1x144xf32, #tpu.memory_space<vmem>>, vector<1x1x144xf32>
    %232 = vector.shape_cast %231 : vector<1x1x144xf32> to vector<1x144xf32>
    %233 = vector.broadcast %232 : vector<1x144xf32> to vector<64x144xf32>
    %234 = arith.mulf %230, %233 : vector<64x144xf32>
    %235 = arith.addf %229, %234 : vector<64x144xf32>
    %236 = vector.broadcast %181 : vector<64x1xf32> to vector<64x144xf32>
    %237 = arith.mulf %235, %236 : vector<64x144xf32>
    %238 = arith.addf %218, %237 : vector<64x144xf32>
    %c0_188 = arith.constant 0 : index
    %c0_189 = arith.constant 0 : index
    %239 = vector.load %arg22[%c0_188, %c0_189] : memref<1x144xf32, #tpu.memory_space<vmem>>, vector<1x144xf32>
    %240 = vector.broadcast %239 : vector<1x144xf32> to vector<64x144xf32>
    %241 = arith.addf %238, %240 : vector<64x144xf32>
    %cst_190 = arith.constant 0.000000e+00 : f32
    %242 = vector.broadcast %cst_190 : f32 to vector<64x144xf32>
    %243 = arith.maximumf %241, %242 : vector<64x144xf32>
    %244 = arith.truncf %243 : vector<64x144xf32> to vector<64x144xbf16>
    %c0_191 = arith.constant 0 : index
    %c0_192 = arith.constant 0 : index
    %245 = vector.load %arg25[%c0_191, %c0_192] : memref<144x24xbf16, #tpu.memory_space<vmem>>, vector<144x24xbf16>
    %cst_193 = arith.constant dense<0.000000e+00> : vector<64x24xf32>
    %246 = tpu.matmul %244, %245, %cst_193 {dimension_numbers = #tpu.dot_dimension_numbers<[1], [0], [0], [1], [0, 0, 1, 1], [], []>} : vector<64x144xbf16>, vector<144x24xbf16>, vector<64x24xf32> -> vector<64x24xf32>
    %c0_194 = arith.constant 0 : index
    %c0_195 = arith.constant 0 : index
    %247 = vector.load %arg26[%c0_194, %c0_195] : memref<1x24xf32, #tpu.memory_space<vmem>>, vector<1x24xf32>
    %248 = vector.broadcast %247 : vector<1x24xf32> to vector<64x24xf32>
    %249 = arith.addf %246, %248 : vector<64x24xf32>
    %250 = arith.extf %168 : vector<64x24xbf16> to vector<64x24xf32>
    %251 = arith.addf %249, %250 : vector<64x24xf32>
    %252 = arith.truncf %251 : vector<64x24xf32> to vector<64x24xbf16>
    %c0_196 = arith.constant 0 : index
    %c0_197 = arith.constant 0 : index
    %253 = vector.load %arg27[%c0_196, %c0_197] : memref<24x144xbf16, #tpu.memory_space<vmem>>, vector<24x144xbf16>
    %cst_198 = arith.constant dense<0.000000e+00> : vector<64x144xf32>
    %254 = tpu.matmul %252, %253, %cst_198 {dimension_numbers = #tpu.dot_dimension_numbers<[1], [0], [0], [1], [0, 0, 1, 1], [], []>} : vector<64x24xbf16>, vector<24x144xbf16>, vector<64x144xf32> -> vector<64x144xf32>
    %c0_199 = arith.constant 0 : index
    %c0_200 = arith.constant 0 : index
    %255 = vector.load %arg28[%c0_199, %c0_200] : memref<1x144xf32, #tpu.memory_space<vmem>>, vector<1x144xf32>
    %256 = vector.broadcast %255 : vector<1x144xf32> to vector<64x144xf32>
    %257 = arith.addf %254, %256 : vector<64x144xf32>
    %cst_201 = arith.constant 0.000000e+00 : f32
    %258 = vector.broadcast %cst_201 : f32 to vector<64x144xf32>
    %259 = arith.maximumf %257, %258 : vector<64x144xf32>
    %cst_202 = arith.constant 0.000000e+00 : f32
    %260 = vector.broadcast %cst_202 : f32 to vector<9x144xf32>
    %c0_203 = arith.constant 0 : index
    %c0_204 = arith.constant 0 : index
    %261 = vector.load %arg50[%c0_203, %c0_204] : memref<82x144xf32, #tpu.memory_space<vmem>>, vector<9x144xf32>
    tpu.vector_store %arg50[%c0_203, %c0_204], %260 {strides = array<i32>} : memref<82x144xf32, #tpu.memory_space<vmem>>, vector<9x144xf32>,
    %c9_205 = arith.constant 9 : index
    %c0_206 = arith.constant 0 : index
    %262 = vector.load %arg50[%c9_205, %c0_206] : memref<82x144xf32, #tpu.memory_space<vmem>>, vector<64x144xf32>
    tpu.vector_store %arg50[%c9_205, %c0_206], %259 {strides = array<i32>} : memref<82x144xf32, #tpu.memory_space<vmem>>, vector<64x144xf32>,
    %c73_207 = arith.constant 73 : index
    %c0_208 = arith.constant 0 : index
    %263 = vector.load %arg50[%c73_207, %c0_208] : memref<82x144xf32, #tpu.memory_space<vmem>>, vector<9x144xf32>
    tpu.vector_store %arg50[%c73_207, %c0_208], %260 {strides = array<i32>} : memref<82x144xf32, #tpu.memory_space<vmem>>, vector<9x144xf32>,
    %c0_209 = arith.constant 0 : index
    %c0_210 = arith.constant 0 : index
    %264 = vector.load %arg31[%c0_209, %c0_210] : memref<64x1xf32, #tpu.memory_space<vmem>>, vector<64x1xf32>
    %c0_211 = arith.constant 0 : index
    %c0_212 = arith.constant 0 : index
    %265 = vector.load %arg32[%c0_211, %c0_212] : memref<64x1xf32, #tpu.memory_space<vmem>>, vector<64x1xf32>
    %c0_213 = arith.constant 0 : index
    %c0_214 = arith.constant 0 : index
    %266 = vector.load %arg50[%c0_213, %c0_214] : memref<82x144xf32, #tpu.memory_space<vmem>>, vector<64x144xf32>
    %c0_215 = arith.constant 0 : index
    %c0_216 = arith.constant 0 : index
    %c0_217 = arith.constant 0 : index
    %267 = vector.load %arg29[%c0_215, %c0_216, %c0_217] : memref<9x1x144xf32, #tpu.memory_space<vmem>>, vector<1x1x144xf32>
    %268 = vector.shape_cast %267 : vector<1x1x144xf32> to vector<1x144xf32>
    %269 = vector.broadcast %268 : vector<1x144xf32> to vector<64x144xf32>
    %270 = arith.mulf %266, %269 : vector<64x144xf32>
    %c8_218 = arith.constant 8 : index
    %c0_219 = arith.constant 0 : index
    %271 = vector.load %arg50[%c8_218, %c0_219] : memref<82x144xf32, #tpu.memory_space<vmem>>, vector<64x144xf32>
    %c3_220 = arith.constant 3 : index
    %c0_221 = arith.constant 0 : index
    %c0_222 = arith.constant 0 : index
    %272 = vector.load %arg29[%c3_220, %c0_221, %c0_222] : memref<9x1x144xf32, #tpu.memory_space<vmem>>, vector<1x1x144xf32>
    %273 = vector.shape_cast %272 : vector<1x1x144xf32> to vector<1x144xf32>
    %274 = vector.broadcast %273 : vector<1x144xf32> to vector<64x144xf32>
    %275 = arith.mulf %271, %274 : vector<64x144xf32>
    %276 = arith.addf %270, %275 : vector<64x144xf32>
    %c16_223 = arith.constant 16 : index
    %c0_224 = arith.constant 0 : index
    %277 = vector.load %arg50[%c16_223, %c0_224] : memref<82x144xf32, #tpu.memory_space<vmem>>, vector<64x144xf32>
    %c6_225 = arith.constant 6 : index
    %c0_226 = arith.constant 0 : index
    %c0_227 = arith.constant 0 : index
    %278 = vector.load %arg29[%c6_225, %c0_226, %c0_227] : memref<9x1x144xf32, #tpu.memory_space<vmem>>, vector<1x1x144xf32>
    %279 = vector.shape_cast %278 : vector<1x1x144xf32> to vector<1x144xf32>
    %280 = vector.broadcast %279 : vector<1x144xf32> to vector<64x144xf32>
    %281 = arith.mulf %277, %280 : vector<64x144xf32>
    %282 = arith.addf %276, %281 : vector<64x144xf32>
    %283 = vector.broadcast %264 : vector<64x1xf32> to vector<64x144xf32>
    %284 = arith.mulf %282, %283 : vector<64x144xf32>
    %c1_228 = arith.constant 1 : index
    %c0_229 = arith.constant 0 : index
    %285 = vector.load %arg50[%c1_228, %c0_229] : memref<82x144xf32, #tpu.memory_space<vmem>>, vector<64x144xf32>
    %c1_230 = arith.constant 1 : index
    %c0_231 = arith.constant 0 : index
    %c0_232 = arith.constant 0 : index
    %286 = vector.load %arg29[%c1_230, %c0_231, %c0_232] : memref<9x1x144xf32, #tpu.memory_space<vmem>>, vector<1x1x144xf32>
    %287 = vector.shape_cast %286 : vector<1x1x144xf32> to vector<1x144xf32>
    %288 = vector.broadcast %287 : vector<1x144xf32> to vector<64x144xf32>
    %289 = arith.mulf %285, %288 : vector<64x144xf32>
    %c9_233 = arith.constant 9 : index
    %c0_234 = arith.constant 0 : index
    %290 = vector.load %arg50[%c9_233, %c0_234] : memref<82x144xf32, #tpu.memory_space<vmem>>, vector<64x144xf32>
    %c4_235 = arith.constant 4 : index
    %c0_236 = arith.constant 0 : index
    %c0_237 = arith.constant 0 : index
    %291 = vector.load %arg29[%c4_235, %c0_236, %c0_237] : memref<9x1x144xf32, #tpu.memory_space<vmem>>, vector<1x1x144xf32>
    %292 = vector.shape_cast %291 : vector<1x1x144xf32> to vector<1x144xf32>
    %293 = vector.broadcast %292 : vector<1x144xf32> to vector<64x144xf32>
    %294 = arith.mulf %290, %293 : vector<64x144xf32>
    %295 = arith.addf %289, %294 : vector<64x144xf32>
    %c17_238 = arith.constant 17 : index
    %c0_239 = arith.constant 0 : index
    %296 = vector.load %arg50[%c17_238, %c0_239] : memref<82x144xf32, #tpu.memory_space<vmem>>, vector<64x144xf32>
    %c7_240 = arith.constant 7 : index
    %c0_241 = arith.constant 0 : index
    %c0_242 = arith.constant 0 : index
    %297 = vector.load %arg29[%c7_240, %c0_241, %c0_242] : memref<9x1x144xf32, #tpu.memory_space<vmem>>, vector<1x1x144xf32>
    %298 = vector.shape_cast %297 : vector<1x1x144xf32> to vector<1x144xf32>
    %299 = vector.broadcast %298 : vector<1x144xf32> to vector<64x144xf32>
    %300 = arith.mulf %296, %299 : vector<64x144xf32>
    %301 = arith.addf %295, %300 : vector<64x144xf32>
    %302 = arith.addf %284, %301 : vector<64x144xf32>
    %c2_243 = arith.constant 2 : index
    %c0_244 = arith.constant 0 : index
    %303 = vector.load %arg50[%c2_243, %c0_244] : memref<82x144xf32, #tpu.memory_space<vmem>>, vector<64x144xf32>
    %c2_245 = arith.constant 2 : index
    %c0_246 = arith.constant 0 : index
    %c0_247 = arith.constant 0 : index
    %304 = vector.load %arg29[%c2_245, %c0_246, %c0_247] : memref<9x1x144xf32, #tpu.memory_space<vmem>>, vector<1x1x144xf32>
    %305 = vector.shape_cast %304 : vector<1x1x144xf32> to vector<1x144xf32>
    %306 = vector.broadcast %305 : vector<1x144xf32> to vector<64x144xf32>
    %307 = arith.mulf %303, %306 : vector<64x144xf32>
    %c10_248 = arith.constant 10 : index
    %c0_249 = arith.constant 0 : index
    %308 = vector.load %arg50[%c10_248, %c0_249] : memref<82x144xf32, #tpu.memory_space<vmem>>, vector<64x144xf32>
    %c5_250 = arith.constant 5 : index
    %c0_251 = arith.constant 0 : index
    %c0_252 = arith.constant 0 : index
    %309 = vector.load %arg29[%c5_250, %c0_251, %c0_252] : memref<9x1x144xf32, #tpu.memory_space<vmem>>, vector<1x1x144xf32>
    %310 = vector.shape_cast %309 : vector<1x1x144xf32> to vector<1x144xf32>
    %311 = vector.broadcast %310 : vector<1x144xf32> to vector<64x144xf32>
    %312 = arith.mulf %308, %311 : vector<64x144xf32>
    %313 = arith.addf %307, %312 : vector<64x144xf32>
    %c18_253 = arith.constant 18 : index
    %c0_254 = arith.constant 0 : index
    %314 = vector.load %arg50[%c18_253, %c0_254] : memref<82x144xf32, #tpu.memory_space<vmem>>, vector<64x144xf32>
    %c8_255 = arith.constant 8 : index
    %c0_256 = arith.constant 0 : index
    %c0_257 = arith.constant 0 : index
    %315 = vector.load %arg29[%c8_255, %c0_256, %c0_257] : memref<9x1x144xf32, #tpu.memory_space<vmem>>, vector<1x1x144xf32>
    %316 = vector.shape_cast %315 : vector<1x1x144xf32> to vector<1x144xf32>
    %317 = vector.broadcast %316 : vector<1x144xf32> to vector<64x144xf32>
    %318 = arith.mulf %314, %317 : vector<64x144xf32>
    %319 = arith.addf %313, %318 : vector<64x144xf32>
    %320 = vector.broadcast %265 : vector<64x1xf32> to vector<64x144xf32>
    %321 = arith.mulf %319, %320 : vector<64x144xf32>
    %322 = arith.addf %302, %321 : vector<64x144xf32>
    %c0_258 = arith.constant 0 : index
    %c0_259 = arith.constant 0 : index
    %323 = vector.load %arg30[%c0_258, %c0_259] : memref<1x144xf32, #tpu.memory_space<vmem>>, vector<1x144xf32>
    %324 = vector.broadcast %323 : vector<1x144xf32> to vector<64x144xf32>
    %325 = arith.addf %322, %324 : vector<64x144xf32>
    %cst_260 = arith.constant 0.000000e+00 : f32
    %326 = vector.broadcast %cst_260 : f32 to vector<64x144xf32>
    %327 = arith.maximumf %325, %326 : vector<64x144xf32>
    %328 = arith.truncf %327 : vector<64x144xf32> to vector<64x144xbf16>
    %c0_261 = arith.constant 0 : index
    %c0_262 = arith.constant 0 : index
    %329 = vector.load %arg33[%c0_261, %c0_262] : memref<16x64xbf16, #tpu.memory_space<vmem>>, vector<16x64xbf16>
    %cst_263 = arith.constant dense<0.000000e+00> : vector<16x144xf32>
    %330 = tpu.matmul %329, %328, %cst_263 {dimension_numbers = #tpu.dot_dimension_numbers<[1], [0], [0], [1], [0, 0, 1, 1], [], []>} : vector<16x64xbf16>, vector<64x144xbf16>, vector<16x144xf32> -> vector<16x144xf32>
    %331 = arith.truncf %330 : vector<16x144xf32> to vector<16x144xbf16>
    %c0_264 = arith.constant 0 : index
    %c0_265 = arith.constant 0 : index
    %332 = vector.load %arg34[%c0_264, %c0_265] : memref<144x32xbf16, #tpu.memory_space<vmem>>, vector<144x32xbf16>
    %cst_266 = arith.constant dense<0.000000e+00> : vector<16x32xf32>
    %333 = tpu.matmul %331, %332, %cst_266 {dimension_numbers = #tpu.dot_dimension_numbers<[1], [0], [0], [1], [0, 0, 1, 1], [], []>} : vector<16x144xbf16>, vector<144x32xbf16>, vector<16x32xf32> -> vector<16x32xf32>
    %c0_267 = arith.constant 0 : index
    %c0_268 = arith.constant 0 : index
    %334 = vector.load %arg35[%c0_267, %c0_268] : memref<1x32xf32, #tpu.memory_space<vmem>>, vector<1x32xf32>
    %335 = vector.broadcast %334 : vector<1x32xf32> to vector<16x32xf32>
    %336 = arith.addf %333, %335 : vector<16x32xf32>
    %337 = arith.truncf %336 : vector<16x32xf32> to vector<16x32xbf16>
    %c0_269 = arith.constant 0 : index
    %c0_270 = arith.constant 0 : index
    %338 = vector.load %arg36[%c0_269, %c0_270] : memref<32x192xbf16, #tpu.memory_space<vmem>>, vector<32x192xbf16>
    %cst_271 = arith.constant dense<0.000000e+00> : vector<16x192xf32>
    %339 = tpu.matmul %337, %338, %cst_271 {dimension_numbers = #tpu.dot_dimension_numbers<[1], [0], [0], [1], [0, 0, 1, 1], [], []>} : vector<16x32xbf16>, vector<32x192xbf16>, vector<16x192xf32> -> vector<16x192xf32>
    %c0_272 = arith.constant 0 : index
    %c0_273 = arith.constant 0 : index
    %340 = vector.load %arg37[%c0_272, %c0_273] : memref<1x192xf32, #tpu.memory_space<vmem>>, vector<1x192xf32>
    %341 = vector.broadcast %340 : vector<1x192xf32> to vector<16x192xf32>
    %342 = arith.addf %339, %341 : vector<16x192xf32>
    %cst_274 = arith.constant 0.000000e+00 : f32
    %343 = vector.broadcast %cst_274 : f32 to vector<16x192xf32>
    %344 = arith.maximumf %342, %343 : vector<16x192xf32>
    %cst_275 = arith.constant 0.000000e+00 : f32
    %345 = vector.broadcast %cst_275 : f32 to vector<5x192xf32>
    %c0_276 = arith.constant 0 : index
    %c0_277 = arith.constant 0 : index
    %346 = vector.load %arg51[%c0_276, %c0_277] : memref<26x192xf32, #tpu.memory_space<vmem>>, vector<5x192xf32>
    tpu.vector_store %arg51[%c0_276, %c0_277], %345 {strides = array<i32>} : memref<26x192xf32, #tpu.memory_space<vmem>>, vector<5x192xf32>,
    %c5_278 = arith.constant 5 : index
    %c0_279 = arith.constant 0 : index
    %347 = vector.load %arg51[%c5_278, %c0_279] : memref<26x192xf32, #tpu.memory_space<vmem>>, vector<16x192xf32>
    tpu.vector_store %arg51[%c5_278, %c0_279], %344 {strides = array<i32>} : memref<26x192xf32, #tpu.memory_space<vmem>>, vector<16x192xf32>,
    %c21 = arith.constant 21 : index
    %c0_280 = arith.constant 0 : index
    %348 = vector.load %arg51[%c21, %c0_280] : memref<26x192xf32, #tpu.memory_space<vmem>>, vector<5x192xf32>
    tpu.vector_store %arg51[%c21, %c0_280], %345 {strides = array<i32>} : memref<26x192xf32, #tpu.memory_space<vmem>>, vector<5x192xf32>,
    %c0_281 = arith.constant 0 : index
    %c0_282 = arith.constant 0 : index
    %349 = vector.load %arg40[%c0_281, %c0_282] : memref<16x1xf32, #tpu.memory_space<vmem>>, vector<16x1xf32>
    %c0_283 = arith.constant 0 : index
    %c0_284 = arith.constant 0 : index
    %350 = vector.load %arg41[%c0_283, %c0_284] : memref<16x1xf32, #tpu.memory_space<vmem>>, vector<16x1xf32>
    %c0_285 = arith.constant 0 : index
    %c0_286 = arith.constant 0 : index
    %351 = vector.load %arg51[%c0_285, %c0_286] : memref<26x192xf32, #tpu.memory_space<vmem>>, vector<16x192xf32>
    %c0_287 = arith.constant 0 : index
    %c0_288 = arith.constant 0 : index
    %c0_289 = arith.constant 0 : index
    %352 = vector.load %arg38[%c0_287, %c0_288, %c0_289] : memref<9x1x192xf32, #tpu.memory_space<vmem>>, vector<1x1x192xf32>
    %353 = vector.shape_cast %352 : vector<1x1x192xf32> to vector<1x192xf32>
    %354 = vector.broadcast %353 : vector<1x192xf32> to vector<16x192xf32>
    %355 = arith.mulf %351, %354 : vector<16x192xf32>
    %c4_290 = arith.constant 4 : index
    %c0_291 = arith.constant 0 : index
    %356 = vector.load %arg51[%c4_290, %c0_291] : memref<26x192xf32, #tpu.memory_space<vmem>>, vector<16x192xf32>
    %c3_292 = arith.constant 3 : index
    %c0_293 = arith.constant 0 : index
    %c0_294 = arith.constant 0 : index
    %357 = vector.load %arg38[%c3_292, %c0_293, %c0_294] : memref<9x1x192xf32, #tpu.memory_space<vmem>>, vector<1x1x192xf32>
    %358 = vector.shape_cast %357 : vector<1x1x192xf32> to vector<1x192xf32>
    %359 = vector.broadcast %358 : vector<1x192xf32> to vector<16x192xf32>
    %360 = arith.mulf %356, %359 : vector<16x192xf32>
    %361 = arith.addf %355, %360 : vector<16x192xf32>
    %c8_295 = arith.constant 8 : index
    %c0_296 = arith.constant 0 : index
    %362 = vector.load %arg51[%c8_295, %c0_296] : memref<26x192xf32, #tpu.memory_space<vmem>>, vector<16x192xf32>
    %c6_297 = arith.constant 6 : index
    %c0_298 = arith.constant 0 : index
    %c0_299 = arith.constant 0 : index
    %363 = vector.load %arg38[%c6_297, %c0_298, %c0_299] : memref<9x1x192xf32, #tpu.memory_space<vmem>>, vector<1x1x192xf32>
    %364 = vector.shape_cast %363 : vector<1x1x192xf32> to vector<1x192xf32>
    %365 = vector.broadcast %364 : vector<1x192xf32> to vector<16x192xf32>
    %366 = arith.mulf %362, %365 : vector<16x192xf32>
    %367 = arith.addf %361, %366 : vector<16x192xf32>
    %368 = vector.broadcast %349 : vector<16x1xf32> to vector<16x192xf32>
    %369 = arith.mulf %367, %368 : vector<16x192xf32>
    %c1_300 = arith.constant 1 : index
    %c0_301 = arith.constant 0 : index
    %370 = vector.load %arg51[%c1_300, %c0_301] : memref<26x192xf32, #tpu.memory_space<vmem>>, vector<16x192xf32>
    %c1_302 = arith.constant 1 : index
    %c0_303 = arith.constant 0 : index
    %c0_304 = arith.constant 0 : index
    %371 = vector.load %arg38[%c1_302, %c0_303, %c0_304] : memref<9x1x192xf32, #tpu.memory_space<vmem>>, vector<1x1x192xf32>
    %372 = vector.shape_cast %371 : vector<1x1x192xf32> to vector<1x192xf32>
    %373 = vector.broadcast %372 : vector<1x192xf32> to vector<16x192xf32>
    %374 = arith.mulf %370, %373 : vector<16x192xf32>
    %c5_305 = arith.constant 5 : index
    %c0_306 = arith.constant 0 : index
    %375 = vector.load %arg51[%c5_305, %c0_306] : memref<26x192xf32, #tpu.memory_space<vmem>>, vector<16x192xf32>
    %c4_307 = arith.constant 4 : index
    %c0_308 = arith.constant 0 : index
    %c0_309 = arith.constant 0 : index
    %376 = vector.load %arg38[%c4_307, %c0_308, %c0_309] : memref<9x1x192xf32, #tpu.memory_space<vmem>>, vector<1x1x192xf32>
    %377 = vector.shape_cast %376 : vector<1x1x192xf32> to vector<1x192xf32>
    %378 = vector.broadcast %377 : vector<1x192xf32> to vector<16x192xf32>
    %379 = arith.mulf %375, %378 : vector<16x192xf32>
    %380 = arith.addf %374, %379 : vector<16x192xf32>
    %c9_310 = arith.constant 9 : index
    %c0_311 = arith.constant 0 : index
    %381 = vector.load %arg51[%c9_310, %c0_311] : memref<26x192xf32, #tpu.memory_space<vmem>>, vector<16x192xf32>
    %c7_312 = arith.constant 7 : index
    %c0_313 = arith.constant 0 : index
    %c0_314 = arith.constant 0 : index
    %382 = vector.load %arg38[%c7_312, %c0_313, %c0_314] : memref<9x1x192xf32, #tpu.memory_space<vmem>>, vector<1x1x192xf32>
    %383 = vector.shape_cast %382 : vector<1x1x192xf32> to vector<1x192xf32>
    %384 = vector.broadcast %383 : vector<1x192xf32> to vector<16x192xf32>
    %385 = arith.mulf %381, %384 : vector<16x192xf32>
    %386 = arith.addf %380, %385 : vector<16x192xf32>
    %387 = arith.addf %369, %386 : vector<16x192xf32>
    %c2_315 = arith.constant 2 : index
    %c0_316 = arith.constant 0 : index
    %388 = vector.load %arg51[%c2_315, %c0_316] : memref<26x192xf32, #tpu.memory_space<vmem>>, vector<16x192xf32>
    %c2_317 = arith.constant 2 : index
    %c0_318 = arith.constant 0 : index
    %c0_319 = arith.constant 0 : index
    %389 = vector.load %arg38[%c2_317, %c0_318, %c0_319] : memref<9x1x192xf32, #tpu.memory_space<vmem>>, vector<1x1x192xf32>
    %390 = vector.shape_cast %389 : vector<1x1x192xf32> to vector<1x192xf32>
    %391 = vector.broadcast %390 : vector<1x192xf32> to vector<16x192xf32>
    %392 = arith.mulf %388, %391 : vector<16x192xf32>
    %c6_320 = arith.constant 6 : index
    %c0_321 = arith.constant 0 : index
    %393 = vector.load %arg51[%c6_320, %c0_321] : memref<26x192xf32, #tpu.memory_space<vmem>>, vector<16x192xf32>
    %c5_322 = arith.constant 5 : index
    %c0_323 = arith.constant 0 : index
    %c0_324 = arith.constant 0 : index
    %394 = vector.load %arg38[%c5_322, %c0_323, %c0_324] : memref<9x1x192xf32, #tpu.memory_space<vmem>>, vector<1x1x192xf32>
    %395 = vector.shape_cast %394 : vector<1x1x192xf32> to vector<1x192xf32>
    %396 = vector.broadcast %395 : vector<1x192xf32> to vector<16x192xf32>
    %397 = arith.mulf %393, %396 : vector<16x192xf32>
    %398 = arith.addf %392, %397 : vector<16x192xf32>
    %c10_325 = arith.constant 10 : index
    %c0_326 = arith.constant 0 : index
    %399 = vector.load %arg51[%c10_325, %c0_326] : memref<26x192xf32, #tpu.memory_space<vmem>>, vector<16x192xf32>
    %c8_327 = arith.constant 8 : index
    %c0_328 = arith.constant 0 : index
    %c0_329 = arith.constant 0 : index
    %400 = vector.load %arg38[%c8_327, %c0_328, %c0_329] : memref<9x1x192xf32, #tpu.memory_space<vmem>>, vector<1x1x192xf32>
    %401 = vector.shape_cast %400 : vector<1x1x192xf32> to vector<1x192xf32>
    %402 = vector.broadcast %401 : vector<1x192xf32> to vector<16x192xf32>
    %403 = arith.mulf %399, %402 : vector<16x192xf32>
    %404 = arith.addf %398, %403 : vector<16x192xf32>
    %405 = vector.broadcast %350 : vector<16x1xf32> to vector<16x192xf32>
    %406 = arith.mulf %404, %405 : vector<16x192xf32>
    %407 = arith.addf %387, %406 : vector<16x192xf32>
    %c0_330 = arith.constant 0 : index
    %c0_331 = arith.constant 0 : index
    %408 = vector.load %arg39[%c0_330, %c0_331] : memref<1x192xf32, #tpu.memory_space<vmem>>, vector<1x192xf32>
    %409 = vector.broadcast %408 : vector<1x192xf32> to vector<16x192xf32>
    %410 = arith.addf %407, %409 : vector<16x192xf32>
    %cst_332 = arith.constant 0.000000e+00 : f32
    %411 = vector.broadcast %cst_332 : f32 to vector<16x192xf32>
    %412 = arith.maximumf %410, %411 : vector<16x192xf32>
    %413 = arith.truncf %412 : vector<16x192xf32> to vector<16x192xbf16>
    %c0_333 = arith.constant 0 : index
    %c0_334 = arith.constant 0 : index
    %414 = vector.load %arg42[%c0_333, %c0_334] : memref<192x32xbf16, #tpu.memory_space<vmem>>, vector<192x32xbf16>
    %cst_335 = arith.constant dense<0.000000e+00> : vector<16x32xf32>
    %415 = tpu.matmul %413, %414, %cst_335 {dimension_numbers = #tpu.dot_dimension_numbers<[1], [0], [0], [1], [0, 0, 1, 1], [], []>} : vector<16x192xbf16>, vector<192x32xbf16>, vector<16x32xf32> -> vector<16x32xf32>
    %c0_336 = arith.constant 0 : index
    %c0_337 = arith.constant 0 : index
    %416 = vector.load %arg43[%c0_336, %c0_337] : memref<1x32xf32, #tpu.memory_space<vmem>>, vector<1x32xf32>
    %417 = vector.broadcast %416 : vector<1x32xf32> to vector<16x32xf32>
    %418 = arith.addf %415, %417 : vector<16x32xf32>
    %419 = arith.extf %337 : vector<16x32xbf16> to vector<16x32xf32>
    %420 = arith.addf %418, %419 : vector<16x32xf32>
    %421 = arith.truncf %420 : vector<16x32xf32> to vector<16x32xbf16>
    %c0_338 = arith.constant 0 : index
    %c0_339 = arith.constant 0 : index
    %422 = vector.load %arg44[%c0_338, %c0_339] : memref<32x128xbf16, #tpu.memory_space<vmem>>, vector<32x128xbf16>
    %cst_340 = arith.constant dense<0.000000e+00> : vector<16x128xf32>
    %423 = tpu.matmul %421, %422, %cst_340 {dimension_numbers = #tpu.dot_dimension_numbers<[1], [0], [0], [1], [0, 0, 1, 1], [], []>} : vector<16x32xbf16>, vector<32x128xbf16>, vector<16x128xf32> -> vector<16x128xf32>
    %c0_341 = arith.constant 0 : index
    %c0_342 = arith.constant 0 : index
    %424 = vector.load %arg45[%c0_341, %c0_342] : memref<1x128xf32, #tpu.memory_space<vmem>>, vector<1x128xf32>
    %425 = vector.broadcast %424 : vector<1x128xf32> to vector<16x128xf32>
    %426 = arith.addf %423, %425 : vector<16x128xf32>
    %cst_343 = arith.constant 0.000000e+00 : f32
    %427 = vector.broadcast %cst_343 : f32 to vector<16x128xf32>
    %428 = arith.maximumf %426, %427 : vector<16x128xf32>
    %c0_344 = arith.constant 0 : index
    %c0_345 = arith.constant 0 : index
    %c0_346 = arith.constant 0 : index
    %429 = vector.load %arg46[%c0_344, %c0_345, %c0_346] : memref<1x16x128xf32, #tpu.memory_space<vmem>>, vector<1x16x128xf32>
    %430 = vector.shape_cast %429 : vector<1x16x128xf32> to vector<16x128xf32>
    %431 = vector.shape_cast %428 : vector<16x128xf32> to vector<1x16x128xf32>
    tpu.vector_store %arg46[%c0_344, %c0_345, %c0_346], %431 {strides = array<i32>} : memref<1x16x128xf32, #tpu.memory_space<vmem>>, vector<1x16x128xf32>,
    return
  }
  func.func @transform_0(%arg0: i32) -> (i32, i32, i32) {
    %c0_i32 = arith.constant 0 : i32
    %c0_i32_0 = arith.constant 0 : i32
    %c0_i32_1 = arith.constant 0 : i32
    return %arg0, %c0_i32, %c0_i32_0 : i32, i32, i32
  }
  func.func @transform_1(%arg0: i32) -> (i32, i32) {
    %c0_i32 = arith.constant 0 : i32
    %c0_i32_0 = arith.constant 0 : i32
    %c0_i32_1 = arith.constant 0 : i32
    return %c0_i32, %c0_i32_0 : i32, i32
  }
  func.func @transform_2(%arg0: i32) -> (i32, i32) {
    %c0_i32 = arith.constant 0 : i32
    %c0_i32_0 = arith.constant 0 : i32
    %c0_i32_1 = arith.constant 0 : i32
    return %c0_i32, %c0_i32_0 : i32, i32
  }
  func.func @transform_3(%arg0: i32) -> (i32, i32, i32) {
    %c0_i32 = arith.constant 0 : i32
    %c0_i32_0 = arith.constant 0 : i32
    %c0_i32_1 = arith.constant 0 : i32
    %c0_i32_2 = arith.constant 0 : i32
    return %c0_i32, %c0_i32_0, %c0_i32_1 : i32, i32, i32
  }
  func.func @transform_4(%arg0: i32) -> (i32, i32) {
    %c0_i32 = arith.constant 0 : i32
    %c0_i32_0 = arith.constant 0 : i32
    %c0_i32_1 = arith.constant 0 : i32
    return %c0_i32, %c0_i32_0 : i32, i32
  }
  func.func @transform_5(%arg0: i32) -> (i32, i32) {
    %c0_i32 = arith.constant 0 : i32
    %c0_i32_0 = arith.constant 0 : i32
    %c0_i32_1 = arith.constant 0 : i32
    return %c0_i32, %c0_i32_0 : i32, i32
  }
  func.func @transform_6(%arg0: i32) -> (i32, i32) {
    %c0_i32 = arith.constant 0 : i32
    %c0_i32_0 = arith.constant 0 : i32
    %c0_i32_1 = arith.constant 0 : i32
    return %c0_i32, %c0_i32_0 : i32, i32
  }
  func.func @transform_7(%arg0: i32) -> (i32, i32) {
    %c0_i32 = arith.constant 0 : i32
    %c0_i32_0 = arith.constant 0 : i32
    %c0_i32_1 = arith.constant 0 : i32
    return %c0_i32, %c0_i32_0 : i32, i32
  }
  func.func @transform_8(%arg0: i32) -> (i32, i32) {
    %c0_i32 = arith.constant 0 : i32
    %c0_i32_0 = arith.constant 0 : i32
    %c0_i32_1 = arith.constant 0 : i32
    return %c0_i32, %c0_i32_0 : i32, i32
  }
  func.func @transform_9(%arg0: i32) -> (i32, i32) {
    %c0_i32 = arith.constant 0 : i32
    %c0_i32_0 = arith.constant 0 : i32
    %c0_i32_1 = arith.constant 0 : i32
    return %c0_i32, %c0_i32_0 : i32, i32
  }
  func.func @transform_10(%arg0: i32) -> (i32, i32) {
    %c0_i32 = arith.constant 0 : i32
    %c0_i32_0 = arith.constant 0 : i32
    %c0_i32_1 = arith.constant 0 : i32
    return %c0_i32, %c0_i32_0 : i32, i32
  }
  func.func @transform_11(%arg0: i32) -> (i32, i32, i32) {
    %c0_i32 = arith.constant 0 : i32
    %c0_i32_0 = arith.constant 0 : i32
    %c0_i32_1 = arith.constant 0 : i32
    %c0_i32_2 = arith.constant 0 : i32
    return %c0_i32, %c0_i32_0, %c0_i32_1 : i32, i32, i32
  }
  func.func @transform_12(%arg0: i32) -> (i32, i32) {
    %c0_i32 = arith.constant 0 : i32
    %c0_i32_0 = arith.constant 0 : i32
    %c0_i32_1 = arith.constant 0 : i32
    return %c0_i32, %c0_i32_0 : i32, i32
  }
  func.func @transform_13(%arg0: i32) -> (i32, i32) {
    %c0_i32 = arith.constant 0 : i32
    %c0_i32_0 = arith.constant 0 : i32
    %c0_i32_1 = arith.constant 0 : i32
    return %c0_i32, %c0_i32_0 : i32, i32
  }
  func.func @transform_14(%arg0: i32) -> (i32, i32) {
    %c0_i32 = arith.constant 0 : i32
    %c0_i32_0 = arith.constant 0 : i32
    %c0_i32_1 = arith.constant 0 : i32
    return %c0_i32, %c0_i32_0 : i32, i32
  }
  func.func @transform_15(%arg0: i32) -> (i32, i32) {
    %c0_i32 = arith.constant 0 : i32
    %c0_i32_0 = arith.constant 0 : i32
    %c0_i32_1 = arith.constant 0 : i32
    return %c0_i32, %c0_i32_0 : i32, i32
  }
  func.func @transform_16(%arg0: i32) -> (i32, i32) {
    %c0_i32 = arith.constant 0 : i32
    %c0_i32_0 = arith.constant 0 : i32
    %c0_i32_1 = arith.constant 0 : i32
    return %c0_i32, %c0_i32_0 : i32, i32
  }
  func.func @transform_17(%arg0: i32) -> (i32, i32) {
    %c0_i32 = arith.constant 0 : i32
    %c0_i32_0 = arith.constant 0 : i32
    %c0_i32_1 = arith.constant 0 : i32
    return %c0_i32, %c0_i32_0 : i32, i32
  }
  func.func @transform_18(%arg0: i32) -> (i32, i32) {
    %c0_i32 = arith.constant 0 : i32
    %c0_i32_0 = arith.constant 0 : i32
    %c0_i32_1 = arith.constant 0 : i32
    return %c0_i32, %c0_i32_0 : i32, i32
  }
  func.func @transform_19(%arg0: i32) -> (i32, i32) {
    %c0_i32 = arith.constant 0 : i32
    %c0_i32_0 = arith.constant 0 : i32
    %c0_i32_1 = arith.constant 0 : i32
    return %c0_i32, %c0_i32_0 : i32, i32
  }
  func.func @transform_20(%arg0: i32) -> (i32, i32, i32) {
    %c0_i32 = arith.constant 0 : i32
    %c0_i32_0 = arith.constant 0 : i32
    %c0_i32_1 = arith.constant 0 : i32
    %c0_i32_2 = arith.constant 0 : i32
    return %c0_i32, %c0_i32_0, %c0_i32_1 : i32, i32, i32
  }
  func.func @transform_21(%arg0: i32) -> (i32, i32) {
    %c0_i32 = arith.constant 0 : i32
    %c0_i32_0 = arith.constant 0 : i32
    %c0_i32_1 = arith.constant 0 : i32
    return %c0_i32, %c0_i32_0 : i32, i32
  }
  func.func @transform_22(%arg0: i32) -> (i32, i32) {
    %c0_i32 = arith.constant 0 : i32
    %c0_i32_0 = arith.constant 0 : i32
    %c0_i32_1 = arith.constant 0 : i32
    return %c0_i32, %c0_i32_0 : i32, i32
  }
  func.func @transform_23(%arg0: i32) -> (i32, i32) {
    %c0_i32 = arith.constant 0 : i32
    %c0_i32_0 = arith.constant 0 : i32
    %c0_i32_1 = arith.constant 0 : i32
    return %c0_i32, %c0_i32_0 : i32, i32
  }
  func.func @transform_24(%arg0: i32) -> (i32, i32) {
    %c0_i32 = arith.constant 0 : i32
    %c0_i32_0 = arith.constant 0 : i32
    %c0_i32_1 = arith.constant 0 : i32
    return %c0_i32, %c0_i32_0 : i32, i32
  }
  func.func @transform_25(%arg0: i32) -> (i32, i32) {
    %c0_i32 = arith.constant 0 : i32
    %c0_i32_0 = arith.constant 0 : i32
    %c0_i32_1 = arith.constant 0 : i32
    return %c0_i32, %c0_i32_0 : i32, i32
  }
  func.func @transform_26(%arg0: i32) -> (i32, i32) {
    %c0_i32 = arith.constant 0 : i32
    %c0_i32_0 = arith.constant 0 : i32
    %c0_i32_1 = arith.constant 0 : i32
    return %c0_i32, %c0_i32_0 : i32, i32
  }
  func.func @transform_27(%arg0: i32) -> (i32, i32) {
    %c0_i32 = arith.constant 0 : i32
    %c0_i32_0 = arith.constant 0 : i32
    %c0_i32_1 = arith.constant 0 : i32
    return %c0_i32, %c0_i32_0 : i32, i32
  }
  func.func @transform_28(%arg0: i32) -> (i32, i32, i32) {
    %c0_i32 = arith.constant 0 : i32
    %c0_i32_0 = arith.constant 0 : i32
    %c0_i32_1 = arith.constant 0 : i32
    %c0_i32_2 = arith.constant 0 : i32
    return %c0_i32, %c0_i32_0, %c0_i32_1 : i32, i32, i32
  }
  func.func @transform_29(%arg0: i32) -> (i32, i32) {
    %c0_i32 = arith.constant 0 : i32
    %c0_i32_0 = arith.constant 0 : i32
    %c0_i32_1 = arith.constant 0 : i32
    return %c0_i32, %c0_i32_0 : i32, i32
  }
  func.func @transform_30(%arg0: i32) -> (i32, i32) {
    %c0_i32 = arith.constant 0 : i32
    %c0_i32_0 = arith.constant 0 : i32
    %c0_i32_1 = arith.constant 0 : i32
    return %c0_i32, %c0_i32_0 : i32, i32
  }
  func.func @transform_31(%arg0: i32) -> (i32, i32) {
    %c0_i32 = arith.constant 0 : i32
    %c0_i32_0 = arith.constant 0 : i32
    %c0_i32_1 = arith.constant 0 : i32
    return %c0_i32, %c0_i32_0 : i32, i32
  }
  func.func @transform_32(%arg0: i32) -> (i32, i32) {
    %c0_i32 = arith.constant 0 : i32
    %c0_i32_0 = arith.constant 0 : i32
    %c0_i32_1 = arith.constant 0 : i32
    return %c0_i32, %c0_i32_0 : i32, i32
  }
  func.func @transform_33(%arg0: i32) -> (i32, i32) {
    %c0_i32 = arith.constant 0 : i32
    %c0_i32_0 = arith.constant 0 : i32
    %c0_i32_1 = arith.constant 0 : i32
    return %c0_i32, %c0_i32_0 : i32, i32
  }
  func.func @transform_34(%arg0: i32) -> (i32, i32) {
    %c0_i32 = arith.constant 0 : i32
    %c0_i32_0 = arith.constant 0 : i32
    %c0_i32_1 = arith.constant 0 : i32
    return %c0_i32, %c0_i32_0 : i32, i32
  }
  func.func @transform_35(%arg0: i32) -> (i32, i32) {
    %c0_i32 = arith.constant 0 : i32
    %c0_i32_0 = arith.constant 0 : i32
    %c0_i32_1 = arith.constant 0 : i32
    return %c0_i32, %c0_i32_0 : i32, i32
  }
  func.func @transform_36(%arg0: i32) -> (i32, i32) {
    %c0_i32 = arith.constant 0 : i32
    %c0_i32_0 = arith.constant 0 : i32
    %c0_i32_1 = arith.constant 0 : i32
    return %c0_i32, %c0_i32_0 : i32, i32
  }
  func.func @transform_37(%arg0: i32) -> (i32, i32, i32) {
    %c0_i32 = arith.constant 0 : i32
    %c0_i32_0 = arith.constant 0 : i32
    %c0_i32_1 = arith.constant 0 : i32
    %c0_i32_2 = arith.constant 0 : i32
    return %c0_i32, %c0_i32_0, %c0_i32_1 : i32, i32, i32
  }
  func.func @transform_38(%arg0: i32) -> (i32, i32) {
    %c0_i32 = arith.constant 0 : i32
    %c0_i32_0 = arith.constant 0 : i32
    %c0_i32_1 = arith.constant 0 : i32
    return %c0_i32, %c0_i32_0 : i32, i32
  }
  func.func @transform_39(%arg0: i32) -> (i32, i32) {
    %c0_i32 = arith.constant 0 : i32
    %c0_i32_0 = arith.constant 0 : i32
    %c0_i32_1 = arith.constant 0 : i32
    return %c0_i32, %c0_i32_0 : i32, i32
  }
  func.func @transform_40(%arg0: i32) -> (i32, i32) {
    %c0_i32 = arith.constant 0 : i32
    %c0_i32_0 = arith.constant 0 : i32
    %c0_i32_1 = arith.constant 0 : i32
    return %c0_i32, %c0_i32_0 : i32, i32
  }
  func.func @transform_41(%arg0: i32) -> (i32, i32) {
    %c0_i32 = arith.constant 0 : i32
    %c0_i32_0 = arith.constant 0 : i32
    %c0_i32_1 = arith.constant 0 : i32
    return %c0_i32, %c0_i32_0 : i32, i32
  }
  func.func @transform_42(%arg0: i32) -> (i32, i32) {
    %c0_i32 = arith.constant 0 : i32
    %c0_i32_0 = arith.constant 0 : i32
    %c0_i32_1 = arith.constant 0 : i32
    return %c0_i32, %c0_i32_0 : i32, i32
  }
  func.func @transform_43(%arg0: i32) -> (i32, i32) {
    %c0_i32 = arith.constant 0 : i32
    %c0_i32_0 = arith.constant 0 : i32
    %c0_i32_1 = arith.constant 0 : i32
    return %c0_i32, %c0_i32_0 : i32, i32
  }
  func.func @transform_44(%arg0: i32) -> (i32, i32) {
    %c0_i32 = arith.constant 0 : i32
    %c0_i32_0 = arith.constant 0 : i32
    %c0_i32_1 = arith.constant 0 : i32
    return %c0_i32, %c0_i32_0 : i32, i32
  }
  func.func @transform_45(%arg0: i32) -> (i32, i32, i32) {
    %c0_i32 = arith.constant 0 : i32
    %c0_i32_0 = arith.constant 0 : i32
    %c0_i32_1 = arith.constant 0 : i32
    return %arg0, %c0_i32, %c0_i32_0 : i32, i32, i32
  }
}

</mosaic_0001>

<bundles_post_ra>
// kernel: qmobilenetv2_forward.1
= control target key start
LH: loop header
LB: loop body
LE: loop exit
PB: predicated region body
PF: predicated region fallthrough
CT: control target
= control target key end

     0   :  { %s8479_s6 = smov 1   ;;  %s8480_s10 = smov 2   ;;  %s12700_s0 = inlined_call_operand.smem [shape: u32[46], index: -1, kind: input, shape index: {}] }
   0x1   :  { %s8537_s5 = sld [smem:[%s12700_s0]]   ;;  %s8481_s14 = smov 3  }
   0x2   :  { %s8542_s9 = sld [smem:[%s12700_s0 + %s8479_s6]]   ;;  %s8482_s18 = smov 4  }
   0x3   :  { %s8547_s13 = sld [smem:[%s12700_s0 + %s8480_s10]]   ;;  %s8483_s22 = smov 5  }
   0x4   :  { %s8552_s17 = sld [smem:[%s12700_s0 + %s8481_s14]]   ;;  %s8484_s26 = smov 6  }
   0x5   :  { %s8557_s21 = sld [smem:[%s12700_s0 + %s8482_s18]]   ;;  %s8485_s30 = smov 7  }
   0x6   :  { %s8562_s25 = sld [smem:[%s12700_s0 + %s8483_s22]]   ;;  %s8486_s4 = smov 8  }
   0x7   :  { %12835 = sst [smem:[#allocation10_spill]] %s8537_s5  ;;  %s8487_s10 = smov 9  }
   0x8   :  { %12836 = sst [smem:[#allocation11_spill]] %s8542_s9  ;;  %s8488_s15 = smov 10  }
   0x9   :  { %12837 = sst [smem:[#allocation12_spill]] %s8547_s13  ;;  %s8489_s20 = smov 11  }
   0xa   :  { %s8567_s29 = sld [smem:[%s12700_s0 + %s8484_s26]]   ;;  %s8490_s26 = smov 12  }
   0xb   :  { %s8572_s3 = sld [smem:[%s12700_s0 + %s8485_s30]]   ;;  %s8491_s1 = smov 13  }
   0xc   :  { %s8577_s8 = sld [smem:[%s12700_s0 + %s8486_s4]]   ;;  %s8492_s7 = smov 14  }
   0xd   :  { %s8582_s14 = sld [smem:[%s12700_s0 + %s8487_s10]]   ;;  %s8494_s22 = smov 16  }
   0xe   :  { %s8587_s19 = sld [smem:[%s12700_s0 + %s8488_s15]]   ;;  %s8493_s15 = smov 15  }
   0xf   :  { %s8592_s24 = sld [smem:[%s12700_s0 + %s8489_s20]]   ;;  %s8495_s28 = smov 17  }
  0x10   :  { %s8597_s30 = sld [smem:[%s12700_s0 + %s8490_s26]]  }
  0x11   :  { %12838 = sst [smem:[#allocation13_spill]] %s8572_s3 }
  0x12   :  { %12839 = sst [smem:[#allocation14_spill]] %s8577_s8 }
  0x13   :  { %12840 = sst [smem:[#allocation15_spill]] %s8582_s14 }
  0x14   :  { %12841 = sst [smem:[#allocation16_spill]] %s8587_s19 }
  0x15   :  { %12842 = sst [smem:[#allocation17_spill]] %s8592_s24 }
  0x16   :  { %12843 = sst [smem:[#allocation18_spill]] %s8597_s30 }
  0x17   :  { %s8602_s6 = sld [smem:[%s12700_s0 + %s8491_s1]]  }
  0x18   :  { %s8607_s12 = sld [smem:[%s12700_s0 + %s8492_s7]]   ;;  %s8496_s7 = smov 18  }
  0x19   :  { %s8612_s20 = sld [smem:[%s12700_s0 + %s8493_s15]]   ;;  %s8497_s15 = smov 19  }
  0x1a   :  { %s8617_s27 = sld [smem:[%s12700_s0 + %s8494_s22]]   ;;  %s8498_s22 = smov 20  }
  0x1b   :  { %s8622_s4 = sld [smem:[%s12700_s0 + %s8495_s28]]   ;;  %s8499_s28 = smov 21  }
  0x1c   :  { %s8627_s30 = sld [smem:[%s12700_s0 + %s8496_s7]]   ;;  %s8500_s7 = smov 22  }
  0x1d   :  { %12844 = sst [smem:[#allocation19_spill]] %s8602_s6 }
  0x1e   :  { %12845 = sst [smem:[#allocation20_spill]] %s8607_s12 }
  0x1f   :  { %12846 = sst [smem:[#allocation21_spill]] %s8612_s20 }
  0x20   :  { %12847 = sst [smem:[#allocation22_spill]] %s8617_s27 }
  0x21   :  { %12848 = sst [smem:[#allocation23_spill]] %s8622_s4 }
  0x22   :  { %12849 = sst [smem:[#allocation24_spill]] %s8627_s30 }
  0x23   :  { %s8632_s20 = sld [smem:[%s12700_s0 + %s8497_s15]]   ;;  %s8501_s15 = smov 23  }
  0x24   :  { %s8637_s27 = sld [smem:[%s12700_s0 + %s8498_s22]]   ;;  %s8502_s22 = smov 24  }
  0x25   :  { %s8642_s4 = sld [smem:[%s12700_s0 + %s8499_s28]]   ;;  %s8503_s28 = smov 25  }
  0x26   :  { %s8647_s30 = sld [smem:[%s12700_s0 + %s8500_s7]]   ;;  %s8504_s7 = smov 26  }
  0x27   :  { %s8667_s24 = sld [smem:[%s12700_s0 + %s8504_s7]]   ;;  %s8508_s7 = smov 30  }
  0x29   :  { %12850 = sst [smem:[#allocation25_spill]] %s8632_s20 }
  0x2a   :  { %12851 = sst [smem:[#allocation26_spill]] %s8637_s27 }
  0x2b   :  { %12852 = sst [smem:[#allocation27_spill]] %s8642_s4 }
  0x2c   :  { %s8652_s20 = sld [smem:[%s12700_s0 + %s8501_s15]]   ;;  %s8505_s15 = smov 27  }
  0x2d   :  { %s8657_s27 = sld [smem:[%s12700_s0 + %s8502_s22]]   ;;  %s8506_s22 = smov 28  }
  0x2e   :  { %s8662_s4 = sld [smem:[%s12700_s0 + %s8503_s28]]   ;;  %s8507_s28 = smov 29  }
  0x2f   :  { %12855 = sst [smem:[#allocation30_spill]] %s8667_s24 }
  0x30   :  { %s8672_s19 = sld [smem:[%s12700_s0 + %s8505_s15]]   ;;  %s8509_s15 = smov 31  }
  0x31   :  { %s8687_s24 = sld [smem:[%s12700_s0 + %s8508_s7]]   ;;  %s8512_s7 = smov 34  }
  0x33   :  { %12853 = sst [smem:[#allocation28_spill]] %s8657_s27 }
  0x34   :  { %12854 = sst [smem:[#allocation29_spill]] %s8662_s4 }
  0x35   :  { %s8677_s27 = sld [smem:[%s12700_s0 + %s8506_s22]]   ;;  %s8510_s22 = smov 32  }
  0x36   :  { %12856 = sst [smem:[#allocation31_spill]] %s8672_s19 }
  0x37   :  { %s8682_s4 = sld [smem:[%s12700_s0 + %s8507_s28]]   ;;  %s8511_s28 = smov 33  }
  0x38   :  { %12859 = sst [smem:[#allocation34_spill]] %s8687_s24 }
  0x39   :  { %s8692_s19 = sld [smem:[%s12700_s0 + %s8509_s15]]   ;;  %s8513_s15 = smov 35  }
  0x3a   :  { %s8707_s24 = sld [smem:[%s12700_s0 + %s8512_s7]]   ;;  %s8516_s7 = smov 38  }
  0x3b   :  { %12857 = sst [smem:[#allocation32_spill]] %s8677_s27 }
  0x3c   :  { %s8697_s27 = sld [smem:[%s12700_s0 + %s8510_s22]]   ;;  %s8514_s22 = smov 36  }
  0x3d   :  { %12858 = sst [smem:[#allocation33_spill]] %s8682_s4 }
  0x3e   :  { %s8702_s4 = sld [smem:[%s12700_s0 + %s8511_s28]]   ;;  %s8515_s28 = smov 37  }
  0x3f   :  { %12860 = sst [smem:[#allocation35_spill]] %s8692_s19 }
  0x40   :  { %12863 = sst [smem:[#allocation38_spill]] %s8707_s24 }
  0x41   :  { %s8712_s19 = sld [smem:[%s12700_s0 + %s8513_s15]]   ;;  %s8517_s15 = smov 39  }
  0x42   :  { %12861 = sst [smem:[#allocation36_spill]] %s8697_s27 }
  0x43   :  { %s8717_s27 = sld [smem:[%s12700_s0 + %s8514_s22]]   ;;  %s8518_s22 = smov 40  }
  0x44   :  { %12862 = sst [smem:[#allocation37_spill]] %s8702_s4 }
  0x45   :  { %s8722_s4 = sld [smem:[%s12700_s0 + %s8515_s28]]   ;;  %s8519_s28 = smov 41  }
  0x46   :  { %s8727_s24 = sld [smem:[%s12700_s0 + %s8516_s7]]   ;;  %s8520_s7 = smov 42  }
  0x47   :  { %12864 = sst [smem:[#allocation39_spill]] %s8712_s19 }
  0x48   :  { %s8732_s19 = sld [smem:[%s12700_s0 + %s8517_s15]]   ;;  %s8521_s15 = smov 43  }
  0x49   :  { %12865 = sst [smem:[#allocation40_spill]] %s8717_s27 }
  0x4a   :  { %s8737_s27 = sld [smem:[%s12700_s0 + %s8518_s22]]   ;;  %s8522_s22 = smov 44  }
  0x4b   :  { %12866 = sst [smem:[#allocation41_spill]] %s8722_s4 }
  0x4c   :  { %12867 = sst [smem:[#allocation42_spill]] %s8727_s24 }
  0x4d   :  { %s8742_s4 = sld [smem:[%s12700_s0 + %s8519_s28]]   ;;  %s8523_s28 = smov 45  }
  0x4e   :  { %12868 = sst [smem:[#allocation43_spill]] %s8732_s19 }
  0x4f   :  { %s8747_s24 = sld [smem:[%s12700_s0 + %s8520_s7]]  }
  0x50   :  { %12869 = sst [smem:[#allocation44_spill]] %s8737_s27 }
  0x51   :  { %s8752_s19 = sld [smem:[%s12700_s0 + %s8521_s15]]  }
  0x52   :  { %s8757_s27 = sld [smem:[%s12700_s0 + %s8522_s22]]  }
  0x53   :  { %12870 = sst [smem:[#allocation45_spill]] %s8742_s4 }
  0x54   :  { %s8762_s4 = sld [smem:[%s12700_s0 + %s8523_s28]]  }
  0x55   :  { %96 = vsyncpa [#allocation8], 0 }
  0x56   :  { %98 = vsyncpa [#allocation8 + $0x1], 0  ;;  %s8764_s7 = smov 0   ;;  %s8766_s10 = smov 0  }
  0x57   :  { %s8768_s11 = smov 0   ;;  %s8770_s15 = smov 0  }
  0x58 LB: > { %s12871_s13 = sld [smem:[#allocation12_spill]]  ;;  %s8785_s0 = sadd.s32 4294967295, %s8477_s15   ;;  %s8469_s10 = sphi %s8766_s10, %s13235_s10   ;;  %s8465_s7 = sphi %s8764_s7, %s13234_s7   ;;  %s8477_s15 = sphi %s8770_s15, %s13237_s15   ;;  %s8473_s11 = sphi %s8768_s11, %s13236_s11  }
  0x59   : > { %s12872_s12 = sld [smem:[#allocation20_spill]]  ;;  %s7743_s16 = sadd.s32 4294967294, %s8477_s15  }
  0x5a   : > { %s12873_s9 = sld [smem:[#allocation11_spill]]  ;;  %s8789_s18 = sadd.s32 1, %s8477_s15  }
  0x5b   : > { %s12874_s8 = sld [smem:[#allocation14_spill]]  ;;  %s1061_s22 = sadd.s32 1, %s8473_s11 }
  0x5c   : > { %s12875_s6 = sld [smem:[#allocation19_spill]]  ;;  %s1058_s23 = ssub.s32 %s8477_s15, %s8789_s18 }
  0x5d   : > { %s12876_s3 = sld [smem:[#allocation13_spill]]  ;;  %p1071_p0 = scmp.ne.s32.totalorder %s8473_s11, %s8469_s10 }
  0x5e   : > { %p1059_p1 = scmp.eq.s32.totalorder %s1058_s23, 0  ;;  %p1072_p2 = scmp.eq.s32.totalorder %s8785_s0, 1 }
  0x5f   : > { %p1077_p3 = scmp.ne.s32.totalorder %s8469_s10, %s8465_s7  ;;  %p1078_p4 = scmp.eq.s32.totalorder %s7743_s16, 1 }
  0x60   : > { %s8800_s26 = scalar_select %p1059_p1, %s8473_s11, %s1061_s22  }
  0x61   : > { %p8802_p5 = por %p1072_p2, %p1071_p0  ;;  %p8806_p6 = por %p1078_p4, %p1077_p3 }
  0x62   : > { %p7746_p7 = scmp.ge.s32.totalorder %s8477_s15, 1  ;;  %p1236_p8 = scmp.lt.s32.totalorder %s8477_s15, 3 }
  0x64   : > { %p1237_p9 = pnand %p7746_p7, %p1236_p8 }
  0x66   : > { %1240 = sbr.rel (%p1237_p9) target bundleno = 2593 (0xa21), region = 200 }
  0x6b   : > { %v1730_v0 = vld [vmem:[%s8567_s29] sm:$0xff]  ;;  %v1700_v1 = vld [vmem:[%s8562_s25 + $0x10] sm:$0xff]  ;;  %vm1530_vm0 = vcmask 1044480   ;;  %vm1531_vm1 = vcmask 1045504   ;;  %v8524_v3 = vmov 0   ;;  %s12879_s5 = sld [smem:[#allocation10_spill]] }
  0x6c   : > { %v1698_v2 = vld [vmem:[%s8562_s25] sm:$0xff]  ;;  %8347 = vset.pattern.permute.xlu2 %v8524_v3  ;;  %8346 = vset.pattern.permute.xlu1 %v8524_v3  ;;  %v7820_v4 = vld [vmem:[%s12873_s9 + $0x8] sm:$0xf]  ;;  %v8196_v5 = vld [vmem:[%s12873_s9 + $0x8] sm:$0x30]  ;;  %v8525_v7 = vmov 65535  }
  0x6d   : > { %8345 = vset.pattern.permute.xlu0 %v8524_v3  ;;  %2620 = vperm.xlu1 %8346, %v1730_v0   ;;  %v7821_v6 = vor.u32 %v8196_v5, %v7820_v4  ;;  %v1532_v8 = vsel %vm1530_vm0, 4294967295, %v8525_v7  ;;  %p1344_p10 = scmp.lt.s32.totalorder %s8785_s0, 1  ;;  %v8195_v11 = vld [vmem:[%s12873_s9] sm:$0xff]  ;;  %v1731_v12 = vld [vmem:[%s8567_s29 + $0x8] sm:$0xff]  ;;  %v1701_v13 = vld [vmem:[%s8562_s25 + $0x18] sm:$0xff]  ;;  %vm1481_vm2 = vcmask 220160  }
  0x6e   : > { %1984 = vperm.xlu2 %8347, %v1700_v1   ;;  %1974 = vperm.xlu0 %8345, %v1698_v2   ;;  %v1533_v9 = vsel %vm1531_vm1, %v1532_v8, 0  ;;  %v1699_v14 = vld [vmem:[%s8562_s25 + $0x8] sm:$0xff]  ;;  %v1733_v16 = vld [vmem:[%s8567_s29 + $0x18] sm:$0xff]  ;;  %v1702_v17 = vld [vmem:[%s8562_s25 + $0x20] sm:$0xff]  ;;  %vm1658_vm3 = vcmask 261120   ;;  %vm1661_vm4 = vcmask 253952  }
  0x6f   : > { %v1535_v10 = vand.u32 %v7821_v6, %v1533_v9  ;;  %s1345_s2 = scalar_select %p1344_p10, %s8785_s0, 1  ;;  %v1732_v18 = vld [vmem:[%s8567_s29 + $0x10] sm:$0xff]  ;;  %v1734_v19 = vld [vmem:[%s8567_s29 + $0x20] sm:$0xff]  ;;  %v1735_v20 = vld [vmem:[%s8567_s29 + $0x28] sm:$0xff]  ;;  %v8526_v59 = vmov 0.0   ;;  %vm3111_vm5 = vcmask 130048  }
  0x70   : > { %v1703_v21 = vld [vmem:[%s8562_s25 + $0x28] sm:$0xff]  ;;  %v1705_v23 = vld [vmem:[%s8562_s25 + $0x38] sm:$0xff]  ;;  %v1736_v24 = vld [vmem:[%s8567_s29 + $0x30] sm:$0xff]  ;;  %1659 = vst.msk [vmem:[#allocation2] sm:$0xff] %vm1658_vm3, %v8526_v59  ;;  %s12880_s14 = sld [smem:[#allocation15_spill]]  ;;  %vm3281_vm6 = vcmask 785408  }
  0x71   : > { %1543 = vmatpush.bf16.msra.mxu0 %v1535_v10  ;;  %s8178_s16 = sshll.u32 %s1345_s2, 7  ;;  %v1704_v25 = vld [vmem:[%s8562_s25 + $0x30] sm:$0xff]  ;;  %v1706_v26 = vld [vmem:[%s8562_s25 + $0x40] sm:$0xff]  ;;  %v1707_v27 = vld [vmem:[%s8562_s25 + $0x48] sm:$0xff]  ;;  %1660 = vst.msk [vmem:[#allocation2 + $0x8] sm:$0xff] %vm1658_vm3, %v8526_v59  ;;  %s12881_s23 = sld [smem:[#allocation35_spill]] }
  0x72   : > { %s8825_s22 = scalar_lea.vmem %s12879_s5, %s8178_s16  ;;  %v1737_v28 = vld [vmem:[%s8567_s29 + $0x38] sm:$0xff]  ;;  %v1739_v30 = vld [vmem:[%s8567_s29 + $0x48] sm:$0xff]  ;;  %v1708_v31 = vld [vmem:[%s8562_s25 + $0x50] sm:$0xff]  ;;  %1662 = vst.msk [vmem:[#allocation2 + $0x10] sm:$0x1] %vm1661_vm4, %v8526_v59  ;;  %s12882_s2 = sld [smem:[#allocation34_spill]] }
  0x73   : > { %v8179_v15 = vld [vmem:[%s8825_s22] sm:$0xff]  ;;  %v8180_v22 = vld [vmem:[%s8825_s22 + $0x8] sm:$0xff]  ;;  %v8181_v29 = vld [vmem:[%s8825_s22 + $0x10] sm:$0xff]  ;;  %1695 = vst.msk [vmem:[#allocation2 + $0x111] sm:$0xff] %vm1658_vm3, %v8526_v59  ;;  %s12883_s16 = sld [smem:[#allocation44_spill]]  ;;  %vm3284_vm7 = vcmask 778240  }
  0x74   : > { %v1738_v32 = vld [vmem:[%s8567_s29 + $0x40] sm:$0xff]  ;;  %v1740_v33 = vld [vmem:[%s8567_s29 + $0x50] sm:$0xff]  ;;  %v1741_v34 = vld [vmem:[%s8567_s29 + $0x58] sm:$0xff]  ;;  %1696 = vst.msk [vmem:[#allocation2 + $0x119] sm:$0xff] %vm1658_vm3, %v8526_v59  ;;  %s12962_s5 = sld [smem:[#allocation18_spill]]  ;;  %vm4817_vm8 = vcmask 1043456  }
  0x75   : > { %1544 = vmatpush.bf16.msra.mxu0 %v8195_v11  ;;  %2625 = vperm.xlu1 %8346, %v1731_v12   ;;  %v1709_v35 = vld [vmem:[%s8562_s25 + $0x58] sm:$0xff]  ;;  %v1711_v37 = vld [vmem:[%s8562_s25 + $0x68] sm:$0xff]  ;;  %v1742_v38 = vld [vmem:[%s8567_s29 + $0x60] sm:$0xff]  ;;  %1697 = vst.msk [vmem:[#allocation2 + $0x121] sm:$0x1] %vm1661_vm4, %v8526_v59  ;;  %vm4804_vm9 = vcmask 195584  }
  0x76   : > { %1989 = vperm.xlu2 %8347, %v1701_v13   ;;  %1979 = vperm.xlu0 %8345, %v1699_v14   ;;  %v8182_v36 = vld [vmem:[%s8825_s22 + $0x18] sm:$0xff]  ;;  %v1710_v39 = vld [vmem:[%s8562_s25 + $0x60] sm:$0xff]  ;;  %v1712_v40 = vld [vmem:[%s8562_s25 + $0x70] sm:$0xff]  ;;  %4898 = vst [vmem:[#allocation4] sm:$0xff] %v8526_v59  ;;  %vm4969_vm10 = vcmask 130049   ;;  %vm4901_vm11 = vcmask 122880  }
  0x77   : > { %v1713_v41 = vld [vmem:[%s8562_s25 + $0x78] sm:$0xff]  ;;  %v1743_v42 = vld [vmem:[%s8567_s29 + $0x68] sm:$0xff]  ;;  %v8183_v43 = vld [vmem:[%s8825_s22 + $0x20] sm:$0xff]  ;;  %4900 = vst [vmem:[#allocation4 + $0x10] sm:$0x1] %v8526_v59  ;;  %vm5561_vm12 = vcmask 1041408  }
  0x78   : > { %7822 = vmatmul.msk.bf16.vlgmr.msra.gmra.mxu0 %vm1481_vm2, %v8179_v15  ;;  %v1745_v44 = vld [vmem:[%s8567_s29 + $0x78] sm:$0xff]  ;;  %v1714_v45 = vld [vmem:[%s8562_s25 + $0x80] sm:$0xff]  ;;  %v1744_v46 = vld [vmem:[%s8567_s29 + $0x70] sm:$0xff]  ;;  %4987 = vst [vmem:[#allocation4 + $0x90] sm:$0xfe] %v8526_v59  ;;  %vm4919_vm13 = vcmask 1040384  }
  0x79   : > { %v1746_v47 = vld [vmem:[%s8567_s29 + $0x80] sm:$0xff]  ;;  %v1747_v48 = vld [vmem:[%s8567_s29 + $0x88] sm:$0xff]  ;;  %v1717_v51 = vld [vmem:[%s8562_s25 + $0x98] sm:$0xff]  ;;  %4989 = vst [vmem:[#allocation4 + $0xa0] sm:$0x3] %v8526_v59  ;;  %vm5339_vm14 = vcmask 1046528  }
  0x7a   : > { %v1715_v49 = vld [vmem:[%s8562_s25 + $0x88] sm:$0xff]  ;;  %v1748_v52 = vld [vmem:[%s8567_s29 + $0x90] sm:$0xff]  ;;  %v1718_v54 = vld [vmem:[%s8562_s25 + $0xa0] sm:$0xff]  ;;  %6016 = vst [vmem:[#allocation5] sm:$0xff] %v8526_v59  ;;  %vm4990_vm15 = vcmask 123904   ;;  %vm7086_vm4 = vcmask 523269  }
  0x7b   : > { %v8184_v50 = vld [vmem:[%s8825_s22 + $0x28] sm:$0xff]  ;;  %v1716_v53 = vld [vmem:[%s8562_s25 + $0x90] sm:$0xff]  ;;  %v1749_v56 = vld [vmem:[%s8567_s29 + $0x98] sm:$0xff]  ;;  %6018 = vst [vmem:[#allocation5 + $0x10] sm:$0x1] %v8526_v59 }
  0x7c   : > { %v1719_v55 = vld [vmem:[%s8562_s25 + $0xa8] sm:$0xff]  ;;  %v8185_v57 = vld [vmem:[%s8825_s22 + $0x30] sm:$0xff]  ;;  %v1750_v61 = vld [vmem:[%s8567_s29 + $0xa0] sm:$0xff]  ;;  %6102 = vst [vmem:[#allocation5 + $0x90] sm:$0xfe] %v8526_v59 }
  0x7d   : > { %2635 = vperm.xlu1 %8346, %v1733_v16   ;;  %v1751_v58 = vld [vmem:[%s8567_s29 + $0xa8] sm:$0xff]  ;;  %v1720_v60 = vld [vmem:[%s8562_s25 + $0xb0] sm:$0xff]  ;;  %v1753_v63 = vld [vmem:[%s8567_s29 + $0xb8] sm:$0xff]  ;;  %6104 = vst [vmem:[#allocation5 + $0xa0] sm:$0x3] %v8526_v59 }
  0x7e   : > { %1994 = vperm.xlu2 %8347, %v1702_v17   ;;  %2630 = vperm.xlu0 %8345, %v1732_v18   ;;  %v1752_v62 = vld [vmem:[%s8567_s29 + $0xb0] sm:$0xff]  ;;  %v1721_v0 = vld [vmem:[%s8562_s25 + $0xb8] sm:$0xff]  ;;  %7066 = vst [vmem:[#allocation6] sm:$0x1f] %v8526_v59  ;;  %v1723_v2 = vld [vmem:[%s8562_s25 + $0xc8] sm:$0xff] }
  0x7f   : > { %v8186_v1 = vld [vmem:[%s8825_s22 + $0x38] sm:$0xff]  ;;  %7092 = vst [vmem:[#allocation6 + $0x20] sm:$0xe0] %v8526_v59  ;;  %v1754_v3 = vld [vmem:[%s8567_s29 + $0xc0] sm:$0xff]  ;;  %v1724_v6 = vld [vmem:[%s8562_s25 + $0xd0] sm:$0xff] }
  0x80   : > { %v1722_v4 = vld [vmem:[%s8562_s25 + $0xc0] sm:$0xff]  ;;  %7094 = vst [vmem:[#allocation6 + $0x30] sm:$0x3] %v8526_v59  ;;  %v1725_v7 = vld [vmem:[%s8562_s25 + $0xd8] sm:$0xff]  ;;  %v1755_v8 = vld [vmem:[%s8567_s29 + $0xc8] sm:$0xff] }
  0x81   : > { %v8894_v5 = vld [vmem:[%s12871_s13] ss:$0 sm:$0xff]  ;;  %v1757_v13 = vld [vmem:[%s8567_s29 + $0xd8] sm:$0xff]  ;;  %v1756_v15 = vld [vmem:[%s8567_s29 + $0xd0] sm:$0xff] }
  0x82   : > { %v8187_v9 = vld [vmem:[%s8825_s22 + $0x40] sm:$0xff] }
  0x83   : > { %v1726_v14 = vld [vmem:[%s8562_s25 + $0xe0] sm:$0xff] }
  0x84   : > { %v2164_v59 = vld [vmem:[#allocation2 + $0x1] sm:$0xff] }
  0x85   : > { %2640 = vperm.xlu1 %8346, %v1734_v19   ;;  %v1758_v19 = vld [vmem:[%s8567_s29 + $0xe0] sm:$0xff] }
  0x86   : > { %2645 = vperm.xlu2 %8347, %v1735_v20   ;;  %1999 = vperm.xlu0 %8345, %v1703_v21   ;;  %v1759_v20 = vld [vmem:[%s8567_s29 + $0xe8] sm:$0xff] }
  0x87   : > { %v1727_v21 = vld [vmem:[%s8562_s25 + $0xe8] sm:$0xff] }
  0x88   : > { %7823 = vmatmul.msk.bf16.gmra.mxu0 %vm1481_vm2, %v8180_v22  ;;  %v8188_v22 = vld [vmem:[%s8825_s22 + $0x48] sm:$0xff] }
  0x8d   : > { %2009 = vperm.xlu1 %8346, %v1705_v23  }
  0x8e   : > { %2650 = vperm.xlu2 %8347, %v1736_v24   ;;  %2004 = vperm.xlu0 %8345, %v1704_v25   ;;  %v8198_v25 = vld [vmem:[%s12876_s3 + $0x8] sm:$0xff] }
  0x8f   : > { %3000 = vmatpush.bf16.msra.mxu1 %v8198_v25 }
  0x95   : > { %2014 = vperm.xlu1 %8346, %v1706_v26  }
  0x96   : > { %2019 = vperm.xlu2 %8347, %v1707_v27   ;;  %2655 = vperm.xlu0 %8345, %v1737_v28   ;;  %v1729_v27 = vld [vmem:[%s8562_s25 + $0xf8] sm:$0xff]  ;;  %v1760_v28 = vld [vmem:[%s8567_s29 + $0xf0] sm:$0xff] }
  0x98   : > { %7824 = vmatmul.msk.bf16.gmra.mxu0 %vm1481_vm2, %v8181_v29  ;;  %v1728_v29 = vld [vmem:[%s8562_s25 + $0xf0] sm:$0xff] }
  0x9d   : > { %2665 = vperm.xlu1 %8346, %v1739_v30   ;;  %v8197_v30 = vld [vmem:[%s12876_s3] sm:$0xff]  ;;  %s12906_s3 = sld [smem:[#allocation17_spill]] }
  0x9e   : > { %2024 = vperm.xlu2 %8347, %v1708_v31   ;;  %2660 = vperm.xlu0 %8345, %v1738_v32  }
  0x9f   : > { %3001 = vmatpush.bf16.msra.mxu1 %v8197_v30 }
  0xa5   : > { %2670 = vperm.xlu1 %8346, %v1740_v33  }
  0xa6   : > { %2675 = vperm.xlu2 %8347, %v1741_v34   ;;  %2029 = vperm.xlu0 %8345, %v1709_v35   ;;  %v1762_v34 = vld [vmem:[#allocation2] sm:$0xff] }
  0xa7   : > { %v8922_v35 = vld [vmem:[%s8552_s17] ss:$0 sm:$0xff] }
  0xa8   : > { %7825 = vmatmul.msk.bf16.gmra.mxu0 %vm1481_vm2, %v8182_v36  ;;  %v8925_v36 = vld [vmem:[%s8552_s17 + $0x3] ss:$0 sm:$0xff] }
  0xad   : > { %2039 = vperm.xlu1 %8346, %v1711_v37  }
  0xae   : > { %2680 = vperm.xlu2 %8347, %v1742_v38   ;;  %2034 = vperm.xlu0 %8345, %v1710_v39   ;;  %v2407_v38 = vld [vmem:[#allocation2 + $0x2] sm:$0xff] }
  0xaf   : > { %v8930_v39 = vld [vmem:[%s8552_s17 + $0x2] ss:$0 sm:$0xff] }
  0xb5   : > { %2044 = vperm.xlu1 %8346, %v1712_v40   ;;  %v8933_v40 = vld [vmem:[%s8552_s17 + $0x5] ss:$0 sm:$0xff] }
  0xb6   : > { %2049 = vperm.xlu2 %8347, %v1713_v41   ;;  %2685 = vperm.xlu0 %8345, %v1743_v42   ;;  %v3335_v41 = vld [vmem:[%s12875_s6 + $0x70] sm:$0xff]  ;;  %v3336_v42 = vld [vmem:[%s12875_s6 + $0x78] sm:$0xff] }
  0xb8   : > { %7826 = vmatmul.msk.bf16.gmra.mxu0 %vm1481_vm2, %v8183_v43  ;;  %v8939_v43 = vld [vmem:[%s8552_s17 + $0x6] ss:$0 sm:$0xff] }
  0xbd   : > { %2695 = vperm.xlu1 %8346, %v1745_v44   ;;  %v1761_v44 = vld [vmem:[%s8567_s29 + $0xf8] sm:$0xff] }
  0xbe   : > { %2054 = vperm.xlu2 %8347, %v1714_v45   ;;  %2690 = vperm.xlu0 %8345, %v1744_v46  }
  0xc5   : > { %2700 = vperm.xlu1 %8346, %v1746_v47   ;;  %v8189_v47 = vld [vmem:[%s8825_s22 + $0x50] sm:$0xff] }
  0xc6   : > { %2705 = vperm.xlu2 %8347, %v1747_v48   ;;  %2059 = vperm.xlu0 %8345, %v1715_v49   ;;  %v1763_v48 = vld [vmem:[#allocation2 + $0x8] sm:$0xff] }
  0xc8   : > { %7827 = vmatmul.msk.bf16.gmra.mxu0 %vm1481_vm2, %v8184_v50  ;;  %v1798_v50 = vmul.f32 %v8922_v35, %v1762_v34 }
  0xcd   : > { %2069 = vperm.xlu1 %8346, %v1717_v51  }
  0xce   : > { %2710 = vperm.xlu2 %8347, %v1748_v52   ;;  %2064 = vperm.xlu0 %8345, %v1716_v53   ;;  %v8953_v53 = vld [vmem:[%s8552_s17 + $0x1] ss:$0 sm:$0xff] }
  0xd5   : > { %2074 = vperm.xlu1 %8346, %v1718_v54   ;;  %v8956_v54 = vld [vmem:[%s8552_s17 + $0x4] ss:$0 sm:$0xff] }
  0xd6   : > { %2079 = vperm.xlu2 %8347, %v1719_v55   ;;  %2715 = vperm.xlu0 %8345, %v1749_v56   ;;  %v2444_v55 = vmul.f32 %v8930_v39, %v2407_v38 }
  0xd8   : > { %7828 = vmatmul.msk.bf16.gmra.mxu0 %vm1481_vm2, %v8185_v57 }
  0xdd   : > { %2725 = vperm.xlu1 %8346, %v1751_v58  }
  0xde   : > { %2084 = vperm.xlu2 %8347, %v1720_v60   ;;  %2720 = vperm.xlu0 %8345, %v1750_v61  }
  0xe0   : > { %v1975_v56 = vpop.permute.xlu0 %1974 }
  0xe5   : > { %2730 = vperm.xlu1 %8346, %v1752_v62   ;;  %v8967_v62 = vld [vmem:[%s8552_s17 + $0x8] ss:$0 sm:$0xff] }
  0xe6   : > { %2735 = vperm.xlu2 %8347, %v1753_v63   ;;  %2089 = vperm.xlu0 %8345, %v1721_v0   ;;  %v1799_v63 = vmul.f32 %v8922_v35, %v1763_v48 }
  0xe8   : > { %7829 = vmatmul.msk.bf16.gmra.mxu0 %vm1481_vm2, %v8186_v1  ;;  %v1980_v38 = vpop.permute.xlu0 %1979 }
  0xed   : > { %2099 = vperm.xlu1 %8346, %v1723_v2  }
  0xee   : > { %2740 = vperm.xlu2 %8347, %v1754_v3   ;;  %2094 = vperm.xlu0 %8345, %v1722_v4   ;;  %v8974_v3 = vld [vmem:[%s8552_s17 + $0x7] ss:$0 sm:$0xff] }
  0xf5   : > { %v1546_v10 = vpop.f32.mrf.mxu0  ;;  %2104 = vperm.xlu1 %8346, %v1724_v6  }
  0xf6   : > { %v1547_v11 = vadd.f32 %v8894_v5, %v1546_v10  ;;  %2109 = vperm.xlu2 %8347, %v1725_v7   ;;  %2745 = vperm.xlu0 %8345, %v1755_v8   ;;  %v2201_v7 = vmul.f32 %v8953_v53, %v2164_v59  ;;  %v3368_v10 = vld [vmem:[%s12872_s12 + $0x78] sm:$0xff]  ;;  %v3334_v59 = vld [vmem:[%s12875_s6 + $0x68] sm:$0xff] }
  0xf8   : > { %v1626_v12 = vmax.f32 %v1547_v11, 0.0  ;;  %7830 = vmatmul.msk.bf16.gmra.mxu0 %vm1481_vm2, %v8187_v9 }
  0xfa   : > { %1663 = vst.msk [vmem:[#allocation2 + $0x11] sm:$0xff] %vm1658_vm3, %v1626_v12 }
  0xfd   : > { %v1548_v16 = vpop.f32.mrf.mxu0  ;;  %2755 = vperm.xlu1 %8346, %v1757_v13   ;;  %v2165_v13 = vld [vmem:[#allocation2 + $0x9] sm:$0xff] }
  0xfe   : > { %v1549_v17 = vadd.f32 %v8894_v5, %v1548_v16  ;;  %2114 = vperm.xlu2 %8347, %v1726_v14   ;;  %2750 = vperm.xlu0 %8345, %v1756_v15  }
 0x100   : > { %v1627_v18 = vmax.f32 %v1549_v17, 0.0  ;;  %v2621_v17 = vpop.permute.xlu1 %2620 }
 0x101   : > { %v8927_v37 = vld [vmem:[#allocation2 + $0x10] sm:$0xff] }
 0x102   : > { %1664 = vst.msk [vmem:[#allocation2 + $0x19] sm:$0xff] %vm1658_vm3, %v1627_v18  ;;  %v1837_v51 = vmul.f32 %v8925_v36, %v8927_v37  ;;  %v8962_v60 = vld [vmem:[#allocation2 + $0x11] sm:$0xff]  ;;  %v3333_v18 = vld [vmem:[%s12875_s6 + $0x60] sm:$0xff] }
 0x103   : > { %v2240_v8 = vmul.f32 %v8956_v54, %v8962_v60  ;;  %v2408_v30 = vld [vmem:[#allocation2 + $0xa] sm:$0xff] }
 0x104   : > { %v1869_v2 = vadd.f32 %v1837_v51, %v1798_v50 }
 0x105   : > { %v1551_v23 = vpop.f32.mrf.mxu0  ;;  %2760 = vperm.xlu1 %8346, %v1758_v19   ;;  %v3367_v19 = vld [vmem:[%s12872_s12 + $0x70] sm:$0xff] }
 0x106   : > { %v1552_v24 = vadd.f32 %v8894_v5, %v1551_v23  ;;  %2765 = vperm.xlu2 %8347, %v1759_v20   ;;  %2119 = vperm.xlu0 %8345, %v1727_v21  }
 0x108   : > { %v1628_v26 = vmax.f32 %v1552_v24, 0.0  ;;  %7831 = vmatmul.msk.bf16.gmra.mxu0 %vm1481_vm2, %v8188_v22 }
 0x109   : > { %v8944_v46 = vld [vmem:[#allocation2 + $0x12] sm:$0xff] }
 0x10a   : > { %1665 = vst.msk [vmem:[#allocation2 + $0x21] sm:$0xff] %vm1658_vm3, %v1628_v26  ;;  %v8947_v49 = vld [vmem:[#allocation2 + $0x18] sm:$0xff]  ;;  %v2483_v61 = vmul.f32 %v8933_v40, %v8944_v46 }
 0x10b   : > { %v1838_v0 = vmul.f32 %v8925_v36, %v8947_v49  ;;  %v8989_v14 = vld [vmem:[#allocation2 + $0x19] sm:$0xff] }
 0x10c   : > { %v2515_v15 = vadd.f32 %v2483_v61, %v2444_v55 }
 0x10d   : > { %v1553_v31 = vpop.f32.mrf.mxu0  ;;  %2129 = vperm.xlu1 %8346, %v1729_v27   ;;  %v1870_v20 = vadd.f32 %v1838_v0, %v1799_v63  ;;  %v2202_v27 = vmul.f32 %v8953_v53, %v2165_v13  ;;  %v8190_v0 = vld [vmem:[%s8825_s22 + $0x58] sm:$0xff]  ;;  %v1800_v13 = vmul.f32 %v8922_v35, %v8927_v37 }
 0x10e   : > { %v1554_v32 = vadd.f32 %v8894_v5, %v1553_v31  ;;  %2770 = vperm.xlu2 %8347, %v1760_v28   ;;  %2124 = vperm.xlu0 %8345, %v1728_v29   ;;  %v2241_v28 = vmul.f32 %v8956_v54, %v8989_v14  ;;  %v2272_v29 = vadd.f32 %v2240_v8, %v2201_v7  ;;  %v9022_v7 = vld [vmem:[%s8557_s21] ss:$0 sm:$0xff] }
 0x110   : > { %v1629_v33 = vmax.f32 %v1554_v32, 0.0  ;;  %v2273_v50 = vadd.f32 %v2241_v28, %v2202_v27  ;;  %v1801_v28 = vmul.f32 %v8922_v35, %v8947_v49 }
 0x111   : > { %v8942_v45 = vld [vmem:[#allocation2 + $0x20] sm:$0xff] }
 0x112   : > { %1666 = vst.msk [vmem:[#allocation2 + $0x29] sm:$0xff] %vm1658_vm3, %v1629_v33  ;;  %v1908_v58 = vmul.f32 %v8939_v43, %v8942_v45  ;;  %v8978_v6 = vld [vmem:[#allocation2 + $0x21] sm:$0xff]  ;;  %v1839_v8 = vmul.f32 %v8925_v36, %v8942_v45 }
 0x113   : > { %v8995_v21 = vld [vmem:[#allocation2 + $0x1a] sm:$0xff]  ;;  %v2311_v23 = vmul.f32 %v8974_v3, %v8978_v6 }
 0x114   : > { %v1940_v12 = vadd.f32 %v1908_v58, %v1869_v2  ;;  %v2484_v33 = vmul.f32 %v8933_v40, %v8995_v21  ;;  %v3366_v58 = vld [vmem:[%s12872_s12 + $0x68] sm:$0xff] }
 0x115   : > { %v1556_v52 = vpop.f32.mrf.mxu0  ;;  %3667 = vperm.xlu1 %8346, %v3335_v41  }
 0x116   : > { %v1557_v57 = vadd.f32 %v8894_v5, %v1556_v52  ;;  %3672 = vperm.xlu2 %8347, %v3336_v42   ;;  %2775 = vperm.xlu0 %8345, %v1761_v44   ;;  %v2132_v32 = vmul.f32 %v1975_v56, %v1940_v12  ;;  %v2343_v42 = vadd.f32 %v2311_v23, %v2272_v29  ;;  %v3365_v52 = vld [vmem:[%s12872_s12 + $0x60] sm:$0xff] }
 0x117   : > { %v2445_v44 = vmul.f32 %v8930_v39, %v2408_v30  ;;  %v2446_v23 = vmul.f32 %v8930_v39, %v8944_v46  ;;  %v2242_v30 = vmul.f32 %v8956_v54, %v8978_v6 }
 0x118   : > { %v1630_v1 = vmax.f32 %v1557_v57, 0.0  ;;  %7832 = vmatmul.msk.bf16.gmra.mxu0 %vm1481_vm2, %v8189_v47  ;;  %v2375_v55 = vadd.f32 %v2343_v42, %v2132_v32  ;;  %v3332_v32 = vld [vmem:[%s12875_s6 + $0x58] sm:$0xff]  ;;  %v3331_v42 = vld [vmem:[%s12875_s6 + $0x50] sm:$0xff] }
 0x119   : > { %v8976_v4 = vld [vmem:[#allocation2 + $0x28] sm:$0xff]  ;;  %v2516_v56 = vadd.f32 %v2484_v33, %v2445_v44 }
 0x11a   : > { %v8983_v9 = vld [vmem:[#allocation2 + $0x22] sm:$0xff]  ;;  %1667 = vst.msk [vmem:[#allocation2 + $0x31] sm:$0xff] %vm1658_vm3, %v1630_v1  ;;  %v1909_v11 = vmul.f32 %v8939_v43, %v8976_v4 }
 0x11b   : > { %v2554_v16 = vmul.f32 %v8967_v62, %v8983_v9  ;;  %v8997_v22 = vld [vmem:[#allocation2 + $0x29] sm:$0xff] }
 0x11c   : > { %v1941_v26 = vadd.f32 %v1909_v11, %v1870_v20  ;;  %v2312_v34 = vmul.f32 %v8974_v3, %v8997_v22  ;;  %v1840_v20 = vmul.f32 %v8925_v36, %v8976_v4 }
 0x11d   : > { %v2586_v24 = vadd.f32 %v2554_v16, %v2515_v15  ;;  %v1558_v25 = vpop.f32.mrf.mxu0  ;;  %4318 = vperm.xlu1 %8346, %v3368_v10   ;;  %v2626_v10 = vpop.permute.xlu1 %2625  ;;  %v2485_v15 = vmul.f32 %v8933_v40, %v8983_v9 }
 0x11e   : > { %v1559_v31 = vadd.f32 %v8894_v5, %v1558_v25  ;;  %3657 = vperm.xlu2 %8347, %v3333_v18   ;;  %4313 = vperm.xlu0 %8345, %v3367_v19   ;;  %v2133_v48 = vmul.f32 %v1980_v38, %v1941_v26  ;;  %v2344_v61 = vadd.f32 %v2312_v34, %v2273_v50  ;;  %v1985_v16 = vpop.permute.xlu2 %1984 }
 0x11f   : > { %v2778_v47 = vmul.f32 %v2621_v17, %v2586_v24  ;;  %v1871_v26 = vadd.f32 %v1839_v8, %v1800_v13  ;;  %v1872_v44 = vadd.f32 %v1840_v20, %v1801_v28  ;;  %v2631_v8 = vpop.permute.xlu0 %2630 }
 0x120   : > { %v1631_v41 = vmax.f32 %v1559_v31, 0.0  ;;  %v2376_v12 = vadd.f32 %v2344_v61, %v2133_v48  ;;  %v2517_v31 = vadd.f32 %v2485_v15, %v2446_v23 }
 0x121   : > { %v9010_v51 = vld [vmem:[#allocation2 + $0x2a] sm:$0xff]  ;;  %v2810_v2 = vadd.f32 %v2778_v47, %v2375_v55  ;;  %v2203_v47 = vmul.f32 %v8953_v53, %v8962_v60 }
 0x122   : > { %1668 = vst.msk [vmem:[#allocation2 + $0x39] sm:$0xff] %vm1658_vm3, %v1631_v41  ;;  %v2555_v57 = vmul.f32 %v8967_v62, %v9010_v51  ;;  %v9018_v63 = vld [vmem:[#allocation2 + $0x30] sm:$0xff] }
 0x123   : > { %v1910_v19 = vmul.f32 %v8939_v43, %v9018_v63  ;;  %v2846_v25 = vadd.f32 %v9022_v7, %v2810_v2  ;;  %v9043_v29 = vld [vmem:[#allocation2 + $0x31] sm:$0xff]  ;;  %v2274_v61 = vadd.f32 %v2242_v30, %v2203_v47 }
 0x124   : > { %v2587_v1 = vadd.f32 %v2555_v57, %v2516_v56  ;;  %v3363_v41 = vld [vmem:[%s12872_s12 + $0x50] sm:$0xff]  ;;  %v2313_v55 = vmul.f32 %v8974_v3, %v9043_v29 }
 0x125   : > { %v1561_v11 = vpop.f32.mrf.mxu0  ;;  %4303 = vperm.xlu1 %8346, %v3365_v52   ;;  %v1942_v38 = vadd.f32 %v1910_v19, %v1871_v26  ;;  %v2878_v48 = vmax.f32 %v2846_v25, 0.0  ;;  %v3330_v25 = vld [vmem:[%s12875_s6 + $0x48] sm:$0xff]  ;;  %v3364_v26 = vld [vmem:[%s12872_s12 + $0x58] sm:$0xff] }
 0x126   : > { %v1562_v17 = vadd.f32 %v8894_v5, %v1561_v11  ;;  %4308 = vperm.xlu2 %8347, %v3366_v58   ;;  %3662 = vperm.xlu0 %8345, %v3334_v59   ;;  %v2779_v18 = vmul.f32 %v2626_v10, %v2587_v1  ;;  %v2243_v59 = vmul.f32 %v8956_v54, %v8997_v22 }
 0x127   : > { %v2134_v2 = vmul.f32 %v1985_v16, %v1942_v38  ;;  %v2204_v10 = vmul.f32 %v8953_v53, %v8989_v14  ;;  %v2345_v15 = vadd.f32 %v2313_v55, %v2274_v61  ;;  %v3329_v14 = vld [vmem:[%s12875_s6 + $0x40] sm:$0xff]  ;;  %v2448_v55 = vmul.f32 %v8930_v39, %v8983_v9 }
 0x128   : > { %v1632_v37 = vmax.f32 %v1562_v17, 0.0  ;;  %7833 = vmatmul.msk.bf16.gmra.mxu0 %vm1481_vm2, %v8190_v0  ;;  %v2811_v24 = vadd.f32 %v2779_v18, %v2376_v12  ;;  %v2486_v0 = vmul.f32 %v8933_v40, %v9010_v51  ;;  %v1990_v12 = vpop.permute.xlu2 %1989  ;;  %v2447_v17 = vmul.f32 %v8930_v39, %v8995_v21 }
 0x129   : > { %v9039_v27 = vld [vmem:[#allocation2 + $0x38] sm:$0xff]  ;;  %v2275_v19 = vadd.f32 %v2243_v59, %v2204_v10  ;;  %v2377_v23 = vadd.f32 %v2345_v15, %v2134_v2  ;;  %v1803_v61 = vmul.f32 %v8922_v35, %v8976_v4  ;;  %v3362_v2 = vld [vmem:[%s12872_s12 + $0x48] sm:$0xff]  ;;  %v3361_v15 = vld [vmem:[%s12872_s12 + $0x40] sm:$0xff] }
 0x12a   : > { %v9047_v46 = vld [vmem:[#allocation2 + $0x32] sm:$0xff]  ;;  %1669 = vst.msk [vmem:[#allocation2 + $0x41] sm:$0xff] %vm1658_vm3, %v1632_v37  ;;  %v2847_v33 = vadd.f32 %v9022_v7, %v2811_v24  ;;  %v1911_v34 = vmul.f32 %v8939_v43, %v9039_v27  ;;  %v2518_v37 = vadd.f32 %v2486_v0, %v2447_v17 }
 0x12b   : > { %v2556_v49 = vmul.f32 %v8967_v62, %v9047_v46  ;;  %v9060_v52 = vld [vmem:[#allocation2 + $0x39] sm:$0xff] }
 0x12c   : > { %v2879_v50 = vmax.f32 %v2847_v33, 0.0  ;;  %v1943_v58 = vadd.f32 %v1911_v34, %v1872_v44  ;;  %v2314_v11 = vmul.f32 %v8974_v3, %v9060_v52  ;;  %v1841_v33 = vmul.f32 %v8925_v36, %v9018_v63  ;;  %v2636_v34 = vpop.permute.xlu1 %2635 }
 0x12d   : > { %v2588_v56 = vadd.f32 %v2556_v49, %v2517_v31  ;;  %v1563_v57 = vpop.f32.mrf.mxu0  ;;  %3652 = vperm.xlu1 %8346, %v3332_v32   ;;  %v8191_v31 = vld [vmem:[%s8825_s22 + $0x60] sm:$0xff] }
 0x12e   : > { %v1564_v60 = vadd.f32 %v8894_v5, %v1563_v57  ;;  %4293 = vperm.xlu2 %8347, %v3363_v41   ;;  %3647 = vperm.xlu0 %8345, %v3331_v42   ;;  %v2910_v1 = vpack.c.bf16 %v2879_v50, %v2878_v48  ;;  %v2135_v16 = vmul.f32 %v1990_v12, %v1943_v58 }
 0x12f   : > { %v2780_v18 = vmul.f32 %v2631_v8, %v2588_v56  ;;  %v2346_v28 = vadd.f32 %v2314_v11, %v2275_v19  ;;  %v1802_v41 = vmul.f32 %v8922_v35, %v8942_v45  ;;  %v2487_v42 = vmul.f32 %v8933_v40, %v9047_v46 }
 0x130   : > { %v1633_v13 = vmax.f32 %v1564_v60, 0.0  ;;  %7854 = vmatmul.msk.bf16.vlgmr.msra.gmra.mxu1 %vm1658_vm3, %v2910_v1  ;;  %v1842_v50 = vmul.f32 %v8925_v36, %v9039_v27  ;;  %v2244_v60 = vmul.f32 %v8956_v54, %v9043_v29  ;;  %v1995_v12 = vpop.permute.xlu2 %1994 }
 0x131   : > { %v9076_v20 = vld [vmem:[#allocation2 + $0x3a] sm:$0xff]  ;;  %v2812_v32 = vadd.f32 %v2780_v18, %v2377_v23  ;;  %v2378_v49 = vadd.f32 %v2346_v28, %v2135_v16  ;;  %v1873_v58 = vadd.f32 %v1841_v33, %v1802_v41  ;;  %v2519_v1 = vadd.f32 %v2487_v42, %v2448_v55 }
 0x132   : > { %1670 = vst.msk [vmem:[#allocation2 + $0x49] sm:$0xff] %vm1658_vm3, %v1633_v13  ;;  %v2557_v24 = vmul.f32 %v8967_v62, %v9076_v20  ;;  %v9084_v30 = vld [vmem:[#allocation2 + $0x40] sm:$0xff]  ;;  %v3327_v13 = vld [vmem:[%s12875_s6 + $0x30] sm:$0xff]  ;;  %v1874_v17 = vadd.f32 %v1842_v50, %v1803_v61  ;;  %v2205_v18 = vmul.f32 %v8953_v53, %v8978_v6  ;;  %v3328_v61 = vld [vmem:[%s12875_s6 + $0x38] sm:$0xff] }
 0x133   : > { %v1912_v48 = vmul.f32 %v8939_v43, %v9084_v30  ;;  %v2848_v57 = vadd.f32 %v9022_v7, %v2812_v32  ;;  %v9106_v0 = vld [vmem:[#allocation2 + $0x41] sm:$0xff] }
 0x134   : > { %v2589_v21 = vadd.f32 %v2557_v24, %v2518_v37  ;;  %v2315_v23 = vmul.f32 %v8974_v3, %v9106_v0  ;;  %v2276_v28 = vadd.f32 %v2244_v60, %v2205_v18  ;;  %v2641_v33 = vpop.permute.xlu1 %2640 }
 0x135   : > { %v1566_v38 = vpop.f32.mrf.mxu0  ;;  %3637 = vperm.xlu1 %8346, %v3329_v14   ;;  %v1944_v11 = vadd.f32 %v1912_v48, %v1873_v58  ;;  %v2880_v16 = vmax.f32 %v2848_v57, 0.0  ;;  %v3360_v58 = vld [vmem:[%s12872_s12 + $0x38] sm:$0xff] }
 0x136   : > { %v1567_v44 = vadd.f32 %v8894_v5, %v1566_v38  ;;  %3642 = vperm.xlu2 %8347, %v3330_v25   ;;  %4298 = vperm.xlu0 %8345, %v3364_v26   ;;  %v2781_v47 = vmul.f32 %v2636_v34, %v2589_v21  ;;  %v2245_v26 = vmul.f32 %v8956_v54, %v9060_v52 }
 0x137   : > { %v2136_v32 = vmul.f32 %v1995_v12, %v1944_v11  ;;  %v2206_v34 = vmul.f32 %v8953_v53, %v8997_v22  ;;  %v2347_v42 = vadd.f32 %v2315_v23, %v2276_v28  ;;  %v3359_v22 = vld [vmem:[%s12872_s12 + $0x30] sm:$0xff]  ;;  %v2450_v23 = vmul.f32 %v8930_v39, %v9047_v46 }
 0x138   : > { %v1634_v56 = vmax.f32 %v1567_v44, 0.0  ;;  %7834 = vmatmul.msk.bf16.gmra.mxu0 %vm1481_vm2, %v8191_v31  ;;  %v2813_v45 = vadd.f32 %v2781_v47, %v2378_v49  ;;  %v2488_v31 = vmul.f32 %v8933_v40, %v9076_v20  ;;  %v2000_v49 = vpop.permute.xlu0 %1999  ;;  %v2449_v44 = vmul.f32 %v8930_v39, %v9010_v51  ;;  %v2646_v11 = vpop.permute.xlu2 %2645 }
 0x139   : > { %v9102_v59 = vld [vmem:[#allocation2 + $0x48] sm:$0xff]  ;;  %v2277_v50 = vadd.f32 %v2245_v26, %v2206_v34  ;;  %v1805_v28 = vmul.f32 %v8922_v35, %v9039_v27 }
 0x13a   : > { %v9110_v9 = vld [vmem:[#allocation2 + $0x42] sm:$0xff]  ;;  %1671 = vst.msk [vmem:[#allocation2 + $0x51] sm:$0xff] %vm1658_vm3, %v1634_v56  ;;  %v2849_v8 = vadd.f32 %v9022_v7, %v2813_v45  ;;  %v1913_v10 = vmul.f32 %v8939_v43, %v9102_v59  ;;  %v2379_v56 = vadd.f32 %v2347_v42, %v2136_v32  ;;  %v2520_v45 = vadd.f32 %v2488_v31, %v2449_v44 }
 0x13b   : > { %v2558_v4 = vmul.f32 %v8967_v62, %v9110_v9  ;;  %v9123_v14 = vld [vmem:[#allocation2 + $0x49] sm:$0xff]  ;;  %v3325_v42 = vld [vmem:[%s12875_s6 + $0x20] sm:$0xff] }
 0x13c   : > { %v2881_v19 = vmax.f32 %v2849_v8, 0.0  ;;  %v1945_v25 = vadd.f32 %v1913_v10, %v1874_v17  ;;  %v2316_v38 = vmul.f32 %v8974_v3, %v9123_v14  ;;  %v1843_v10 = vmul.f32 %v8925_v36, %v9084_v30  ;;  %v3326_v32 = vld [vmem:[%s12875_s6 + $0x28] sm:$0xff] }
 0x13d   : > { %v2590_v37 = vadd.f32 %v2558_v4, %v2519_v1  ;;  %v1568_v24 = vpop.f32.mrf.mxu0  ;;  %4288 = vperm.xlu1 %8346, %v3362_v2   ;;  %v8192_v2 = vld [vmem:[%s8825_s22 + $0x68] sm:$0xff] }
 0x13e   : > { %v1569_v6 = vadd.f32 %v8894_v5, %v1568_v24  ;;  %3627 = vperm.xlu2 %8347, %v3327_v13   ;;  %4283 = vperm.xlu0 %8345, %v3361_v15   ;;  %v2911_v21 = vpack.c.bf16 %v2881_v19, %v2880_v16  ;;  %v2137_v48 = vmul.f32 %v2000_v49, %v1945_v25 }
 0x13f   : > { %v2782_v47 = vmul.f32 %v2641_v33, %v2590_v37  ;;  %v2348_v60 = vadd.f32 %v2316_v38, %v2277_v50  ;;  %v1804_v13 = vmul.f32 %v8922_v35, %v9018_v63  ;;  %v2489_v15 = vmul.f32 %v8933_v40, %v9110_v9 }
 0x140   : > { %v1635_v41 = vmax.f32 %v1569_v6, 0.0  ;;  %7855 = vmatmul.msk.bf16.gmra.mxu1 %vm1658_vm3, %v2911_v21  ;;  %v1844_v19 = vmul.f32 %v8925_v36, %v9102_v59  ;;  %v2246_v6 = vmul.f32 %v8956_v54, %v9106_v0  ;;  %v2005_v49 = vpop.permute.xlu0 %2004 }
 0x141   : > { %v9139_v55 = vld [vmem:[#allocation2 + $0x4a] sm:$0xff]  ;;  %v2814_v8 = vadd.f32 %v2782_v47, %v2379_v56  ;;  %v2380_v12 = vadd.f32 %v2348_v60, %v2137_v48  ;;  %v1875_v25 = vadd.f32 %v1843_v10, %v1804_v13  ;;  %v2521_v21 = vadd.f32 %v2489_v15, %v2450_v23  ;;  %v2651_v10 = vpop.permute.xlu2 %2650 }
 0x142   : > { %1672 = vst.msk [vmem:[#allocation2 + $0x59] sm:$0xff] %vm1658_vm3, %v1635_v41  ;;  %v2559_v57 = vmul.f32 %v8967_v62, %v9139_v55  ;;  %v9147_v1 = vld [vmem:[#allocation2 + $0x50] sm:$0xff]  ;;  %v3357_v41 = vld [vmem:[%s12872_s12 + $0x20] sm:$0xff]  ;;  %v1876_v44 = vadd.f32 %v1844_v19, %v1805_v28  ;;  %v2207_v47 = vmul.f32 %v8953_v53, %v9043_v29  ;;  %v3358_v28 = vld [vmem:[%s12872_s12 + $0x28] sm:$0xff] }
 0x143   : > { %v1914_v16 = vmul.f32 %v8939_v43, %v9147_v1  ;;  %v2850_v24 = vadd.f32 %v9022_v7, %v2814_v8  ;;  %v9169_v31 = vld [vmem:[#allocation2 + $0x51] sm:$0xff] }
 0x144   : > { %v2591_v51 = vadd.f32 %v2559_v57, %v2520_v45  ;;  %v2317_v56 = vmul.f32 %v8974_v3, %v9169_v31  ;;  %v2278_v60 = vadd.f32 %v2246_v6, %v2207_v47 }
 0x145   : > { %v1571_v4 = vpop.f32.mrf.mxu0  ;;  %4273 = vperm.xlu1 %8346, %v3359_v22   ;;  %v1946_v38 = vadd.f32 %v1914_v16, %v1875_v25  ;;  %v2882_v48 = vmax.f32 %v2850_v24, 0.0  ;;  %v3324_v25 = vld [vmem:[%s12875_s6 + $0x18] sm:$0xff] }
 0x146   : > { %v1572_v17 = vadd.f32 %v8894_v5, %v1571_v4  ;;  %4278 = vperm.xlu2 %8347, %v3360_v58   ;;  %3632 = vperm.xlu0 %8345, %v3328_v61   ;;  %v2783_v18 = vmul.f32 %v2646_v11, %v2591_v51  ;;  %v2247_v61 = vmul.f32 %v8956_v54, %v9123_v14 }
 0x147   : > { %v2138_v8 = vmul.f32 %v2005_v49, %v1946_v38  ;;  %v2208_v11 = vmul.f32 %v8953_v53, %v9060_v52  ;;  %v2349_v15 = vadd.f32 %v2317_v56, %v2278_v60  ;;  %v3323_v52 = vld [vmem:[%s12875_s6 + $0x10] sm:$0xff]  ;;  %v2452_v56 = vmul.f32 %v8930_v39, %v9110_v9 }
 0x148   : > { %v1636_v37 = vmax.f32 %v1572_v17, 0.0  ;;  %7835 = vmatmul.msk.bf16.gmra.mxu0 %vm1481_vm2, %v8192_v2  ;;  %v2815_v63 = vadd.f32 %v2783_v18, %v2380_v12  ;;  %v2490_v2 = vmul.f32 %v8933_v40, %v9139_v55  ;;  %v2010_v12 = vpop.permute.xlu1 %2009  ;;  %v2451_v17 = vmul.f32 %v8930_v39, %v9076_v20  ;;  %v2656_v38 = vpop.permute.xlu0 %2655 }
 0x149   : > { %v9165_v26 = vld [vmem:[#allocation2 + $0x58] sm:$0xff]  ;;  %v2279_v19 = vadd.f32 %v2247_v61, %v2208_v11  ;;  %v1807_v60 = vmul.f32 %v8922_v35, %v9102_v59 }
 0x14a   : > { %v9173_v46 = vld [vmem:[#allocation2 + $0x52] sm:$0xff]  ;;  %1673 = vst.msk [vmem:[#allocation2 + $0x61] sm:$0xff] %vm1658_vm3, %v1636_v37  ;;  %v2851_v33 = vadd.f32 %v9022_v7, %v2815_v63  ;;  %v1915_v34 = vmul.f32 %v8939_v43, %v9165_v26  ;;  %v2381_v37 = vadd.f32 %v2349_v15, %v2138_v8  ;;  %v2522_v63 = vadd.f32 %v2490_v2, %v2451_v17 }
 0x14b   : > { %v2560_v27 = vmul.f32 %v8967_v62, %v9173_v46  ;;  %v9186_v22 = vld [vmem:[#allocation2 + $0x59] sm:$0xff]  ;;  %v3355_v15 = vld [vmem:[%s12872_s12 + $0x10] sm:$0xff] }
 0x14c   : > { %v2883_v50 = vmax.f32 %v2851_v33, 0.0  ;;  %v1947_v58 = vadd.f32 %v1915_v34, %v1876_v44  ;;  %v2318_v4 = vmul.f32 %v8974_v3, %v9186_v22  ;;  %v1845_v34 = vmul.f32 %v8925_v36, %v9147_v1  ;;  %v3356_v8 = vld [vmem:[%s12872_s12 + $0x18] sm:$0xff] }
 0x14d   : > { %v2592_v45 = vadd.f32 %v2560_v27, %v2521_v21  ;;  %v1573_v57 = vpop.f32.mrf.mxu0  ;;  %3622 = vperm.xlu1 %8346, %v3326_v32   ;;  %v8193_v32 = vld [vmem:[%s8825_s22 + $0x70] sm:$0xff] }
 0x14e   : > { %v1574_v29 = vadd.f32 %v8894_v5, %v1573_v57  ;;  %4263 = vperm.xlu2 %8347, %v3357_v41   ;;  %3617 = vperm.xlu0 %8345, %v3325_v42   ;;  %v2912_v51 = vpack.c.bf16 %v2883_v50, %v2882_v48  ;;  %v2139_v16 = vmul.f32 %v2010_v12, %v1947_v58 }
 0x14f   : > { %v2784_v18 = vmul.f32 %v2651_v10, %v2592_v45  ;;  %v2350_v6 = vadd.f32 %v2318_v4, %v2279_v19  ;;  %v1806_v41 = vmul.f32 %v8922_v35, %v9084_v30  ;;  %v2491_v42 = vmul.f32 %v8933_v40, %v9173_v46 }
 0x150   : > { %v1637_v13 = vmax.f32 %v1574_v29, 0.0  ;;  %7856 = vmatmul.msk.bf16.gmra.mxu1 %vm1658_vm3, %v2912_v51  ;;  %v1846_v50 = vmul.f32 %v8925_v36, %v9165_v26  ;;  %v2248_v29 = vmul.f32 %v8956_v54, %v9169_v31  ;;  %v2015_v12 = vpop.permute.xlu1 %2014 }
 0x151   : > { %v9202_v23 = vld [vmem:[#allocation2 + $0x5a] sm:$0xff]  ;;  %v2816_v33 = vadd.f32 %v2784_v18, %v2381_v37  ;;  %v2382_v49 = vadd.f32 %v2350_v6, %v2139_v16  ;;  %v1877_v58 = vadd.f32 %v1845_v34, %v1806_v41  ;;  %v2523_v51 = vadd.f32 %v2491_v42, %v2452_v56  ;;  %v2661_v34 = vpop.permute.xlu0 %2660 }
 0x152   : > { %1674 = vst.msk [vmem:[#allocation2 + $0x69] sm:$0xff] %vm1658_vm3, %v1637_v13  ;;  %v2561_v24 = vmul.f32 %v8967_v62, %v9202_v23  ;;  %v9210_v21 = vld [vmem:[#allocation2 + $0x60] sm:$0xff]  ;;  %v1878_v17 = vadd.f32 %v1846_v50, %v1807_v60  ;;  %v2209_v18 = vmul.f32 %v8953_v53, %v9106_v0  ;;  %v3322_v60 = vld [vmem:[%s12875_s6 + $0x8] sm:$0xff] }
 0x153   : > { %v1916_v48 = vmul.f32 %v8939_v43, %v9210_v21  ;;  %v2852_v57 = vadd.f32 %v9022_v7, %v2816_v33  ;;  %v9232_v2 = vld [vmem:[#allocation2 + $0x61] sm:$0xff] }
 0x154   : > { %v2593_v20 = vadd.f32 %v2561_v24, %v2522_v63  ;;  %v3321_v13 = vld [vmem:[%s12875_s6] sm:$0xff]  ;;  %v2319_v37 = vmul.f32 %v8974_v3, %v9232_v2  ;;  %v2280_v6 = vadd.f32 %v2248_v29, %v2209_v18 }
 0x155   : > { %v1576_v27 = vpop.f32.mrf.mxu0  ;;  %3607 = vperm.xlu1 %8346, %v3323_v52   ;;  %v1948_v4 = vadd.f32 %v1916_v48, %v1877_v58  ;;  %v2884_v16 = vmax.f32 %v2852_v57, 0.0  ;;  %v3354_v58 = vld [vmem:[%s12872_s12 + $0x8] sm:$0xff] }
 0x156   : > { %v1577_v44 = vadd.f32 %v8894_v5, %v1576_v27  ;;  %3612 = vperm.xlu2 %8347, %v3324_v25   ;;  %4268 = vperm.xlu0 %8345, %v3358_v28   ;;  %v2785_v47 = vmul.f32 %v2656_v38, %v2593_v20  ;;  %v2249_v28 = vmul.f32 %v8956_v54, %v9186_v22 }
 0x157   : > { %v2140_v33 = vmul.f32 %v2015_v12, %v1948_v4  ;;  %v2210_v38 = vmul.f32 %v8953_v53, %v9123_v14  ;;  %v2351_v42 = vadd.f32 %v2319_v37, %v2280_v6  ;;  %v3353_v14 = vld [vmem:[%s12872_s12] sm:$0xff]  ;;  %v2454_v37 = vmul.f32 %v8930_v39, %v9173_v46 }
 0x158   : > { %v1638_v45 = vmax.f32 %v1577_v44, 0.0  ;;  %7836 = vmatmul.msk.bf16.gmra.mxu0 %vm1481_vm2, %v8193_v32  ;;  %v2817_v30 = vadd.f32 %v2785_v47, %v2382_v49  ;;  %v2492_v32 = vmul.f32 %v8933_v40, %v9202_v23  ;;  %v2020_v49 = vpop.permute.xlu2 %2019  ;;  %v2453_v44 = vmul.f32 %v8930_v39, %v9139_v55  ;;  %v2666_v4 = vpop.permute.xlu1 %2665 }
 0x159   : > { %v9228_v61 = vld [vmem:[#allocation2 + $0x68] sm:$0xff]  ;;  %v2281_v50 = vadd.f32 %v2249_v28, %v2210_v38  ;;  %v1809_v6 = vmul.f32 %v8922_v35, %v9165_v26 }
 0x15a   : > { %v9236_v9 = vld [vmem:[#allocation2 + $0x62] sm:$0xff]  ;;  %1675 = vst.msk [vmem:[#allocation2 + $0x71] sm:$0xff] %vm1658_vm3, %v1638_v45  ;;  %v2853_v10 = vadd.f32 %v9022_v7, %v2817_v30  ;;  %v1917_v11 = vmul.f32 %v8939_v43, %v9228_v61  ;;  %v2383_v45 = vadd.f32 %v2351_v42, %v2140_v33  ;;  %v2524_v30 = vadd.f32 %v2492_v32, %v2453_v44  ;;  %v3352_v33 = vld [vmem:[%s12875_s6 + $0xf8] sm:$0xff]  ;;  %v3351_v42 = vld [vmem:[%s12875_s6 + $0xf0] sm:$0xff] }
 0x15b   : > { %v2562_v59 = vmul.f32 %v8967_v62, %v9236_v9  ;;  %v9249_v52 = vld [vmem:[#allocation2 + $0x69] sm:$0xff] }
 0x15c   : > { %v2885_v19 = vmax.f32 %v2853_v10, 0.0  ;;  %v1949_v25 = vadd.f32 %v1917_v11, %v1878_v17  ;;  %v2320_v27 = vmul.f32 %v8974_v3, %v9249_v52  ;;  %v1847_v11 = vmul.f32 %v8925_v36, %v9210_v21 }
 0x15d   : > { %v2594_v63 = vadd.f32 %v2562_v59, %v2523_v51  ;;  %v1578_v24 = vpop.f32.mrf.mxu0  ;;  %4258 = vperm.xlu1 %8346, %v3356_v8   ;;  %v8194_v8 = vld [vmem:[%s8825_s22 + $0x78] sm:$0xff]  ;;  %s12884_s22 = sld [smem:[#allocation43_spill]] }
 0x15e   : > { %v1579_v0 = vadd.f32 %v8894_v5, %v1578_v24  ;;  %3597 = vperm.xlu2 %8347, %v3321_v13   ;;  %4253 = vperm.xlu0 %8345, %v3355_v15   ;;  %v2913_v20 = vpack.c.bf16 %v2885_v19, %v2884_v16  ;;  %v2141_v48 = vmul.f32 %v2020_v49, %v1949_v25 }
 0x15f   : > { %v2786_v47 = vmul.f32 %v2661_v34, %v2594_v63  ;;  %v2352_v29 = vadd.f32 %v2320_v27, %v2281_v50  ;;  %v1808_v13 = vmul.f32 %v8922_v35, %v9147_v1  ;;  %v2493_v15 = vmul.f32 %v8933_v40, %v9236_v9 }
 0x160   : > { %v1639_v41 = vmax.f32 %v1579_v0, 0.0  ;;  %7857 = vmatmul.msk.bf16.gmra.mxu1 %vm1658_vm3, %v2913_v20  ;;  %v1848_v19 = vmul.f32 %v8925_v36, %v9228_v61  ;;  %v2250_v0 = vmul.f32 %v8956_v54, %v9232_v2  ;;  %v2025_v49 = vpop.permute.xlu2 %2024 }
 0x161   : > { %v9265_v56 = vld [vmem:[#allocation2 + $0x6a] sm:$0xff]  ;;  %v2818_v10 = vadd.f32 %v2786_v47, %v2383_v45  ;;  %v2384_v12 = vadd.f32 %v2352_v29, %v2141_v48  ;;  %v1879_v25 = vadd.f32 %v1847_v11, %v1808_v13  ;;  %v2525_v20 = vadd.f32 %v2493_v15, %v2454_v37  ;;  %v2671_v11 = vpop.permute.xlu1 %2670 }
 0x162   : > { %1676 = vst.msk [vmem:[#allocation2 + $0x79] sm:$0xff] %vm1658_vm3, %v1639_v41  ;;  %v2563_v57 = vmul.f32 %v8967_v62, %v9265_v56  ;;  %v9273_v51 = vld [vmem:[#allocation2 + $0x70] sm:$0xff]  ;;  %v1880_v44 = vadd.f32 %v1848_v19, %v1809_v6  ;;  %v2211_v47 = vmul.f32 %v8953_v53, %v9169_v31 }
 0x163   : > { %v1918_v16 = vmul.f32 %v8939_v43, %v9273_v51  ;;  %v2854_v24 = vadd.f32 %v9022_v7, %v2818_v10  ;;  %v9295_v32 = vld [vmem:[#allocation2 + $0x71] sm:$0xff] }
 0x164   : > { %v2595_v55 = vadd.f32 %v2563_v57, %v2524_v30  ;;  %v3383_v41 = vld [vmem:[%s12872_s12 + $0xf0] sm:$0xff]  ;;  %v2321_v45 = vmul.f32 %v8974_v3, %v9295_v32  ;;  %v2282_v29 = vadd.f32 %v2250_v0, %v2211_v47 }
 0x165   : > { %v1581_v59 = vpop.f32.mrf.mxu0  ;;  %4243 = vperm.xlu1 %8346, %v3353_v14   ;;  %v1950_v27 = vadd.f32 %v1918_v16, %v1879_v25  ;;  %v2886_v48 = vmax.f32 %v2854_v24, 0.0  ;;  %v3350_v24 = vld [vmem:[%s12875_s6 + $0xe8] sm:$0xff]  ;;  %v3384_v25 = vld [vmem:[%s12872_s12 + $0xf8] sm:$0xff] }
 0x166   : > { %v1582_v17 = vadd.f32 %v8894_v5, %v1581_v59  ;;  %4248 = vperm.xlu2 %8347, %v3354_v58   ;;  %3602 = vperm.xlu0 %8345, %v3322_v60   ;;  %v2787_v18 = vmul.f32 %v2666_v4, %v2595_v55  ;;  %v2251_v60 = vmul.f32 %v8956_v54, %v9249_v52 }
 0x167   : > { %v2142_v10 = vmul.f32 %v2025_v49, %v1950_v27  ;;  %v2212_v4 = vmul.f32 %v8953_v53, %v9186_v22  ;;  %v2353_v15 = vadd.f32 %v2321_v45, %v2282_v29  ;;  %v3349_v22 = vld [vmem:[%s12875_s6 + $0xe0] sm:$0xff] }
 0x168   : > { %v1640_v63 = vmax.f32 %v1582_v17, 0.0  ;;  %7837 = vmatmul.msk.bf16.gmra.mxu0 %vm1481_vm2, %v8194_v8  ;;  %v2819_v1 = vadd.f32 %v2787_v18, %v2384_v12  ;;  %v2494_v8 = vmul.f32 %v8933_v40, %v9265_v56  ;;  %v2030_v12 = vpop.permute.xlu0 %2029  ;;  %vm6853_vm2 = vcmask 523264  }
 0x169   : > { %v9291_v28 = vld [vmem:[#allocation2 + $0x78] sm:$0xff]  ;;  %v2283_v16 = vadd.f32 %v2251_v60, %v2212_v4  ;;  %v2385_v37 = vadd.f32 %v2353_v15, %v2142_v10  ;;  %v3347_v10 = vld [vmem:[%s12875_s6 + $0xd0] sm:$0xff] }
 0x16a   : > { %v9299_v46 = vld [vmem:[#allocation2 + $0x72] sm:$0xff]  ;;  %1677 = vst.msk [vmem:[#allocation2 + $0x81] sm:$0xff] %vm1658_vm3, %v1640_v63  ;;  %v2855_v34 = vadd.f32 %v9022_v7, %v2819_v1  ;;  %v1919_v38 = vmul.f32 %v8939_v43, %v9291_v28 }
 0x16b   : > { %v2564_v26 = vmul.f32 %v8967_v62, %v9299_v46  ;;  %v9312_v14 = vld [vmem:[#allocation2 + $0x79] sm:$0xff]  ;;  %v2495_v49 = vmul.f32 %v8933_v40, %v9299_v46 }
 0x16c   : > { %v2887_v50 = vmax.f32 %v2855_v34, 0.0  ;;  %v1951_v58 = vadd.f32 %v1919_v38, %v1880_v44  ;;  %v2322_v59 = vmul.f32 %v8974_v3, %v9312_v14  ;;  %v2676_v34 = vpop.permute.xlu2 %2675 }
 0x16d   : > { %v2596_v30 = vadd.f32 %v2564_v26, %v2525_v20  ;;  %v1583_v57 = vpop.f32.mrf.mxu0  ;;  %3752 = vperm.xlu1 %8346, %v3352_v33   ;;  %v1849_v33 = vmul.f32 %v8925_v36, %v9273_v51  ;;  %v1810_v26 = vmul.f32 %v8922_v35, %v9210_v21  ;;  %v2456_v21 = vmul.f32 %v8930_v39, %v9236_v9  ;;  %v3382_v9 = vld [vmem:[%s12872_s12 + $0xe8] sm:$0xff] }
 0x16e   : > { %v1584_v31 = vadd.f32 %v8894_v5, %v1583_v57  ;;  %4393 = vperm.xlu2 %8347, %v3383_v41   ;;  %3747 = vperm.xlu0 %8345, %v3351_v42   ;;  %v2914_v55 = vpack.c.bf16 %v2887_v50, %v2886_v48  ;;  %v2455_v5 = vmul.f32 %v8930_v39, %v9202_v23  ;;  %v9345_v41 = vld [vmem:[%s12871_s13] ss:$0 sm:$0xff] }
 0x16f   : > { %v2788_v17 = vmul.f32 %v2671_v11, %v2596_v30  ;;  %v2143_v18 = vmul.f32 %v2030_v12, %v1951_v58  ;;  %v2354_v6 = vadd.f32 %v2322_v59, %v2283_v16  ;;  %v1850_v48 = vmul.f32 %v8925_v36, %v9291_v28  ;;  %v3381_v11 = vld [vmem:[%s12872_s12 + $0xe0] sm:$0xff] }
 0x170   : > { %v1641_v13 = vmax.f32 %v1584_v31, 0.0  ;;  %7858 = vmatmul.msk.bf16.gmra.mxu1 %vm1658_vm3, %v2914_v55  ;;  %v2526_v63 = vadd.f32 %v2494_v8, %v2455_v5  ;;  %v1881_v30 = vadd.f32 %v1849_v33, %v1810_v26  ;;  %v1811_v58 = vmul.f32 %v8922_v35, %v9228_v61  ;;  %v2035_v61 = vpop.permute.xlu0 %2034 }
 0x171   : > { %v9328_v19 = vld [vmem:[#allocation2 + $0x7a] sm:$0xff]  ;;  %v2820_v20 = vadd.f32 %v2788_v17, %v2385_v37  ;;  %v2386_v27 = vadd.f32 %v2354_v6, %v2143_v18  ;;  %v2252_v36 = vmul.f32 %v8956_v54, %v9295_v32  ;;  %v2527_v39 = vadd.f32 %v2495_v49, %v2456_v21  ;;  %v9383_v37 = vld [vmem:[%s8552_s17 + $0x5] ss:$0 sm:$0xff] }
 0x172   : > { %1678 = vst.msk [vmem:[#allocation2 + $0x89] sm:$0xff] %vm1658_vm3, %v1641_v13  ;;  %v2565_v1 = vmul.f32 %v8967_v62, %v9328_v19  ;;  %v9336_v0 = vld [vmem:[#allocation2 + $0x80] sm:$0xff]  ;;  %v1882_v4 = vadd.f32 %v1850_v48, %v1811_v58  ;;  %v2213_v59 = vmul.f32 %v8953_v53, %v9232_v2  ;;  %v2253_v16 = vmul.f32 %v8956_v54, %v9312_v14  ;;  %v3348_v48 = vld [vmem:[%s12875_s6 + $0xd8] sm:$0xff] }
 0x173   : > { %v1920_v47 = vmul.f32 %v8939_v43, %v9336_v0  ;;  %v2856_v40 = vadd.f32 %v9022_v7, %v2820_v20  ;;  %v9359_v60 = vld [vmem:[#allocation2 + $0x81] sm:$0xff]  ;;  %v2496_v2 = vmul.f32 %v9383_v37, %v9328_v19  ;;  %v2214_v6 = vmul.f32 %v8953_v53, %v9249_v52 }
 0x174   : > { %v2597_v23 = vadd.f32 %v2565_v1, %v2526_v63  ;;  %v2323_v5 = vmul.f32 %v8974_v3, %v9359_v60 }
 0x175   : > { %v1586_v38 = vpop.f32.mrf.mxu0  ;;  %3737 = vperm.xlu1 %8346, %v3349_v22   ;;  %v1952_v55 = vadd.f32 %v1920_v47, %v1881_v30  ;;  %v2888_v12 = vmax.f32 %v2856_v40, 0.0  ;;  %v2284_v22 = vadd.f32 %v2252_v36, %v2213_v59  ;;  %v2285_v49 = vadd.f32 %v2253_v16, %v2214_v6  ;;  %v3380_v47 = vld [vmem:[%s12872_s12 + $0xd8] sm:$0xff]  ;;  %v9409_v40 = vld [vmem:[%s8552_s17 + $0x3] ss:$0 sm:$0xff] }
 0x176   : > { %v1587_v42 = vadd.f32 %v9345_v41, %v1586_v38  ;;  %3742 = vperm.xlu2 %8347, %v3350_v24   ;;  %4398 = vperm.xlu0 %8345, %v3384_v25   ;;  %v2789_v44 = vmul.f32 %v2676_v34, %v2597_v23  ;;  %v2681_v25 = vpop.permute.xlu2 %2680  ;;  %v2040_v23 = vpop.permute.xlu1 %2039  ;;  %v9394_v34 = vld [vmem:[%s8552_s17 + $0x2] ss:$0 sm:$0xff]  ;;  %v1851_v30 = vmul.f32 %v9409_v40, %v9336_v0 }
 0x177   : > { %v2144_v24 = vmul.f32 %v2035_v61, %v1952_v55  ;;  %v2355_v33 = vadd.f32 %v2323_v5, %v2284_v22  ;;  %v2457_v38 = vmul.f32 %v9394_v34, %v9265_v56  ;;  %v3346_v22 = vld [vmem:[%s12875_s6 + $0xc8] sm:$0xff]  ;;  %v3377_v6 = vld [vmem:[%s12872_s12 + $0xc0] sm:$0xff] }
 0x178   : > { %v1642_v50 = vmax.f32 %v1587_v42, 0.0  ;;  %v2821_v45 = vadd.f32 %v2789_v44, %v2386_v27  ;;  %v2686_v58 = vpop.permute.xlu0 %2685 }
 0x179   : > { %v9355_v57 = vld [vmem:[#allocation2 + $0x88] sm:$0xff]  ;;  %v2387_v52 = vadd.f32 %v2355_v33, %v2144_v24  ;;  %v2528_v42 = vadd.f32 %v2496_v2, %v2457_v38 }
 0x17a   : > { %v9363_v29 = vld [vmem:[#allocation2 + $0x82] sm:$0xff]  ;;  %1679 = vst.msk [vmem:[#allocation2 + $0x91] sm:$0xff] %vm1658_vm3, %v1642_v50  ;;  %v2857_v8 = vadd.f32 %v9022_v7, %v2821_v45  ;;  %v1921_v31 = vmul.f32 %v8939_v43, %v9355_v57 }
 0x17b   : > { %v2566_v35 = vmul.f32 %v8967_v62, %v9363_v29  ;;  %v9376_v15 = vld [vmem:[#allocation2 + $0x89] sm:$0xff] }
 0x17c   : > { %v2889_v13 = vmax.f32 %v2857_v8, 0.0  ;;  %v1953_v18 = vadd.f32 %v1921_v31, %v1882_v4  ;;  %v2324_v54 = vmul.f32 %v8974_v3, %v9376_v15  ;;  %v3379_v3 = vld [vmem:[%s12872_s12 + $0xd0] sm:$0xff]  ;;  %v2497_v8 = vmul.f32 %v9383_v37, %v9363_v29 }
 0x17d   : > { %v2598_v43 = vadd.f32 %v2566_v35, %v2527_v39  ;;  %v1588_v17 = vpop.f32.mrf.mxu0  ;;  %4388 = vperm.xlu1 %8346, %v3382_v9   ;;  %v9414_v9 = vld [vmem:[%s8552_s17] ss:$0 sm:$0xff]  ;;  %v9422_v35 = vld [vmem:[%s8552_s17 + $0x6] ss:$0 sm:$0xff] }
 0x17e   : > { %v1589_v63 = vadd.f32 %v9345_v41, %v1588_v17  ;;  %3727 = vperm.xlu2 %8347, %v3347_v10   ;;  %4383 = vperm.xlu0 %8345, %v3381_v11   ;;  %v2915_v1 = vpack.c.bf16 %v2889_v13, %v2888_v12  ;;  %v2145_v26 = vmul.f32 %v2040_v23, %v1953_v18  ;;  %v9438_v17 = vld [vmem:[%s8552_s17 + $0x4] ss:$0 sm:$0xff] }
 0x17f   : > { %v2790_v27 = vmul.f32 %v2681_v25, %v2598_v43  ;;  %v2356_v21 = vadd.f32 %v2324_v54, %v2285_v49  ;;  %v1852_v10 = vmul.f32 %v9409_v40, %v9355_v57  ;;  %v1813_v5 = vmul.f32 %v9414_v9, %v9291_v28  ;;  %v2045_v25 = vpop.permute.xlu1 %2044  ;;  %v3345_v54 = vld [vmem:[%s12875_s6 + $0xc0] sm:$0xff] }
 0x180   : > { %v1643_v20 = vmax.f32 %v1589_v63, 0.0  ;;  %7859 = vmatmul.msk.bf16.gmra.mxu1 %vm1658_vm3, %v2915_v1  ;;  %v9450_v1 = vld [vmem:[%s8552_s17 + $0x8] ss:$0 sm:$0xff] }
 0x181   : > { %v9398_v53 = vld [vmem:[#allocation2 + $0x8a] sm:$0xff]  ;;  %v2822_v45 = vadd.f32 %v2790_v27, %v2387_v52  ;;  %v2388_v39 = vadd.f32 %v2356_v21, %v2145_v26  ;;  %v1884_v23 = vadd.f32 %v1852_v10, %v1813_v5  ;;  %v9464_v26 = vld [vmem:[%s8552_s17 + $0x7] ss:$0 sm:$0xff] }
 0x182   : > { %1680 = vst.msk [vmem:[#allocation2 + $0x99] sm:$0xff] %vm1658_vm3, %v1643_v20  ;;  %v2567_v44 = vmul.f32 %v8967_v62, %v9398_v53  ;;  %v9406_v50 = vld [vmem:[#allocation2 + $0x90] sm:$0xff]  ;;  %v1812_v62 = vmul.f32 %v9414_v9, %v9273_v51  ;;  %v2458_v51 = vmul.f32 %v9394_v34, %v9299_v46  ;;  %v2254_v46 = vmul.f32 %v9438_v17, %v9359_v60  ;;  %v9457_v20 = vld [vmem:[%s8552_s17 + $0x1] ss:$0 sm:$0xff] }
 0x183   : > { %v1922_v61 = vmul.f32 %v9422_v35, %v9406_v50  ;;  %v2858_v59 = vadd.f32 %v9022_v7, %v2822_v45  ;;  %v9435_v43 = vld [vmem:[#allocation2 + $0x91] sm:$0xff]  ;;  %v2215_v33 = vmul.f32 %v9457_v20, %v9295_v32  ;;  %v2498_v32 = vmul.f32 %v9383_v37, %v9398_v53  ;;  %v2691_v45 = vpop.permute.xlu0 %2690 }
 0x184   : > { %v2599_v56 = vadd.f32 %v2567_v44, %v2528_v42  ;;  %v1883_v12 = vadd.f32 %v1851_v30, %v1812_v62  ;;  %v2529_v16 = vadd.f32 %v2497_v8, %v2458_v51  ;;  %v2325_v49 = vmul.f32 %v9464_v26, %v9435_v43 }
 0x185   : > { %v1591_v36 = vpop.f32.mrf.mxu0  ;;  %4373 = vperm.xlu1 %8346, %v3379_v3   ;;  %v2890_v38 = vmax.f32 %v2858_v59, 0.0  ;;  %v2255_v44 = vmul.f32 %v9438_v17, %v9376_v15  ;;  %v2216_v30 = vmul.f32 %v9457_v20, %v9312_v14  ;;  %v2459_v8 = vmul.f32 %v9394_v34, %v9328_v19  ;;  %v3343_v14 = vld [vmem:[%s12875_s6 + $0xb0] sm:$0xff]  ;;  %v3344_v59 = vld [vmem:[%s12875_s6 + $0xb8] sm:$0xff] }
 0x186   : > { %v1592_v31 = vadd.f32 %v9345_v41, %v1591_v36  ;;  %4378 = vperm.xlu2 %8347, %v3380_v47   ;;  %3732 = vperm.xlu0 %8345, %v3348_v48   ;;  %v2791_v55 = vmul.f32 %v2686_v58, %v2599_v56  ;;  %v1954_v63 = vadd.f32 %v1922_v61, %v1883_v12  ;;  %v2050_v36 = vpop.permute.xlu2 %2049  ;;  %v3378_v12 = vld [vmem:[%s12872_s12 + $0xc8] sm:$0xff] }
 0x187   : > { %v2286_v47 = vadd.f32 %v2254_v46, %v2215_v33  ;;  %v2287_v61 = vadd.f32 %v2255_v44, %v2216_v30 }
 0x188   : > { %v1644_v11 = vmax.f32 %v1592_v31, 0.0  ;;  %v2823_v4 = vadd.f32 %v2791_v55, %v2388_v39  ;;  %v2146_v56 = vmul.f32 %v2045_v25, %v1954_v63 }
 0x189   : > { %v9431_v13 = vld [vmem:[#allocation2 + $0x98] sm:$0xff]  ;;  %v2357_v62 = vadd.f32 %v2325_v49, %v2286_v47  ;;  %v1815_v47 = vmul.f32 %v9414_v9, %v9355_v57 }
 0x18a   : > { %v9442_v18 = vld [vmem:[#allocation2 + $0x92] sm:$0xff]  ;;  %1681 = vst.msk [vmem:[#allocation2 + $0xa1] sm:$0xff] %vm1658_vm3, %v1644_v11  ;;  %v2859_v2 = vadd.f32 %v9022_v7, %v2823_v4  ;;  %v1923_v28 = vmul.f32 %v9422_v35, %v9431_v13  ;;  %v2530_v11 = vadd.f32 %v2498_v32, %v2459_v8  ;;  %v1854_v33 = vmul.f32 %v9409_v40, %v9431_v13 }
 0x18b   : > { %v2568_v24 = vmul.f32 %v9450_v1, %v9442_v18  ;;  %v9461_v27 = vld [vmem:[#allocation2 + $0x99] sm:$0xff]  ;;  %v2389_v51 = vadd.f32 %v2357_v62, %v2146_v56  ;;  %v2499_v25 = vmul.f32 %v9383_v37, %v9442_v18  ;;  %v3375_v62 = vld [vmem:[%s12872_s12 + $0xb0] sm:$0xff] }
 0x18c   : > { %v2891_v7 = vmax.f32 %v2859_v2, 0.0  ;;  %v1955_v42 = vadd.f32 %v1923_v28, %v1884_v23  ;;  %v2326_v58 = vmul.f32 %v9464_v26, %v9461_v27  ;;  %v2696_v2 = vpop.permute.xlu1 %2695  ;;  %v3376_v56 = vld [vmem:[%s12872_s12 + $0xb8] sm:$0xff]  ;;  %v1886_v8 = vadd.f32 %v1854_v33, %v1815_v47  ;;  %v3374_v47 = vld [vmem:[%s12872_s12 + $0xa8] sm:$0xff] }
 0x18d   : > { %v2600_v3 = vadd.f32 %v2568_v24, %v2529_v16  ;;  %v1593_v52 = vpop.f32.mrf.mxu0  ;;  %3722 = vperm.xlu1 %8346, %v3346_v22   ;;  %v1853_v22 = vmul.f32 %v9409_v40, %v9406_v50  ;;  %v1814_v24 = vmul.f32 %v9414_v9, %v9336_v0  ;;  %v2460_v0 = vmul.f32 %v9394_v34, %v9363_v29 }
 0x18e   : > { %v1594_v48 = vadd.f32 %v9345_v41, %v1593_v52  ;;  %4363 = vperm.xlu2 %8347, %v3377_v6   ;;  %3717 = vperm.xlu0 %8345, %v3345_v54   ;;  %v2916_v21 = vpack.c.bf16 %v2891_v7, %v2890_v38  ;;  %v2147_v55 = vmul.f32 %v2050_v36, %v1955_v42  ;;  %v2055_v36 = vpop.permute.xlu2 %2054 }
 0x18f   : > { %v2792_v31 = vmul.f32 %v2691_v45, %v2600_v3  ;;  %v2358_v5 = vadd.f32 %v2326_v58, %v2287_v61  ;;  %v2256_v38 = vmul.f32 %v9438_v17, %v9435_v43  ;;  %v9506_v3 = vld [vmem:[%s8557_s21] ss:$0 sm:$0xff]  ;;  %v1885_v42 = vadd.f32 %v1853_v22, %v1814_v24 }
 0x190   : > { %v1645_v39 = vmax.f32 %v1594_v48, 0.0  ;;  %7860 = vmatmul.msk.bf16.gmra.mxu1 %vm1658_vm3, %v2916_v21  ;;  %v2217_v29 = vmul.f32 %v9457_v20, %v9359_v60  ;;  %v2531_v21 = vadd.f32 %v2499_v25, %v2460_v0  ;;  %v2060_v25 = vpop.permute.xlu0 %2059 }
 0x191   : > { %v9480_v10 = vld [vmem:[#allocation2 + $0x9a] sm:$0xff]  ;;  %v2824_v19 = vadd.f32 %v2792_v31, %v2389_v51  ;;  %v2390_v63 = vadd.f32 %v2358_v5, %v2147_v55  ;;  %v2257_v5 = vmul.f32 %v9438_v17, %v9461_v27 }
 0x192   : > { %1682 = vst.msk [vmem:[#allocation2 + $0xa9] sm:$0xff] %vm1658_vm3, %v1645_v39  ;;  %v2569_v4 = vmul.f32 %v9450_v1, %v9480_v10  ;;  %v9488_v46 = vld [vmem:[#allocation2 + $0xa0] sm:$0xff]  ;;  %v2288_v60 = vadd.f32 %v2256_v38, %v2217_v29  ;;  %v3342_v29 = vld [vmem:[%s12875_s6 + $0xa8] sm:$0xff] }
 0x193   : > { %v1924_v23 = vmul.f32 %v9422_v35, %v9488_v46  ;;  %v2860_v52 = vadd.f32 %v9506_v3, %v2824_v19  ;;  %v9513_v32 = vld [vmem:[#allocation2 + $0xa1] sm:$0xff] }
 0x194   : > { %v2601_v16 = vadd.f32 %v2569_v4, %v2530_v11  ;;  %v3341_v39 = vld [vmem:[%s12875_s6 + $0xa0] sm:$0xff]  ;;  %v2327_v51 = vmul.f32 %v9464_v26, %v9513_v32  ;;  %v8387_v4 = vld [vmem:[#allocation4] sm:$0xff] }
 0x195   : > { %v1596_v28 = vpop.f32.mrf.mxu0  ;;  %3707 = vperm.xlu1 %8346, %v3343_v14   ;;  %v1956_v58 = vadd.f32 %v1924_v23, %v1885_v42  ;;  %v8199_v31 = vld [vmem:[%s12880_s14] sm:$0xff]  ;;  %v2892_v55 = vmax.f32 %v2860_v52, 0.0  ;;  %4899 = vst.msk [vmem:[#allocation4 + $0x8] sm:$0xff] %vm3111_vm5, %v8387_v4  ;;  %v2461_v23 = vmul.f32 %v9394_v34, %v9398_v53 }
 0x196   : > { %v1597_v6 = vadd.f32 %v9345_v41, %v1596_v28  ;;  %3712 = vperm.xlu2 %8347, %v3344_v59   ;;  %4368 = vperm.xlu0 %8345, %v3378_v12   ;;  %v2793_v54 = vmul.f32 %v2696_v2, %v2601_v16  ;;  %v2500_v16 = vmul.f32 %v9383_v37, %v9480_v10  ;;  %v2701_v28 = vpop.permute.xlu1 %2700 }
 0x197   : > { %3167 = vmatpush.bf16.msra.mxu2 %v8199_v31  ;;  %6017 = vst.msk [vmem:[#allocation5 + $0x8] sm:$0xff] %vm3111_vm5, %v8387_v4  ;;  %v2148_v2 = vmul.f32 %v2055_v36, %v1956_v58  ;;  %v2706_v58 = vpop.permute.xlu2 %2705 }
 0x198   : > { %v1646_v7 = vmax.f32 %v1597_v6, 0.0  ;;  %v2825_v49 = vadd.f32 %v2793_v54, %v2390_v63  ;;  %v2218_v63 = vmul.f32 %v9457_v20, %v9376_v15  ;;  %v2359_v54 = vadd.f32 %v2327_v51, %v2288_v60  ;;  %v3373_v15 = vld [vmem:[%s12872_s12 + $0xa0] sm:$0xff] }
 0x199   : > { %v9509_v44 = vld [vmem:[#allocation2 + $0xa8] sm:$0xff]  ;;  %v2532_v52 = vadd.f32 %v2500_v16, %v2461_v23  ;;  %v2258_v16 = vmul.f32 %v9438_v17, %v9513_v32  ;;  %v2219_v23 = vmul.f32 %v9457_v20, %v9435_v43 }
 0x19a   : > { %v9517_v48 = vld [vmem:[#allocation2 + $0xa2] sm:$0xff]  ;;  %1683 = vst.msk [vmem:[#allocation2 + $0xb1] sm:$0xff] %vm1658_vm3, %v1646_v7  ;;  %v2861_v45 = vadd.f32 %v9506_v3, %v2825_v49  ;;  %v1925_v30 = vmul.f32 %v9422_v35, %v9509_v44  ;;  %v2289_v0 = vadd.f32 %v2257_v5, %v2218_v63  ;;  %v2391_v49 = vadd.f32 %v2359_v54, %v2148_v2  ;;  %v3340_v2 = vld [vmem:[%s12875_s6 + $0x98] sm:$0xff] }
 0x19b   : > { %v2570_v57 = vmul.f32 %v9450_v1, %v9517_v48  ;;  %v9529_v14 = vld [vmem:[#allocation2 + $0xa9] sm:$0xff] }
 0x19c   : > { %v2893_v61 = vmax.f32 %v2861_v45, 0.0  ;;  %v1957_v12 = vadd.f32 %v1925_v30, %v1886_v8  ;;  %v2328_v24 = vmul.f32 %v9464_v26, %v9529_v14  ;;  %v1855_v30 = vmul.f32 %v9409_v40, %v9488_v46 }
 0x19d   : > { %v2602_v11 = vadd.f32 %v2570_v57, %v2531_v21  ;;  %v1598_v59 = vpop.f32.mrf.mxu0  ;;  %4358 = vperm.xlu1 %8346, %v3376_v56  }
 0x19e   : > { %v1599_v19 = vadd.f32 %v9345_v41, %v1598_v59  ;;  %3697 = vperm.xlu2 %8347, %v3341_v39   ;;  %4353 = vperm.xlu0 %8345, %v3375_v62   ;;  %v2917_v22 = vpack.c.bf16 %v2893_v61, %v2892_v55  ;;  %v2149_v38 = vmul.f32 %v2060_v25, %v1957_v12  ;;  %v3371_v25 = vld [vmem:[%s12872_s12 + $0x90] sm:$0xff] }
 0x19f   : > { %v2794_v33 = vmul.f32 %v2701_v28, %v2602_v11  ;;  %v2360_v21 = vadd.f32 %v2328_v24, %v2289_v0  ;;  %v1816_v39 = vmul.f32 %v9414_v9, %v9406_v50  ;;  %v2501_v62 = vmul.f32 %v9383_v37, %v9517_v48 }
 0x1a0   : > { %v1647_v6 = vmax.f32 %v1599_v19, 0.0  ;;  %7861 = vmatmul.msk.bf16.gmra.mxu1 %vm1658_vm3, %v2917_v22  ;;  %v1856_v55 = vmul.f32 %v9409_v40, %v9509_v44  ;;  %v2462_v61 = vmul.f32 %v9394_v34, %v9442_v18  ;;  %v1817_v12 = vmul.f32 %v9414_v9, %v9431_v13  ;;  %v2065_v22 = vpop.permute.xlu0 %2064 }
 0x1a1   : > { %v9547_v7 = vld [vmem:[#allocation2 + $0xaa] sm:$0xff]  ;;  %v2826_v53 = vadd.f32 %v2794_v33, %v2391_v49  ;;  %v2392_v36 = vadd.f32 %v2360_v21, %v2149_v38  ;;  %v1887_v4 = vadd.f32 %v1855_v30, %v1816_v39  ;;  %v2290_v21 = vadd.f32 %v2258_v16, %v2219_v23  ;;  %v2070_v39 = vpop.permute.xlu1 %2069 }
 0x1a2   : > { %1684 = vst.msk [vmem:[#allocation2 + $0xb9] sm:$0xff] %vm1658_vm3, %v1647_v6  ;;  %v2571_v42 = vmul.f32 %v9450_v1, %v9547_v7  ;;  %v9555_v56 = vld [vmem:[#allocation2 + $0xb0] sm:$0xff]  ;;  %v2533_v18 = vadd.f32 %v2501_v62, %v2462_v61  ;;  %v1888_v54 = vadd.f32 %v1856_v55, %v1817_v12  ;;  %v2502_v43 = vmul.f32 %v9383_v37, %v9547_v7  ;;  %v9609_v55 = vld [vmem:[%s12874_s8] ss:$0 sm:$0xff] }
 0x1a3   : > { %v1926_v31 = vmul.f32 %v9422_v35, %v9555_v56  ;;  %v2862_v11 = vadd.f32 %v9506_v3, %v2826_v53  ;;  %v9575_v5 = vld [vmem:[#allocation2 + $0xb1] sm:$0xff]  ;;  %v1818_v23 = vmul.f32 %v9414_v9, %v9488_v46 }
 0x1a4   : > { %v2603_v45 = vadd.f32 %v2571_v42, %v2532_v52  ;;  %v3339_v6 = vld [vmem:[%s12875_s6 + $0x90] sm:$0xff] }
 0x1a5   : > { %v1601_v57 = vpop.f32.mrf.mxu0  ;;  %4343 = vperm.xlu1 %8346, %v3373_v15   ;;  %v1958_v24 = vadd.f32 %v1926_v31, %v1887_v4  ;;  %v2894_v33 = vmax.f32 %v2862_v11, 0.0  ;;  %v2329_v15 = vmul.f32 %v9464_v26, %v9575_v5 }
 0x1a6   : > { %v1602_v8 = vadd.f32 %v9345_v41, %v1601_v57  ;;  %4348 = vperm.xlu2 %8347, %v3374_v47   ;;  %3702 = vperm.xlu0 %8345, %v3342_v29   ;;  %v2795_v60 = vmul.f32 %v2706_v58, %v2603_v45  ;;  %v2259_v29 = vmul.f32 %v9438_v17, %v9529_v14  ;;  %v2711_v58 = vpop.permute.xlu2 %2710 }
 0x1a7   : > { %v2150_v30 = vmul.f32 %v2065_v22, %v1958_v24  ;;  %v2220_v57 = vmul.f32 %v9457_v20, %v9461_v27  ;;  %v3337_v27 = vld [vmem:[%s12875_s6 + $0x80] sm:$0xff]  ;;  %v3372_v22 = vld [vmem:[%s12872_s12 + $0x98] sm:$0xff] }
 0x1a8   : > { %v1648_v51 = vmax.f32 %v1602_v8, 0.0  ;;  %v2827_v50 = vadd.f32 %v2795_v60, %v2392_v36  ;;  %v2361_v8 = vadd.f32 %v2329_v15, %v2290_v21  ;;  %v2463_v60 = vmul.f32 %v9394_v34, %v9480_v10 }
 0x1a9   : > { %v9571_v59 = vld [vmem:[#allocation2 + $0xb8] sm:$0xff] }
 0x1aa   : > { %v9579_v19 = vld [vmem:[#allocation2 + $0xb2] sm:$0xff]  ;;  %1685 = vst.msk [vmem:[#allocation2 + $0xc1] sm:$0xff] %vm1658_vm3, %v1648_v51  ;;  %v2863_v28 = vadd.f32 %v9506_v3, %v2827_v50  ;;  %v1927_v63 = vmul.f32 %v9422_v35, %v9571_v59  ;;  %v2291_v51 = vadd.f32 %v2259_v29, %v2220_v57  ;;  %v2393_v11 = vadd.f32 %v2361_v8, %v2150_v30  ;;  %v3370_v8 = vld [vmem:[%s12872_s12 + $0x88] sm:$0xff] }
 0x1ab   : > { %v2572_v13 = vmul.f32 %v9450_v1, %v9579_v19  ;;  %v9592_v0 = vld [vmem:[#allocation2 + $0xb9] sm:$0xff]  ;;  %v2534_v4 = vadd.f32 %v2502_v43, %v2463_v60  ;;  %v2503_v46 = vmul.f32 %v9383_v37, %v9579_v19  ;;  %v1819_v30 = vmul.f32 %v9414_v9, %v9509_v44 }
 0x1ac   : > { %v2895_v38 = vmax.f32 %v2863_v28, 0.0  ;;  %v1959_v47 = vadd.f32 %v1927_v63, %v1888_v54  ;;  %v2330_v36 = vmul.f32 %v9464_v26, %v9592_v0  ;;  %v2716_v28 = vpop.permute.xlu0 %2715  ;;  %v2221_v57 = vmul.f32 %v9457_v20, %v9513_v32 }
 0x1ad   : > { %v2604_v49 = vadd.f32 %v2572_v13, %v2533_v18  ;;  %v1603_v52 = vpop.f32.mrf.mxu0  ;;  %v3003_v42 = vpop.f32.mrf.mxu1  ;;  %3692 = vperm.xlu1 %8346, %v3340_v2   ;;  %v3338_v18 = vld [vmem:[%s12875_s6 + $0x88] sm:$0xff]  ;;  %v1857_v2 = vmul.f32 %v9409_v40, %v9555_v56  ;;  %s13231_s6 = sld [smem:[#allocation40_spill]] }
 0x1ae   : > { %v1604_v45 = vadd.f32 %v9345_v41, %v1603_v52  ;;  %4333 = vperm.xlu2 %8347, %v3371_v25   ;;  %3687 = vperm.xlu0 %8345, %v3339_v6   ;;  %v2918_v53 = vpack.c.bf16 %v2895_v38, %v2894_v33  ;;  %v2151_v61 = vmul.f32 %v2070_v39, %v1959_v47 }
 0x1af   : > { %v2796_v31 = vmul.f32 %v2711_v58, %v2604_v49  ;;  %v2362_v10 = vadd.f32 %v2330_v36, %v2291_v51  ;;  %v3004_v13 = vadd.f32 %v9609_v55, %v3003_v42  ;;  %v1858_v52 = vmul.f32 %v9409_v40, %v9571_v59  ;;  %v3369_v51 = vld [vmem:[%s12872_s12 + $0x80] sm:$0xff] }
 0x1b0   : > { %v1649_v62 = vmax.f32 %v1604_v45, 0.0  ;;  %7862 = vmatmul.msk.bf16.gmra.mxu1 %vm1658_vm3, %v2918_v53  ;;  %v1889_v42 = vadd.f32 %v1857_v2, %v1818_v23  ;;  %v2260_v47 = vmul.f32 %v9438_v17, %v9575_v5  ;;  %v2464_v39 = vmul.f32 %v9394_v34, %v9517_v48 }
 0x1b1   : > { %v9611_v50 = vld [vmem:[#allocation2 + $0xba] sm:$0xff]  ;;  %v2828_v24 = vadd.f32 %v2796_v31, %v2393_v11  ;;  %v2394_v54 = vadd.f32 %v2362_v10, %v2151_v61  ;;  %v1890_v32 = vadd.f32 %v1858_v52, %v1819_v30 }
 0x1b2   : > { %1686 = vst.msk [vmem:[#allocation2 + $0xc9] sm:$0xff] %vm1658_vm3, %v1649_v62  ;;  %v2573_v12 = vmul.f32 %v9450_v1, %v9611_v50  ;;  %v9617_v16 = vld [vmem:[#allocation2 + $0xc0] sm:$0xff]  ;;  %v2075_v62 = vpop.permute.xlu1 %2074 }
 0x1b3   : > { %v1928_v33 = vmul.f32 %v9422_v35, %v9617_v16  ;;  %v2864_v45 = vadd.f32 %v9506_v3, %v2828_v24  ;;  %v9641_v58 = vld [vmem:[#allocation2 + $0xc1] sm:$0xff]  ;;  %v2504_v24 = vmul.f32 %v9383_v37, %v9611_v50 }
 0x1b4   : > { %v2605_v63 = vadd.f32 %v2573_v12, %v2534_v4  ;;  %v5000_v61 = vld [vmem:[%s8652_s20] sm:$0xff]  ;;  %v2721_v23 = vpop.permute.xlu0 %2720 }
 0x1b5   : > { %v1606_v25 = vpop.f32.mrf.mxu0  ;;  %v3005_v6 = vpop.f32.mrf.mxu1  ;;  %3677 = vperm.xlu1 %8346, %v3337_v27   ;;  %v1960_v31 = vadd.f32 %v1928_v33, %v1889_v42  ;;  %v2535_v27 = vadd.f32 %v2503_v46, %v2464_v39  ;;  %v2896_v48 = vmax.f32 %v2864_v45, 0.0  ;;  %v2222_v33 = vmul.f32 %v9457_v20, %v9529_v14  ;;  %v5002_v14 = vld [vmem:[%s8652_s20 + $0x10] sm:$0xff]  ;;  %v4992_v39 = vld [vmem:[%s8647_s30] sm:$0xff] }
 0x1b6   : > { %v1607_v38 = vadd.f32 %v9345_v41, %v1606_v25  ;;  %v3006_v15 = vadd.f32 %v9609_v55, %v3005_v6  ;;  %3682 = vperm.xlu2 %8347, %v3338_v18   ;;  %4338 = vperm.xlu0 %8345, %v3372_v22   ;;  %v2797_v49 = vmul.f32 %v2716_v28, %v2605_v63 }
 0x1b7   : > { %v2292_v18 = vadd.f32 %v2260_v47, %v2221_v57  ;;  %v2331_v22 = vmul.f32 %v9464_v26, %v9641_v58  ;;  %v2261_v63 = vmul.f32 %v9438_v17, %v9592_v0  ;;  %v2465_v42 = vmul.f32 %v9394_v34, %v9547_v7 }
 0x1b8   : > { %v1650_v29 = vmax.f32 %v1607_v38, 0.0  ;;  %v3083_v21 = vpack.c.bf16 %v3006_v15, %v3004_v13  ;;  %v2829_v43 = vadd.f32 %v2797_v49, %v2394_v54  ;;  %v2152_v54 = vmul.f32 %v2075_v62, %v1960_v31  ;;  %v2080_v15 = vpop.permute.xlu2 %2079  ;;  %v5001_v62 = vld [vmem:[%s8652_s20 + $0x8] sm:$0xff] }
 0x1b9   : > { %v9637_v53 = vld [vmem:[#allocation2 + $0xc8] sm:$0xff]  ;;  %v2363_v52 = vadd.f32 %v2331_v22, %v2292_v18  ;;  %v2536_v45 = vadd.f32 %v2504_v24, %v2465_v42  ;;  %v1859_v7 = vmul.f32 %v9409_v40, %v9617_v16 }
 0x1ba   : > { %v9645_v36 = vld [vmem:[#allocation2 + $0xc2] sm:$0xff]  ;;  %1687 = vst.msk [vmem:[#allocation2 + $0xd1] sm:$0xff] %vm1658_vm3, %v1650_v29  ;;  %7874 = vmatmul.msk.bf16.vlgmr.msra.gmra.mxu2 %vm3111_vm5, %v3083_v21  ;;  %v2865_v60 = vadd.f32 %v9506_v3, %v2829_v43  ;;  %v1929_v44 = vmul.f32 %v9422_v35, %v9637_v53  ;;  %v2293_v29 = vadd.f32 %v2261_v63, %v2222_v33 }
 0x1bb   : > { %v2574_v11 = vmul.f32 %v9450_v1, %v9645_v36  ;;  %v9659_v12 = vld [vmem:[#allocation2 + $0xc9] sm:$0xff]  ;;  %v2395_v43 = vadd.f32 %v2363_v52, %v2152_v54 }
 0x1bc   : > { %v2897_v4 = vmax.f32 %v2865_v60, 0.0  ;;  %v1961_v28 = vadd.f32 %v1929_v44, %v1890_v32  ;;  %v2332_v38 = vmul.f32 %v9464_v26, %v9659_v12  ;;  %v2726_v60 = vpop.permute.xlu1 %2725 }
 0x1bd   : > { %v1608_v10 = vpop.f32.mrf.mxu0  ;;  %v3008_v2 = vpop.f32.mrf.mxu1  ;;  %4328 = vperm.xlu1 %8346, %v3370_v8   ;;  %v2606_v13 = vadd.f32 %v2574_v11, %v2535_v27  ;;  %v1820_v11 = vmul.f32 %v9414_v9, %v9555_v56 }
 0x1be   : > { %v1609_v25 = vadd.f32 %v9345_v41, %v1608_v10  ;;  %5531 = vperm.xlu2 %8347, %v5000_v61   ;;  %4323 = vperm.xlu0 %8345, %v3369_v51   ;;  %v2919_v6 = vpack.c.bf16 %v2897_v4, %v2896_v48  ;;  %v2153_v46 = vmul.f32 %v2080_v15, %v1961_v28 }
 0x1bf   : > { %v2798_v47 = vmul.f32 %v2721_v23, %v2606_v13  ;;  %v2364_v8 = vadd.f32 %v2332_v38, %v2293_v29  ;;  %v3009_v61 = vadd.f32 %v9609_v55, %v3008_v2  ;;  %v1860_v10 = vmul.f32 %v9409_v40, %v9637_v53 }
 0x1c0   : > { %v1651_v49 = vmax.f32 %v1609_v25, 0.0  ;;  %7863 = vmatmul.msk.bf16.gmra.mxu1 %vm1658_vm3, %v2919_v6  ;;  %v1891_v2 = vadd.f32 %v1859_v7, %v1820_v11  ;;  %v2262_v28 = vmul.f32 %v9438_v17, %v9641_v58  ;;  %v1821_v6 = vmul.f32 %v9414_v9, %v9571_v59  ;;  %v2085_v15 = vpop.permute.xlu2 %2084  ;;  %v5004_v59 = vld [vmem:[%s8652_s20 + $0x20] sm:$0xff] }
 0x1c1   : > { %v9675_v21 = vld [vmem:[#allocation2 + $0xca] sm:$0xff]  ;;  %v2830_v31 = vadd.f32 %v2798_v47, %v2395_v43  ;;  %v2396_v27 = vadd.f32 %v2364_v8, %v2153_v46  ;;  %v2223_v23 = vmul.f32 %v9457_v20, %v9575_v5  ;;  %v2505_v38 = vmul.f32 %v9383_v37, %v9645_v36 }
 0x1c2   : > { %1688 = vst.msk [vmem:[#allocation2 + $0xd9] sm:$0xff] %vm1658_vm3, %v1651_v49  ;;  %v2575_v30 = vmul.f32 %v9450_v1, %v9675_v21  ;;  %v9681_v57 = vld [vmem:[#allocation2 + $0xd0] sm:$0xff]  ;;  %v5003_v49 = vld [vmem:[%s8652_s20 + $0x18] sm:$0xff]  ;;  %v4993_v47 = vld [vmem:[%s8647_s30 + $0x8] sm:$0xff]  ;;  %v1892_v46 = vadd.f32 %v1860_v10, %v1821_v6 }
 0x1c3   : > { %v1930_v48 = vmul.f32 %v9422_v35, %v9681_v57  ;;  %v2866_v13 = vadd.f32 %v9506_v3, %v2830_v31  ;;  %v9703_v54 = vld [vmem:[#allocation2 + $0xd1] sm:$0xff]  ;;  %v2294_v29 = vadd.f32 %v2262_v28, %v2223_v23 }
 0x1c4   : > { %v2607_v44 = vadd.f32 %v2575_v30, %v2536_v45 }
 0x1c5   : > { %v1611_v51 = vpop.f32.mrf.mxu0  ;;  %v3010_v32 = vpop.f32.mrf.mxu1  ;;  %5539 = vperm.xlu1 %8346, %v5002_v14   ;;  %v1962_v42 = vadd.f32 %v1930_v48, %v1891_v2  ;;  %v2466_v14 = vmul.f32 %v9394_v34, %v9579_v19  ;;  %v2898_v43 = vmax.f32 %v2866_v13, 0.0  ;;  %v2506_v19 = vmul.f32 %v9383_v37, %v9675_v21 }
 0x1c6   : > { %v1612_v4 = vadd.f32 %v9345_v41, %v1611_v51  ;;  %v3011_v18 = vadd.f32 %v9609_v55, %v3010_v32  ;;  %5130 = vperm.xlu2 %8347, %v4992_v39   ;;  %5535 = vperm.xlu0 %8345, %v5001_v62   ;;  %v2799_v22 = vmul.f32 %v2726_v60, %v2607_v44 }
 0x1c7   : > { %v2333_v39 = vmul.f32 %v9464_v26, %v9703_v54  ;;  %v2263_v44 = vmul.f32 %v9438_v17, %v9659_v12  ;;  %v2537_v31 = vadd.f32 %v2505_v38, %v2466_v14  ;;  %v2154_v32 = vmul.f32 %v2085_v15, %v1962_v42  ;;  %v5005_v15 = vld [vmem:[%s8652_s20 + $0x28] sm:$0xff] }
 0x1c8   : > { %v1652_v63 = vmax.f32 %v1612_v4, 0.0  ;;  %v3084_v56 = vpack.c.bf16 %v3011_v18, %v3009_v61  ;;  %v2831_v24 = vadd.f32 %v2799_v22, %v2396_v27  ;;  %v2224_v27 = vmul.f32 %v9457_v20, %v9592_v0  ;;  %v2731_v4 = vpop.permute.xlu1 %2730  ;;  %v2090_v18 = vpop.permute.xlu0 %2089 }
 0x1c9   : > { %v9699_v25 = vld [vmem:[#allocation2 + $0xd8] sm:$0xff]  ;;  %v2365_v10 = vadd.f32 %v2333_v39, %v2294_v29  ;;  %v2467_v2 = vmul.f32 %v9394_v34, %v9611_v50  ;;  %v1861_v50 = vmul.f32 %v9409_v40, %v9681_v57  ;;  %v2736_v42 = vpop.permute.xlu2 %2735 }
 0x1ca   : > { %v9707_v33 = vld [vmem:[#allocation2 + $0xd2] sm:$0xff]  ;;  %1689 = vst.msk [vmem:[#allocation2 + $0xe1] sm:$0xff] %vm1658_vm3, %v1652_v63  ;;  %7875 = vmatmul.msk.bf16.gmra.mxu2 %vm3111_vm5, %v3084_v56  ;;  %v2867_v52 = vadd.f32 %v9506_v3, %v2831_v24  ;;  %v1931_v5 = vmul.f32 %v9422_v35, %v9699_v25  ;;  %v2295_v63 = vadd.f32 %v2263_v44, %v2224_v27 }
 0x1cb   : > { %v9721_v30 = vld [vmem:[#allocation2 + $0xd9] sm:$0xff]  ;;  %v2576_v62 = vmul.f32 %v9450_v1, %v9707_v33  ;;  %v2397_v13 = vadd.f32 %v2365_v10, %v2154_v32  ;;  %v2538_v6 = vadd.f32 %v2506_v19, %v2467_v2  ;;  %v1823_v32 = vmul.f32 %v9414_v9, %v9637_v53 }
 0x1cc   : > { %v2899_v45 = vmax.f32 %v2867_v52, 0.0  ;;  %v1963_v60 = vadd.f32 %v1931_v5, %v1892_v46  ;;  %v2334_v11 = vmul.f32 %v9464_v26, %v9721_v30  ;;  %v4995_v24 = vld [vmem:[%s8647_s30 + $0x18] sm:$0xff]  ;;  %v1822_v5 = vmul.f32 %v9414_v9, %v9617_v16  ;;  %v4996_v10 = vld [vmem:[%s8647_s30 + $0x20] sm:$0xff] }
 0x1cd   : > { %v1613_v8 = vpop.f32.mrf.mxu0  ;;  %v3013_v7 = vpop.f32.mrf.mxu1  ;;  %5543 = vperm.xlu1 %8346, %v5003_v49   ;;  %v2608_v48 = vadd.f32 %v2576_v62, %v2537_v31  ;;  %v4994_v49 = vld [vmem:[%s8647_s30 + $0x10] sm:$0xff]  ;;  %v2264_v16 = vmul.f32 %v9438_v17, %v9703_v54  ;;  %v2225_v27 = vmul.f32 %v9457_v20, %v9641_v58 }
 0x1ce   : > { %v1614_v61 = vadd.f32 %v9345_v41, %v1613_v8  ;;  %5547 = vperm.xlu2 %8347, %v5004_v59   ;;  %5135 = vperm.xlu0 %8345, %v4993_v47   ;;  %v2920_v51 = vpack.c.bf16 %v2899_v45, %v2898_v43  ;;  %v2155_v28 = vmul.f32 %v2090_v18, %v1963_v60 }
 0x1cf   : > { %v2800_v0 = vmul.f32 %v2731_v4, %v2608_v48  ;;  %v2366_v52 = vadd.f32 %v2334_v11, %v2295_v63  ;;  %v3014_v46 = vadd.f32 %v9609_v55, %v3013_v7  ;;  %v1862_v7 = vmul.f32 %v9409_v40, %v9699_v25 }
 0x1d0   : > { %v1653_v22 = vmax.f32 %v1614_v61, 0.0  ;;  %7864 = vmatmul.msk.bf16.gmra.mxu1 %vm1658_vm3, %v2920_v51  ;;  %v2507_v60 = vmul.f32 %v9383_v37, %v9707_v33  ;;  %v1893_v44 = vadd.f32 %v1861_v50, %v1822_v5  ;;  %v2468_v11 = vmul.f32 %v9394_v34, %v9645_v36  ;;  %v5006_v36 = vld [vmem:[%s8652_s20 + $0x30] sm:$0xff] }
 0x1d1   : > { %v9739_v56 = vld [vmem:[#allocation2 + $0xda] sm:$0xff]  ;;  %v2832_v47 = vadd.f32 %v2800_v0, %v2397_v13  ;;  %v2398_v43 = vadd.f32 %v2366_v52, %v2155_v28  ;;  %v4997_v28 = vld [vmem:[%s8647_s30 + $0x28] sm:$0xff]  ;;  %v1894_v63 = vadd.f32 %v1862_v7, %v1823_v32 }
 0x1d2   : > { %1690 = vst.msk [vmem:[#allocation2 + $0xe9] sm:$0xff] %vm1658_vm3, %v1653_v22  ;;  %v2577_v23 = vmul.f32 %v9450_v1, %v9739_v56  ;;  %v9745_v38 = vld [vmem:[#allocation2 + $0xe0] sm:$0xff]  ;;  %v2095_v22 = vpop.permute.xlu0 %2094  ;;  %v2539_v0 = vadd.f32 %v2507_v60, %v2468_v11  ;;  %v5007_v32 = vld [vmem:[%s8652_s20 + $0x38] sm:$0xff] }
 0x1d3   : > { %v1932_v45 = vmul.f32 %v9422_v35, %v9745_v38  ;;  %v2868_v51 = vadd.f32 %v9506_v3, %v2832_v47  ;;  %v9773_v4 = vld [vmem:[#allocation2 + $0xe1] sm:$0xff]  ;;  %v1863_v11 = vmul.f32 %v9409_v40, %v9745_v38 }
 0x1d4   : > { %v2609_v59 = vadd.f32 %v2577_v23, %v2538_v6 }
 0x1d5   : > { %v1616_v29 = vpop.f32.mrf.mxu0  ;;  %v3015_v14 = vpop.f32.mrf.mxu1  ;;  %5145 = vperm.xlu1 %8346, %v4995_v24   ;;  %v1964_v2 = vadd.f32 %v1932_v45, %v1893_v44  ;;  %v2900_v13 = vmax.f32 %v2868_v51, 0.0  ;;  %v2226_v45 = vmul.f32 %v9457_v20, %v9659_v12  ;;  %v4998_v12 = vld [vmem:[%s8647_s30 + $0x30] sm:$0xff] }
 0x1d6   : > { %v1617_v39 = vadd.f32 %v9345_v41, %v1616_v29  ;;  %v3016_v62 = vadd.f32 %v9609_v55, %v3015_v14  ;;  %5551 = vperm.xlu2 %8347, %v5005_v15   ;;  %5140 = vperm.xlu0 %8345, %v4994_v49   ;;  %v2801_v8 = vmul.f32 %v2736_v42, %v2609_v59 }
 0x1d7   : > { %v2296_v15 = vadd.f32 %v2264_v16, %v2225_v27  ;;  %v2335_v49 = vmul.f32 %v9464_v26, %v9773_v4  ;;  %v2265_v42 = vmul.f32 %v9438_v17, %v9721_v30  ;;  %v2508_v59 = vmul.f32 %v9383_v37, %v9739_v56 }
 0x1d8   : > { %v1654_v19 = vmax.f32 %v1617_v39, 0.0  ;;  %v3085_v31 = vpack.c.bf16 %v3016_v62, %v3014_v46  ;;  %v2833_v61 = vadd.f32 %v2801_v8, %v2398_v43  ;;  %v2156_v14 = vmul.f32 %v2095_v22, %v1964_v2  ;;  %v2741_v43 = vpop.permute.xlu2 %2740  ;;  %v2100_v62 = vpop.permute.xlu1 %2099 }
 0x1d9   : > { %v9771_v48 = vld [vmem:[#allocation2 + $0xe8] sm:$0xff]  ;;  %v2469_v37 = vmul.f32 %v9394_v34, %v9675_v21  ;;  %v2297_v60 = vadd.f32 %v2265_v42, %v2226_v45  ;;  %v4999_v21 = vld [vmem:[%s8647_s30 + $0x38] sm:$0xff]  ;;  %v1824_v2 = vmul.f32 %v9414_v9, %v9681_v57  ;;  %v2266_v57 = vmul.f32 %v9438_v17, %v9773_v4 }
 0x1da   : > { %v9775_v18 = vld [vmem:[#allocation2 + $0xe2] sm:$0xff]  ;;  %1691 = vst.msk [vmem:[#allocation2 + $0xf1] sm:$0xff] %vm1658_vm3, %v1654_v19  ;;  %7876 = vmatmul.msk.bf16.gmra.mxu2 %vm3111_vm5, %v3085_v31  ;;  %v2869_v53 = vadd.f32 %v9506_v3, %v2833_v61  ;;  %v1933_v58 = vmul.f32 %v9422_v35, %v9771_v48  ;;  %v2746_v22 = vpop.permute.xlu0 %2745 }
 0x1db   : > { %v2578_v24 = vmul.f32 %v9450_v1, %v9775_v18  ;;  %v9787_v23 = vld [vmem:[#allocation2 + $0xe9] sm:$0xff]  ;;  %v2540_v31 = vadd.f32 %v2508_v59, %v2469_v37  ;;  %v1825_v37 = vmul.f32 %v9414_v9, %v9699_v25 }
 0x1dc   : > { %v2901_v6 = vmax.f32 %v2869_v53, 0.0  ;;  %v1965_v47 = vadd.f32 %v1933_v58, %v1894_v63  ;;  %v2336_v39 = vmul.f32 %v9464_v26, %v9787_v23 }
 0x1dd   : > { %v1618_v50 = vpop.f32.mrf.mxu0  ;;  %v3018_v52 = vpop.f32.mrf.mxu1  ;;  %5150 = vperm.xlu1 %8346, %v4996_v10   ;;  %v2610_v46 = vadd.f32 %v2578_v24, %v2539_v0  ;;  %v8388_v24 = vld [vmem:[%s12871_s13] ss:$0 sm:$0xff] }
 0x1de   : > { %v1619_v5 = vadd.f32 %v9345_v41, %v1618_v50  ;;  %5155 = vperm.xlu2 %8347, %v4997_v28   ;;  %5555 = vperm.xlu0 %8345, %v5006_v36   ;;  %v2921_v29 = vpack.c.bf16 %v2901_v6, %v2900_v13  ;;  %v2367_v41 = vadd.f32 %v2335_v49, %v2296_v15 }
 0x1df   : > { %v2802_v7 = vmul.f32 %v2741_v43, %v2610_v46  ;;  %v2157_v16 = vmul.f32 %v2100_v62, %v1965_v47  ;;  %v2368_v27 = vadd.f32 %v2336_v39, %v2297_v60  ;;  %v3019_v58 = vadd.f32 %v9609_v55, %v3018_v52  ;;  %v9827_v52 = vld [vmem:[%s8552_s17 + $0x5] ss:$0 sm:$0xff] }
 0x1e0   : > { %v1655_v8 = vmax.f32 %v1619_v5, 0.0  ;;  %7865 = vmatmul.msk.bf16.gmra.mxu1 %vm1658_vm3, %v2921_v29  ;;  %v2399_v19 = vadd.f32 %v2367_v41, %v2156_v14  ;;  %v1864_v49 = vmul.f32 %v9409_v40, %v9771_v48  ;;  %v1895_v50 = vadd.f32 %v1863_v11, %v1824_v2  ;;  %v2110_v62 = vpop.permute.xlu2 %2109  ;;  %v6121_v41 = vld [vmem:[%s12881_s23 + $0x38] sm:$0xff] }
 0x1e1   : > { %v9803_v44 = vld [vmem:[#allocation2 + $0xea] sm:$0xff]  ;;  %v2400_v63 = vadd.f32 %v2368_v27, %v2157_v16  ;;  %v2509_v42 = vmul.f32 %v9827_v52, %v9775_v18  ;;  %v2227_v40 = vmul.f32 %v9457_v20, %v9703_v54  ;;  %v2470_v29 = vmul.f32 %v9394_v34, %v9707_v33  ;;  %v2105_v33 = vpop.permute.xlu1 %2104 }
 0x1e2   : > { %1692 = vst.msk [vmem:[#allocation2 + $0xf9] sm:$0xff] %vm1658_vm3, %v1655_v8  ;;  %v2579_v61 = vmul.f32 %v9450_v1, %v9803_v44  ;;  %v9809_v51 = vld [vmem:[#allocation2 + $0xf0] sm:$0xff]  ;;  %v2834_v53 = vadd.f32 %v2802_v7, %v2399_v19  ;;  %v6119_v7 = vld [vmem:[%s12881_s23 + $0x28] sm:$0xff]  ;;  %v1896_v25 = vadd.f32 %v1864_v49, %v1825_v37  ;;  %v2267_v27 = vmul.f32 %v9438_v17, %v9787_v23 }
 0x1e3   : > { %v1934_v0 = vmul.f32 %v9422_v35, %v9809_v51  ;;  %v9838_v45 = vld [vmem:[#allocation2 + $0xf1] sm:$0xff]  ;;  %v2298_v16 = vadd.f32 %v2266_v57, %v2227_v40  ;;  %v2541_v60 = vadd.f32 %v2509_v42, %v2470_v29  ;;  %v2510_v11 = vmul.f32 %v9827_v52, %v9803_v44  ;;  %v9877_v49 = vld [vmem:[%s8552_s17 + $0x8] ss:$0 sm:$0xff]  ;;  %v9898_v29 = vld [vmem:[%s8552_s17 + $0x1] ss:$0 sm:$0xff] }
 0x1e4   : > { %v2611_v10 = vadd.f32 %v2579_v61, %v2540_v31  ;;  %v2870_v5 = vadd.f32 %v9506_v3, %v2834_v53  ;;  %v6120_v8 = vld [vmem:[%s12881_s23 + $0x30] sm:$0xff]  ;;  %v2337_v31 = vmul.f32 %v9464_v26, %v9838_v45  ;;  %v2228_v2 = vmul.f32 %v9457_v20, %v9721_v30  ;;  %v6113_v20 = vld [vmem:[%s12882_s2 + $0x38] sm:$0xff] }
 0x1e5   : > { %v1621_v28 = vpop.f32.mrf.mxu0  ;;  %v3020_v36 = vpop.f32.mrf.mxu1  ;;  %5160 = vperm.xlu1 %8346, %v4998_v12   ;;  %v1966_v43 = vadd.f32 %v1934_v0, %v1895_v50  ;;  %v6112_v42 = vld [vmem:[%s12882_s2 + $0x30] sm:$0xff] }
 0x1e6   : > { %v1622_v13 = vadd.f32 %v8388_v24, %v1621_v28  ;;  %v3021_v6 = vadd.f32 %v9609_v55, %v3020_v36  ;;  %5165 = vperm.xlu2 %8347, %v4999_v21   ;;  %5559 = vperm.xlu0 %8345, %v5007_v32   ;;  %v2803_v15 = vmul.f32 %v2746_v22, %v2611_v10  ;;  %v2902_v19 = vmax.f32 %v2870_v5, 0.0  ;;  %v9865_v28 = vld [vmem:[%s8552_s17 + $0x2] ss:$0 sm:$0xff]  ;;  %v9893_v5 = vld [vmem:[%s8552_s17 + $0x3] ss:$0 sm:$0xff] }
 0x1e7   : > { %v2158_v32 = vmul.f32 %v2105_v33, %v1966_v43  ;;  %v2471_v17 = vmul.f32 %v9865_v28, %v9739_v56  ;;  %v2369_v0 = vadd.f32 %v2337_v31, %v2298_v16  ;;  %v1865_v40 = vmul.f32 %v9893_v5, %v9809_v51 }
 0x1e8   : > { %v1656_v59 = vmax.f32 %v1622_v13, 0.0  ;;  %v3086_v47 = vpack.c.bf16 %v3021_v6, %v3019_v58  ;;  %v2835_v46 = vadd.f32 %v2803_v15, %v2400_v63  ;;  %v2751_v58 = vpop.permute.xlu0 %2750  ;;  %v2299_v13 = vadd.f32 %v2267_v27, %v2228_v2 }
 0x1e9   : > { %v9836_v14 = vld [vmem:[#allocation2 + $0xf8] sm:$0xff]  ;;  %v2401_v56 = vadd.f32 %v2369_v0, %v2158_v32  ;;  %v2542_v15 = vadd.f32 %v2510_v11, %v2471_v17  ;;  %v2229_v43 = vmul.f32 %v9898_v29, %v9773_v4  ;;  %v2472_v31 = vmul.f32 %v9865_v28, %v9775_v18 }
 0x1ea   : > { %v9840_v39 = vld [vmem:[#allocation2 + $0xf2] sm:$0xff]  ;;  %1693 = vst.msk [vmem:[#allocation2 + $0x101] sm:$0xff] %vm1658_vm3, %v1656_v59  ;;  %7877 = vmatmul.msk.bf16.gmra.mxu2 %vm3111_vm5, %v3086_v47  ;;  %v2871_v54 = vadd.f32 %v9506_v3, %v2835_v46  ;;  %v1935_v34 = vmul.f32 %v9422_v35, %v9836_v14  ;;  %v9886_v59 = vld [vmem:[%s8552_s17] ss:$0 sm:$0xff]  ;;  %v2473_v18 = vmul.f32 %v9865_v28, %v9803_v44 }
 0x1eb   : > { %v2580_v12 = vmul.f32 %v9450_v1, %v9840_v39  ;;  %v9856_v35 = vld [vmem:[#allocation2 + $0xf9] sm:$0xff]  ;;  %v1826_v47 = vmul.f32 %v9886_v59, %v9745_v38  ;;  %v1827_v46 = vmul.f32 %v9886_v59, %v9771_v48  ;;  %v2230_v38 = vmul.f32 %v9898_v29, %v9787_v23 }
 0x1ec   : > { %v2903_v9 = vmax.f32 %v2871_v54, 0.0  ;;  %v1967_v53 = vadd.f32 %v1935_v34, %v1896_v25  ;;  %v2338_v63 = vmul.f32 %v9464_v26, %v9856_v35  ;;  %v6117_v26 = vld [vmem:[%s12881_s23 + $0x18] sm:$0xff]  ;;  %v2756_v34 = vpop.permute.xlu1 %2755  ;;  %v2511_v16 = vmul.f32 %v9827_v52, %v9840_v39 }
 0x1ed   : > { %v1623_v61 = vpop.f32.mrf.mxu0  ;;  %v3023_v21 = vpop.f32.mrf.mxu1  ;;  %6668 = vperm.xlu1 %8346, %v6120_v8   ;;  %v2612_v1 = vadd.f32 %v2580_v12, %v2541_v60 }
 0x1ee   : > { %v1624_v22 = vadd.f32 %v8388_v24, %v1623_v61  ;;  %6672 = vperm.xlu2 %8347, %v6121_v41   ;;  %6664 = vperm.xlu0 %8345, %v6119_v7   ;;  %v2922_v10 = vpack.c.bf16 %v2903_v9, %v2902_v19  ;;  %v2159_v30 = vmul.f32 %v2110_v62, %v1967_v53  ;;  %v2115_v62 = vpop.permute.xlu2 %2114  ;;  %v9908_v7 = vld [vmem:[%s8552_s17 + $0x6] ss:$0 sm:$0xff]  ;;  %v9916_v9 = vld [vmem:[%s8552_s17 + $0x4] ss:$0 sm:$0xff] }
 0x1ef   : > { %v2804_v24 = vmul.f32 %v2751_v58, %v2612_v1  ;;  %v2370_v37 = vadd.f32 %v2338_v63, %v2299_v13  ;;  %v3024_v48 = vadd.f32 %v9609_v55, %v3023_v21  ;;  %v1866_v41 = vmul.f32 %v9893_v5, %v9836_v14 }
 0x1f0   : > { %v1657_v36 = vmax.f32 %v1624_v22, 0.0  ;;  %7866 = vmatmul.msk.bf16.gmra.mxu1 %vm1658_vm3, %v2922_v10  ;;  %v1897_v19 = vadd.f32 %v1865_v40, %v1826_v47  ;;  %v2269_v25 = vmul.f32 %v9916_v9, %v9856_v35  ;;  %v2268_v1 = vmul.f32 %v9916_v9, %v9838_v45 }
 0x1f1   : > { %v9872_v6 = vld [vmem:[#allocation2 + $0xfa] sm:$0xff]  ;;  %v2836_v54 = vadd.f32 %v2804_v24, %v2401_v56  ;;  %v2402_v23 = vadd.f32 %v2370_v37, %v2159_v30  ;;  %v1898_v10 = vadd.f32 %v1866_v41, %v1827_v46  ;;  %v2543_v17 = vadd.f32 %v2511_v16, %v2472_v31  ;;  %v9936_v24 = vld [vmem:[%s8552_s17 + $0x7] ss:$0 sm:$0xff]  ;;  %v2120_v56 = vpop.permute.xlu0 %2119 }
 0x1f2   : > { %1694 = vst.msk [vmem:[#allocation2 + $0x109] sm:$0xff] %vm1658_vm3, %v1657_v36  ;;  %v2581_v50 = vmul.f32 %v9877_v49, %v9872_v6  ;;  %v9881_v57 = vld [vmem:[#allocation2 + $0x100] sm:$0xff]  ;;  %v2512_v61 = vmul.f32 %v9827_v52, %v9872_v6  ;;  %v2301_v44 = vadd.f32 %v2269_v25, %v2230_v38  ;;  %v1902_v16 = vld [vmem:[#allocation2 + $0x118] sm:$0xff] }
 0x1f3   : > { %v1936_v4 = vmul.f32 %v9908_v7, %v9881_v57  ;;  %v2872_v27 = vadd.f32 %v9506_v3, %v2836_v54  ;;  %v9925_v11 = vld [vmem:[#allocation2 + $0x101] sm:$0xff] }
 0x1f4   : > { %v2613_v8 = vadd.f32 %v2581_v50, %v2542_v15  ;;  %v6110_v36 = vld [vmem:[%s12882_s2 + $0x20] sm:$0xff]  ;;  %v6111_v15 = vld [vmem:[%s12882_s2 + $0x28] sm:$0xff] }
 0x1f5   : > { %v3025_v33 = vpop.f32.mrf.mxu1  ;;  %6279 = vperm.xlu1 %8346, %v6113_v20   ;;  %v1968_v53 = vadd.f32 %v1936_v4, %v1897_v19  ;;  %v6118_v50 = vld [vmem:[%s12881_s23 + $0x20] sm:$0xff]  ;;  %v1829_v19 = vmul.f32 %v9886_v59, %v9836_v14  ;;  %v1828_v14 = vmul.f32 %v9886_v59, %v9809_v51 }
 0x1f6   : > { %v3026_v60 = vadd.f32 %v9609_v55, %v3025_v33  ;;  %6656 = vperm.xlu2 %8347, %v6117_v26   ;;  %6274 = vperm.xlu0 %8345, %v6112_v42   ;;  %v2805_v12 = vmul.f32 %v2756_v34, %v2613_v8  ;;  %v2339_v26 = vmul.f32 %v9936_v24, %v9925_v11 }
 0x1f7   : > { %v2544_v42 = vadd.f32 %v2512_v61, %v2473_v18  ;;  %v2160_v54 = vmul.f32 %v2115_v62, %v1968_v53  ;;  %v2300_v34 = vadd.f32 %v2268_v1, %v2229_v43  ;;  %v6116_v1 = vld [vmem:[%s12881_s23 + $0x10] sm:$0xff] }
 0x1f8   : > { %v3087_v21 = vpack.c.bf16 %v3026_v60, %v3024_v48  ;;  %v2837_v32 = vadd.f32 %v2805_v12, %v2402_v23  ;;  %v2305_v60 = vld [vmem:[#allocation2 + $0x119] sm:$0xff]  ;;  %v2766_v23 = vpop.permute.xlu2 %2765  ;;  %v2761_v12 = vpop.permute.xlu1 %2760  ;;  %v6108_v18 = vld [vmem:[%s12882_s2 + $0x10] sm:$0xff] }
 0x1f9   : > { %v1831_v22 = vld [vmem:[#allocation2 + $0x108] sm:$0xff]  ;;  %v2371_v43 = vadd.f32 %v2339_v26, %v2300_v34  ;;  %v1901_v61 = vld [vmem:[#allocation2 + $0x110] sm:$0xff]  ;;  %v6106_v34 = vld [vmem:[%s12882_s2] sm:$0xff] }
 0x1fa   : > { %v2234_v58 = vld [vmem:[#allocation2 + $0x109] sm:$0xff]  ;;  %7878 = vmatmul.msk.bf16.gmra.mxu2 %vm3111_vm5, %v3087_v21  ;;  %v2873_v63 = vadd.f32 %v9506_v3, %v2837_v32  ;;  %v1937_v0 = vmul.f32 %v9908_v7, %v1831_v22  ;;  %v2904_v3 = vmax.f32 %v2872_v27, 0.0  ;;  %v1868_v33 = vmul.f32 %v9893_v5, %v1831_v22  ;;  %v2304_v26 = vld [vmem:[#allocation2 + $0x111] sm:$0xff] }
 0x1fb   : > { %v2476_v2 = vld [vmem:[#allocation2 + $0x102] sm:$0xff]  ;;  %v2340_v13 = vmul.f32 %v9936_v24, %v2234_v58  ;;  %v2477_v20 = vld [vmem:[#allocation2 + $0x10a] sm:$0xff]  ;;  %v1867_v21 = vmul.f32 %v9893_v5, %v9881_v57  ;;  %v1939_v32 = vmul.f32 %v9908_v7, %v1902_v16  ;;  %v2342_v27 = vmul.f32 %v9936_v24, %v2305_v60 }
 0x1fc   : > { %v2582_v30 = vmul.f32 %v9877_v49, %v2476_v2  ;;  %v2583_v47 = vmul.f32 %v9877_v49, %v2477_v20  ;;  %v2905_v46 = vmax.f32 %v2873_v63, 0.0  ;;  %v1969_v40 = vadd.f32 %v1937_v0, %v1898_v10 }
 0x1fd   : > { %v3028_v8 = vpop.f32.mrf.mxu1  ;;  %6264 = vperm.xlu1 %8346, %v6110_v36   ;;  %v2372_v4 = vadd.f32 %v2340_v13, %v2301_v44  ;;  %v2403_v22 = vadd.f32 %v2371_v43, %v2160_v54  ;;  %v1900_v53 = vadd.f32 %v1868_v33, %v1829_v19  ;;  %v1938_v36 = vmul.f32 %v9908_v7, %v1901_v61  ;;  %v2125_v7 = vpop.permute.xlu0 %2124 }
 0x1fe   : > { %v2614_v37 = vadd.f32 %v2582_v30, %v2543_v17  ;;  %v2615_v48 = vadd.f32 %v2583_v47, %v2544_v42  ;;  %6269 = vperm.xlu2 %8347, %v6111_v15   ;;  %6660 = vperm.xlu0 %8345, %v6118_v50   ;;  %v2923_v38 = vpack.c.bf16 %v2905_v46, %v2904_v3  ;;  %v6115_v17 = vld [vmem:[%s12881_s23 + $0x8] sm:$0xff]  ;;  %v2547_v30 = vld [vmem:[#allocation2 + $0x112] sm:$0xff]  ;;  %v6114_v46 = vld [vmem:[%s12881_s23] sm:$0xff] }
 0x1ff   : > { %v2161_v41 = vmul.f32 %v2120_v56, %v1969_v40  ;;  %v2231_v63 = vmul.f32 %v9898_v29, %v9838_v45  ;;  %v2232_v57 = vmul.f32 %v9898_v29, %v9856_v35  ;;  %v2271_v5 = vmul.f32 %v9916_v9, %v2234_v58  ;;  %v2548_v56 = vld [vmem:[#allocation2 + $0x11a] sm:$0xff] }
 0x200   : > { %7867 = vmatmul.msk.bf16.gmra.mxu1 %vm1658_vm3, %v2923_v38  ;;  %v2806_v25 = vmul.f32 %v2761_v12, %v2614_v37  ;;  %v2807_v31 = vmul.f32 %v2766_v23, %v2615_v48  ;;  %v2474_v13 = vmul.f32 %v9865_v28, %v9840_v39  ;;  %v2513_v51 = vmul.f32 %v9827_v52, %v2476_v2  ;;  %v2130_v3 = vpop.permute.xlu1 %2129  ;;  %v6109_v48 = vld [vmem:[%s12882_s2 + $0x18] sm:$0xff]  ;;  %v2771_v19 = vpop.permute.xlu2 %2770 }
 0x201   : > { %v2404_v62 = vadd.f32 %v2372_v4, %v2161_v41  ;;  %v2514_v59 = vmul.f32 %v9827_v52, %v2477_v20  ;;  %v3029_v15 = vadd.f32 %v9609_v55, %v3028_v8  ;;  %v1899_v50 = vadd.f32 %v1867_v21, %v1828_v14  ;;  %v8398_v52 = vld [vmem:[%s8557_s21] ss:$0 sm:$0xff]  ;;  %v7100_v21 = vld [vmem:[%s12883_s16 + $0x8] sm:$0xff] }
 0x202   : > { %v2838_v0 = vadd.f32 %v2806_v25, %v2403_v22  ;;  %v2270_v35 = vmul.f32 %v9916_v9, %v9925_v11  ;;  %v2475_v29 = vmul.f32 %v9865_v28, %v9872_v6  ;;  %v1971_v2 = vadd.f32 %v1939_v32, %v1900_v53  ;;  %v6107_v32 = vld [vmem:[%s12882_s2 + $0x8] sm:$0xff]  ;;  %s12891_s2 = sld [smem:[#allocation16_spill]] }
 0x203   : > { %v2839_v10 = vadd.f32 %v2807_v31, %v2404_v62  ;;  %v1970_v20 = vadd.f32 %v1938_v36, %v1899_v50  ;;  %v2303_v44 = vadd.f32 %v2271_v5, %v2232_v57  ;;  %v2584_v42 = vmul.f32 %v9877_v49, %v2547_v30  ;;  %v7099_v31 = vld [vmem:[%s12883_s16] sm:$0xff]  ;;  %v7098_v36 = vld [vmem:[%s12884_s22 + $0x8] sm:$0xff] }
 0x204   : > { %v2585_v9 = vmul.f32 %v9877_v49, %v2548_v56  ;;  %v2874_v47 = vadd.f32 %v8398_v52, %v2838_v0  ;;  %v2545_v28 = vadd.f32 %v2513_v51, %v2474_v13  ;;  %v2546_v6 = vadd.f32 %v2514_v59, %v2475_v29  ;;  %v7097_v57 = vld [vmem:[%s12884_s22] sm:$0xff]  ;;  %v8399_v56 = vld [vmem:[#allocation4] sm:$0xff] }
 0x205   : > { %v3030_v45 = vpop.f32.mrf.mxu1  ;;  %6652 = vperm.xlu1 %8346, %v6116_v1   ;;  %v2875_v58 = vadd.f32 %v8398_v52, %v2839_v10  ;;  %v2163_v37 = vmul.f32 %v2130_v3, %v1971_v2  ;;  %v2302_v8 = vadd.f32 %v2270_v35, %v2231_v63  ;;  %v2341_v54 = vmul.f32 %v9936_v24, %v2304_v26  ;;  %v2776_v43 = vpop.permute.xlu0 %2775 }
 0x206   : > { %v3031_v39 = vadd.f32 %v9609_v55, %v3030_v45  ;;  %6254 = vperm.xlu2 %8347, %v6108_v18   ;;  %6648 = vperm.xlu0 %8345, %v6115_v17   ;;  %v2162_v33 = vmul.f32 %v2125_v7, %v1970_v20  ;;  %v2906_v38 = vmax.f32 %v2874_v47, 0.0  ;;  %v2374_v41 = vadd.f32 %v2342_v27, %v2303_v44  ;;  %v10006_v45 = vld [vmem:[%s12874_s8] ss:$0 sm:$0xff] }
 0x207   : > { %v2907_v40 = vmax.f32 %v2875_v58, 0.0  ;;  %v2616_v49 = vadd.f32 %v2584_v42, %v2545_v28  ;;  %v2617_v4 = vadd.f32 %v2585_v9, %v2546_v6  ;;  %v2373_v23 = vadd.f32 %v2341_v54, %v2302_v8  ;;  %3282 = vst.msk [vmem:[#allocation3] sm:$0xff] %vm3281_vm6, %v8399_v56 }
 0x208   : > { %v3088_v11 = vpack.c.bf16 %v3031_v39, %v3029_v15  ;;  %v2406_v12 = vadd.f32 %v2374_v41, %v2163_v37  ;;  %v9986_v22 = vpop.permute.xlu1 %3667  ;;  %v9993_v13 = vpop.permute.xlu2 %3672  ;;  %3283 = vst.msk [vmem:[#allocation3 + $0x8] sm:$0xff] %vm3281_vm6, %v8399_v56 }
 0x209   : > { %v2924_v60 = vpack.c.bf16 %v2907_v40, %v2906_v38  ;;  %v2405_v24 = vadd.f32 %v2373_v23, %v2162_v33  ;;  %v2808_v62 = vmul.f32 %v2771_v19, %v2616_v49  ;;  %v2809_v25 = vmul.f32 %v2776_v43, %v2617_v4  ;;  %12885 = vst [vmem:[#allocation46_spill] sm:$0xff] %v9986_v22 }
 0x20a   : > { %7879 = vmatmul.msk.bf16.gmra.mxu2 %vm3111_vm5, %v3088_v11  ;;  %12886 = vst [vmem:[#allocation47_spill] sm:$0xff] %v9993_v13  ;;  %v10026_v11 = vld [vmem:[%s12891_s2] ss:$0 sm:$0xff]  ;;  %v10160_v13 = vld [vmem:[%s12906_s3 + $0x8] ss:$0 sm:$0xff] }
 0x20b   : > { %v2841_v61 = vadd.f32 %v2809_v25, %v2406_v12  ;;  %v2840_v27 = vadd.f32 %v2808_v62, %v2405_v24  ;;  %3318 = vst.msk [vmem:[#allocation3 + $0x111] sm:$0xff] %vm3281_vm6, %v8399_v56 }
 0x20c   : > { %3319 = vst.msk [vmem:[#allocation3 + $0x119] sm:$0xff] %vm3281_vm6, %v8399_v56 }
 0x20d   : > { %v3033_v16 = vpop.f32.mrf.mxu1  ;;  %6644 = vperm.xlu1 %8346, %v6114_v46   ;;  %v2877_v53 = vadd.f32 %v8398_v52, %v2841_v61  ;;  %v2876_v17 = vadd.f32 %v8398_v52, %v2840_v27  ;;  %v9995_v51 = vpop.permute.xlu0 %4313  ;;  %3285 = vst.msk [vmem:[#allocation3 + $0x10] sm:$0x1] %vm3284_vm7, %v8399_v56 }
 0x20e   : > { %6244 = vperm.xlu2 %8347, %v6106_v34   ;;  %6259 = vperm.xlu0 %8345, %v6109_v48   ;;  %v3034_v10 = vadd.f32 %v9609_v55, %v3033_v16  ;;  %12887 = vst [vmem:[#allocation48_spill] sm:$0xff] %v9995_v51 }
 0x20f   : > { %v2909_v63 = vmax.f32 %v2877_v53, 0.0  ;;  %v2908_v5 = vmax.f32 %v2876_v17, 0.0  ;;  %3320 = vst.msk [vmem:[#allocation3 + $0x121] sm:$0x1] %vm3284_vm7, %v8399_v56 }
 0x210   : > { %7868 = vmatmul.msk.bf16.gmra.mxu1 %vm1658_vm3, %v2924_v60  ;;  %v9997_v30 = vpop.permute.xlu1 %4318  ;;  %v10009_v35 = vpop.permute.xlu2 %3657 }
 0x211   : > { %v2925_v59 = vpack.c.bf16 %v2909_v63, %v2908_v5  ;;  %12888 = vst [vmem:[#allocation49_spill] sm:$0xff] %v9997_v30 }
 0x212   : > { %12889 = vst [vmem:[#allocation50_spill] sm:$0xff] %v10009_v35 }
 0x215   : > { %v3035_v1 = vpop.f32.mrf.mxu1  ;;  %7385 = vperm.xlu1 %8346, %v7099_v31   ;;  %v10011_v29 = vpop.permute.xlu0 %3662 }
 0x216   : > { %v3036_v14 = vadd.f32 %v9609_v55, %v3035_v1  ;;  %7389 = vperm.xlu2 %8347, %v7100_v21   ;;  %6249 = vperm.xlu0 %8345, %v6107_v32   ;;  %12890 = vst [vmem:[#allocation51_spill] sm:$0xff] %v10011_v29 }
 0x218   : > { %v3089_v18 = vpack.c.bf16 %v3036_v14, %v3034_v10  ;;  %v10013_v52 = vpop.permute.xlu1 %4303  ;;  %v10016_v2 = vpop.permute.xlu2 %4308 }
 0x219   : > { %12892 = vst [vmem:[#allocation52_spill] sm:$0xff] %v10013_v52 }
 0x21a   : > { %7880 = vmatmul.msk.bf16.gmra.mxu2 %vm3111_vm5, %v3089_v18  ;;  %12893 = vst [vmem:[#allocation53_spill] sm:$0xff] %v10016_v2 }
 0x21d   : > { %v3038_v0 = vpop.f32.mrf.mxu1  ;;  %7180 = vperm.xlu1 %8346, %v7098_v36  }
 0x21e   : > { %7175 = vperm.xlu0 %8345, %v7097_v57   ;;  %v3039_v15 = vadd.f32 %v9609_v55, %v3038_v0  ;;  %v10018_v55 = vpop.permute.xlu0 %3647 }
 0x21f   : > { %12894 = vst [vmem:[#allocation54_spill] sm:$0xff] %v10018_v55 }
 0x220   : > { %7869 = vmatmul.msk.bf16.gmra.mxu1 %vm1658_vm3, %v2925_v59  ;;  %v10020_v20 = vpop.permute.xlu1 %3652  ;;  %v10028_v47 = vpop.permute.xlu2 %4293 }
 0x221   : > { %12895 = vst [vmem:[#allocation55_spill] sm:$0xff] %v10020_v20 }
 0x222   : > { %12896 = vst [vmem:[#allocation56_spill] sm:$0xff] %v10028_v47 }
 0x225   : > { %v3040_v7 = vpop.f32.mrf.mxu1 }
 0x226   : > { %v3041_v50 = vadd.f32 %v10006_v45, %v3040_v7  ;;  %v10030_v28 = vpop.permute.xlu0 %4298 }
 0x227   : > { %12897 = vst [vmem:[#allocation57_spill] sm:$0xff] %v10030_v28 }
 0x228   : > { %v3090_v39 = vpack.c.bf16 %v3041_v50, %v3039_v15  ;;  %v10032_v46 = vpop.permute.xlu1 %3637  ;;  %v10036_v34 = vpop.permute.xlu2 %3642 }
 0x229   : > { %12898 = vst [vmem:[#allocation58_spill] sm:$0xff] %v10032_v46 }
 0x22a   : > { %7881 = vmatmul.msk.bf16.gmra.mxu2 %vm3111_vm5, %v3090_v39  ;;  %12899 = vst [vmem:[#allocation59_spill] sm:$0xff] %v10036_v34 }
 0x22d   : > { %v3043_v58 = vpop.f32.mrf.mxu1 }
 0x22e   : > { %v3044_v26 = vadd.f32 %v10006_v45, %v3043_v58  ;;  %v10038_v48 = vpop.permute.xlu0 %4283 }
 0x22f   : > { %12900 = vst [vmem:[#allocation60_spill] sm:$0xff] %v10038_v48 }
 0x230   : > { %v10043_v49 = vpop.permute.xlu1 %4288  ;;  %v10048_v19 = vpop.permute.xlu2 %3627 }
 0x231   : > { %12901 = vst [vmem:[#allocation61_spill] sm:$0xff] %v10043_v49 }
 0x235   : > { %v3045_v44 = vpop.f32.mrf.mxu1 }
 0x236   : > { %v3046_v42 = vadd.f32 %v10006_v45, %v3045_v44  ;;  %v10050_v43 = vpop.permute.xlu0 %3632 }
 0x237   : > { %12902 = vst [vmem:[#allocation62_spill] sm:$0xff] %v10050_v43 }
 0x238   : > { %v3091_v9 = vpack.c.bf16 %v3046_v42, %v3044_v26  ;;  %v10052_v62 = vpop.permute.xlu1 %4273  ;;  %v10058_v10 = vpop.permute.xlu2 %4278 }
 0x239   : > { %12903 = vst [vmem:[#allocation63_spill] sm:$0xff] %v10052_v62 }
 0x23a   : > { %7882 = vmatmul.msk.bf16.gmra.mxu2 %vm3111_vm5, %v3091_v9  ;;  %12904 = vst [vmem:[#allocation64_spill] sm:$0xff] %v10058_v10 }
 0x23d   : > { %v3048_v6 = vpop.f32.mrf.mxu1  ;;  %v3169_v3 = vpop.f32.mrf.mxu2 }
 0x23e   : > { %v3170_v40 = vadd.f32 %v10026_v11, %v3169_v3  ;;  %v3049_v33 = vadd.f32 %v10006_v45, %v3048_v6  ;;  %v10060_v14 = vpop.permute.xlu0 %3617 }
 0x240   : > { %v3249_v37 = vmax.f32 %v3170_v40, 0.0  ;;  %v10064_v53 = vpop.permute.xlu1 %3622  ;;  %v10068_v57 = vpop.permute.xlu2 %4263 }
 0x242   : > { %3286 = vst.msk [vmem:[#allocation3 + $0x11] sm:$0xff] %vm3281_vm6, %v3249_v37 }
 0x245   : > { %v3050_v8 = vpop.f32.mrf.mxu1  ;;  %v3171_v54 = vpop.f32.mrf.mxu2 }
 0x246   : > { %v3051_v38 = vadd.f32 %v10006_v45, %v3050_v8  ;;  %v3172_v41 = vadd.f32 %v10026_v11, %v3171_v54  ;;  %v10070_v5 = vpop.permute.xlu0 %4268 }
 0x247   : > { %12905 = vst [vmem:[#allocation65_spill] sm:$0xff] %v10070_v5 }
 0x248   : > { %v3092_v4 = vpack.c.bf16 %v3051_v38, %v3049_v33  ;;  %v3250_v16 = vmax.f32 %v3172_v41, 0.0  ;;  %v10072_v56 = vpop.permute.xlu1 %3607  ;;  %v10079_v42 = vpop.permute.xlu2 %3612 }
 0x249   : > { %v4031_v10 = vld [vmem:[#allocation3 + $0xa] sm:$0xff] }
 0x24a   : > { %3287 = vst.msk [vmem:[#allocation3 + $0x19] sm:$0xff] %vm3281_vm6, %v3250_v16  ;;  %7883 = vmatmul.msk.bf16.gmra.mxu2 %vm3111_vm5, %v3092_v4 }
 0x24d   : > { %v3053_v60 = vpop.f32.mrf.mxu1  ;;  %v3174_v23 = vpop.f32.mrf.mxu2 }
 0x24e   : > { %v3175_v12 = vadd.f32 %v10026_v11, %v3174_v23  ;;  %v3054_v61 = vadd.f32 %v10006_v45, %v3053_v60  ;;  %v10081_v9 = vpop.permute.xlu0 %4253 }
 0x250   : > { %v3251_v24 = vmax.f32 %v3175_v12, 0.0  ;;  %v10084_v3 = vpop.permute.xlu1 %4258  ;;  %v10090_v41 = vpop.permute.xlu2 %3597 }
 0x252   : > { %3288 = vst.msk [vmem:[#allocation3 + $0x21] sm:$0xff] %vm3281_vm6, %v3251_v24 }
 0x255   : > { %v3055_v25 = vpop.f32.mrf.mxu1  ;;  %v3176_v31 = vpop.f32.mrf.mxu2 }
 0x256   : > { %v3056_v21 = vadd.f32 %v10006_v45, %v3055_v25  ;;  %v3177_v32 = vadd.f32 %v10026_v11, %v3176_v31  ;;  %v10092_v4 = vpop.permute.xlu0 %3602 }
 0x258   : > { %v3093_v27 = vpack.c.bf16 %v3056_v21, %v3054_v61  ;;  %v3252_v1 = vmax.f32 %v3177_v32, 0.0  ;;  %v10094_v23 = vpop.permute.xlu1 %4243  ;;  %v10100_v61 = vld [vmem:[%s12906_s3] ss:$0 sm:$0xff]  ;;  %v10102_v21 = vpop.permute.xlu2 %4248 }
 0x25a   : > { %3289 = vst.msk [vmem:[#allocation3 + $0x29] sm:$0xff] %vm3281_vm6, %v3252_v1  ;;  %7884 = vmatmul.msk.bf16.gmra.mxu2 %vm3111_vm5, %v3093_v27  ;;  %v10108_v27 = vld [vmem:[%s12906_s3 + $0x3] ss:$0 sm:$0xff]  ;;  %v3385_v1 = vld [vmem:[#allocation3] sm:$0xff] }
 0x25d   : > { %v3058_v18 = vpop.f32.mrf.mxu1  ;;  %v3179_v17 = vpop.f32.mrf.mxu2 }
 0x25e   : > { %v3180_v36 = vadd.f32 %v10026_v11, %v3179_v17  ;;  %v3059_v7 = vadd.f32 %v10006_v45, %v3058_v18  ;;  %v10104_v32 = vpop.permute.xlu0 %3747  ;;  %v3387_v18 = vld [vmem:[#allocation3 + $0x10] sm:$0xff] }
 0x25f   : > { %12907 = vst [vmem:[#allocation66_spill] sm:$0xff] %v10104_v32  ;;  %v3423_v48 = vmul.f32 %v10100_v61, %v3387_v18 }
 0x260   : > { %v3253_v63 = vmax.f32 %v3180_v36, 0.0  ;;  %v10110_v17 = vpop.permute.xlu1 %3752  ;;  %v10113_v36 = vld [vmem:[%s12906_s3 + $0x6] ss:$0 sm:$0xff] }
 0x261   : > { %12908 = vst [vmem:[#allocation67_spill] sm:$0xff] %v10110_v17  ;;  %v4034_v52 = vld [vmem:[#allocation3 + $0x22] sm:$0xff] }
 0x262   : > { %3290 = vst.msk [vmem:[#allocation3 + $0x31] sm:$0xff] %vm3281_vm6, %v3253_v63 }
 0x265   : > { %v3060_v0 = vpop.f32.mrf.mxu1  ;;  %v3181_v59 = vpop.f32.mrf.mxu2 }
 0x266   : > { %v3061_v15 = vadd.f32 %v10006_v45, %v3060_v0  ;;  %v3182_v50 = vadd.f32 %v10026_v11, %v3181_v59  ;;  %v10115_v59 = vld [vmem:[#allocation3 + $0x20] sm:$0xff]  ;;  %v10145_v17 = vpop.permute.xlu0 %4398 }
 0x267   : > { %12910 = vst [vmem:[#allocation69_spill] sm:$0xff] %v10145_v17 }
 0x268   : > { %v3094_v39 = vpack.c.bf16 %v3061_v15, %v3059_v7  ;;  %v3254_v58 = vmax.f32 %v3182_v50, 0.0  ;;  %v3421_v7 = vmul.f32 %v10100_v61, %v3385_v1  ;;  %v3791_v1 = vld [vmem:[#allocation3 + $0x21] sm:$0xff]  ;;  %v10153_v28 = vpop.permute.xlu1 %3737 }
 0x269   : > { %12911 = vst [vmem:[#allocation70_spill] sm:$0xff] %v10153_v28 }
 0x26a   : > { %3291 = vst.msk [vmem:[#allocation3 + $0x39] sm:$0xff] %vm3281_vm6, %v3254_v58  ;;  %7885 = vmatmul.msk.bf16.gmra.mxu2 %vm3111_vm5, %v3094_v39  ;;  %v3460_v58 = vmul.f32 %v10108_v27, %v3387_v18 }
 0x26d   : > { %v3063_v44 = vpop.f32.mrf.mxu1  ;;  %v3184_v26 = vpop.f32.mrf.mxu2 }
 0x26e   : > { %v3185_v6 = vadd.f32 %v10026_v11, %v3184_v26  ;;  %v3064_v54 = vadd.f32 %v10006_v45, %v3063_v44  ;;  %v10123_v44 = vld [vmem:[%s12906_s3 + $0x1] ss:$0 sm:$0xff]  ;;  %v10126_v26 = vld [vmem:[%s12906_s3 + $0x4] ss:$0 sm:$0xff] }
 0x270   : > { %v3255_v40 = vmax.f32 %v3185_v6, 0.0 }
 0x272   : > { %3292 = vst.msk [vmem:[#allocation3 + $0x41] sm:$0xff] %vm3281_vm6, %v3255_v40 }
 0x275   : > { %v3065_v37 = vpop.f32.mrf.mxu1  ;;  %v3186_v8 = vpop.f32.mrf.mxu2 }
 0x276   : > { %v3066_v33 = vadd.f32 %v10006_v45, %v3065_v37  ;;  %v3187_v38 = vadd.f32 %v10026_v11, %v3186_v8  ;;  %v3789_v37 = vld [vmem:[#allocation3 + $0x11] sm:$0xff]  ;;  %v3531_v8 = vmul.f32 %v10113_v36, %v10115_v59 }
 0x277   : > { %v3826_v49 = vmul.f32 %v10123_v44, %v3789_v37 }
 0x278   : > { %v3095_v16 = vpack.c.bf16 %v3066_v33, %v3064_v54  ;;  %v3256_v60 = vmax.f32 %v3187_v38, 0.0  ;;  %v3787_v54 = vld [vmem:[#allocation3 + $0x1] sm:$0xff]  ;;  %v10131_v33 = vld [vmem:[%s12906_s3 + $0x2] ss:$0 sm:$0xff]  ;;  %v10134_v38 = vld [vmem:[%s12906_s3 + $0x5] ss:$0 sm:$0xff] }
 0x27a   : > { %3293 = vst.msk [vmem:[#allocation3 + $0x49] sm:$0xff] %vm3281_vm6, %v3256_v60  ;;  %7886 = vmatmul.msk.bf16.gmra.mxu2 %vm3111_vm5, %v3095_v16  ;;  %v3386_v16 = vld [vmem:[#allocation3 + $0x8] sm:$0xff] }
 0x27b   : > { %v3788_v60 = vld [vmem:[#allocation3 + $0x9] sm:$0xff] }
 0x27d   : > { %v3068_v12 = vpop.f32.mrf.mxu1  ;;  %v3189_v24 = vpop.f32.mrf.mxu2 }
 0x27e   : > { %v3190_v25 = vadd.f32 %v10026_v11, %v3189_v24  ;;  %v3069_v15 = vadd.f32 %v10006_v45, %v3068_v12  ;;  %v10139_v12 = vld [vmem:[%s12906_s3 + $0x7] ss:$0 sm:$0xff] }
 0x27f   : > { %v3388_v24 = vld [vmem:[#allocation3 + $0x18] sm:$0xff] }
 0x280   : > { %v3257_v31 = vmax.f32 %v3190_v25, 0.0  ;;  %v3492_v25 = vadd.f32 %v3460_v58, %v3421_v7  ;;  %v3461_v30 = vmul.f32 %v10108_v27, %v3388_v24  ;;  %v3424_v18 = vmul.f32 %v10100_v61, %v3388_v24 }
 0x282   : > { %3294 = vst.msk [vmem:[#allocation3 + $0x51] sm:$0xff] %vm3281_vm6, %v3257_v31  ;;  %v4030_v31 = vld [vmem:[#allocation3 + $0x2] sm:$0xff]  ;;  %v3563_v32 = vadd.f32 %v3531_v8, %v3492_v25 }
 0x283   : > { %v3390_v8 = vld [vmem:[#allocation3 + $0x28] sm:$0xff] }
 0x284   : > { %v3755_v35 = vmul.f32 %v10090_v41, %v3563_v32  ;;  %v3532_v24 = vmul.f32 %v10113_v36, %v3390_v8  ;;  %v3828_v41 = vmul.f32 %v10123_v44, %v3791_v1 }
 0x285   : > { %v3070_v63 = vpop.f32.mrf.mxu1  ;;  %v3191_v0 = vpop.f32.mrf.mxu2 }
 0x286   : > { %v3071_v50 = vadd.f32 %v10006_v45, %v3070_v63  ;;  %v3192_v39 = vadd.f32 %v10026_v11, %v3191_v0  ;;  %v3790_v63 = vld [vmem:[#allocation3 + $0x19] sm:$0xff] }
 0x287   : > { %v4032_v0 = vld [vmem:[#allocation3 + $0x12] sm:$0xff]  ;;  %v3864_v25 = vmul.f32 %v10126_v26, %v3790_v63  ;;  %v3827_v29 = vmul.f32 %v10123_v44, %v3790_v63 }
 0x288   : > { %v3096_v6 = vpack.c.bf16 %v3071_v50, %v3069_v15  ;;  %v3258_v40 = vmax.f32 %v3192_v39, 0.0  ;;  %v3824_v15 = vmul.f32 %v10123_v44, %v3787_v54  ;;  %v3863_v50 = vmul.f32 %v10126_v26, %v3789_v37  ;;  %v10143_v39 = vpop.permute.xlu2 %4393  ;;  %v4033_v54 = vld [vmem:[#allocation3 + $0x1a] sm:$0xff] }
 0x289   : > { %12909 = vst [vmem:[#allocation68_spill] sm:$0xff] %v10143_v39  ;;  %v4067_v39 = vmul.f32 %v10131_v33, %v4030_v31  ;;  %v4106_v17 = vmul.f32 %v10134_v38, %v4032_v0  ;;  %v3462_v37 = vmul.f32 %v10108_v27, %v10115_v59  ;;  %v4068_v31 = vmul.f32 %v10131_v33, %v4031_v10 }
 0x28a   : > { %3295 = vst.msk [vmem:[#allocation3 + $0x59] sm:$0xff] %vm3281_vm6, %v3258_v40  ;;  %7887 = vmatmul.msk.bf16.gmra.mxu2 %vm3111_vm5, %v3096_v6  ;;  %v3422_v40 = vmul.f32 %v10100_v61, %v3386_v16  ;;  %v3825_v6 = vmul.f32 %v10123_v44, %v3788_v60  ;;  %v3934_v60 = vmul.f32 %v10139_v12, %v3791_v1 }
 0x28b   : > { %v3895_v2 = vadd.f32 %v3863_v50, %v3824_v15  ;;  %v4107_v51 = vmul.f32 %v10134_v38, %v4033_v54  ;;  %v4069_v22 = vmul.f32 %v10131_v33, %v4032_v0  ;;  %v3391_v15 = vld [vmem:[#allocation3 + $0x30] sm:$0xff]  ;;  %v3425_v10 = vmul.f32 %v10100_v61, %v10115_v59 }
 0x28c   : > { %v3493_v47 = vadd.f32 %v3461_v30, %v3422_v40  ;;  %v3792_v50 = vld [vmem:[#allocation3 + $0x29] sm:$0xff]  ;;  %v4138_v55 = vadd.f32 %v4106_v17, %v4067_v39  ;;  %v3494_v32 = vadd.f32 %v3462_v37, %v3423_v48  ;;  %v10177_v63 = vmul.f32 %v10131_v33, %v4033_v54  ;;  %v10201_v37 = vpop.permute.xlu1 %4388 }
 0x28d   : > { %v3073_v7 = vpop.f32.mrf.mxu1  ;;  %v3194_v58 = vpop.f32.mrf.mxu2  ;;  %v3966_v20 = vadd.f32 %v3934_v60, %v3895_v2  ;;  %v4177_v30 = vmul.f32 %v10160_v13, %v4034_v52  ;;  %v4035_v0 = vld [vmem:[#allocation3 + $0x2a] sm:$0xff]  ;;  %v3463_v40 = vmul.f32 %v10108_v27, %v3390_v8  ;;  %v4139_v46 = vadd.f32 %v4107_v51, %v4068_v31  ;;  %12914 = vst [vmem:[#allocation73_spill] sm:$0xff] %v10201_v37 }
 0x28e   : > { %v3195_v16 = vadd.f32 %v10026_v11, %v3194_v58  ;;  %v3865_v58 = vmul.f32 %v10126_v26, %v3791_v1  ;;  %v10184_v2 = vmul.f32 %v10100_v61, %v3390_v8  ;;  %v3533_v17 = vmul.f32 %v10113_v36, %v3391_v15  ;;  %v12943_v37 = vld [vmem:[#allocation59_spill] sm:$0xff] }
 0x28f   : > { %v10181_v34 = vadd.f32 %v3966_v20, %v3755_v35  ;;  %v3866_v48 = vmul.f32 %v10126_v26, %v3792_v50  ;;  %v3564_v1 = vadd.f32 %v3532_v24, %v3493_v47  ;;  %v4108_v51 = vmul.f32 %v10134_v38, %v4034_v52  ;;  %v10194_v20 = vpop.permute.xlu0 %4383  ;;  %v3392_v24 = vld [vmem:[#allocation3 + $0x38] sm:$0xff] }
 0x290   : > { %v3259_v28 = vmax.f32 %v3195_v16, 0.0  ;;  %v3896_v16 = vadd.f32 %v3864_v25, %v3825_v6  ;;  %v10188_v39 = vpop.permute.xlu2 %3742  ;;  %v3074_v6 = vadd.f32 %v10006_v45, %v3073_v7  ;;  %12913 = vst [vmem:[#allocation72_spill] sm:$0xff] %v10194_v20  ;;  %v10197_v8 = vmul.f32 %v10123_v44, %v3792_v50 }
 0x291   : > { %12912 = vst [vmem:[#allocation71_spill] sm:$0xff] %v10188_v39  ;;  %v3935_v25 = vmul.f32 %v10139_v12, %v3792_v50  ;;  %v4178_v47 = vmul.f32 %v10160_v13, %v4035_v0  ;;  %v4209_v60 = vadd.f32 %v4177_v30, %v4138_v55  ;;  %v3464_v20 = vmul.f32 %v10108_v27, %v3391_v15 }
 0x292   : > { %3296 = vst.msk [vmem:[#allocation3 + $0x61] sm:$0xff] %vm3281_vm6, %v3259_v28  ;;  %v3897_v28 = vadd.f32 %v3865_v58, %v3826_v49  ;;  %v3793_v49 = vld [vmem:[#allocation3 + $0x31] sm:$0xff]  ;;  %v4071_v58 = vmul.f32 %v10131_v33, %v4034_v52  ;;  %v3565_v39 = vadd.f32 %v3533_v17, %v3494_v32  ;;  %v3898_v43 = vadd.f32 %v3866_v48, %v3827_v29  ;;  %v3794_v32 = vld [vmem:[#allocation3 + $0x39] sm:$0xff] }
 0x293   : > { %v3756_v5 = vmul.f32 %v10092_v4, %v3564_v1  ;;  %v3867_v55 = vmul.f32 %v10126_v26, %v3793_v49  ;;  %v3936_v50 = vmul.f32 %v10139_v12, %v3793_v49  ;;  %v4140_v30 = vadd.f32 %v4108_v51, %v4069_v22  ;;  %v4037_v51 = vld [vmem:[#allocation3 + $0x3a] sm:$0xff] }
 0x294   : > { %v10211_v52 = vmul.f32 %v10100_v61, %v3391_v15  ;;  %v10215_v29 = vmul.f32 %v10123_v44, %v3793_v49  ;;  %v10218_v4 = vmul.f32 %v10131_v33, %v4035_v0  ;;  %v3534_v17 = vmul.f32 %v10113_v36, %v3392_v24 }
 0x295   : > { %v3075_v59 = vpop.f32.mrf.mxu1  ;;  %v3196_v62 = vpop.f32.mrf.mxu2  ;;  %v3757_v15 = vmul.f32 %v10072_v56, %v3565_v39  ;;  %v3465_v49 = vmul.f32 %v10108_v27, %v3392_v24 }
 0x296   : > { %v3076_v54 = vadd.f32 %v10006_v45, %v3075_v59  ;;  %v3197_v35 = vadd.f32 %v10026_v11, %v3196_v62  ;;  %v3495_v62 = vadd.f32 %v3463_v40, %v3424_v18  ;;  %v4036_v59 = vld [vmem:[#allocation3 + $0x32] sm:$0xff]  ;;  %v3967_v18 = vadd.f32 %v3935_v25, %v3896_v16 }
 0x297   : > { %v4210_v40 = vadd.f32 %v4178_v47, %v4139_v46  ;;  %v4179_v48 = vmul.f32 %v10160_v13, %v4036_v59  ;;  %v4109_v46 = vmul.f32 %v10134_v38, %v4035_v0  ;;  %v3899_v25 = vadd.f32 %v3867_v55, %v3828_v41 }
 0x298   : > { %v3097_v7 = vpack.c.bf16 %v3076_v54, %v3074_v6  ;;  %v3260_v31 = vmax.f32 %v3197_v35, 0.0  ;;  %v4401_v6 = vmul.f32 %v10094_v23, %v4209_v60  ;;  %v3496_v54 = vadd.f32 %v3464_v20, %v3425_v10  ;;  %v3393_v35 = vld [vmem:[#allocation3 + $0x40] sm:$0xff]  ;;  %v10230_v56 = vpop.permute.xlu2 %3727 }
 0x299   : > { %v3999_v16 = vadd.f32 %v3967_v18, %v3756_v5  ;;  %v3968_v47 = vadd.f32 %v3936_v50, %v3897_v28  ;;  %v3868_v60 = vmul.f32 %v10126_v26, %v3794_v32  ;;  %v4402_v10 = vmul.f32 %v10102_v21, %v4210_v40  ;;  %12915 = vst [vmem:[#allocation74_spill] sm:$0xff] %v10230_v56  ;;  %v10235_v18 = vpop.permute.xlu0 %3732  ;;  %v3795_v21 = vld [vmem:[#allocation3 + $0x41] sm:$0xff] }
 0x29a   : > { %3297 = vst.msk [vmem:[#allocation3 + $0x69] sm:$0xff] %vm3281_vm6, %v3260_v31  ;;  %7888 = vmatmul.msk.bf16.gmra.mxu2 %vm3111_vm5, %v3097_v7  ;;  %v4110_v7 = vmul.f32 %v10134_v38, %v4036_v59  ;;  %v3937_v31 = vmul.f32 %v10139_v12, %v3794_v32  ;;  %v3566_v5 = vadd.f32 %v3534_v17, %v3495_v62 }
 0x29b   : > { %v4211_v39 = vadd.f32 %v4179_v48, %v4140_v30  ;;  %v10233_v20 = vadd.f32 %v4401_v6, %v10181_v34  ;;  %12917 = vst [vmem:[#allocation76_spill] sm:$0xff] %v10235_v18  ;;  %v3535_v41 = vmul.f32 %v10113_v36, %v3393_v35  ;;  %v4000_v28 = vadd.f32 %v3968_v47, %v3757_v15  ;;  %v3394_v6 = vld [vmem:[#allocation3 + $0x48] sm:$0xff] }
 0x29c   : > { %v4141_v55 = vadd.f32 %v4109_v46, %v10177_v63  ;;  %v4180_v50 = vmul.f32 %v10160_v13, %v4037_v51  ;;  %v10244_v62 = vmul.f32 %v10100_v61, %v3392_v24  ;;  %v10247_v34 = vmul.f32 %v10123_v44, %v3794_v32  ;;  %v4038_v24 = vld [vmem:[#allocation3 + $0x42] sm:$0xff] }
 0x29d   : > { %v3078_v1 = vpop.f32.mrf.mxu1  ;;  %v3199_v22 = vpop.f32.mrf.mxu2  ;;  %12916 = vst [vmem:[#allocation75_spill] sm:$0xff] %v10233_v20  ;;  %v10250_v30 = vmul.f32 %v10131_v33, %v4036_v59  ;;  %v3497_v40 = vadd.f32 %v3465_v49, %v10184_v2  ;;  %v10254_v63 = vadd.f32 %v3868_v60, %v10197_v8  ;;  %v4142_v17 = vadd.f32 %v4110_v7, %v4071_v58  ;;  %v10264_v49 = vld [vmem:[#allocation3 + $0x50] sm:$0xff] }
 0x29e   : > { %v3200_v23 = vadd.f32 %v10026_v11, %v3199_v22  ;;  %v10240_v22 = vpop.permute.xlu1 %4373  ;;  %v3969_v48 = vadd.f32 %v3937_v31, %v3898_v43  ;;  %v10256_v15 = vadd.f32 %v4402_v10, %v3999_v16  ;;  %v10259_v46 = vmul.f32 %v10100_v61, %v3393_v35 }
 0x29f   : > { %12918 = vst [vmem:[#allocation77_spill] sm:$0xff] %v10240_v22  ;;  %v3466_v32 = vmul.f32 %v10108_v27, %v3393_v35  ;;  %v4403_v59 = vmul.f32 %v10081_v9, %v4211_v39  ;;  %v3869_v8 = vmul.f32 %v10126_v26, %v3795_v21  ;;  %v3567_v58 = vadd.f32 %v3535_v41, %v3496_v54  ;;  %v3796_v39 = vld [vmem:[#allocation3 + $0x49] sm:$0xff] }
 0x2a0   : > { %v3261_v0 = vmax.f32 %v3200_v23, 0.0  ;;  %12919 = vst [vmem:[#allocation78_spill] sm:$0xff] %v10256_v15  ;;  %v3758_v23 = vmul.f32 %v10079_v42, %v3566_v5  ;;  %v3938_v43 = vmul.f32 %v10139_v12, %v3795_v21  ;;  %v4212_v16 = vadd.f32 %v4180_v50, %v4141_v55 }
 0x2a1   : > { %v3079_v60 = vadd.f32 %v10006_v45, %v3078_v1  ;;  %v3536_v42 = vmul.f32 %v10113_v36, %v3394_v6  ;;  %v10273_v9 = vmul.f32 %v10123_v44, %v3795_v21  ;;  %v10276_v31 = vmul.f32 %v10131_v33, %v4037_v51 }
 0x2a2   : > { %3298 = vst.msk [vmem:[#allocation3 + $0x71] sm:$0xff] %vm3281_vm6, %v3261_v0  ;;  %v4111_v10 = vmul.f32 %v10134_v38, %v4037_v51  ;;  %v4181_v54 = vmul.f32 %v10160_v13, %v4038_v24  ;;  %v4001_v1 = vadd.f32 %v3969_v48, %v3758_v23  ;;  %v3498_v41 = vadd.f32 %v3466_v32, %v10211_v52  ;;  %v4039_v51 = vld [vmem:[#allocation3 + $0x4a] sm:$0xff]  ;;  %v10292_v48 = vpop.permute.xlu0 %3717 }
 0x2a3   : > { %v3901_v55 = vadd.f32 %v3869_v8, %v10215_v29  ;;  %v3759_v50 = vmul.f32 %v10060_v14, %v3567_v58  ;;  %v10285_v21 = vadd.f32 %v4403_v59, %v4000_v28  ;;  %12922 = vst [vmem:[#allocation81_spill] sm:$0xff] %v10292_v48  ;;  %v3797_v52 = vld [vmem:[#allocation3 + $0x51] sm:$0xff]  ;;  %v10295_v29 = vmul.f32 %v10100_v61, %v3394_v6 }
 0x2a4   : > { %v3939_v14 = vmul.f32 %v10139_v12, %v3796_v39  ;;  %v4143_v28 = vadd.f32 %v4111_v10, %v10218_v4  ;;  %v4213_v32 = vadd.f32 %v4181_v54, %v4142_v17  ;;  %v3396_v59 = vld [vmem:[#allocation3 + $0x58] sm:$0xff]  ;;  %v10302_v8 = vmul.f32 %v10123_v44, %v3796_v39 }
 0x2a5   : > { %v3080_v47 = vpop.f32.mrf.mxu1  ;;  %v3201_v2 = vpop.f32.mrf.mxu2  ;;  %12920 = vst [vmem:[#allocation79_spill] sm:$0xff] %v10285_v21  ;;  %v4182_v4 = vmul.f32 %v10160_v13, %v4039_v51 }
 0x2a6   : > { %v3081_v7 = vadd.f32 %v10006_v45, %v3080_v47  ;;  %v3202_v35 = vadd.f32 %v10026_v11, %v3201_v2  ;;  %v3537_v45 = vmul.f32 %v10113_v36, %v10264_v49  ;;  %v10287_v47 = vpop.permute.xlu2 %4378  ;;  %v3568_v2 = vadd.f32 %v3536_v42, %v3497_v40  ;;  %v10299_v23 = vpop.permute.xlu1 %3722 }
 0x2a7   : > { %12921 = vst [vmem:[#allocation80_spill] sm:$0xff] %v10287_v47  ;;  %v3940_v42 = vmul.f32 %v10139_v12, %v3797_v52 }
 0x2a8   : > { %v3098_v0 = vpack.c.bf16 %v3081_v7, %v3079_v60  ;;  %v3262_v5 = vmax.f32 %v3202_v35, 0.0  ;;  %v3970_v60 = vadd.f32 %v3938_v43, %v3899_v25  ;;  %v4404_v7 = vmul.f32 %v10084_v3, %v4212_v16  ;;  %12923 = vst [vmem:[#allocation82_spill] sm:$0xff] %v10299_v23 }
 0x2a9   : > { %v10305_v25 = vmul.f32 %v10131_v33, %v4038_v24  ;;  %v3467_v3 = vmul.f32 %v10108_v27, %v3394_v6  ;;  %v3569_v40 = vadd.f32 %v3537_v45, %v3498_v41  ;;  %v3870_v43 = vmul.f32 %v10126_v26, %v3796_v39 }
 0x2aa   : > { %3299 = vst.msk [vmem:[#allocation3 + $0x79] sm:$0xff] %vm3281_vm6, %v3262_v5  ;;  %7889 = vmatmul.msk.bf16.gmra.mxu2 %vm3111_vm5, %v3098_v0  ;;  %v4112_v16 = vmul.f32 %v10134_v38, %v4038_v24  ;;  %v4002_v35 = vadd.f32 %v3970_v60, %v3759_v50  ;;  %v3760_v10 = vmul.f32 %v10064_v53, %v3568_v2  ;;  %v4040_v0 = vld [vmem:[#allocation3 + $0x52] sm:$0xff] }
 0x2ab   : > { %v10314_v54 = vadd.f32 %v4404_v7, %v4001_v1  ;;  %v3468_v6 = vmul.f32 %v10108_v27, %v10264_v49  ;;  %v3538_v5 = vmul.f32 %v10113_v36, %v3396_v59  ;;  %v3971_v39 = vadd.f32 %v3939_v14, %v10254_v63 }
 0x2ac   : > { %v4405_v24 = vmul.f32 %v10068_v57, %v4213_v32  ;;  %v3871_v41 = vmul.f32 %v10126_v26, %v3797_v52  ;;  %v3761_v50 = vmul.f32 %v10048_v19, %v3569_v40  ;;  %v4113_v60 = vmul.f32 %v10134_v38, %v4039_v51  ;;  %v3798_v57 = vld [vmem:[#allocation3 + $0x59] sm:$0xff] }
 0x2ad   : > { %v3204_v58 = vpop.f32.mrf.mxu2  ;;  %12924 = vst [vmem:[#allocation83_spill] sm:$0xff] %v10314_v54  ;;  %v3499_v53 = vadd.f32 %v3467_v3, %v10244_v62  ;;  %v3902_v1 = vadd.f32 %v3870_v43, %v10247_v34  ;;  %v4144_v2 = vadd.f32 %v4112_v16, %v10250_v30  ;;  %v4214_v7 = vadd.f32 %v4182_v4, %v4143_v28  ;;  %v3397_v28 = vld [vmem:[#allocation3 + $0x60] sm:$0xff]  ;;  %v10344_v16 = vpop.permute.xlu0 %4368 }
 0x2ae   : > { %v3205_v17 = vadd.f32 %v10026_v11, %v3204_v58  ;;  %v3431_v63 = vmul.f32 %v10100_v61, %v10264_v49  ;;  %v3972_v14 = vadd.f32 %v3940_v42, %v3901_v55  ;;  %v4183_v32 = vmul.f32 %v10160_v13, %v4040_v0  ;;  %v10337_v30 = vpop.permute.xlu2 %4363  ;;  %12929 = vst [vmem:[#allocation88_spill] sm:$0xff] %v10344_v16  ;;  %v12930_v42 = vld [vmem:[#allocation65_spill] sm:$0xff] }
 0x2af   : > { %v10331_v58 = vadd.f32 %v3971_v39, %v3760_v10  ;;  %v3834_v19 = vmul.f32 %v10123_v44, %v3797_v52  ;;  %v4076_v62 = vmul.f32 %v10131_v33, %v4039_v51  ;;  %v3570_v3 = vadd.f32 %v3538_v5, %v3499_v53  ;;  %12927 = vst [vmem:[#allocation86_spill] sm:$0xff] %v10337_v30  ;;  %v3799_v52 = vld [vmem:[#allocation3 + $0x61] sm:$0xff] }
 0x2b0   : > { %v3263_v45 = vmax.f32 %v3205_v17, 0.0  ;;  %v10335_v34 = vadd.f32 %v4405_v24, %v4002_v35  ;;  %v3500_v40 = vadd.f32 %v3468_v6, %v10259_v46  ;;  %v3903_v49 = vadd.f32 %v3871_v41, %v10273_v9  ;;  %v10354_v46 = vpop.permute.xlu1 %3707  ;;  %v4041_v6 = vld [vmem:[#allocation3 + $0x5a] sm:$0xff]  ;;  %v3398_v24 = vld [vmem:[#allocation3 + $0x68] sm:$0xff] }
 0x2b1   : > { %12925 = vst [vmem:[#allocation84_spill] sm:$0xff] %v10331_v58  ;;  %v10341_v43 = vadd.f32 %v3972_v14, %v3761_v50  ;;  %v4145_v55 = vadd.f32 %v4113_v60, %v10276_v31  ;;  %v10347_v51 = vmul.f32 %v10100_v61, %v3396_v59  ;;  %v3469_v35 = vmul.f32 %v10108_v27, %v3396_v59  ;;  %v12933_v50 = vld [vmem:[#allocation62_spill] sm:$0xff] }
 0x2b2   : > { %3300 = vst.msk [vmem:[#allocation3 + $0x81] sm:$0xff] %vm3281_vm6, %v3263_v45  ;;  %v3941_v17 = vmul.f32 %v10139_v12, %v3798_v57  ;;  %v10352_v10 = vmul.f32 %v12930_v42, %v4214_v7  ;;  %v3872_v31 = vmul.f32 %v10126_v26, %v3798_v57  ;;  %v4114_v5 = vmul.f32 %v10134_v38, %v4040_v0 }
 0x2b3   : > { %12926 = vst [vmem:[#allocation85_spill] sm:$0xff] %v10335_v34  ;;  %v4215_v39 = vadd.f32 %v4183_v32, %v4144_v2  ;;  %v3835_v45 = vmul.f32 %v10123_v44, %v3798_v57  ;;  %v4077_v59 = vmul.f32 %v10131_v33, %v4040_v0  ;;  %v3539_v41 = vmul.f32 %v10113_v36, %v3397_v28  ;;  %v3800_v0 = vld [vmem:[#allocation3 + $0x69] sm:$0xff] }
 0x2b4   : > { %12928 = vst [vmem:[#allocation87_spill] sm:$0xff] %v10341_v43  ;;  %v3762_v60 = vmul.f32 %v12933_v50, %v3570_v3  ;;  %v3470_v7 = vmul.f32 %v10108_v27, %v3397_v28  ;;  %v3873_v14 = vmul.f32 %v10126_v26, %v3799_v52  ;;  %v3501_v42 = vadd.f32 %v3469_v35, %v10295_v29  ;;  %v12934_v50 = vld [vmem:[#allocation63_spill] sm:$0xff] }
 0x2b5   : > { %v3206_v4 = vpop.f32.mrf.mxu2  ;;  %12931 = vst [vmem:[#allocation65_spill] sm:$0xff] %v10352_v10  ;;  %v4115_v2 = vmul.f32 %v10134_v38, %v4041_v6  ;;  %v3973_v32 = vadd.f32 %v3941_v17, %v3902_v1  ;;  %v4184_v57 = vmul.f32 %v10160_v13, %v4041_v6  ;;  %v10372_v3 = vadd.f32 %v3872_v31, %v10302_v8  ;;  %v4042_v1 = vld [vmem:[#allocation3 + $0x62] sm:$0xff] }
 0x2b6   : > { %12932 = vst [vmem:[#allocation89_spill] sm:$0xff] %v10354_v46  ;;  %v3207_v9 = vadd.f32 %v10026_v11, %v3206_v4  ;;  %v3942_v4 = vmul.f32 %v10139_v12, %v3799_v52  ;;  %v3540_v46 = vmul.f32 %v10113_v36, %v3398_v24  ;;  %v10376_v30 = vmul.f32 %v12934_v50, %v4215_v39 }
 0x2b7   : > { %v3433_v29 = vmul.f32 %v10100_v61, %v3397_v28  ;;  %v3836_v35 = vmul.f32 %v10123_v44, %v3799_v52  ;;  %v3571_v17 = vadd.f32 %v3539_v41, %v3500_v40  ;;  %v10380_v16 = vadd.f32 %v3973_v32, %v3762_v60  ;;  %v10389_v52 = vpop.permute.xlu2 %3712  ;;  %v3801_v41 = vld [vmem:[#allocation3 + $0x71] sm:$0xff] }
 0x2b8   : > { %v3264_v53 = vmax.f32 %v3207_v9, 0.0  ;;  %v4146_v9 = vadd.f32 %v4114_v5, %v10305_v25  ;;  %12935 = vst [vmem:[#allocation62_spill] sm:$0xff] %v10376_v30  ;;  %v3502_v22 = vadd.f32 %v3470_v7, %v3431_v63  ;;  %v3905_v23 = vadd.f32 %v3873_v14, %v3834_v19  ;;  %v3400_v60 = vld [vmem:[#allocation3 + $0x78] sm:$0xff] }
 0x2b9   : > { %12936 = vst [vmem:[#allocation63_spill] sm:$0xff] %v10380_v16  ;;  %v4078_v47 = vmul.f32 %v10131_v33, %v4041_v6  ;;  %v10383_v8 = vadd.f32 %v3942_v4, %v3903_v49  ;;  %v3471_v25 = vmul.f32 %v10108_v27, %v3398_v24  ;;  %v3874_v5 = vmul.f32 %v10126_v26, %v3800_v0  ;;  %v10394_v49 = vpop.permute.xlu0 %4353 }
 0x2ba   : > { %3301 = vst.msk [vmem:[#allocation3 + $0x89] sm:$0xff] %vm3281_vm6, %v3264_v53  ;;  %v3399_v53 = vld [vmem:[#allocation3 + $0x70] sm:$0xff]  ;;  %v4147_v39 = vadd.f32 %v4115_v2, %v4076_v62  ;;  %v10387_v28 = vadd.f32 %v4184_v57, %v4145_v55  ;;  %v4116_v63 = vmul.f32 %v10134_v38, %v4042_v1  ;;  %v3572_v19 = vadd.f32 %v3540_v46, %v3501_v42  ;;  %v12940_v55 = vld [vmem:[#allocation58_spill] sm:$0xff]  ;;  %v10402_v2 = vpop.permute.xlu1 %4358 }
 0x2bb   : > { %12937 = vst [vmem:[#allocation90_spill] sm:$0xff] %v10383_v8  ;;  %v4185_v6 = vmul.f32 %v10160_v13, %v4042_v1  ;;  %v3434_v7 = vmul.f32 %v10100_v61, %v3398_v24  ;;  %v3837_v14 = vmul.f32 %v10123_v44, %v3800_v0  ;;  %v3541_v62 = vmul.f32 %v10113_v36, %v3399_v53  ;;  %v4044_v57 = vld [vmem:[#allocation3 + $0x72] sm:$0xff]  ;;  %v4043_v42 = vld [vmem:[#allocation3 + $0x6a] sm:$0xff] }
 0x2bc   : > { %12938 = vst [vmem:[#allocation91_spill] sm:$0xff] %v10389_v52  ;;  %v10400_v4 = vmul.f32 %v12940_v55, %v3571_v17  ;;  %v3472_v46 = vmul.f32 %v10108_v27, %v3399_v53  ;;  %v4079_v50 = vmul.f32 %v10131_v33, %v4042_v1  ;;  %v3875_v24 = vmul.f32 %v10126_v26, %v3801_v41  ;;  %v3802_v55 = vld [vmem:[#allocation3 + $0x79] sm:$0xff] }
 0x2bd   : > { %v3209_v31 = vpop.f32.mrf.mxu2  ;;  %12939 = vst [vmem:[#allocation92_spill] sm:$0xff] %v10394_v49  ;;  %v3503_v49 = vadd.f32 %v3471_v25, %v10347_v51  ;;  %v3906_v52 = vadd.f32 %v3874_v5, %v3835_v45  ;;  %v3944_v17 = vmul.f32 %v10139_v12, %v3801_v41  ;;  %v10415_v18 = vmul.f32 %v12943_v37, %v3572_v19 }
 0x2be   : > { %v3210_v40 = vadd.f32 %v10026_v11, %v3209_v31  ;;  %12941 = vst [vmem:[#allocation58_spill] sm:$0xff] %v10400_v4  ;;  %v10407_v31 = vmul.f32 %v10139_v12, %v3800_v0  ;;  %v10417_v1 = vadd.f32 %v4185_v6, %v4146_v9  ;;  %v3573_v0 = vadd.f32 %v3541_v62, %v3502_v22  ;;  %v3803_v62 = vld [vmem:[#allocation3 + $0x81] sm:$0xff] }
 0x2bf   : > { %12942 = vst [vmem:[#allocation93_spill] sm:$0xff] %v10402_v2  ;;  %v4148_v2 = vadd.f32 %v4116_v63, %v4077_v59  ;;  %v4117_v56 = vmul.f32 %v10134_v38, %v4043_v42  ;;  %v4187_v48 = vmul.f32 %v10160_v13, %v4044_v57  ;;  %v4186_v51 = vmul.f32 %v10160_v13, %v4043_v42  ;;  %v3401_v63 = vld [vmem:[#allocation3 + $0x80] sm:$0xff]  ;;  %v10437_v54 = vpop.permute.xlu2 %3697 }
 0x2c0   : > { %v3265_v32 = vmax.f32 %v3210_v40, 0.0  ;;  %v3542_v40 = vmul.f32 %v10113_v36, %v3400_v60  ;;  %v3435_v45 = vmul.f32 %v10100_v61, %v3399_v53  ;;  %v3838_v25 = vmul.f32 %v10123_v44, %v3801_v41  ;;  %12945 = vst [vmem:[#allocation59_spill] sm:$0xff] %v10437_v54 }
 0x2c1   : > { %v3504_v5 = vadd.f32 %v3472_v46, %v3433_v29  ;;  %v3473_v37 = vmul.f32 %v10108_v27, %v3400_v60  ;;  %v3876_v9 = vmul.f32 %v10126_v26, %v3802_v55  ;;  %v3907_v22 = vadd.f32 %v3875_v24, %v3836_v35  ;;  %v12944_v29 = vld [vmem:[#allocation54_spill] sm:$0xff] }
 0x2c2   : > { %3302 = vst.msk [vmem:[#allocation3 + $0x91] sm:$0xff] %vm3281_vm6, %v3265_v32  ;;  %v4080_v32 = vmul.f32 %v10131_v33, %v4043_v42  ;;  %v10427_v19 = vadd.f32 %v3944_v17, %v3905_v23  ;;  %v4118_v20 = vmul.f32 %v10134_v38, %v4044_v57  ;;  %v3574_v53 = vadd.f32 %v3542_v40, %v3503_v49  ;;  %v4045_v49 = vld [vmem:[#allocation3 + $0x7a] sm:$0xff]  ;;  %v10444_v40 = vpop.permute.xlu0 %3702  ;;  %v4046_v54 = vld [vmem:[#allocation3 + $0x82] sm:$0xff] }
 0x2c3   : > { %v3945_v41 = vmul.f32 %v10139_v12, %v3802_v55  ;;  %v10433_v46 = vmul.f32 %v12944_v29, %v3573_v0  ;;  %v4149_v42 = vadd.f32 %v4117_v56, %v4078_v47  ;;  %v4219_v15 = vadd.f32 %v4187_v48, %v4148_v2  ;;  %12946 = vst [vmem:[#allocation54_spill] sm:$0xff] %v10444_v40  ;;  %v10452_v2 = vpop.permute.xlu1 %4343 }
 0x2c4   : > { %v10435_v21 = vadd.f32 %v4186_v51, %v4147_v39  ;;  %v3436_v23 = vmul.f32 %v10100_v61, %v3400_v60  ;;  %v3474_v24 = vmul.f32 %v10108_v27, %v3401_v63  ;;  %v10442_v17 = vmul.f32 %v10123_v44, %v3802_v55  ;;  %12948 = vst [vmem:[#allocation95_spill] sm:$0xff] %v10452_v2  ;;  %v12949_v51 = vld [vmem:[#allocation55_spill] sm:$0xff] }
 0x2c5   : > { %v3211_v59 = vpop.f32.mrf.mxu2  ;;  %v3877_v56 = vmul.f32 %v10126_v26, %v3803_v62  ;;  %v4081_v47 = vmul.f32 %v10131_v33, %v4044_v57  ;;  %v3505_v48 = vadd.f32 %v3473_v37, %v3434_v7  ;;  %v10450_v39 = vadd.f32 %v3876_v9, %v3837_v14  ;;  %v12950_v7 = vld [vmem:[#allocation56_spill] sm:$0xff] }
 0x2c6   : > { %v3212_v6 = vadd.f32 %v10026_v11, %v3211_v59  ;;  %v3543_v55 = vmul.f32 %v10113_v36, %v3401_v63  ;;  %v4150_v0 = vadd.f32 %v4118_v20, %v4079_v50  ;;  %v10461_v29 = vadd.f32 %v3945_v41, %v3906_v52 }
 0x2c7   : > { %v10464_v57 = vmul.f32 %v10131_v33, %v4045_v49  ;;  %v10467_v14 = vmul.f32 %v12950_v7, %v4219_v15  ;;  %v3437_v37 = vmul.f32 %v10100_v61, %v3401_v63  ;;  %v3506_v2 = vadd.f32 %v3474_v24, %v3435_v45  ;;  %v3804_v24 = vld [vmem:[#allocation3 + $0x89] sm:$0xff] }
 0x2c8   : > { %v3266_v35 = vmax.f32 %v3212_v6, 0.0  ;;  %v10459_v6 = vmul.f32 %v12949_v51, %v3574_v53  ;;  %v3946_v20 = vmul.f32 %v10139_v12, %v3803_v62  ;;  %v4119_v50 = vmul.f32 %v10134_v38, %v4045_v49 }
 0x2c9   : > { %v10446_v59 = vld [vmem:[#allocation3 + $0x90] sm:$0xff]  ;;  %v4188_v52 = vmul.f32 %v10160_v13, %v4045_v49  ;;  %v3909_v41 = vadd.f32 %v3877_v56, %v3838_v25  ;;  %v3840_v15 = vmul.f32 %v10123_v44, %v3803_v62  ;;  %v4120_v34 = vmul.f32 %v10134_v38, %v4046_v54 }
 0x2ca   : > { %12947 = vst [vmem:[#allocation94_spill] sm:$0xff] %v10446_v59  ;;  %v10455_v60 = vld [vmem:[#allocation3 + $0x91] sm:$0xff]  ;;  %v3476_v9 = vmul.f32 %v10108_v27, %v10446_v59  ;;  %v3545_v45 = vmul.f32 %v10113_v36, %v10446_v59  ;;  %v3575_v49 = vadd.f32 %v3543_v55, %v3504_v5  ;;  %v4189_v62 = vmul.f32 %v10160_v13, %v4046_v54 }
 0x2cb   : > { %3303 = vst.msk [vmem:[#allocation3 + $0x99] sm:$0xff] %vm3281_vm6, %v3266_v35  ;;  %v3402_v35 = vld [vmem:[#allocation3 + $0x88] sm:$0xff]  ;;  %v3879_v63 = vmul.f32 %v10126_v26, %v10455_v60  ;;  %v10491_v10 = vadd.f32 %v3946_v20, %v3907_v22  ;;  %v10493_v58 = vadd.f32 %v4188_v52, %v4149_v42  ;;  %v3878_v43 = vmul.f32 %v10126_v26, %v3804_v24  ;;  %v10513_v52 = vpop.permute.xlu0 %3687 }
 0x2cc   : > { %v10475_v51 = vadd.f32 %v3476_v9, %v3437_v37  ;;  %v10483_v40 = vld [vmem:[#allocation3 + $0x8a] sm:$0xff]  ;;  %v3475_v25 = vmul.f32 %v10108_v27, %v3402_v35  ;;  %v3544_v56 = vmul.f32 %v10113_v36, %v3402_v35  ;;  %v3947_v5 = vmul.f32 %v10139_v12, %v3804_v24 }
 0x2cd   : > { %v3214_v53 = vpop.f32.mrf.mxu2  ;;  %v10489_v37 = vadd.f32 %v3879_v63, %v3840_v15  ;;  %v4190_v55 = vmul.f32 %v10160_v13, %v10483_v40  ;;  %v3438_v15 = vmul.f32 %v10100_v61, %v3402_v35  ;;  %v10504_v63 = vpop.permute.xlu2 %4348  ;;  %v3577_v22 = vadd.f32 %v3545_v45, %v3506_v2 }
 0x2ce   : > { %v3215_v7 = vadd.f32 %v10026_v11, %v3214_v53  ;;  %v4151_v53 = vadd.f32 %v4119_v50, %v4080_v32  ;;  %12952 = vst [vmem:[#allocation56_spill] sm:$0xff] %v10504_v63  ;;  %v4152_v20 = vadd.f32 %v4120_v34, %v4081_v47  ;;  %v3576_v16 = vadd.f32 %v3544_v56, %v3505_v48  ;;  %v10517_v35 = vpop.permute.xlu1 %3692  ;;  %v12955_v56 = vld [vmem:[#allocation46_spill] sm:$0xff] }
 0x2cf   : > { %v4221_v8 = vadd.f32 %v4189_v62, %v4150_v0  ;;  %12954 = vst [vmem:[#allocation97_spill] sm:$0xff] %v10517_v35  ;;  %v3841_v45 = vmul.f32 %v10123_v44, %v3804_v24  ;;  %v4083_v34 = vmul.f32 %v10131_v33, %v4046_v54  ;;  %v3769_v62 = vmul.f32 %v12955_v56, %v3577_v22  ;;  %v12956_v24 = vld [vmem:[#allocation51_spill] sm:$0xff]  ;;  %v12959_v56 = vld [vmem:[#allocation52_spill] sm:$0xff] }
 0x2d0   : > { %v3267_v9 = vmax.f32 %v3215_v7, 0.0  ;;  %v3507_v7 = vadd.f32 %v3475_v25, %v3436_v23  ;;  %v4222_v63 = vadd.f32 %v4190_v55, %v4151_v53  ;;  %v4121_v44 = vmul.f32 %v10134_v38, %v10483_v40 }
 0x2d1   : > { %v3768_v53 = vmul.f32 %v12956_v24, %v3576_v16  ;;  %v3910_v22 = vadd.f32 %v3878_v43, %v10442_v17 }
 0x2d2   : > { %v10495_v30 = vld [vmem:[#allocation3 + $0x98] sm:$0xff]  ;;  %3304 = vst.msk [vmem:[#allocation3 + $0xa1] sm:$0xff] %vm3281_vm6, %v3267_v9  ;;  %v3948_v9 = vmul.f32 %v10139_v12, %v10455_v60 }
 0x2d3   : > { %v10498_v59 = vld [vmem:[#allocation3 + $0x92] sm:$0xff]  ;;  %v3546_v32 = vmul.f32 %v10113_v36, %v10495_v30  ;;  %v3477_v61 = vmul.f32 %v10108_v27, %v10495_v30 }
 0x2d4   : > { %12951 = vst [vmem:[#allocation55_spill] sm:$0xff] %v10498_v59  ;;  %v10509_v42 = vld [vmem:[#allocation3 + $0x99] sm:$0xff]  ;;  %v4191_v50 = vmul.f32 %v10160_v13, %v10498_v59  ;;  %v4122_v48 = vmul.f32 %v10134_v38, %v10498_v59 }
 0x2d5   : > { %12953 = vst [vmem:[#allocation96_spill] sm:$0xff] %v10509_v42  ;;  %v3216_v47 = vpop.f32.mrf.mxu2  ;;  %v10523_v4 = vadd.f32 %v3477_v61, %v3438_v15  ;;  %v3880_v23 = vmul.f32 %v10126_v26, %v10509_v42  ;;  %v3578_v25 = vadd.f32 %v3546_v32, %v3507_v7  ;;  %v3949_v54 = vmul.f32 %v10139_v12, %v10509_v42  ;;  %v12957_v61 = vld [vmem:[#allocation48_spill] sm:$0xff]  ;;  %v12960_v59 = vld [vmem:[#allocation53_spill] sm:$0xff] }
 0x2d6   : > { %v4223_v2 = vadd.f32 %v4191_v50, %v4152_v20  ;;  %v3217_v0 = vadd.f32 %v10026_v11, %v3216_v47  ;;  %v10538_v15 = vadd.f32 %v4122_v48, %v4083_v34  ;;  %v3980_v50 = vadd.f32 %v3948_v9, %v3909_v41  ;;  %v12958_v11 = vld [vmem:[#allocation50_spill] sm:$0xff]  ;;  %v12961_v41 = vld [vmem:[#allocation47_spill] sm:$0xff]  ;;  %v3678_v24 = vpop.permute.xlu1 %3677 }
 0x2d7   : > { %v10536_v55 = vadd.f32 %v3880_v23, %v3841_v45  ;;  %v3767_v32 = vmul.f32 %v12958_v11, %v3575_v49  ;;  %v3979_v47 = vadd.f32 %v3947_v5, %v10450_v39  ;;  %v4413_v42 = vmul.f32 %v12959_v56, %v4221_v8  ;;  %v10561_v5 = vpop.permute.xlu2 %4333 }
 0x2d8   : > { %v3268_v20 = vmax.f32 %v3217_v0, 0.0  ;;  %v4415_v35 = vmul.f32 %v12957_v61, %v4223_v2  ;;  %v4414_v16 = vmul.f32 %v12960_v59, %v4222_v63  ;;  %v3770_v9 = vmul.f32 %v12961_v41, %v3578_v25  ;;  %v10567_v0 = vpop.permute.xlu0 %4338 }
 0x2d9   : > { %v10543_v7 = vld [vmem:[#allocation3 + $0x9a] sm:$0xff]  ;;  %v4012_v2 = vadd.f32 %v3980_v50, %v3769_v62  ;;  %v4153_v49 = vadd.f32 %v4121_v44, %v10464_v57  ;;  %v3981_v17 = vadd.f32 %v3949_v54, %v3910_v22  ;;  %v4011_v39 = vadd.f32 %v3979_v47, %v3768_v53  ;;  %v10574_v53 = vld [vmem:[%s12891_s2] ss:$0 sm:$0xff]  ;;  %s13051_s2 = sld [smem:[#allocation24_spill]] }
 0x2da   : > { %v10548_v45 = vld [vmem:[#allocation3 + $0xa0] sm:$0xff]  ;;  %3305 = vst.msk [vmem:[#allocation3 + $0xa9] sm:$0xff] %vm3281_vm6, %v3268_v20  ;;  %v4192_v43 = vmul.f32 %v10160_v13, %v10543_v7  ;;  %v4084_v59 = vmul.f32 %v10131_v33, %v10483_v40  ;;  %v4123_v48 = vmul.f32 %v10134_v38, %v10543_v7  ;;  %v4010_v62 = vadd.f32 %v10491_v10, %v3767_v32  ;;  %v10579_v38 = vld [vmem:[%s12962_s5] ss:$0 sm:$0xff]  ;;  %s12985_s5 = sld [smem:[#allocation21_spill]] }
 0x2db   : > { %v10550_v34 = vld [vmem:[#allocation3 + $0xa1] sm:$0xff]  ;;  %v3547_v8 = vmul.f32 %v10113_v36, %v10548_v45  ;;  %v4447_v23 = vadd.f32 %v4415_v35, %v4012_v2  ;;  %v4446_v44 = vadd.f32 %v4414_v16, %v4011_v39  ;;  %v4013_v20 = vadd.f32 %v3981_v17, %v3770_v9 }
 0x2dc   : > { %v4224_v63 = vadd.f32 %v4192_v43, %v4153_v49  ;;  %v3950_v57 = vmul.f32 %v10139_v12, %v10550_v34  ;;  %v12963_v54 = vld [vmem:[#allocation57_spill] sm:$0xff]  ;;  %v10581_v11 = vadd.f32 %v4123_v48, %v4084_v59  ;;  %v4445_v22 = vadd.f32 %v4413_v42, %v4010_v62  ;;  %v12969_v62 = vld [vmem:[#allocation90_spill] sm:$0xff] }
 0x2dd   : > { %v3219_v25 = vpop.f32.mrf.mxu2  ;;  %v4412_v33 = vmul.f32 %v12963_v54, %v10493_v58  ;;  %v3579_v40 = vadd.f32 %v3547_v8, %v10475_v51  ;;  %v12964_v50 = vld [vmem:[#allocation49_spill] sm:$0xff]  ;;  %v4009_v10 = vadd.f32 %v10461_v29, %v10459_v6  ;;  %v4483_v56 = vadd.f32 %v10579_v38, %v4447_v23 }
 0x2de   : > { %v3220_v35 = vadd.f32 %v10574_v53, %v3219_v25  ;;  %v4416_v61 = vmul.f32 %v12964_v50, %v4224_v63  ;;  %v3982_v58 = vadd.f32 %v3950_v57, %v10489_v37  ;;  %v3975_v16 = vadd.f32 %v10407_v31, %v10372_v3  ;;  %v12965_v2 = vld [vmem:[#allocation61_spill] sm:$0xff]  ;;  %v12966_v31 = vld [vmem:[#allocation60_spill] sm:$0xff]  ;;  %v12968_v25 = vld [vmem:[#allocation58_spill] sm:$0xff] }
 0x2df   : > { %v3771_v32 = vmul.f32 %v3678_v24, %v3579_v40  ;;  %v4008_v41 = vadd.f32 %v10427_v19, %v10433_v46  ;;  %v4444_v9 = vadd.f32 %v4412_v33, %v4009_v10  ;;  %v4410_v42 = vmul.f32 %v12965_v2, %v10435_v21  ;;  %v12967_v46 = vld [vmem:[#allocation64_spill] sm:$0xff]  ;;  %v3683_v54 = vpop.permute.xlu2 %3682 }
 0x2e0   : > { %v3269_v51 = vmax.f32 %v3220_v35, 0.0  ;;  %v4448_v47 = vadd.f32 %v4416_v61, %v4013_v20  ;;  %v4482_v3 = vadd.f32 %v10579_v38, %v4446_v44  ;;  %v4409_v19 = vmul.f32 %v12966_v31, %v10417_v1  ;;  %v4324_v35 = vpop.permute.xlu0 %4323  ;;  %v12972_v31 = vld [vmem:[#allocation87_spill] sm:$0xff] }
 0x2e1   : > { %v10593_v49 = vld [vmem:[#allocation3 + $0xa8] sm:$0xff]  ;;  %v4014_v37 = vadd.f32 %v3982_v58, %v3771_v32  ;;  %v4408_v17 = vmul.f32 %v12967_v46, %v10387_v28  ;;  %v4481_v21 = vadd.f32 %v10579_v38, %v4445_v22  ;;  %v4443_v39 = vadd.f32 %v10467_v14, %v4008_v41 }
 0x2e2   : > { %v10595_v6 = vld [vmem:[#allocation3 + $0xa9] sm:$0xff]  ;;  %3306 = vst.msk [vmem:[#allocation3 + $0xb1] sm:$0xff] %vm3281_vm6, %v3269_v51  ;;  %v4484_v43 = vadd.f32 %v10579_v38, %v4448_v47  ;;  %v4007_v8 = vadd.f32 %v3975_v16, %v10415_v18  ;;  %v3548_v59 = vmul.f32 %v10113_v36, %v10593_v49  ;;  %v4515_v63 = vmax.f32 %v4483_v56, 0.0 }
 0x2e3   : > { %v10597_v29 = vld [vmem:[#allocation3 + $0xa2] sm:$0xff]  ;;  %v3951_v57 = vmul.f32 %v10139_v12, %v10595_v6  ;;  %v4480_v28 = vadd.f32 %v10579_v38, %v4444_v9  ;;  %v4006_v44 = vadd.f32 %v12969_v62, %v12968_v25  ;;  %v4514_v40 = vmax.f32 %v4482_v3, 0.0  ;;  %v12970_v51 = vld [vmem:[#allocation63_spill] sm:$0xff]  ;;  %v12974_v25 = vld [vmem:[#allocation84_spill] sm:$0xff] }
 0x2e4   : > { %v4516_v23 = vmax.f32 %v4484_v43, 0.0  ;;  %v4193_v1 = vmul.f32 %v10160_v13, %v10597_v29  ;;  %v4442_v14 = vadd.f32 %v4410_v42, %v4007_v8  ;;  %v3580_v18 = vadd.f32 %v3548_v59, %v10523_v4  ;;  %v12971_v41 = vld [vmem:[#allocation94_spill] sm:$0xff]  ;;  %v10649_v8 = vld [vmem:[%s12906_s3 + $0x1] ss:$0 sm:$0xff]  ;;  %v12975_v62 = vld [vmem:[#allocation65_spill] sm:$0xff] }
 0x2e5   : > { %v3221_v48 = vpop.f32.mrf.mxu2  ;;  %v4441_v20 = vadd.f32 %v4409_v19, %v4006_v44  ;;  %v3478_v50 = vmul.f32 %v10108_v27, %v10548_v45  ;;  %v3983_v22 = vadd.f32 %v3951_v57, %v10536_v55  ;;  %v4513_v32 = vmax.f32 %v4481_v21, 0.0  ;;  %v10633_v27 = vld [vmem:[%s12906_s3] ss:$0 sm:$0xff]  ;;  %v12973_v19 = vld [vmem:[#allocation62_spill] sm:$0xff]  ;;  %v10644_v21 = vld [vmem:[%s12906_s3 + $0x6] ss:$0 sm:$0xff] }
 0x2e6   : > { %v3222_v36 = vadd.f32 %v10574_v53, %v3221_v48  ;;  %v4540_v33 = vpack.c.bf16 %v4516_v23, %v4515_v63  ;;  %v4225_v24 = vadd.f32 %v4193_v1, %v10538_v15  ;;  %v3772_v61 = vmul.f32 %v3683_v54, %v3580_v18 }
 0x2e7   : > { %v4479_v4 = vadd.f32 %v10579_v38, %v4443_v39  ;;  %v4440_v47 = vadd.f32 %v4408_v17, %v12970_v51  ;;  %v3439_v55 = vmul.f32 %v10633_v27, %v12971_v41  ;;  %v3881_v9 = vmul.f32 %v10126_v26, %v10550_v34  ;;  %v10685_v51 = vld [vmem:[%s12906_s3 + $0x4] ss:$0 sm:$0xff] }
 0x2e8   : > { %v3270_v10 = vmax.f32 %v3222_v36, 0.0  ;;  %4597 = vmatpush.bf16.msra.mxu3 %v4540_v33  ;;  %v4417_v58 = vmul.f32 %v4324_v35, %v4225_v24  ;;  %v4015_v2 = vadd.f32 %v3983_v22, %v3772_v61  ;;  %v4539_v42 = vpack.c.bf16 %v4514_v40, %v4513_v32  ;;  %v4329_v33 = vpop.permute.xlu1 %4328  ;;  %v10671_v61 = vld [vmem:[%s12906_s3 + $0x5] ss:$0 sm:$0xff] }
 0x2e9   : > { %v10626_v56 = vld [vmem:[#allocation3 + $0xb0] sm:$0xff]  ;;  %v4512_v43 = vmax.f32 %v4480_v28, 0.0  ;;  %v4478_v3 = vadd.f32 %v10579_v38, %v4442_v14  ;;  %v4439_v46 = vadd.f32 %v12973_v19, %v12972_v31  ;;  %v3510_v17 = vadd.f32 %v3478_v50, %v3439_v55 }
 0x2ea   : > { %v10628_v15 = vld [vmem:[#allocation3 + $0xb1] sm:$0xff]  ;;  %3307 = vst.msk [vmem:[#allocation3 + $0xb9] sm:$0xff] %vm3281_vm6, %v3270_v10  ;;  %v3549_v39 = vmul.f32 %v10644_v21, %v10626_v56  ;;  %v3842_v26 = vmul.f32 %v10649_v8, %v10455_v60  ;;  %v4511_v63 = vmax.f32 %v4479_v4, 0.0  ;;  %v4477_v23 = vadd.f32 %v10579_v38, %v4441_v20 }
 0x2eb   : > { %v10630_v16 = vld [vmem:[#allocation3 + $0xaa] sm:$0xff]  ;;  %v3952_v59 = vmul.f32 %v10139_v12, %v10628_v15  ;;  %v4449_v1 = vadd.f32 %v4417_v58, %v4014_v37  ;;  %v4476_v28 = vadd.f32 %v10579_v38, %v4440_v47  ;;  %v4438_v44 = vadd.f32 %v12975_v62, %v12974_v25 }
 0x2ec   : > { %4598 = vmatpush.bf16.msra.mxu3 %v4539_v42  ;;  %v4194_v57 = vmul.f32 %v10160_v13, %v10630_v16  ;;  %v3581_v60 = vadd.f32 %v3549_v39, %v3510_v17  ;;  %v3913_v14 = vadd.f32 %v3881_v9, %v3842_v26  ;;  %v4538_v18 = vpack.c.bf16 %v4512_v43, %v4511_v63  ;;  %v10665_v13 = vld [vmem:[%s12906_s3 + $0x3] ss:$0 sm:$0xff]  ;;  %v12976_v42 = vld [vmem:[#allocation85_spill] sm:$0xff]  ;;  %v12977_v31 = vld [vmem:[#allocation55_spill] sm:$0xff] }
 0x2ed   : > { %v3224_v48 = vpop.f32.mrf.mxu2  ;;  %v4510_v54 = vmax.f32 %v4478_v3, 0.0  ;;  %v4475_v40 = vadd.f32 %v10579_v38, %v4439_v46  ;;  %v3479_v37 = vmul.f32 %v10665_v13, %v10593_v49  ;;  %v4509_v50 = vmax.f32 %v4477_v23, 0.0  ;;  %v10693_v3 = vld [vmem:[%s12906_s3 + $0x2] ss:$0 sm:$0xff]  ;;  %v10702_v26 = vld [vmem:[%s12906_s3 + $0x7] ss:$0 sm:$0xff] }
 0x2ee   : > { %v3225_v12 = vadd.f32 %v10574_v53, %v3224_v48  ;;  %v4226_v36 = vadd.f32 %v4194_v57, %v10581_v11  ;;  %v3773_v24 = vmul.f32 %v10513_v52, %v3581_v60  ;;  %v3984_v35 = vadd.f32 %v3952_v59, %v3913_v14  ;;  %v12978_v17 = vld [vmem:[#allocation96_spill] sm:$0xff]  ;;  %v10707_v57 = vld [vmem:[%s12906_s3 + $0x8] ss:$0 sm:$0xff]  ;;  %s13054_s3 = sld [smem:[#allocation22_spill]] }
 0x2ef   : > { %v4124_v11 = vmul.f32 %v10671_v61, %v10597_v29  ;;  %v4474_v10 = vadd.f32 %v10579_v38, %v4438_v44  ;;  %v3440_v52 = vmul.f32 %v10633_v27, %v10495_v30  ;;  %v3882_v47 = vmul.f32 %v10685_v51, %v10595_v6  ;;  %v12979_v44 = vld [vmem:[#allocation83_spill] sm:$0xff] }
 0x2f0   : > { %v3271_v20 = vmax.f32 %v3225_v12, 0.0  ;;  %4599 = vmatpush.bf16.msra.mxu3 %v4538_v18  ;;  %v4418_v22 = vmul.f32 %v4329_v33, %v4226_v36  ;;  %v4016_v41 = vadd.f32 %v3984_v35, %v3773_v24  ;;  %v4537_v55 = vpack.c.bf16 %v4510_v54, %v4509_v50  ;;  %v12981_v24 = vld [vmem:[#allocation97_spill] sm:$0xff] }
 0x2f1   : > { %v10676_v32 = vld [vmem:[#allocation3 + $0xb8] sm:$0xff]  ;;  %v4508_v9 = vmax.f32 %v4476_v28, 0.0  ;;  %v4473_v43 = vadd.f32 %v10579_v38, %v12976_v42  ;;  %v4085_v19 = vmul.f32 %v10693_v3, %v12977_v31  ;;  %v3511_v30 = vadd.f32 %v3479_v37, %v3440_v52  ;;  %v12982_v31 = vld [vmem:[#allocation78_spill] sm:$0xff] }
 0x2f2   : > { %v10678_v4 = vld [vmem:[#allocation3 + $0xb9] sm:$0xff]  ;;  %3308 = vst.msk [vmem:[#allocation3 + $0xc1] sm:$0xff] %vm3281_vm6, %v3271_v20  ;;  %v3550_v46 = vmul.f32 %v10644_v21, %v10676_v32  ;;  %v3843_v39 = vmul.f32 %v10649_v8, %v12978_v17  ;;  %v4507_v63 = vmax.f32 %v4475_v40, 0.0  ;;  %v4450_v28 = vadd.f32 %v4418_v22, %v4015_v2  ;;  %v12980_v40 = vld [vmem:[#allocation79_spill] sm:$0xff] }
 0x2f3   : > { %v10680_v58 = vld [vmem:[#allocation3 + $0xb2] sm:$0xff]  ;;  %v3953_v59 = vmul.f32 %v10702_v26, %v10678_v4  ;;  %v4156_v23 = vadd.f32 %v4124_v11, %v4085_v19  ;;  %v4506_v62 = vmax.f32 %v4474_v10, 0.0  ;;  %v4472_v60 = vadd.f32 %v10579_v38, %v12979_v44 }
 0x2f4   : > { %4600 = vmatpush.bf16.msra.mxu3 %v4537_v55  ;;  %v4195_v48 = vmul.f32 %v10707_v57, %v10680_v58  ;;  %v3582_v14 = vadd.f32 %v3550_v46, %v3511_v30  ;;  %v3914_v12 = vadd.f32 %v3882_v47, %v3843_v39  ;;  %v4536_v54 = vpack.c.bf16 %v4508_v9, %v4507_v63 }
 0x2f5   : > { %v3226_v25 = vpop.f32.mrf.mxu2  ;;  %v4486_v33 = vadd.f32 %v10579_v38, %v4450_v28  ;;  %v4471_v37 = vadd.f32 %v10579_v38, %v12980_v40  ;;  %v4485_v2 = vadd.f32 %v10579_v38, %v4449_v1  ;;  %v4505_v11 = vmax.f32 %v4473_v43, 0.0  ;;  %v12983_v43 = vld [vmem:[#allocation75_spill] sm:$0xff] }
 0x2f6   : > { %v3227_v18 = vadd.f32 %v10574_v53, %v3226_v25  ;;  %v4227_v36 = vadd.f32 %v4195_v48, %v4156_v23  ;;  %v3774_v35 = vmul.f32 %v12981_v24, %v3582_v14  ;;  %v3985_v20 = vadd.f32 %v3953_v59, %v3914_v12  ;;  %v8201_v24 = vld [vmem:[%s12985_s5 + $0x4] sm:$0xf0] }
 0x2f7   : > { %v4125_v22 = vmul.f32 %v10671_v61, %v10630_v16  ;;  %v4518_v55 = vmax.f32 %v4486_v33, 0.0  ;;  %v4535_v9 = vpack.c.bf16 %v4506_v62, %v4505_v11  ;;  %v4504_v42 = vmax.f32 %v4472_v60, 0.0 }
 0x2f8   : > { %v3272_v50 = vmax.f32 %v3227_v18, 0.0  ;;  %4601 = vmatpush.bf16.msra.mxu3 %v4536_v54  ;;  %v4419_v10 = vmul.f32 %v10561_v5, %v4227_v36  ;;  %v4017_v47 = vadd.f32 %v3985_v20, %v3774_v35  ;;  %v4470_v19 = vadd.f32 %v10579_v38, %v12982_v31  ;;  %v8203_v31 = vld [vmem:[%s12985_s5 + $0x14] sm:$0xf0] }
 0x2f9   : > { %v10722_v52 = vld [vmem:[#allocation3 + $0xba] sm:$0xff]  ;;  %v4086_v1 = vmul.f32 %v10693_v3, %v10543_v7  ;;  %v4469_v30 = vadd.f32 %v10579_v38, %v12983_v43  ;;  %v4517_v46 = vmax.f32 %v4485_v2, 0.0  ;;  %v4503_v5 = vmax.f32 %v4471_v37, 0.0 }
 0x2fa   : > { %3309 = vst.msk [vmem:[#allocation3 + $0xc9] sm:$0xff] %vm3281_vm6, %v3272_v50  ;;  %v4196_v39 = vmul.f32 %v10707_v57, %v10722_v52  ;;  %v4451_v59 = vadd.f32 %v4419_v10, %v4016_v41  ;;  %v4502_v25 = vmax.f32 %v4470_v19, 0.0  ;;  %v7900_v37 = vld [vmem:[%s12985_s5] sm:$0xf]  ;;  %v3441_v19 = vmul.f32 %v10633_v27, %v10548_v45 }
 0x2fb   : > { %v4157_v17 = vadd.f32 %v4125_v22, %v4086_v1  ;;  %v10733_v23 = vpack.c.bf16 %v4518_v55, %v4517_v46  ;;  %v4534_v28 = vpack.c.bf16 %v4504_v42, %v4503_v5  ;;  %v4501_v44 = vmax.f32 %v4469_v30, 0.0  ;;  %v7908_v42 = vld [vmem:[%s12985_s5 + $0x10] sm:$0xf]  ;;  %v3409_v5 = vld [vmem:[#allocation3 + $0xc0] sm:$0xff] }
 0x2fc   : > { %4602 = vmatpush.bf16.msra.mxu3 %v4535_v9  ;;  %v4487_v36 = vadd.f32 %v10579_v38, %v4451_v59  ;;  %v3480_v55 = vmul.f32 %v10665_v13, %v10626_v56  ;;  %v3883_v9 = vmul.f32 %v10685_v51, %v10628_v15  ;;  %v3442_v1 = vmul.f32 %v10633_v27, %v10593_v49 }
 0x2fd   : > { %v3229_v63 = vpop.f32.mrf.mxu2  ;;  %12984 = vst [vmem:[#allocation46_spill] sm:$0xff] %v10733_v23  ;;  %v4228_v62 = vadd.f32 %v4196_v39, %v4157_v17  ;;  %v4533_v14 = vpack.c.bf16 %v4502_v25, %v4501_v44  ;;  %v3844_v43 = vmul.f32 %v10649_v8, %v10550_v34  ;;  %v3845_v30 = vmul.f32 %v10649_v8, %v10595_v6  ;;  %v3811_v17 = vld [vmem:[#allocation3 + $0xc1] sm:$0xff] }
 0x2fe   : > { %v3230_v48 = vadd.f32 %v10574_v53, %v3229_v63  ;;  %v4519_v35 = vmax.f32 %v4487_v36, 0.0  ;;  %v7909_v46 = vor.u32 %v8203_v31, %v7908_v42  ;;  %v3481_v39 = vmul.f32 %v10665_v13, %v10676_v32 }
 0x2ff   : > { %v4420_v60 = vmul.f32 %v10567_v0, %v4228_v62  ;;  %v7901_v0 = vor.u32 %v8201_v24, %v7900_v37  ;;  %v3884_v59 = vmul.f32 %v10685_v51, %v10678_v4  ;;  %v4087_v45 = vmul.f32 %v10693_v3, %v10597_v29 }
 0x300   : > { %v3273_v7 = vmax.f32 %v3230_v48, 0.0  ;;  %4603 = vmatpush.bf16.msra.mxu3 %v4534_v28  ;;  %v3443_v49 = vmul.f32 %v10633_v27, %v10626_v56  ;;  %v3846_v34 = vmul.f32 %v10649_v8, %v10628_v15  ;;  %v4088_v6 = vmul.f32 %v10693_v3, %v10630_v16 }
 0x301   : > { %v4452_v41 = vadd.f32 %v4420_v60, %v4017_v47  ;;  %v4126_v63 = vmul.f32 %v10671_v61, %v10680_v58  ;;  %v3410_v28 = vld [vmem:[#allocation3 + $0xc8] sm:$0xff]  ;;  %v3444_v25 = vmul.f32 %v10633_v27, %v10676_v32  ;;  %v3847_v29 = vmul.f32 %v10649_v8, %v10678_v4 }
 0x302   : > { %3310 = vst.msk [vmem:[#allocation3 + $0xd1] sm:$0xff] %vm3281_vm6, %v3273_v7  ;;  %v3512_v62 = vadd.f32 %v3480_v55, %v3441_v19  ;;  %v10782_v56 = vadd.f32 %v3883_v9, %v3844_v43  ;;  %v3812_v7 = vld [vmem:[#allocation3 + $0xc9] sm:$0xff]  ;;  %v3482_v16 = vmul.f32 %v10665_v13, %v3409_v5  ;;  %v3885_v60 = vmul.f32 %v10685_v51, %v3811_v17 }
 0x303   : > { %v4488_v54 = vadd.f32 %v10579_v38, %v4452_v41  ;;  %v4054_v44 = vld [vmem:[#allocation3 + $0xc2] sm:$0xff]  ;;  %v3513_v41 = vadd.f32 %v3481_v39, %v3442_v1  ;;  %v3551_v32 = vmul.f32 %v10644_v21, %v3409_v5  ;;  %v4127_v4 = vmul.f32 %v10671_v61, %v10722_v52 }
 0x304   : > { %4604 = vmatpush.bf16.msra.mxu3 %v4533_v14  ;;  %12987 = vst [vmem:[#allocation48_spill] sm:$0xff] %v10782_v56  ;;  %v4089_v14 = vmul.f32 %v10693_v3, %v10680_v58  ;;  %v3483_v36 = vmul.f32 %v10665_v13, %v3410_v28  ;;  %v3848_v37 = vmul.f32 %v10649_v8, %v3811_v17 }
 0x305   : > { %v3231_v12 = vpop.f32.mrf.mxu2  ;;  %v4520_v40 = vmax.f32 %v4488_v54, 0.0  ;;  %v3445_v54 = vmul.f32 %v10633_v27, %v3409_v5  ;;  %v3886_v58 = vmul.f32 %v10685_v51, %v3812_v7  ;;  %v4128_v24 = vmul.f32 %v10671_v61, %v4054_v44 }
 0x306   : > { %v3232_v18 = vadd.f32 %v10574_v53, %v3231_v12  ;;  %v10790_v12 = vadd.f32 %v3884_v59, %v3845_v30  ;;  %v10812_v55 = vadd.f32 %v3551_v32, %v3512_v62  ;;  %v4159_v9 = vadd.f32 %v4127_v4, %v4088_v6 }
 0x307   : > { %4605 = vmatmul.bf16.vlgmr.msra.gmra.mxu3 %v7901_v0  ;;  %v10744_v2 = vpack.c.bf16 %v4520_v40, %v4519_v35  ;;  %v3552_v0 = vmul.f32 %v10644_v21, %v3410_v28  ;;  %v3514_v35 = vadd.f32 %v3482_v16, %v3443_v49  ;;  %v4091_v19 = vmul.f32 %v10693_v3, %v4054_v44  ;;  %v7916_v49 = vld [vmem:[%s12985_s5 + $0x20] sm:$0xf] }
 0x308   : > { %v3274_v33 = vmax.f32 %v3232_v18, 0.0  ;;  %12988 = vst [vmem:[#allocation50_spill] sm:$0xff] %v10790_v12  ;;  %v3515_v1 = vadd.f32 %v3483_v36, %v3444_v25  ;;  %v10819_v5 = vadd.f32 %v3886_v58, %v3847_v29  ;;  %v10824_v59 = vmul.f32 %v10707_v57, %v4054_v44 }
 0x309   : > { %12986 = vst [vmem:[#allocation51_spill] sm:$0xff] %v10744_v2  ;;  %v3411_v40 = vld [vmem:[#allocation3 + $0xd0] sm:$0xff]  ;;  %v10821_v39 = vadd.f32 %v3552_v0, %v3513_v41 }
 0x30a   : > { %3311 = vst.msk [vmem:[#allocation3 + $0xd9] sm:$0xff] %vm3281_vm6, %v3274_v33  ;;  %v10796_v33 = vadd.f32 %v4126_v63, %v4087_v45  ;;  %v3484_v42 = vmul.f32 %v10665_v13, %v3411_v40  ;;  %v4055_v31 = vld [vmem:[#allocation3 + $0xca] sm:$0xff]  ;;  %v3447_v6 = vmul.f32 %v10633_v27, %v3411_v40 }
 0x30b   : > { %12992 = vst [vmem:[#allocation57_spill] sm:$0xff] %v10812_v55  ;;  %v4092_v62 = vmul.f32 %v10693_v3, %v4055_v31  ;;  %v4171_v55 = vld [vmem:[#allocation3 + $0x11a] sm:$0xff] }
 0x30c   : > { %12989 = vst [vmem:[#allocation52_spill] sm:$0xff] %v10796_v33 }
 0x30d   : > { %v3234_v20 = vpop.f32.mrf.mxu2  ;;  %12994 = vst [vmem:[#allocation61_spill] sm:$0xff] %v10819_v5 }
 0x30e   : > { %v3235_v50 = vadd.f32 %v10574_v53, %v3234_v20  ;;  %v10803_v20 = vadd.f32 %v3885_v60, %v3846_v34  ;;  %12995 = vst [vmem:[#allocation60_spill] sm:$0xff] %v10821_v39  ;;  %v8205_v34 = vld [vmem:[%s12985_s5 + $0x24] sm:$0xf0]  ;;  %v3516_v60 = vadd.f32 %v3484_v42, %v3445_v54 }
 0x30f   : > { %12996 = vst [vmem:[#allocation64_spill] sm:$0xff] %v10824_v59  ;;  %v7917_v41 = vor.u32 %v8205_v34, %v7916_v49 }
 0x310   : > { %v3275_v11 = vmax.f32 %v3235_v50, 0.0  ;;  %12990 = vst [vmem:[#allocation53_spill] sm:$0xff] %v10803_v20  ;;  %v4090_v50 = vmul.f32 %v10693_v3, %v10722_v52  ;;  %v10817_v52 = vmul.f32 %v10702_v26, %v3812_v7 }
 0x311   : > { %v3412_v30 = vld [vmem:[#allocation3 + $0xd8] sm:$0xff] }
 0x312   : > { %3312 = vst.msk [vmem:[#allocation3 + $0xe1] sm:$0xff] %vm3281_vm6, %v3275_v11  ;;  %v10808_v11 = vmul.f32 %v10702_v26, %v3811_v17  ;;  %v4160_v17 = vadd.f32 %v4128_v24, %v4089_v14  ;;  %v4056_v63 = vld [vmem:[#allocation3 + $0xd2] sm:$0xff]  ;;  %v3485_v16 = vmul.f32 %v10665_v13, %v3412_v30  ;;  %v3448_v0 = vmul.f32 %v10633_v27, %v3412_v30 }
 0x313   : > { %12993 = vst [vmem:[#allocation49_spill] sm:$0xff] %v10817_v52  ;;  %v4130_v4 = vmul.f32 %v10671_v61, %v4056_v63  ;;  %v4199_v54 = vmul.f32 %v10707_v57, %v4056_v63  ;;  %v4093_v49 = vmul.f32 %v10693_v3, %v4056_v63 }
 0x314   : > { %12991 = vst [vmem:[#allocation47_spill] sm:$0xff] %v10808_v11 }
 0x315   : > { %v3236_v22 = vpop.f32.mrf.mxu2  ;;  %v10868_v63 = vadd.f32 %v4199_v54, %v4160_v17  ;;  %v3927_v17 = vld [vmem:[#allocation3 + $0x111] sm:$0xff] }
 0x316   : > { %v3237_v10 = vadd.f32 %v10574_v53, %v3236_v22  ;;  %v3813_v22 = vld [vmem:[#allocation3 + $0xd1] sm:$0xff] }
 0x317   : > { %4610 = vmatmul.bf16.gmra.mxu3 %v7909_v46  ;;  %v3814_v46 = vld [vmem:[#allocation3 + $0xd9] sm:$0xff]  ;;  %v3850_v29 = vmul.f32 %v10649_v8, %v3813_v22  ;;  %v10838_v14 = vmul.f32 %v10702_v26, %v3813_v22  ;;  %13003 = vst [vmem:[#allocation84_spill] sm:$0xff] %v10868_v63 }
 0x318   : > { %v3276_v47 = vmax.f32 %v3237_v10, 0.0  ;;  %v3446_v10 = vmul.f32 %v10633_v27, %v3410_v28  ;;  %v3553_v28 = vmul.f32 %v10644_v21, %v3411_v40  ;;  %v3888_v32 = vmul.f32 %v10685_v51, %v3814_v46 }
 0x319   : > { %v3413_v25 = vld [vmem:[#allocation3 + $0xe0] sm:$0xff]  ;;  %12997 = vst [vmem:[#allocation58_spill] sm:$0xff] %v10838_v14 }
 0x31a   : > { %3313 = vst.msk [vmem:[#allocation3 + $0xe9] sm:$0xff] %vm3281_vm6, %v3276_v47  ;;  %v3849_v47 = vmul.f32 %v10649_v8, %v3812_v7  ;;  %v4198_v7 = vmul.f32 %v10707_v57, %v4055_v31  ;;  %v3815_v36 = vld [vmem:[#allocation3 + $0xe1] sm:$0xff]  ;;  %v3555_v40 = vmul.f32 %v10644_v21, %v3413_v25  ;;  %v10847_v24 = vadd.f32 %v3553_v28, %v3514_v35 }
 0x31b   : > { %v4057_v42 = vld [vmem:[#allocation3 + $0xda] sm:$0xff]  ;;  %v3517_v34 = vadd.f32 %v3485_v16, %v3446_v10  ;;  %v3449_v16 = vmul.f32 %v10633_v27, %v3413_v25 }
 0x31c   : > { %12999 = vst [vmem:[#allocation63_spill] sm:$0xff] %v10847_v24  ;;  %v3587_v23 = vadd.f32 %v3555_v40, %v3516_v60  ;;  %v4131_v10 = vmul.f32 %v10671_v61, %v4057_v42  ;;  %v10873_v2 = vmul.f32 %v10693_v3, %v4057_v42  ;;  %v10885_v54 = vmul.f32 %v10707_v57, %v4057_v42 }
 0x31d   : > { %v3239_v48 = vpop.f32.mrf.mxu2 }
 0x31e   : > { %v3240_v15 = vadd.f32 %v10574_v53, %v3239_v48  ;;  %v3887_v48 = vmul.f32 %v10685_v51, %v3813_v22  ;;  %v3851_v22 = vmul.f32 %v10649_v8, %v3814_v46 }
 0x320   : > { %v3277_v18 = vmax.f32 %v3240_v15, 0.0  ;;  %v4129_v15 = vmul.f32 %v10671_v61, %v4055_v31  ;;  %v10845_v58 = vadd.f32 %v3887_v48, %v3848_v37  ;;  %v10859_v37 = vmul.f32 %v10702_v26, %v3814_v46 }
 0x321   : > { %v3414_v48 = vld [vmem:[#allocation3 + $0xe8] sm:$0xff] }
 0x322   : > { %3314 = vst.msk [vmem:[#allocation3 + $0xf1] sm:$0xff] %vm3281_vm6, %v3277_v18  ;;  %v3554_v18 = vmul.f32 %v10644_v21, %v3412_v30  ;;  %v10852_v31 = vadd.f32 %v4129_v15, %v4090_v50  ;;  %v3816_v28 = vld [vmem:[#allocation3 + $0xe9] sm:$0xff]  ;;  %v3889_v30 = vmul.f32 %v10685_v51, %v3815_v36  ;;  %v4162_v50 = vadd.f32 %v4130_v4, %v4091_v19  ;;  %v3525_v4 = vld [vmem:[#allocation3 + $0x118] sm:$0xff] }
 0x323   : > { %12998 = vst [vmem:[#allocation90_spill] sm:$0xff] %v10845_v58  ;;  %v3890_v60 = vmul.f32 %v10685_v51, %v3816_v28  ;;  %v3556_v40 = vmul.f32 %v10644_v21, %v3414_v48 }
 0x324   : > { %13001 = vst [vmem:[#allocation87_spill] sm:$0xff] %v10859_v37  ;;  %v10864_v15 = vadd.f32 %v3554_v18, %v3515_v1  ;;  %v3487_v1 = vmul.f32 %v10665_v13, %v3414_v48  ;;  %v10880_v18 = vadd.f32 %v3889_v30, %v3850_v29  ;;  %v10894_v29 = vmul.f32 %v10633_v27, %v3414_v48 }
 0x325   : > { %v3241_v43 = vpop.f32.mrf.mxu2  ;;  %v10897_v30 = vmul.f32 %v10649_v8, %v3816_v28  ;;  %v10909_v48 = vadd.f32 %v3890_v60, %v3851_v22 }
 0x326   : > { %v3242_v45 = vadd.f32 %v10574_v53, %v3241_v43  ;;  %v10854_v43 = vadd.f32 %v4198_v7, %v4159_v9  ;;  %13002 = vst [vmem:[#allocation62_spill] sm:$0xff] %v10864_v15  ;;  %v4058_v7 = vld [vmem:[#allocation3 + $0xe2] sm:$0xff] }
 0x327   : > { %4615 = vmatmul.bf16.gmra.mxu3 %v7917_v41  ;;  %v3852_v41 = vmul.f32 %v10649_v8, %v3815_v36  ;;  %v4201_v11 = vmul.f32 %v10707_v57, %v4058_v7  ;;  %v4095_v42 = vmul.f32 %v10693_v3, %v4058_v7 }
 0x328   : > { %v3278_v44 = vmax.f32 %v3242_v45, 0.0  ;;  %13000 = vst [vmem:[#allocation94_spill] sm:$0xff] %v10854_v43  ;;  %v3486_v45 = vmul.f32 %v10665_v13, %v3413_v25  ;;  %v4132_v25 = vmul.f32 %v10671_v61, %v4058_v7  ;;  %v10904_v43 = vmul.f32 %v10644_v21, %v3525_v4 }
 0x329   : > { %v3415_v46 = vld [vmem:[#allocation3 + $0xf0] sm:$0xff]  ;;  %v10913_v4 = vadd.f32 %v3556_v40, %v3517_v34 }
 0x32a   : > { %3315 = vst.msk [vmem:[#allocation3 + $0xf9] sm:$0xff] %vm3281_vm6, %v3278_v44  ;;  %v10862_v44 = vadd.f32 %v3888_v32, %v3849_v47  ;;  %v10876_v47 = vmul.f32 %v10702_v26, %v3815_v36  ;;  %v3518_v32 = vadd.f32 %v3486_v45, %v3447_v6  ;;  %v3817_v36 = vld [vmem:[#allocation3 + $0xf1] sm:$0xff]  ;;  %v4163_v45 = vadd.f32 %v4131_v10, %v4092_v62 }
 0x32b   : > { %v4059_v56 = vld [vmem:[#allocation3 + $0xea] sm:$0xff]  ;;  %v10907_v62 = vmul.f32 %v10702_v26, %v3927_v17  ;;  %v4170_v10 = vld [vmem:[#allocation3 + $0x112] sm:$0xff]  ;;  %v3488_v59 = vmul.f32 %v10665_v13, %v3415_v46  ;;  %v4164_v7 = vadd.f32 %v4132_v25, %v4093_v49  ;;  %v3451_v22 = vmul.f32 %v10633_v27, %v3415_v46 }
 0x32c   : > { %13004 = vst [vmem:[#allocation65_spill] sm:$0xff] %v10876_v47  ;;  %v4133_v39 = vmul.f32 %v10671_v61, %v4059_v56  ;;  %v3854_v60 = vmul.f32 %v10649_v8, %v3817_v36  ;;  %v10925_v14 = vmul.f32 %v10707_v57, %v4170_v10  ;;  %v10941_v5 = vmul.f32 %v10702_v26, %v3817_v36 }
 0x32d   : > { %v3244_v35 = vpop.f32.mrf.mxu2  ;;  %v3520_v40 = vadd.f32 %v3488_v59, %v3449_v16 }
 0x32e   : > { %v3245_v9 = vadd.f32 %v10574_v53, %v3244_v35  ;;  %v3557_v35 = vmul.f32 %v10644_v21, %v3415_v46  ;;  %v4165_v24 = vadd.f32 %v4133_v39, %v10873_v2 }
 0x330   : > { %v3279_v19 = vmax.f32 %v3245_v9, 0.0  ;;  %v13005_v9 = vld [vmem:[#allocation81_spill] sm:$0xff]  ;;  %v3589_v17 = vadd.f32 %v3557_v35, %v3518_v32  ;;  %v8207_v32 = vld [vmem:[%s12985_s5 + $0x34] sm:$0xf0] }
 0x331   : > { %v10890_v6 = vmul.f32 %v13005_v9, %v3587_v23  ;;  %v3928_v23 = vld [vmem:[#allocation3 + $0x119] sm:$0xff]  ;;  %v3519_v9 = vadd.f32 %v3487_v1, %v3448_v0  ;;  %v10917_v0 = vadd.f32 %v4201_v11, %v4162_v50  ;;  %v4202_v50 = vmul.f32 %v10707_v57, %v4059_v56 }
 0x332   : > { %3316 = vst.msk [vmem:[#allocation3 + $0x101] sm:$0xff] %vm3281_vm6, %v3279_v19  ;;  %v10901_v19 = vmul.f32 %v10702_v26, %v3816_v28  ;;  %v3416_v12 = vld [vmem:[#allocation3 + $0xf8] sm:$0xff]  ;;  %v3891_v28 = vmul.f32 %v10685_v51, %v3817_v36  ;;  %v10922_v63 = vmul.f32 %v10702_v26, %v3928_v23  ;;  %v4096_v23 = vmul.f32 %v10693_v3, %v4059_v56 }
 0x333   : > { %13006 = vst [vmem:[#allocation85_spill] sm:$0xff] %v10890_v6  ;;  %v3818_v1 = vld [vmem:[#allocation3 + $0xf9] sm:$0xff]  ;;  %v3558_v11 = vmul.f32 %v10644_v21, %v3416_v12  ;;  %v3489_v6 = vmul.f32 %v10665_v13, %v3416_v12 }
 0x334   : > { %13007 = vst [vmem:[#allocation55_spill] sm:$0xff] %v10917_v0  ;;  %v4060_v34 = vld [vmem:[#allocation3 + $0xf2] sm:$0xff]  ;;  %v3923_v35 = vadd.f32 %v3891_v28, %v3852_v41  ;;  %v3892_v59 = vmul.f32 %v10685_v51, %v3818_v1  ;;  %v3961_v0 = vmul.f32 %v10702_v26, %v3818_v1 }
 0x335   : > { %v3246_v52 = vpop.f32.mrf.mxu2  ;;  %v4134_v56 = vmul.f32 %v10671_v61, %v4060_v34  ;;  %v4203_v16 = vmul.f32 %v10707_v57, %v4060_v34  ;;  %v4097_v15 = vmul.f32 %v10693_v3, %v4060_v34 }
 0x336   : > { %v3247_v33 = vadd.f32 %v10574_v53, %v3246_v52  ;;  %v10928_v53 = vmul.f32 %v10707_v57, %v4171_v55  ;;  %v7924_v52 = vld [vmem:[%s12985_s5 + $0x30] sm:$0xf] }
 0x337   : > { %v7925_v20 = vor.u32 %v8207_v32, %v7924_v52  ;;  %v13008_v55 = vld [vmem:[#allocation74_spill] sm:$0xff]  ;;  %v3452_v32 = vmul.f32 %v10633_v27, %v3416_v12 }
 0x338   : > { %v3280_v49 = vmax.f32 %v3247_v33, 0.0  ;;  %v10938_v37 = vmul.f32 %v13008_v55, %v3589_v17  ;;  %v10950_v17 = vadd.f32 %v4202_v50, %v4163_v45  ;;  %v3855_v55 = vmul.f32 %v10649_v8, %v3818_v1 }
 0x339   : > { %v3453_v46 = vld [vmem:[#allocation3 + $0x100] sm:$0xff]  ;;  %4620 = vmatmul.bf16.gmra.mxu3 %v7925_v20  ;;  %v3924_v45 = vadd.f32 %v3892_v59, %v10897_v30 }
 0x33a   : > { %v3856_v25 = vld [vmem:[#allocation3 + $0x101] sm:$0xff]  ;;  %3317 = vst.msk [vmem:[#allocation3 + $0x109] sm:$0xff] %vm3281_vm6, %v3280_v49  ;;  %v3490_v41 = vmul.f32 %v10665_v13, %v3453_v46  ;;  %v3559_v28 = vmul.f32 %v10644_v21, %v3453_v46  ;;  %v3590_v49 = vadd.f32 %v3558_v11, %v3519_v9  ;;  %v3521_v9 = vadd.f32 %v3489_v6, %v10894_v29 }
 0x33b   : > { %v3893_v33 = vmul.f32 %v10685_v51, %v3856_v25  ;;  %v4061_v10 = vld [vmem:[#allocation3 + $0xfa] sm:$0xff]  ;;  %v3962_v36 = vmul.f32 %v10702_v26, %v3856_v25  ;;  %v4235_v11 = vadd.f32 %v4203_v16, %v4164_v7  ;;  %v13010_v16 = vld [vmem:[#allocation70_spill] sm:$0xff] }
 0x33c   : > { %v4135_v2 = vmul.f32 %v10671_v61, %v4061_v10  ;;  %v4204_v39 = vmul.f32 %v10707_v57, %v4061_v10  ;;  %v3522_v50 = vadd.f32 %v3490_v41, %v3451_v22  ;;  %v4098_v46 = vmul.f32 %v10693_v3, %v4061_v10  ;;  %v13009_v25 = vld [vmem:[#allocation76_spill] sm:$0xff] }
 0x33d   : > { %v3925_v52 = vadd.f32 %v3893_v33, %v3854_v60  ;;  %v4166_v60 = vadd.f32 %v4134_v56, %v4095_v42  ;;  %v3591_v20 = vadd.f32 %v3559_v28, %v3520_v40  ;;  %v3782_v33 = vmul.f32 %v13009_v25, %v3590_v49  ;;  %v13012_v49 = vld [vmem:[#allocation71_spill] sm:$0xff]  ;;  %v13016_v25 = vld [vmem:[#allocation73_spill] sm:$0xff] }
 0x33e   : > { %v3994_v34 = vadd.f32 %v3962_v36, %v3923_v35  ;;  %v4167_v58 = vadd.f32 %v4135_v2, %v4096_v23  ;;  %v4236_v1 = vadd.f32 %v4204_v39, %v4165_v24 }
 0x33f   : > { %v3996_v8 = vadd.f32 %v10907_v62, %v3925_v52 }
 0x341   : > { %v3454_v47 = vld [vmem:[#allocation3 + $0x108] sm:$0xff]  ;;  %v3524_v27 = vld [vmem:[#allocation3 + $0x110] sm:$0xff] }
 0x342   : > { %v3857_v12 = vld [vmem:[#allocation3 + $0x109] sm:$0xff]  ;;  %v3491_v6 = vmul.f32 %v10665_v13, %v3454_v47  ;;  %v3561_v29 = vmul.f32 %v10644_v21, %v3524_v27  ;;  %v3560_v3 = vmul.f32 %v10644_v21, %v3454_v47 }
 0x343   : > { %v3894_v30 = vmul.f32 %v10685_v51, %v3857_v12  ;;  %v4099_v42 = vld [vmem:[#allocation3 + $0x102] sm:$0xff]  ;;  %v4100_v7 = vld [vmem:[#allocation3 + $0x10a] sm:$0xff]  ;;  %v3963_v10 = vmul.f32 %v10702_v26, %v3857_v12  ;;  %v3783_v51 = vmul.f32 %v13010_v16, %v3591_v20 }
 0x344   : > { %v4136_v22 = vmul.f32 %v10671_v61, %v4099_v42  ;;  %v4137_v40 = vmul.f32 %v10671_v61, %v4100_v7  ;;  %v4205_v62 = vmul.f32 %v10707_v57, %v4099_v42  ;;  %v3523_v35 = vadd.f32 %v3491_v6, %v3452_v32  ;;  %v13011_v47 = vld [vmem:[#allocation66_spill] sm:$0xff]  ;;  %v13013_v32 = vld [vmem:[#allocation67_spill] sm:$0xff] }
 0x345   : > { %v3593_v24 = vadd.f32 %v3561_v29, %v3522_v50  ;;  %v3926_v23 = vadd.f32 %v3894_v30, %v3855_v55  ;;  %v3592_v13 = vadd.f32 %v3560_v3, %v3521_v9  ;;  %v4206_v41 = vmul.f32 %v10707_v57, %v4100_v7  ;;  %v13014_v57 = vld [vmem:[#allocation68_spill] sm:$0xff] }
 0x346   : > { %v4168_v59 = vadd.f32 %v4136_v22, %v4097_v15  ;;  %v4169_v56 = vadd.f32 %v4137_v40, %v4098_v46  ;;  %v3594_v21 = vadd.f32 %v10904_v43, %v3523_v35  ;;  %v3995_v52 = vadd.f32 %v3963_v10, %v3924_v45  ;;  %v13015_v43 = vld [vmem:[#allocation72_spill] sm:$0xff]  ;;  %v13020_v40 = vld [vmem:[#allocation77_spill] sm:$0xff]  ;;  %v13022_v35 = vld [vmem:[#allocation90_spill] sm:$0xff] }
 0x347   : > { %v3785_v28 = vmul.f32 %v13011_v47, %v3593_v24  ;;  %v3784_v61 = vmul.f32 %v13012_v49, %v3592_v13  ;;  %v4237_v2 = vadd.f32 %v4205_v62, %v4166_v60  ;;  %v4238_v39 = vadd.f32 %v4206_v41, %v4167_v58  ;;  %v13018_v60 = vld [vmem:[#allocation80_spill] sm:$0xff]  ;;  %v13024_v13 = vld [vmem:[#allocation55_spill] sm:$0xff]  ;;  %v13028_v41 = vld [vmem:[#allocation85_spill] sm:$0xff] }
 0x348   : > { %v4239_v26 = vadd.f32 %v10925_v14, %v4168_v59  ;;  %v4240_v36 = vadd.f32 %v10928_v53, %v4169_v56  ;;  %v3786_v15 = vmul.f32 %v13013_v32, %v3594_v21  ;;  %v3997_v55 = vadd.f32 %v10922_v63, %v3926_v23  ;;  %v13017_v14 = vld [vmem:[#allocation69_spill] sm:$0xff]  ;;  %v13021_v62 = vld [vmem:[#allocation88_spill] sm:$0xff]  ;;  %v13026_v56 = vld [vmem:[#allocation62_spill] sm:$0xff] }
 0x349   : > { %v4028_v9 = vadd.f32 %v3996_v8, %v3785_v28  ;;  %v4027_v50 = vadd.f32 %v3995_v52, %v3784_v61  ;;  %v4429_v20 = vmul.f32 %v13015_v43, %v4237_v2  ;;  %v4430_v27 = vmul.f32 %v13016_v25, %v4238_v39  ;;  %v13019_v8 = vld [vmem:[#allocation82_spill] sm:$0xff]  ;;  %v13029_v47 = vld [vmem:[#allocation63_spill] sm:$0xff]  ;;  %v13030_v28 = vld [vmem:[#allocation89_spill] sm:$0xff] }
 0x34a   : > { %v4431_v46 = vmul.f32 %v13014_v57, %v4239_v26  ;;  %v3993_v45 = vadd.f32 %v3961_v0, %v10909_v48  ;;  %v4029_v12 = vadd.f32 %v3997_v55, %v3786_v15  ;;  %v4432_v6 = vmul.f32 %v13017_v14, %v4240_v36  ;;  %v13031_v49 = vld [vmem:[#allocation61_spill] sm:$0xff]  ;;  %v13032_v61 = vld [vmem:[#allocation87_spill] sm:$0xff]  ;;  %v13036_v57 = vld [vmem:[#allocation84_spill] sm:$0xff] }
 0x34b   : > { %v4026_v53 = vadd.f32 %v3994_v34, %v3783_v51  ;;  %v4428_v58 = vmul.f32 %v13018_v60, %v4236_v1  ;;  %v4462_v30 = vadd.f32 %v4430_v27, %v4027_v50  ;;  %v3992_v63 = vadd.f32 %v10941_v5, %v10880_v18  ;;  %v13033_v26 = vld [vmem:[#allocation93_spill] sm:$0xff]  ;;  %v13039_v25 = vld [vmem:[#allocation54_spill] sm:$0xff] }
 0x34c   : > { %v4463_v29 = vadd.f32 %v4431_v46, %v4028_v9  ;;  %v3780_v42 = vmul.f32 %v13019_v8, %v10913_v4  ;;  %v4464_v7 = vadd.f32 %v4432_v6, %v4029_v12  ;;  %v4025_v22 = vadd.f32 %v3993_v45, %v3782_v33  ;;  %v13034_v55 = vld [vmem:[#allocation53_spill] sm:$0xff]  ;;  %v13035_v9 = vld [vmem:[#allocation58_spill] sm:$0xff]  ;;  %v13037_v46 = vld [vmem:[#allocation92_spill] sm:$0xff] }
 0x34d   : > { %v4461_v3 = vadd.f32 %v4429_v20, %v4026_v53  ;;  %v4427_v10 = vmul.f32 %v13020_v40, %v4235_v11  ;;  %v4024_v0 = vadd.f32 %v3992_v63, %v10938_v37  ;;  %v3991_v34 = vadd.f32 %v10901_v19, %v10862_v44  ;;  %v13023_v11 = vld [vmem:[#allocation65_spill] sm:$0xff]  ;;  %v13025_v37 = vld [vmem:[#allocation86_spill] sm:$0xff]  ;;  %v13027_v44 = vld [vmem:[#allocation91_spill] sm:$0xff] }
 0x34e   : > { %v4499_v48 = vadd.f32 %v10579_v38, %v4463_v29  ;;  %v4232_v1 = vadd.f32 %v10885_v54, %v10852_v31  ;;  %v4500_v5 = vadd.f32 %v10579_v38, %v4464_v7  ;;  %v4498_v18 = vadd.f32 %v10579_v38, %v4462_v30  ;;  %v13038_v20 = vld [vmem:[#allocation60_spill] sm:$0xff]  ;;  %v13042_v30 = vld [vmem:[#allocation57_spill] sm:$0xff]  ;;  %v13043_v63 = vld [vmem:[#allocation59_spill] sm:$0xff] }
 0x34f   : > { %v4460_v4 = vadd.f32 %v4428_v58, %v4025_v22  ;;  %v4426_v33 = vmul.f32 %v13021_v62, %v10950_v17  ;;  %v3990_v24 = vadd.f32 %v13023_v11, %v13022_v35  ;;  %v4023_v23 = vadd.f32 %v3991_v34, %v3780_v42  ;;  %v13040_v45 = vld [vmem:[#allocation52_spill] sm:$0xff]  ;;  %v13044_v42 = vld [vmem:[#allocation50_spill] sm:$0xff]  ;;  %v13045_v7 = vld [vmem:[#allocation49_spill] sm:$0xff] }
 0x350   : > { %v4425_v59 = vmul.f32 %v13025_v37, %v13024_v13  ;;  %v3778_v19 = vmul.f32 %v13027_v44, %v13026_v56  ;;  %v4531_v16 = vmax.f32 %v4499_v48, 0.0  ;;  %v4532_v31 = vmax.f32 %v4500_v5, 0.0  ;;  %v13041_v12 = vld [vmem:[#allocation64_spill] sm:$0xff]  ;;  %v13046_v22 = vld [vmem:[#allocation94_spill] sm:$0xff]  ;;  %v13050_v62 = vld [vmem:[#allocation95_spill] sm:$0xff] }
 0x351   : > { %v4497_v54 = vadd.f32 %v10579_v38, %v4461_v3  ;;  %v4459_v51 = vadd.f32 %v4427_v10, %v4024_v0  ;;  %v4022_v21 = vadd.f32 %v3990_v24, %v13028_v41  ;;  %v3777_v17 = vmul.f32 %v13030_v28, %v13029_v47  ;;  %v13047_v40 = vld [vmem:[#allocation56_spill] sm:$0xff] }
 0x352   : > { %v3989_v52 = vadd.f32 %v13032_v61, %v13031_v49  ;;  %v4424_v36 = vmul.f32 %v13033_v26, %v4232_v1  ;;  %v4548_v2 = vpack.c.bf16 %v4532_v31, %v4531_v16  ;;  %v4530_v39 = vmax.f32 %v4498_v18, 0.0  ;;  %v13048_v5 = vld [vmem:[#allocation48_spill] sm:$0xff]  ;;  %v13049_v18 = vld [vmem:[#allocation47_spill] sm:$0xff] }
 0x353   : > { %v4496_v32 = vadd.f32 %v10579_v38, %v4460_v4  ;;  %v4458_v15 = vadd.f32 %v4426_v33, %v4023_v23  ;;  %v3988_v50 = vadd.f32 %v13035_v9, %v13034_v55  ;;  %v4423_v43 = vmul.f32 %v13037_v46, %v13036_v57  ;;  %v8200_v26 = vld [vmem:[%s12985_s5 + $0x4] sm:$0xf]  ;;  %v11047_v55 = vld [vmem:[%s13051_s2 + $0x10] sm:$0xff]  ;;  %v7918_v46 = vld [vmem:[%s12985_s5 + $0x28] sm:$0xf0] }
 0x354   : > { %v3776_v27 = vmul.f32 %v13039_v25, %v13038_v20  ;;  %v4229_v14 = vadd.f32 %v13041_v12, %v13040_v45  ;;  %4626 = vmatpush.bf16.msrb.mxu3 %v4548_v2  ;;  %v4529_v6 = vmax.f32 %v4497_v54, 0.0  ;;  %v4495_v53 = vadd.f32 %v10579_v38, %v4459_v51  ;;  %v8204_v57 = vld [vmem:[%s12985_s5 + $0x24] sm:$0xf]  ;;  %v8206_v25 = vld [vmem:[%s12985_s5 + $0x34] sm:$0xf] }
 0x355   : > { %v4457_v60 = vadd.f32 %v4425_v59, %v4022_v21  ;;  %v4021_v58 = vadd.f32 %v3989_v52, %v3778_v19  ;;  %v4020_v29 = vadd.f32 %v3988_v50, %v3777_v17  ;;  %v3775_v8 = vmul.f32 %v13043_v63, %v13042_v30  ;;  %v13052_v52 = vld [vmem:[#allocation51_spill] sm:$0xff]  ;;  %v8210_v63 = vld [vmem:[%s13054_s3 + $0x10] sm:$0xff] }
 0x356   : > { %v3987_v3 = vadd.f32 %v13045_v7, %v13044_v42  ;;  %v4422_v10 = vmul.f32 %v13047_v40, %v13046_v22  ;;  %v4547_v48 = vpack.c.bf16 %v4530_v39, %v4529_v6  ;;  %v4528_v0 = vmax.f32 %v4496_v32, 0.0  ;;  %v13053_v39 = vld [vmem:[#allocation46_spill] sm:$0xff]  ;;  %v7910_v32 = vld [vmem:[%s12985_s5 + $0x18] sm:$0xf0]  ;;  %v8212_v6 = vld [vmem:[%s13054_s3 + $0x20] sm:$0xff] }
 0x357   : > { %v4494_v34 = vadd.f32 %v10579_v38, %v4458_v15  ;;  %v4456_v1 = vadd.f32 %v4424_v36, %v4021_v58  ;;  %v3986_v4 = vadd.f32 %v13049_v18, %v13048_v5  ;;  %v4421_v33 = vmul.f32 %v13050_v62, %v4229_v14  ;;  %v7902_v36 = vld [vmem:[%s12985_s5 + $0x8] sm:$0xf0]  ;;  %v8208_v7 = vld [vmem:[%s13054_s3] sm:$0xff] }
 0x358   : > { %4627 = vmatpush.bf16.msrb.mxu3 %v4547_v48  ;;  %v4527_v35 = vmax.f32 %v4495_v53, 0.0  ;;  %v4493_v11 = vadd.f32 %v10579_v38, %v4457_v60  ;;  %v4455_v24 = vadd.f32 %v4423_v43, %v4020_v29  ;;  %v4019_v23 = vadd.f32 %v3987_v3, %v3776_v27  ;;  %v7926_v27 = vld [vmem:[%s12985_s5 + $0x38] sm:$0xf0]  ;;  %v8213_v14 = vld [vmem:[%s13054_s3 + $0x28] sm:$0xff] }
 0x359   : > { %v4018_v13 = vadd.f32 %v3986_v4, %v3775_v8  ;;  %v4526_v59 = vmax.f32 %v4494_v34, 0.0  ;;  %v4492_v56 = vadd.f32 %v10579_v38, %v4456_v1  ;;  %v7905_v2 = vor.u32 %v8200_v26, %v7902_v36  ;;  %v8211_v53 = vld [vmem:[%s13054_s3 + $0x18] sm:$0xff]  ;;  %v8209_v8 = vld [vmem:[%s13054_s3 + $0x8] sm:$0xff]  ;;  %s13056_s3 = sld [smem:[#allocation23_spill]] }
 0x35a   : > { %v4546_v37 = vpack.c.bf16 %v4528_v0, %v4527_v35  ;;  %v4454_v44 = vadd.f32 %v4422_v10, %v4019_v23  ;;  %v4525_v19 = vmax.f32 %v4493_v11, 0.0  ;;  %v4491_v16 = vadd.f32 %v10579_v38, %v4455_v24  ;;  %v7962_v35 = vld [vmem:[%s13051_s2 + $0x8] sm:$0xf0] }
 0x35b   : > { %v4453_v31 = vadd.f32 %v4421_v33, %v4018_v13  ;;  %v4524_v51 = vmax.f32 %v4492_v56, 0.0  ;;  %v4797_v9 = vunpack.c.h.b16 %v11047_v55  ;;  %v7921_v20 = vor.u32 %v8204_v57, %v7918_v46  ;;  %v8214_v33 = vld [vmem:[%s13051_s2 + $0x4] sm:$0xf] }
 0x35c   : > { %4628 = vmatpush.bf16.msrb.mxu3 %v4546_v37  ;;  %v4545_v54 = vpack.c.bf16 %v4526_v59, %v4525_v19  ;;  %v4490_v41 = vadd.f32 %v10579_v38, %v4454_v44  ;;  %v4523_v21 = vmax.f32 %v4491_v16, 0.0  ;;  %v7929_v45 = vor.u32 %v8206_v25, %v7926_v27 }
 0x35d   : > { %v4489_v47 = vadd.f32 %v10579_v38, %v4453_v31  ;;  %v8202_v38 = vld [vmem:[%s12985_s5 + $0x14] sm:$0xf]  ;;  %v4801_v50 = vpack.c.b16 %v4797_v9, %v4797_v9  ;;  %s13055_s5 = sld [smem:[#allocation28_spill]]  ;;  %v7965_v24 = vor.u32 %v8214_v33, %v7962_v35 }
 0x35e   : > { %v4544_v28 = vpack.c.bf16 %v4524_v51, %v4523_v21  ;;  %v4522_v17 = vmax.f32 %v4490_v41, 0.0  ;;  %v7913_v15 = vor.u32 %v8202_v38, %v7910_v32  ;;  %v4796_v51 = vunpack.c.l.b16 %v11047_v55  ;;  %v11112_v35 = vld [vmem:[#allocation4] sm:$0xff] }
 0x35f   : > { %v4521_v49 = vmax.f32 %v4489_v47, 0.0  ;;  %v4822_v43 = vsel %vm4817_vm8, %v4801_v50, 0  ;;  %v8371_v26 = vld [vmem:[%s13056_s3] ss:$0 sm:$0xff]  ;;  %s13065_s3 = sld [smem:[#allocation25_spill]] }
 0x360   : > { %4629 = vmatpush.bf16.msrb.mxu3 %v4545_v54  ;;  %4859 = vmatpush.bf16.msrb.mxu2 %v4822_v43  ;;  %v4800_v21 = vpack.c.b16 %v4796_v51, %v4796_v51  ;;  %4988 = vst.msk [vmem:[#allocation4 + $0x98] sm:$0xfe] %vm4969_vm10, %v11112_v35 }
 0x361   : > { %v4543_v61 = vpack.c.bf16 %v4522_v17, %v4521_v49  ;;  %v8215_v17 = vld [vmem:[%s13051_s2 + $0x4] sm:$0xf0]  ;;  %6103 = vst.msk [vmem:[#allocation5 + $0x98] sm:$0xfe] %vm4969_vm10, %v11112_v35 }
 0x362   : > { %v4819_v47 = vsel %vm4817_vm8, %v4800_v21, 0  ;;  %4902 = vst.msk [vmem:[#allocation4 + $0x18] sm:$0x1] %vm4901_vm11, %v11112_v35 }
 0x363   : > { %v8223_v11 = vld [vmem:[%s13055_s5 + $0x38] sm:$0xff]  ;;  %v8224_v41 = vld [vmem:[%s13055_s5 + $0x40] sm:$0xff]  ;;  %6019 = vst.msk [vmem:[#allocation5 + $0x18] sm:$0x1] %vm4901_vm11, %v11112_v35 }
 0x364   : > { %4630 = vmatpush.bf16.msrb.mxu3 %v4544_v28  ;;  %5822 = vmatpush.bf16.msrb.mxu0 %v8223_v11  ;;  %v7960_v28 = vld [vmem:[%s13051_s2] sm:$0xf]  ;;  %s13068_s2 = sld [smem:[#allocation26_spill]] }
 0x365   : > { %4860 = vmatpush.bf16.msrb.mxu2 %v7965_v24  ;;  %5858 = vmatpush.bf16.msrb.mxu1 %v8224_v41  ;;  %v7961_v49 = vor.u32 %v8215_v17, %v7960_v28 }
 0x368   : > { %4631 = vmatpush.bf16.msrb.mxu3 %v4543_v61  ;;  %v8222_v61 = vld [vmem:[%s13055_s5 + $0x30] sm:$0xff] }
 0x369   : > { %5823 = vmatpush.bf16.msrb.mxu0 %v8222_v61 }
 0x36c   : > { %4632 = vmatpush.bf16.msrb.mxu3 %v13052_v52 }
 0x370   : > { %4633 = vmatpush.bf16.msrb.mxu3 %v13053_v39 }
 0x373   : > { %4634 = vmatmul.bf16.vlgmr.msrb.gmra.mxu3 %v7905_v2 }
 0x374   : > { %4725 = vmatpush.bf16.msra.mxu3 %v8213_v14  ;;  %v8221_v14 = vld [vmem:[%s13055_s5 + $0x28] sm:$0xff] }
 0x375   : > { %5824 = vmatpush.bf16.msrb.mxu0 %v8221_v14 }
 0x378   : > { %4726 = vmatpush.bf16.msra.mxu3 %v8212_v6 }
 0x37c   : > { %4727 = vmatpush.bf16.msra.mxu3 %v8211_v53  ;;  %v8220_v53 = vld [vmem:[%s13055_s5 + $0x20] sm:$0xff] }
 0x37d   : > { %5825 = vmatpush.bf16.msrb.mxu0 %v8220_v53  ;;  %v5184_v53 = vld [vmem:[#allocation4] sm:$0xfe] }
 0x380   : > { %4728 = vmatpush.bf16.msra.mxu3 %v8210_v63 }
 0x383   : > { %4639 = vmatmul.bf16.gmra.mxu3 %v7913_v15 }
 0x384   : > { %4729 = vmatpush.bf16.msra.mxu3 %v8209_v8 }
 0x388   : > { %4730 = vmatpush.bf16.msra.mxu3 %v8208_v7 }
 0x38a   : > { %v4606_v12 = vpop.f32.mrf.mxu3 }
 0x38c   : > { %4830 = vmatpush.bf16.msrb.mxu3 %v4819_v47 }
 0x390   : > { %4831 = vmatpush.bf16.msrb.mxu3 %v7961_v49 }
 0x392   : > { %v4608_v60 = vpop.f32.mrf.mxu3 }
 0x393   : > { %4644 = vmatmul.bf16.gmra.mxu3 %v7921_v20 }
 0x39a   : > { %v4611_v58 = vpop.f32.mrf.mxu3 }
 0x3a2   : > { %v4613_v29 = vpop.f32.mrf.mxu3 }
 0x3a3   : > { %4649 = vmatmul.bf16.gmra.mxu3 %v7929_v45 }
 0x3aa   : > { %v4616_v30 = vpop.f32.mrf.mxu3 }
 0x3b2   : > { %v4618_v42 = vpop.f32.mrf.mxu3 }
 0x3bc   : > { %v4621_v3 = vpop.f32.mrf.mxu3 }
 0x3c4   : > { %v4623_v22 = vpop.f32.mrf.mxu3 }
 0x3f6   : > { %v4635_v40 = vpop.f32.mrf.mxu3 }
 0x3f7   : > { %v4636_v48 = vadd.f32 %v4635_v40, %v4606_v12 }
 0x3fe   : > { %v4637_v10 = vpop.f32.mrf.mxu3 }
 0x3ff   : > { %v4638_v0 = vadd.f32 %v4637_v10, %v4608_v60 }
 0x401   : > { %v4655_v34 = vpack.c.bf16 %v4638_v0, %v4636_v48 }
 0x403   : > { %7954 = vmatmul.msk.bf16.vlgmr.msra.gmra.mxu3 %vm3281_vm6, %v4655_v34 }
 0x406   : > { %v4640_v1 = vpop.f32.mrf.mxu3 }
 0x407   : > { %v4641_v18 = vadd.f32 %v4640_v1, %v4611_v58  ;;  %v8219_v58 = vld [vmem:[%s13055_s5 + $0x18] sm:$0xff] }
 0x408   : > { %5826 = vmatpush.bf16.msrb.mxu0 %v8219_v58 }
 0x40e   : > { %v4642_v5 = vpop.f32.mrf.mxu3 }
 0x40f   : > { %v4643_v4 = vadd.f32 %v4642_v5, %v4613_v29 }
 0x411   : > { %v4656_v62 = vpack.c.bf16 %v4643_v4, %v4641_v18  ;;  %v5536_v4 = vpop.permute.xlu0 %5535 }
 0x412   : > { %v5563_v61 = vrot.slane %v5536_v4, 6 }
 0x413   : > { %7955 = vmatmul.msk.bf16.gmra.mxu3 %vm3281_vm6, %v4656_v62  ;;  %v5532_v62 = vpop.permute.xlu2 %5531 }
 0x416   : > { %v4645_v23 = vpop.f32.mrf.mxu3 }
 0x417   : > { %v4646_v37 = vadd.f32 %v4645_v23, %v4616_v30  ;;  %v8218_v23 = vld [vmem:[%s13055_s5 + $0x10] sm:$0xff] }
 0x418   : > { %5827 = vmatpush.bf16.msrb.mxu0 %v8218_v23  ;;  %v5406_v23 = vld [vmem:[#allocation4] sm:$0xfc] }
 0x419   : > { %v11110_v33 = vpop.permute.xlu0 %5135 }
 0x41b   : > { %v11118_v11 = vpop.permute.xlu2 %5130 }
 0x41e   : > { %v4647_v13 = vpop.f32.mrf.mxu3 }
 0x41f   : > { %v4648_v59 = vadd.f32 %v4647_v13, %v4618_v42 }
 0x421   : > { %v4657_v56 = vpack.c.bf16 %v4648_v59, %v4646_v37  ;;  %v11120_v24 = vpop.permute.xlu0 %5140  ;;  %v5540_v37 = vpop.permute.xlu1 %5539 }
 0x422   : > { %13066 = vst [vmem:[#allocation76_spill] sm:$0xff] %v11120_v24  ;;  %v5565_v49 = vrot.slane %v5540_v37, 6  ;;  %v5185_v37 = vld [vmem:[#allocation4 + $0x8] sm:$0xfe] }
 0x423   : > { %7956 = vmatmul.msk.bf16.gmra.mxu3 %vm3281_vm6, %v4657_v56  ;;  %v5548_v13 = vpop.permute.xlu2 %5547  ;;  %v4763_v56 = vld [vmem:[%s13065_s3] sm:$0x3]  ;;  %s13080_s3 = sld [smem:[#allocation27_spill]] }
 0x424   : > { %v5569_v17 = vrot.slane %v5548_v13, 6  ;;  %v11160_v58 = vsel %vm5561_vm12, %v5563_v61, %v5565_v49  ;;  %v7980_v13 = vld [vmem:[%s13068_s2 + $0xa] sm:$0x3] }
 0x426   : > { %v4650_v44 = vpop.f32.mrf.mxu3 }
 0x427   : > { %v4651_v16 = vadd.f32 %v4650_v44, %v4621_v3  ;;  %v11130_v44 = vperm.slane %v4763_v56, 0 }
 0x429   : > { %v11127_v59 = vpop.permute.xlu0 %5555  ;;  %v5544_v41 = vpop.permute.xlu1 %5543 }
 0x42a   : > { %13067 = vst [vmem:[#allocation70_spill] sm:$0xff] %v11127_v59 }
 0x42e   : > { %v4652_v19 = vpop.f32.mrf.mxu3 }
 0x42f   : > { %v4653_v31 = vadd.f32 %v4652_v19, %v4623_v22  ;;  %v11132_v19 = vperm.slane %v4763_v56, 1 }
 0x431   : > { %v4658_v54 = vpack.c.bf16 %v4653_v31, %v4651_v16  ;;  %v5552_v16 = vpop.permute.xlu2 %5551  ;;  %v5560_v21 = vpop.permute.xlu0 %5559 }
 0x432   : > { %v5571_v51 = vrot.slane %v5552_v16, 6 }
 0x433   : > { %7957 = vmatmul.msk.bf16.gmra.mxu3 %vm3281_vm6, %v4658_v54 }
 0x486   : > { %v4732_v52 = vpop.f32.mrf.mxu3 }
 0x487   : > { %v4733_v36 = vadd.f32 %v8371_v26, %v4732_v52 }
 0x489   : > { %v11075_v39 = vpack.c.bf16 %v4733_v36, %v4733_v36  ;;  %v5024_v36 = vld [vmem:[%s13068_s2] sm:$0x3] }
 0x48a   : > { %v11151_v14 = vperm.slane %v5024_v36, 1 }
 0x48b   : > { %13057 = vst [vmem:[#allocation96_spill] sm:$0xff] %v11075_v39  ;;  %v4777_v15 = vunpack.c.l.b16 %v11075_v39 }
 0x48c   : > { %13071 = vst [vmem:[#allocation67_spill] sm:$0xff] %v11151_v14 }
 0x48e   : > { %v4734_v2 = vpop.f32.mrf.mxu3 }
 0x48f   : > { %v4735_v38 = vadd.f32 %v8371_v26, %v4734_v2  ;;  %v7974_v2 = vld [vmem:[%s13068_s2 + $0x6] sm:$0x3] }
 0x491   : > { %v11077_v32 = vpack.c.bf16 %v4735_v38, %v4735_v38  ;;  %v11138_v38 = vrot.slane %v5532_v62, 6 }
 0x493   : > { %13058 = vst [vmem:[#allocation83_spill] sm:$0xff] %v11077_v32  ;;  %v4778_v55 = vunpack.c.l.b16 %v11077_v32 }
 0x495   : > { %v4785_v9 = vpack.c.b16 %v4778_v55, %v4777_v15  ;;  %v5567_v15 = vrot.slane %v5544_v41, 6  ;;  %v12728_v55 = vrot.slane %v11127_v59, 6 }
 0x496   : > { %v4737_v50 = vpop.f32.mrf.mxu3 }
 0x497   : > { %7966 = vmatmul.msk.bf16.vlgmr.msrb.gmra.mxu3 %vm4804_vm9, %v4785_v9  ;;  %7970 = vmatmul.msk.bf16.vlgmr.msrb.gmra.mxu2 %vm4804_vm9, %v4785_v9  ;;  %v4738_v57 = vadd.f32 %v8371_v26, %v4737_v50  ;;  %v11141_v9 = vrot.slane %v5560_v21, 6  ;;  %v7976_v50 = vld [vmem:[%s13068_s2 + $0x2] sm:$0x3] }
 0x499   : > { %v11083_v43 = vpack.c.bf16 %v4738_v57, %v4738_v57  ;;  %13069 = vst [vmem:[#allocation66_spill] sm:$0xff] %v11141_v9  ;;  %v11145_v57 = vsel %vm5561_vm12, %v5569_v17, %v5571_v51 }
 0x49a   : > { %13070 = vst [vmem:[#allocation71_spill] sm:$0xff] %v11145_v57 }
 0x49b   : > { %13059 = vst [vmem:[#allocation79_spill] sm:$0xff] %v11083_v43  ;;  %v4779_v27 = vunpack.c.l.b16 %v11083_v43 }
 0x49e   : > { %v4739_v46 = vpop.f32.mrf.mxu3 }
 0x49f   : > { %v4740_v20 = vadd.f32 %v8371_v26, %v4739_v46 }
 0x4a1   : > { %v11085_v25 = vpack.c.bf16 %v4740_v20, %v4740_v20 }
 0x4a3   : > { %13060 = vst [vmem:[#allocation97_spill] sm:$0xff] %v11085_v25  ;;  %v4780_v45 = vunpack.c.l.b16 %v11085_v25 }
 0x4a5   : > { %v4786_v12 = vpack.c.b16 %v4780_v45, %v4779_v27  ;;  %v7975_v27 = vld [vmem:[%s13068_s2 + $0xc] sm:$0x3]  ;;  %v7979_v45 = vld [vmem:[%s13068_s2 + $0x4] sm:$0x3] }
 0x4a6   : > { %v4742_v6 = vpop.f32.mrf.mxu3  ;;  %v11195_v41 = vperm.slane %v7979_v45, 1 }
 0x4a7   : > { %7967 = vmatmul.msk.bf16.gmra.mxu3 %vm4804_vm9, %v4786_v12  ;;  %7971 = vmatmul.msk.bf16.gmra.mxu2 %vm4804_vm9, %v4786_v12  ;;  %v4743_v60 = vadd.f32 %v8371_v26, %v4742_v6  ;;  %v11149_v12 = vperm.slane %v5024_v36, 0  ;;  %v11153_v6 = vperm.slane %v7974_v2, 0 }
 0x4a9   : > { %v11094_v30 = vpack.c.bf16 %v4743_v60, %v4743_v60  ;;  %13072 = vst [vmem:[#allocation68_spill] sm:$0xff] %v11153_v6  ;;  %v11157_v60 = vsel %vm5561_vm12, %v11138_v38, %v5563_v61  ;;  %v5030_v56 = vmul.f32 %v11112_v35, %v11149_v12  ;;  %v11203_v35 = vperm.slane %v7980_v13, 0 }
 0x4ab   : > { %13061 = vst [vmem:[#allocation78_spill] sm:$0xff] %v11094_v30  ;;  %v4781_v42 = vunpack.c.l.b16 %v11094_v30 }
 0x4ac   : > { %13081 = vst [vmem:[#allocation90_spill] sm:$0xff] %v11203_v35 }
 0x4ae   : > { %v4744_v29 = vpop.f32.mrf.mxu3 }
 0x4af   : > { %v4745_v63 = vadd.f32 %v8371_v26, %v4744_v29  ;;  %v11162_v29 = vperm.slane %v7974_v2, 1 }
 0x4b1   : > { %v11096_v8 = vpack.c.bf16 %v4745_v63, %v4745_v63  ;;  %v11164_v63 = vperm.slane %v7976_v50, 0 }
 0x4b3   : > { %13062 = vst [vmem:[#allocation75_spill] sm:$0xff] %v11096_v8  ;;  %v4782_v7 = vunpack.c.l.b16 %v11096_v8 }
 0x4b4   : > { %13073 = vst [vmem:[#allocation72_spill] sm:$0xff] %v11164_v63 }
 0x4b5   : > { %v4787_v3 = vpack.c.b16 %v4782_v7, %v4781_v42  ;;  %v7977_v42 = vld [vmem:[%s13068_s2 + $0x8] sm:$0x3]  ;;  %v11168_v7 = vsel %vm5561_vm12, %v5565_v49, %v5567_v15  ;;  %v5407_v49 = vld [vmem:[#allocation4 + $0x8] sm:$0xfc] }
 0x4b6   : > { %v4747_v22 = vpop.f32.mrf.mxu3  ;;  %13074 = vst [vmem:[#allocation73_spill] sm:$0xff] %v11168_v7  ;;  %v11190_v16 = vperm.slane %v7977_v42, 0 }
 0x4b7   : > { %7968 = vmatmul.msk.bf16.gmra.mxu3 %vm4804_vm9, %v4787_v3  ;;  %7972 = vmatmul.msk.bf16.gmra.mxu2 %vm4804_vm9, %v4787_v3  ;;  %v4748_v40 = vadd.f32 %v8371_v26, %v4747_v22 }
 0x4b8   : > { %13079 = vst [vmem:[#allocation88_spill] sm:$0xff] %v11190_v16 }
 0x4b9   : > { %v11102_v48 = vpack.c.bf16 %v4748_v40, %v4748_v40  ;;  %v11171_v40 = vperm.slane %v7975_v27, 0 }
 0x4bb   : > { %13063 = vst [vmem:[#allocation81_spill] sm:$0xff] %v11102_v48  ;;  %v4783_v1 = vunpack.c.l.b16 %v11102_v48 }
 0x4bc   : > { %13075 = vst [vmem:[#allocation69_spill] sm:$0xff] %v11171_v40 }
 0x4be   : > { %v4749_v10 = vpop.f32.mrf.mxu3 }
 0x4bf   : > { %v4750_v0 = vadd.f32 %v8371_v26, %v4749_v10  ;;  %v11173_v10 = vperm.slane %v7976_v50, 1 }
 0x4c1   : > { %v11104_v34 = vpack.c.bf16 %v4750_v0, %v4750_v0  ;;  %v11175_v0 = vperm.slane %v7979_v45, 0  ;;  %v11215_v45 = vld [vmem:[%s13080_s3] sm:$0x3]  ;;  %s13099_s3 = sld [smem:[#allocation30_spill]] }
 0x4c3   : > { %13064 = vst [vmem:[#allocation74_spill] sm:$0xff] %v11104_v34  ;;  %v4784_v5 = vunpack.c.l.b16 %v11104_v34  ;;  %v5417_v61 = vmul.f32 %v11175_v0, %v5406_v23 }
 0x4c4   : > { %13076 = vst [vmem:[#allocation80_spill] sm:$0xff] %v11175_v0 }
 0x4c5   : > { %v4788_v18 = vpack.c.b16 %v4784_v5, %v4783_v1  ;;  %v5009_v1 = vld [vmem:[#allocation4 + $0x8] sm:$0xff]  ;;  %v11178_v5 = vsel %vm5561_vm12, %v5567_v15, %v5569_v17  ;;  %v11210_v15 = vperm.slane %v7975_v27, 1 }
 0x4c6   : > { %13077 = vst [vmem:[#allocation82_spill] sm:$0xff] %v11178_v5  ;;  %v11200_v17 = vmul.f32 %v11151_v14, %v5009_v1 }
 0x4c7   : > { %7969 = vmatmul.msk.bf16.gmra.mxu3 %vm4804_vm9, %v4788_v18  ;;  %7973 = vmatmul.msk.bf16.gmra.mxu2 %vm4804_vm9, %v4788_v18  ;;  %v11183_v18 = vsel %vm5561_vm12, %v5571_v51, %v12728_v55  ;;  %v8217_v55 = vld [vmem:[%s13055_s5 + $0x8] sm:$0xff] }
 0x4c8   : > { %13078 = vst [vmem:[#allocation77_spill] sm:$0xff] %v11183_v18  ;;  %5828 = vmatpush.bf16.msrb.mxu0 %v8217_v55 }
 0x51a   : > { %v4833_v31 = vpop.f32.mrf.mxu3  ;;  %v4862_v54 = vpop.f32.mrf.mxu2 }
 0x51b   : > { %v4834_v47 = vadd.f32 %v4833_v31, %v11130_v44  ;;  %v4863_v28 = vadd.f32 %v4862_v54, %v11132_v19  ;;  %v11192_v31 = vperm.slane %v7977_v42, 1  ;;  %v7978_v54 = vld [vmem:[%s13068_s2 + $0xe] sm:$0x3] }
 0x51c   : > { %v11212_v50 = vperm.slane %v7978_v54, 0 }
 0x51d   : > { %v4882_v52 = vmax.f32 %v4834_v47, 0.0  ;;  %v4883_v26 = vmax.f32 %v4863_v28, 0.0  ;;  %v5195_v47 = vmul.f32 %v11164_v63, %v5184_v53  ;;  %v7981_v28 = vld [vmem:[%s13068_s2 + $0x10] sm:$0x3]  ;;  %s13100_s2 = sld [smem:[#allocation29_spill]] }
 0x51e   : > { %v11221_v1 = vperm.slane %v7981_v28, 1 }
 0x51f   : > { %v4920_v46 = vrot.slane %v4882_v52, 7  ;;  %v4921_v20 = vrot.slane %v4883_v26, 7  ;;  %v11205_v52 = vperm.slane %v7980_v13, 1  ;;  %v11208_v26 = vmul.f32 %v11173_v10, %v5185_v37 }
 0x521   : > { %4968 = vst [vmem:[#allocation4 + $0x10] sm:$0xfe] %v4920_v46 }
 0x522   : > { %4970 = vst.msk [vmem:[#allocation4 + $0x18] sm:$0xfe] %vm4969_vm10, %v4921_v20  ;;  %v4835_v3 = vpop.f32.mrf.mxu3  ;;  %v4864_v22 = vpop.f32.mrf.mxu2 }
 0x523   : > { %v4836_v4 = vadd.f32 %v4835_v3, %v11130_v44  ;;  %v4865_v62 = vadd.f32 %v4864_v22, %v11132_v19  ;;  %v11217_v3 = vperm.slane %v7978_v54, 1  ;;  %v11219_v22 = vperm.slane %v7981_v28, 0 }
 0x525   : > { %v4884_v51 = vmax.f32 %v4836_v4, 0.0  ;;  %v4885_v21 = vmax.f32 %v4865_v62, 0.0  ;;  %v11224_v4 = vmul.f32 %v11195_v41, %v5407_v49 }
 0x527   : > { %v4922_v36 = vrot.slane %v4884_v51, 7  ;;  %v4924_v2 = vrot.slane %v4885_v21, 7 }
 0x528   : > { %v5010_v53 = vld [vmem:[#allocation4 + $0x10] sm:$0xff] }
 0x529   : > { %v5213_v42 = vld [vmem:[#allocation4 + $0x10] sm:$0xfe]  ;;  %v11227_v62 = vsel %vm4919_vm13, %v4920_v46, %v4922_v36  ;;  %v4925_v27 = vsel %vm4919_vm13, %v4921_v20, %v4924_v2  ;;  %v5032_v23 = vmul.f32 %v11149_v12, %v5010_v53  ;;  %v5055_v13 = vmul.f32 %v11153_v6, %v5010_v53  ;;  %v5214_v59 = vld [vmem:[#allocation4 + $0x18] sm:$0xfe] }
 0x52a   : > { %4971 = vst [vmem:[#allocation4 + $0x20] sm:$0xff] %v11227_v62  ;;  %v4838_v37 = vpop.f32.mrf.mxu3  ;;  %v4867_v54 = vpop.f32.mrf.mxu2  ;;  %v5057_v51 = vmul.f32 %v11153_v6, %v11227_v62  ;;  %v5096_v21 = vmul.f32 %v11171_v40, %v11227_v62  ;;  %v5197_v28 = vmul.f32 %v11164_v63, %v5010_v53  ;;  %v11239_v46 = vperm.slane %v11215_v45, 0  ;;  %v5435_v8 = vld [vmem:[#allocation4 + $0x10] sm:$0xfc] }
 0x52b   : > { %4972 = vst.msk [vmem:[#allocation4 + $0x28] sm:$0xff] %vm3111_vm5, %v4925_v27  ;;  %v4839_v20 = vadd.f32 %v4838_v37, %v11130_v44  ;;  %v4868_v49 = vadd.f32 %v4867_v54, %v11132_v19  ;;  %v5071_v34 = vadd.f32 %v5055_v13, %v5030_v56  ;;  %v5224_v48 = vmul.f32 %v11190_v16, %v5213_v42  ;;  %v5011_v27 = vld [vmem:[#allocation4 + $0x18] sm:$0xff] }
 0x52c   : > { %v5073_v30 = vadd.f32 %v5057_v51, %v5032_v23  ;;  %v5199_v25 = vmul.f32 %v11164_v63, %v11227_v62  ;;  %v5226_v43 = vmul.f32 %v11190_v16, %v11227_v62  ;;  %v5419_v32 = vmul.f32 %v11175_v0, %v5010_v53  ;;  %v8216_v53 = vld [vmem:[%s13055_s5] sm:$0xff]  ;;  %s13229_s5 = sld [smem:[#allocation38_spill]] }
 0x52d   : > { %v4886_v39 = vmax.f32 %v4839_v20, 0.0  ;;  %v4887_v37 = vmax.f32 %v4868_v49, 0.0  ;;  %v5112_v54 = vadd.f32 %v5096_v21, %v5071_v34  ;;  %v5421_v56 = vmul.f32 %v11175_v0, %v11227_v62  ;;  %5829 = vmatpush.bf16.msrb.mxu0 %v8216_v53 }
 0x52e   : > { %v5242_v42 = vadd.f32 %v5224_v48, %v5195_v47  ;;  %v5244_v23 = vadd.f32 %v5226_v43, %v5197_v28  ;;  %v5446_v13 = vmul.f32 %v11203_v35, %v5435_v8  ;;  %v5448_v51 = vmul.f32 %v11203_v35, %v11227_v62 }
 0x52f   : > { %v4926_v9 = vrot.slane %v4886_v39, 7  ;;  %v4928_v18 = vrot.slane %v4887_v37, 7  ;;  %v5168_v20 = vmul.f32 %v11118_v11, %v5112_v54  ;;  %v5033_v55 = vmul.f32 %v11151_v14, %v5011_v27 }
 0x530   : > { %v5464_v34 = vadd.f32 %v5446_v13, %v5417_v61  ;;  %v5466_v21 = vadd.f32 %v5448_v51, %v5419_v32  ;;  %v5056_v49 = vmul.f32 %v11162_v29, %v5011_v27  ;;  %v11261_v48 = vmul.f32 %v11173_v10, %v5011_v27 }
 0x531   : > { %v11264_v43 = vsel %vm4919_vm13, %v4922_v36, %v4926_v9  ;;  %v4929_v8 = vsel %vm4919_vm13, %v4924_v2, %v4928_v18  ;;  %v5260_v39 = vld [vmem:[#allocation4 + $0x20] sm:$0xfe]  ;;  %v11268_v28 = vmul.f32 %v11192_v31, %v5214_v59  ;;  %v11271_v37 = vmul.f32 %v11195_v41, %v5011_v27 }
 0x532   : > { %v5482_v47 = vld [vmem:[#allocation4 + $0x20] sm:$0xfc]  ;;  %v4840_v32 = vpop.f32.mrf.mxu3  ;;  %v4869_v61 = vpop.f32.mrf.mxu2  ;;  %v5098_v54 = vmul.f32 %v11171_v40, %v11264_v43  ;;  %v5228_v36 = vmul.f32 %v11190_v16, %v11264_v43  ;;  %v5285_v13 = vmul.f32 %v11212_v50, %v5260_v39  ;;  %v5287_v2 = vmul.f32 %v11212_v50, %v11264_v43  ;;  %4974 = vst.msk [vmem:[#allocation4 + $0x38] sm:$0xff] %vm3111_vm5, %v4929_v8  ;;  %v11286_v0 = vld [vmem:[#allocation4 + $0x28] sm:$0xff] }
 0x533   : > { %v4841_v59 = vadd.f32 %v4840_v32, %v11130_v44  ;;  %v4870_v27 = vadd.f32 %v4869_v61, %v11132_v19  ;;  %v5450_v51 = vmul.f32 %v11203_v35, %v11264_v43  ;;  %v5493_v53 = vmul.f32 %v11219_v22, %v5482_v47 }
 0x534   : > { %v5114_v57 = vadd.f32 %v5098_v54, %v5073_v30  ;;  %v5246_v5 = vadd.f32 %v5228_v36, %v5199_v25  ;;  %v5303_v7 = vadd.f32 %v5285_v13, %v5242_v42  ;;  %v5305_v14 = vadd.f32 %v5287_v2, %v5244_v23 }
 0x535   : > { %v4888_v39 = vmax.f32 %v4841_v59, 0.0  ;;  %v4889_v16 = vmax.f32 %v4870_v27, 0.0  ;;  %v5468_v24 = vadd.f32 %v5450_v51, %v5421_v56  ;;  %v5495_v8 = vmul.f32 %v11219_v22, %v11264_v43 }
 0x536   : > { %v5170_v32 = vmul.f32 %v11110_v33, %v5114_v57  ;;  %v5340_v61 = vrot.slane %v5303_v7, 1  ;;  %v5341_v63 = vrot.slane %v5305_v14, 1  ;;  %v5511_v40 = vadd.f32 %v5493_v53, %v5464_v34 }
 0x537   : > { %v4930_v35 = vrot.slane %v4888_v39, 7  ;;  %v4932_v6 = vrot.slane %v4889_v16, 7  ;;  %v5513_v47 = vadd.f32 %v5495_v8, %v5466_v21  ;;  %v5058_v25 = vmul.f32 %v11162_v29, %v11286_v0 }
 0x538   : > { %v5342_v30 = vsel %vm5339_vm14, %v5340_v61, %v5341_v63  ;;  %v5586_v42 = vmul.f32 %v11138_v38, %v5511_v40  ;;  %v5072_v56 = vadd.f32 %v5056_v49, %v11200_v17  ;;  %v5097_v23 = vmul.f32 %v11210_v15, %v11286_v0 }
 0x539   : > { %v11299_v57 = vsel %vm4919_vm13, %v4926_v9, %v4930_v35  ;;  %v4933_v14 = vsel %vm4919_vm13, %v4928_v18, %v4932_v6  ;;  %v5390_v7 = vadd.f32 %v5342_v30, %v5168_v20  ;;  %v5588_v16 = vmul.f32 %v11157_v60, %v5513_v47  ;;  %v11307_v49 = vld [vmem:[#allocation4 + $0x38] sm:$0xff] }
 0x53a   : > { %v4843_v34 = vpop.f32.mrf.mxu3  ;;  %v4872_v21 = vpop.f32.mrf.mxu2  ;;  %v5289_v54 = vmul.f32 %v11212_v50, %v11299_v57  ;;  %v5497_v40 = vmul.f32 %v11219_v22, %v11299_v57  ;;  %v5622_v17 = vrot.slane %v5586_v42, 2  ;;  %v5074_v36 = vadd.f32 %v5058_v25, %v5033_v55  ;;  %4976 = vst.msk [vmem:[#allocation4 + $0x48] sm:$0xff] %vm3111_vm5, %v4933_v14 }
 0x53b   : > { %v4844_v9 = vadd.f32 %v4843_v34, %v11130_v44  ;;  %v4873_v18 = vadd.f32 %v4872_v21, %v11132_v19  ;;  %v5623_v20 = vrot.slane %v5588_v16, 2  ;;  %v5099_v13 = vmul.f32 %v11210_v15, %v11307_v49 }
 0x53c   : > { %v11314_v2 = vadd.f32 %v5289_v54, %v5246_v5  ;;  %v5515_v59 = vadd.f32 %v5497_v40, %v5468_v24  ;;  %v5113_v27 = vadd.f32 %v5097_v23, %v5072_v56  ;;  %v5200_v51 = vmul.f32 %v11173_v10, %v11286_v0  ;;  %v5436_v40 = vld [vmem:[#allocation4 + $0x18] sm:$0xfc] }
 0x53d   : > { %v4890_v53 = vmax.f32 %v4844_v9, 0.0  ;;  %v4891_v39 = vmax.f32 %v4873_v18, 0.0  ;;  %v5624_v55 = vsel %vm1531_vm1, %v5622_v17, %v5623_v20  ;;  %v5115_v8 = vadd.f32 %v5099_v13, %v5074_v36 }
 0x53e   : > { %v5346_v61 = vrot.slane %v11314_v2, 1  ;;  %v11321_v47 = vmul.f32 %v11160_v58, %v5515_v59  ;;  %v5672_v25 = vadd.f32 %v5624_v55, %v5390_v7  ;;  %v11324_v30 = vmul.f32 %v11118_v11, %v5113_v27  ;;  %v5261_v11 = vld [vmem:[#allocation4 + $0x28] sm:$0xfe] }
 0x53f   : > { %v4934_v5 = vrot.slane %v4890_v53, 7  ;;  %v4936_v24 = vrot.slane %v4891_v39, 7  ;;  %v5171_v42 = vmul.f32 %v11110_v33, %v5115_v8  ;;  %v5227_v56 = vmul.f32 %v11192_v31, %v11286_v0 }
 0x540   : > { %v5347_v23 = vsel %vm5339_vm14, %v5341_v63, %v5346_v61  ;;  %v5628_v14 = vrot.slane %v11321_v47, 2  ;;  %v5694_v16 = vadd.f32 %v11239_v46, %v5672_v25  ;;  %v5229_v7 = vmul.f32 %v11192_v31, %v11307_v49 }
 0x541   : > { %v11337_v34 = vsel %vm4919_vm13, %v4930_v35, %v4934_v5  ;;  %v4937_v33 = vsel %vm4919_vm13, %v4932_v6, %v4936_v24  ;;  %v5392_v21 = vadd.f32 %v5347_v23, %v5170_v32  ;;  %v5243_v54 = vadd.f32 %v11268_v28, %v11208_v26  ;;  %v11346_v59 = vld [vmem:[#allocation4 + $0x48] sm:$0xff] }
 0x542   : > { %v4845_v17 = vpop.f32.mrf.mxu3  ;;  %v4874_v63 = vpop.f32.mrf.mxu2  ;;  %v5629_v36 = vsel %vm1531_vm1, %v5623_v20, %v5628_v14  ;;  %v5710_v9 = vmax.f32 %v5694_v16, 0.0  ;;  %v5245_v18 = vadd.f32 %v5227_v56, %v11261_v48  ;;  %v5247_v13 = vadd.f32 %v5229_v7, %v5200_v51  ;;  %4978 = vst.msk [vmem:[#allocation4 + $0x58] sm:$0xff] %vm3111_vm5, %v4937_v33 }
 0x543   : > { %v4846_v6 = vadd.f32 %v4845_v17, %v11130_v44  ;;  %v4875_v35 = vadd.f32 %v4874_v63, %v11132_v19  ;;  %v5674_v26 = vadd.f32 %v5629_v36, %v5392_v21  ;;  %v5286_v28 = vmul.f32 %v11217_v3, %v5261_v11  ;;  %v5483_v21 = vld [vmem:[#allocation4 + $0x28] sm:$0xfc] }
 0x544   : > { %v5288_v32 = vmul.f32 %v11217_v3, %v11307_v49  ;;  %v5290_v20 = vmul.f32 %v11217_v3, %v11346_v59  ;;  %v5422_v48 = vmul.f32 %v11195_v41, %v11286_v0  ;;  %v5447_v27 = vmul.f32 %v11205_v52, %v5436_v40 }
 0x545   : > { %v4892_v51 = vmax.f32 %v4846_v6, 0.0  ;;  %v4893_v53 = vmax.f32 %v4875_v35, 0.0  ;;  %v5696_v39 = vadd.f32 %v11239_v46, %v5674_v26  ;;  %v5304_v55 = vadd.f32 %v5286_v28, %v5243_v54 }
 0x546   : > { %v5306_v8 = vadd.f32 %v5288_v32, %v5245_v18  ;;  %v11360_v25 = vadd.f32 %v5290_v20, %v5247_v13  ;;  %v5449_v56 = vmul.f32 %v11205_v52, %v11286_v0  ;;  %v5451_v23 = vmul.f32 %v11205_v52, %v11307_v49 }
 0x547   : > { %v4938_v16 = vrot.slane %v4892_v51, 7  ;;  %v4940_v7 = vrot.slane %v4893_v53, 7  ;;  %v5712_v11 = vmax.f32 %v5696_v39, 0.0  ;;  %v5343_v33 = vrot.slane %v5304_v55, 1 }
 0x548   : > { %v5344_v40 = vrot.slane %v5306_v8, 1  ;;  %v5348_v17 = vrot.slane %v11360_v25, 1  ;;  %v5465_v63 = vadd.f32 %v5447_v27, %v11224_v4  ;;  %v5467_v54 = vadd.f32 %v5449_v56, %v11271_v37 }
 0x549   : > { %v11370_v36 = vsel %vm4919_vm13, %v4934_v5, %v4938_v16  ;;  %v4941_v18 = vsel %vm4919_vm13, %v4936_v24, %v4940_v7  ;;  %v5726_v13 = vpack.c.bf16 %v5712_v11, %v5710_v9  ;;  %v5469_v6 = vadd.f32 %v5451_v23, %v5422_v48 }
 0x54a   : > { %v4848_v35 = vpop.f32.mrf.mxu3  ;;  %v4877_v26 = vpop.f32.mrf.mxu2  ;;  %v5345_v28 = vsel %vm5339_vm14, %v5343_v33, %v5344_v40  ;;  %v5349_v32 = vsel %vm5339_vm14, %v5344_v40, %v5348_v17  ;;  %v5494_v20 = vmul.f32 %v11221_v1, %v5483_v21  ;;  %v5496_v4 = vmul.f32 %v11221_v1, %v11307_v49  ;;  %4980 = vst.msk [vmem:[#allocation4 + $0x68] sm:$0xff] %vm3111_vm5, %v4941_v18 }
 0x54b   : > { %v4849_v37 = vadd.f32 %v4848_v35, %v11130_v44  ;;  %v4878_v5 = vadd.f32 %v4877_v26, %v11132_v19  ;;  %v11384_v24 = vperm.slane %v11215_v45, 1  ;;  %5830 = vmatmul.bf16.vlgmr.msrb.gmra.mxu0 %v5726_v13  ;;  %v5391_v9 = vadd.f32 %v5345_v28, %v11324_v30  ;;  %v13082_v30 = vld [vmem:[#allocation68_spill] sm:$0xff] }
 0x54c   : > { %v5393_v48 = vadd.f32 %v5349_v32, %v5171_v42  ;;  %v5498_v27 = vmul.f32 %v11221_v1, %v11346_v59  ;;  %v5512_v51 = vadd.f32 %v5494_v20, %v5465_v63  ;;  %v5514_v53 = vadd.f32 %v5496_v4, %v5467_v54  ;;  %v13083_v63 = vld [vmem:[#allocation69_spill] sm:$0xff] }
 0x54d   : > { %v4894_v39 = vmax.f32 %v4849_v37, 0.0  ;;  %v4895_v55 = vmax.f32 %v4878_v5, 0.0  ;;  %v5034_v8 = vmul.f32 %v11149_v12, %v11227_v62  ;;  %v5036_v56 = vmul.f32 %v11149_v12, %v11264_v43  ;;  %v13084_v37 = vld [vmem:[#allocation72_spill] sm:$0xff] }
 0x54e   : > { %v5516_v23 = vadd.f32 %v5498_v27, %v5469_v6  ;;  %v5587_v45 = vmul.f32 %v11138_v38, %v5512_v51  ;;  %v5589_v11 = vmul.f32 %v11157_v60, %v5514_v53  ;;  %v5059_v42 = vmul.f32 %v13082_v30, %v11264_v43 }
 0x54f   : > { %v4942_v33 = vrot.slane %v4894_v39, 7  ;;  %v4944_v21 = vrot.slane %v4895_v55, 7  ;;  %v5061_v40 = vmul.f32 %v13082_v30, %v11299_v57  ;;  %v5100_v54 = vmul.f32 %v13083_v63, %v11299_v57  ;;  %v13085_v39 = vld [vmem:[#allocation76_spill] sm:$0xff] }
 0x550   : > { %v11402_v62 = vmul.f32 %v11160_v58, %v5516_v23  ;;  %v5625_v18 = vrot.slane %v5587_v45, 2  ;;  %v5626_v13 = vrot.slane %v5589_v11, 2  ;;  %v5075_v6 = vadd.f32 %v5059_v42, %v5034_v8  ;;  %v11425_v45 = vpop.permute.xlu1 %5145 }
 0x551   : > { %v11405_v38 = vsel %vm4919_vm13, %v4938_v16, %v4942_v33  ;;  %v4945_v60 = vsel %vm4919_vm13, %v4940_v7, %v4944_v21  ;;  %v5077_v35 = vadd.f32 %v5061_v40, %v5036_v56  ;;  %v5102_v26 = vmul.f32 %v13083_v63, %v11337_v34  ;;  %v13086_v56 = vld [vmem:[#allocation88_spill] sm:$0xff] }
 0x552   : > { %v4850_v28 = vpop.f32.mrf.mxu3  ;;  %v4879_v32 = vpop.f32.mrf.mxu2  ;;  %v5627_v20 = vsel %vm1531_vm1, %v5625_v18, %v5626_v13  ;;  %v5630_v4 = vrot.slane %v11402_v62, 2  ;;  %v5116_v58 = vadd.f32 %v5100_v54, %v5075_v6  ;;  %v5201_v5 = vmul.f32 %v13084_v37, %v11264_v43  ;;  %4982 = vst.msk [vmem:[#allocation4 + $0x78] sm:$0xff] %vm3111_vm5, %v4945_v60 }
 0x553   : > { %v4851_v16 = vadd.f32 %v4850_v28, %v11130_v44  ;;  %v4880_v7 = vadd.f32 %v4879_v32, %v11132_v19  ;;  %v5673_v27 = vadd.f32 %v5627_v20, %v5391_v9  ;;  %v5118_v51 = vadd.f32 %v5102_v26, %v5077_v35  ;;  %v13087_v32 = vld [vmem:[#allocation80_spill] sm:$0xff] }
 0x554   : > { %v5631_v53 = vsel %vm1531_vm1, %v5626_v13, %v5630_v4  ;;  %v5172_v55 = vmul.f32 %v13085_v39, %v5116_v58  ;;  %v5203_v8 = vmul.f32 %v13084_v37, %v11299_v57  ;;  %v5230_v23 = vmul.f32 %v13086_v56, %v11299_v57 }
 0x555   : > { %v4896_v11 = vmax.f32 %v4851_v16, 0.0  ;;  %v4897_v44 = vmax.f32 %v4880_v7, 0.0  ;;  %v5675_v42 = vadd.f32 %v5631_v53, %v5393_v48  ;;  %v5695_v19 = vadd.f32 %v11384_v24, %v5673_v27  ;;  %v13088_v53 = vld [vmem:[#allocation90_spill] sm:$0xff] }
 0x556   : > { %v5174_v9 = vmul.f32 %v11425_v45, %v5118_v51  ;;  %v5232_v40 = vmul.f32 %v13086_v56, %v11337_v34  ;;  %v5248_v54 = vadd.f32 %v5230_v23, %v5201_v5  ;;  %v5291_v18 = vmul.f32 %v11212_v50, %v11337_v34 }
 0x557   : > { %v4946_v13 = vrot.slane %v4896_v11, 7  ;;  %v4948_v6 = vrot.slane %v4897_v44, 7  ;;  %v5697_v60 = vadd.f32 %v11384_v24, %v5675_v42  ;;  %v5711_v35 = vmax.f32 %v5695_v19, 0.0  ;;  %v13089_v11 = vld [vmem:[#allocation67_spill] sm:$0xff] }
 0x558   : > { %v5250_v26 = vadd.f32 %v5232_v40, %v5203_v8  ;;  %v5293_v48 = vmul.f32 %v11212_v50, %v11370_v36  ;;  %v5309_v28 = vadd.f32 %v5291_v18, %v5248_v54  ;;  %v5423_v20 = vmul.f32 %v13087_v32, %v11264_v43  ;;  %v11463_v18 = vld [vmem:[#allocation4 + $0x58] sm:$0xff] }
 0x559   : > { %v11439_v58 = vsel %vm4919_vm13, %v4942_v33, %v4946_v13  ;;  %4985 = vst [vmem:[#allocation4 + $0x90] sm:$0x1] %v4946_v13  ;;  %v4949_v5 = vsel %vm4919_vm13, %v4944_v21, %v4948_v6  ;;  %v5713_v16 = vmax.f32 %v5697_v60, 0.0  ;;  %v5425_v7 = vmul.f32 %v13087_v32, %v11299_v57 }
 0x55a   : > { %4983 = vst [vmem:[#allocation4 + $0x80] sm:$0xff] %v11439_v58  ;;  %v11445_v27 = vadd.f32 %v5293_v48, %v5250_v26  ;;  %v5350_v51 = vrot.slane %v5309_v28, 1  ;;  %v5452_v8 = vmul.f32 %v13088_v53, %v11299_v57  ;;  %v5454_v43 = vmul.f32 %v13088_v53, %v11337_v34 }
 0x55b   : > { %4984 = vst.msk [vmem:[#allocation4 + $0x88] sm:$0xff] %vm3111_vm5, %v4949_v5  ;;  %v5727_v33 = vpack.c.bf16 %v5713_v16, %v5711_v35  ;;  %v5499_v21 = vmul.f32 %v11219_v22, %v11337_v34  ;;  %v5501_v23 = vmul.f32 %v11219_v22, %v11370_v36  ;;  %v5035_v44 = vmul.f32 %v13089_v11, %v11286_v0  ;;  %v11479_v5 = vld [vmem:[#allocation4 + $0x68] sm:$0xff]  ;;  %v13090_v16 = vld [vmem:[#allocation73_spill] sm:$0xff] }
 0x55c   : > { %4986 = vst.msk [vmem:[#allocation4 + $0x98] sm:$0x1] %vm4901_vm11, %v4948_v6  ;;  %v5351_v42 = vsel %vm5339_vm14, %v5346_v61, %v5350_v51  ;;  %v5354_v19 = vrot.slane %v11445_v27, 1  ;;  %v5470_v40 = vadd.f32 %v5452_v8, %v5423_v20  ;;  %v5472_v54 = vadd.f32 %v5454_v43, %v5425_v7  ;;  %v13091_v8 = vld [vmem:[#allocation82_spill] sm:$0xff] }
 0x55d   : > { %8018 = vmatmul.msk.bf16.vlgmr.msrb.gmra.mxu1 %vm3111_vm5, %v5727_v33  ;;  %v5394_v13 = vadd.f32 %v5351_v42, %v5172_v55  ;;  %v5037_v60 = vmul.f32 %v13089_v11, %v11307_v49  ;;  %v5060_v0 = vmul.f32 %v11162_v29, %v11307_v49  ;;  %v5062_v2 = vmul.f32 %v11346_v59, %v11162_v29 }
 0x55e   : > { %v5355_v61 = vsel %vm5339_vm14, %v5350_v51, %v5354_v19  ;;  %v5517_v6 = vadd.f32 %v5499_v21, %v5470_v40  ;;  %v5519_v35 = vadd.f32 %v5501_v23, %v5472_v54  ;;  %v5101_v26 = vmul.f32 %v11346_v59, %v11210_v15 }
 0x55f   : > { %v5396_v48 = vadd.f32 %v5355_v61, %v5174_v9  ;;  %v5076_v55 = vadd.f32 %v5060_v0, %v5035_v44  ;;  %v5078_v28 = vadd.f32 %v5062_v2, %v5037_v60  ;;  %v5103_v20 = vmul.f32 %v11210_v15, %v11463_v18 }
 0x560   : > { %v5592_v7 = vmul.f32 %v13090_v16, %v5517_v6  ;;  %v11483_v43 = vmul.f32 %v13091_v8, %v5519_v35  ;;  %v5202_v51 = vmul.f32 %v11173_v10, %v11307_v49  ;;  %v5204_v33 = vmul.f32 %v11346_v59, %v11173_v10 }
 0x561   : > { %v5117_v21 = vadd.f32 %v5101_v26, %v5076_v55  ;;  %v5119_v9 = vadd.f32 %v5103_v20, %v5078_v28  ;;  %v5231_v23 = vmul.f32 %v11346_v59, %v11192_v31  ;;  %v5233_v44 = vmul.f32 %v11192_v31, %v11463_v18 }
 0x562   : > { %v5632_v42 = vrot.slane %v5592_v7, 2  ;;  %v5636_v40 = vrot.slane %v11483_v43, 2  ;;  %v5292_v54 = vmul.f32 %v11217_v3, %v11463_v18  ;;  %v5294_v60 = vmul.f32 %v11217_v3, %v11479_v5 }
 0x563   : > { %v5173_v0 = vmul.f32 %v13085_v39, %v5117_v21  ;;  %v5175_v2 = vmul.f32 %v11425_v45, %v5119_v9  ;;  %v5249_v61 = vadd.f32 %v5231_v23, %v5202_v51  ;;  %v5251_v6 = vadd.f32 %v5233_v44, %v5204_v33 }
 0x564   : > { %v5633_v35 = vsel %vm1531_vm1, %v5628_v14, %v5632_v42  ;;  %v5637_v26 = vsel %vm1531_vm1, %v5632_v42, %v5636_v40  ;;  %v5424_v55 = vmul.f32 %v11195_v41, %v11307_v49  ;;  %v5426_v28 = vmul.f32 %v11195_v41, %v11346_v59 }
 0x565   : > { %v5676_v20 = vadd.f32 %v5633_v35, %v5394_v13  ;;  %v5678_v39 = vadd.f32 %v5637_v26, %v5396_v48  ;;  %v5310_v7 = vadd.f32 %v5292_v54, %v5249_v61  ;;  %v11510_v45 = vadd.f32 %v5294_v60, %v5251_v6 }
 0x566   : > { %v5453_v47 = vmul.f32 %v11205_v52, %v11346_v59  ;;  %v5455_v14 = vmul.f32 %v11205_v52, %v11463_v18  ;;  %v5500_v51 = vmul.f32 %v11221_v1, %v11463_v18  ;;  %v5502_v49 = vmul.f32 %v11221_v1, %v11479_v5 }
 0x567   : > { %v5698_v33 = vadd.f32 %v11239_v46, %v5676_v20  ;;  %v5700_v13 = vadd.f32 %v11239_v46, %v5678_v39  ;;  %v5352_v48 = vrot.slane %v5310_v7, 1  ;;  %v5356_v21 = vrot.slane %v11510_v45, 1 }
 0x568   : > { %v5471_v9 = vadd.f32 %v5453_v47, %v5424_v55  ;;  %v5473_v23 = vadd.f32 %v5455_v14, %v5426_v28  ;;  %v5038_v44 = vmul.f32 %v11149_v12, %v11299_v57  ;;  %v5040_v42 = vmul.f32 %v11149_v12, %v11337_v34 }
 0x569   : > { %v5714_v54 = vmax.f32 %v5698_v33, 0.0  ;;  %v5716_v60 = vmax.f32 %v5700_v13, 0.0  ;;  %v5353_v61 = vsel %vm5339_vm14, %v5348_v17, %v5352_v48  ;;  %v5357_v6 = vsel %vm5339_vm14, %v5352_v48, %v5356_v21 }
 0x56a   : > { %v5395_v35 = vadd.f32 %v5353_v61, %v5173_v0  ;;  %v5397_v26 = vadd.f32 %v5357_v6, %v5175_v2  ;;  %v5518_v55 = vadd.f32 %v5500_v51, %v5471_v9  ;;  %v5520_v28 = vadd.f32 %v5502_v49, %v5473_v23 }
 0x56b   : > { %v5728_v20 = vpack.c.bf16 %v5716_v60, %v5714_v54  ;;  %v5063_v57 = vmul.f32 %v13082_v30, %v11337_v34  ;;  %v5065_v39 = vmul.f32 %v13082_v30, %v11370_v36  ;;  %v5104_v25 = vmul.f32 %v13083_v63, %v11370_v36  ;;  %v5151_v54 = vpop.permute.xlu1 %5150 }
 0x56c   : > { %v5593_v17 = vmul.f32 %v13090_v16, %v5518_v55  ;;  %v11541_v7 = vmul.f32 %v13091_v8, %v5520_v28  ;;  %v5106_v0 = vmul.f32 %v13083_v63, %v11405_v38  ;;  %v5205_v2 = vmul.f32 %v13084_v37, %v11337_v34 }
 0x56d   : > { %5835 = vmatmul.bf16.gmra.mxu0 %v5728_v20  ;;  %v5079_v47 = vadd.f32 %v5063_v57, %v5038_v44  ;;  %v5081_v14 = vadd.f32 %v5065_v39, %v5040_v42  ;;  %v5207_v51 = vmul.f32 %v13084_v37, %v11370_v36  ;;  %v5234_v49 = vmul.f32 %v13086_v56, %v11370_v36  ;;  %v11558_v42 = vpop.permute.xlu2 %5155 }
 0x56e   : > { %v5634_v33 = vrot.slane %v5593_v17, 2  ;;  %v12759_v16 = vrot.slane %v11541_v7, 2  ;;  %v5236_v8 = vmul.f32 %v13086_v56, %v11405_v38  ;;  %v5295_v13 = vmul.f32 %v11212_v50, %v11405_v38 }
 0x56f   : > { %v5120_v48 = vadd.f32 %v5104_v25, %v5079_v47  ;;  %v5122_v9 = vadd.f32 %v5106_v0, %v5081_v14  ;;  %v5252_v23 = vadd.f32 %v5234_v49, %v5205_v2  ;;  %v5297_v44 = vmul.f32 %v11212_v50, %v11439_v58 }
 0x570   : > { %v5635_v60 = vsel %vm1531_vm1, %v5630_v4, %v5634_v33  ;;  %v5639_v61 = vsel %vm1531_vm1, %v5634_v33, %v12759_v16  ;;  %v5254_v6 = vadd.f32 %v5236_v8, %v5207_v51  ;;  %v5427_v55 = vmul.f32 %v13087_v32, %v11337_v34 }
 0x571   : > { %v5677_v28 = vadd.f32 %v5635_v60, %v5395_v35  ;;  %v5679_v20 = vadd.f32 %v5639_v61, %v5397_v26  ;;  %v5176_v57 = vmul.f32 %v5151_v54, %v5120_v48  ;;  %v5178_v39 = vmul.f32 %v11558_v42, %v5122_v9 }
 0x572   : > { %v5313_v25 = vadd.f32 %v5295_v13, %v5252_v23  ;;  %v11569_v17 = vadd.f32 %v5297_v44, %v5254_v6  ;;  %v5429_v62 = vmul.f32 %v13087_v32, %v11370_v36  ;;  %v5456_v4 = vmul.f32 %v13088_v53, %v11370_v36  ;;  %v11592_v44 = vld [vmem:[#allocation4 + $0x78] sm:$0xff] }
 0x573   : > { %v5699_v0 = vadd.f32 %v11384_v24, %v5677_v28  ;;  %v5701_v2 = vadd.f32 %v11384_v24, %v5679_v20  ;;  %v5458_v34 = vmul.f32 %v13088_v53, %v11405_v38  ;;  %v5503_v35 = vmul.f32 %v11219_v22, %v11405_v38  ;;  %v13092_v20 = vld [vmem:[#allocation71_spill] sm:$0xff] }
 0x574   : > { %v5358_v26 = vrot.slane %v5313_v25, 1  ;;  %v12758_v47 = vrot.slane %v11569_v17, 1  ;;  %v5474_v14 = vadd.f32 %v5456_v4, %v5427_v55  ;;  %v5505_v51 = vmul.f32 %v11219_v22, %v11439_v58  ;;  %v13093_v4 = vld [vmem:[#allocation77_spill] sm:$0xff] }
 0x575   : > { %v5715_v49 = vmax.f32 %v5699_v0, 0.0  ;;  %v5717_v33 = vmax.f32 %v5701_v2, 0.0  ;;  %v5476_v8 = vadd.f32 %v5458_v34, %v5429_v62  ;;  %v5039_v13 = vmul.f32 %v11346_v59, %v13089_v11  ;;  %v11603_v62 = vld [vmem:[#allocation4 + $0x88] sm:$0xff] }
 0x576   : > { %v5359_v48 = vsel %vm5339_vm14, %v5354_v19, %v5358_v26  ;;  %v5363_v9 = vsel %vm5339_vm14, %v5358_v26, %v12758_v47  ;;  %v5521_v23 = vadd.f32 %v5503_v35, %v5474_v14  ;;  %v5041_v60 = vmul.f32 %v13089_v11, %v11463_v18 }
 0x577   : > { %v5729_v61 = vpack.c.bf16 %v5717_v33, %v5715_v49  ;;  %v5398_v6 = vadd.f32 %v5359_v48, %v5176_v57  ;;  %v5400_v55 = vadd.f32 %v5363_v9, %v5178_v39  ;;  %v5523_v28 = vadd.f32 %v5505_v51, %v5476_v8 }
 0x578   : > { %v5596_v59 = vmul.f32 %v13092_v20, %v5521_v23  ;;  %v5064_v27 = vmul.f32 %v11162_v29, %v11463_v18  ;;  %v5066_v19 = vmul.f32 %v11479_v5, %v11162_v29  ;;  %v5105_v25 = vmul.f32 %v11479_v5, %v11210_v15 }
 0x579   : > { %8019 = vmatmul.msk.bf16.gmra.mxu1 %vm3111_vm5, %v5729_v61  ;;  %v11607_v0 = vmul.f32 %v13093_v4, %v5523_v28  ;;  %v5107_v57 = vmul.f32 %v11210_v15, %v11592_v44  ;;  %v5206_v39 = vmul.f32 %v11173_v10, %v11463_v18  ;;  %v5208_v2 = vmul.f32 %v11479_v5, %v11173_v10 }
 0x57a   : > { %v5640_v34 = vrot.slane %v5596_v59, 2  ;;  %v5080_v35 = vadd.f32 %v5064_v27, %v5039_v13  ;;  %v5082_v26 = vadd.f32 %v5066_v19, %v5041_v60  ;;  %v5235_v14 = vmul.f32 %v11479_v5, %v11192_v31 }
 0x57b   : > { %v5644_v51 = vrot.slane %v11607_v0, 2  ;;  %v5237_v49 = vmul.f32 %v11192_v31, %v11592_v44  ;;  %v5296_v33 = vmul.f32 %v11217_v3, %v11592_v44  ;;  %v5298_v8 = vmul.f32 %v11217_v3, %v11603_v62 }
 0x57c   : > { %v5641_v48 = vsel %vm1531_vm1, %v5636_v40, %v5640_v34  ;;  %v5121_v13 = vadd.f32 %v5105_v25, %v5080_v35  ;;  %v5123_v9 = vadd.f32 %v5107_v57, %v5082_v26  ;;  %v5253_v23 = vadd.f32 %v5235_v14, %v5206_v39 }
 0x57d   : > { %v5645_v60 = vsel %vm1531_vm1, %v5640_v34, %v5644_v51  ;;  %v5680_v61 = vadd.f32 %v5641_v48, %v5398_v6  ;;  %v5255_v28 = vadd.f32 %v5237_v49, %v5208_v2  ;;  %v5428_v59 = vmul.f32 %v11195_v41, %v11463_v18  ;;  %v5087_v49 = vld [vmem:[#allocation4 + $0x90] sm:$0xff] }
 0x57e   : > { %v5682_v27 = vadd.f32 %v5645_v60, %v5400_v55  ;;  %v5177_v19 = vmul.f32 %v5151_v54, %v5121_v13  ;;  %v5179_v47 = vmul.f32 %v11558_v42, %v5123_v9  ;;  %v5314_v16 = vadd.f32 %v5296_v33, %v5253_v23  ;;  %v5186_v9 = vld [vmem:[#allocation4 + $0x80] sm:$0x1] }
 0x57f   : > { %v5702_v43 = vadd.f32 %v11239_v46, %v5680_v61  ;;  %v11634_v40 = vadd.f32 %v5298_v8, %v5255_v28  ;;  %v5430_v25 = vmul.f32 %v11195_v41, %v11479_v5  ;;  %v5457_v57 = vmul.f32 %v11205_v52, %v11479_v5  ;;  %v5215_v61 = vld [vmem:[#allocation4 + $0x90] sm:$0x1] }
 0x580   : > { %v5704_v6 = vadd.f32 %v11239_v46, %v5682_v27  ;;  %v5360_v39 = vrot.slane %v5314_v16, 1  ;;  %v5459_v18 = vmul.f32 %v11205_v52, %v11592_v44  ;;  %v5504_v42 = vmul.f32 %v11221_v1, %v11592_v44 }
 0x581   : > { %v5718_v54 = vmax.f32 %v5702_v43, 0.0  ;;  %v5364_v55 = vrot.slane %v11634_v40, 1  ;;  %v5475_v2 = vadd.f32 %v5457_v57, %v5428_v59  ;;  %v5506_v34 = vmul.f32 %v11221_v1, %v11603_v62 }
 0x582   : > { %v5720_v35 = vmax.f32 %v5704_v6, 0.0  ;;  %v5361_v26 = vsel %vm5339_vm14, %v5356_v21, %v5360_v39  ;;  %v5477_v14 = vadd.f32 %v5459_v18, %v5430_v25  ;;  %v5042_v16 = vmul.f32 %v11149_v12, %v11370_v36 }
 0x583   : > { %v5365_v33 = vsel %vm5339_vm14, %v5360_v39, %v5364_v55  ;;  %v5399_v8 = vadd.f32 %v5361_v26, %v5177_v19  ;;  %v5522_v48 = vadd.f32 %v5504_v42, %v5475_v2  ;;  %v5044_v13 = vmul.f32 %v11149_v12, %v11405_v38  ;;  %v5276_v19 = vld [vmem:[#allocation4 + $0xa0] sm:$0x1]  ;;  %v11678_v42 = vpop.permute.xlu1 %5160 }
 0x584   : > { %v5730_v23 = vpack.c.bf16 %v5720_v35, %v5718_v54  ;;  %v5401_v60 = vadd.f32 %v5365_v33, %v5179_v47  ;;  %v5524_v45 = vadd.f32 %v5506_v34, %v5477_v14  ;;  %v5067_v21 = vmul.f32 %v13082_v30, %v11405_v38  ;;  %v13094_v54 = vld [vmem:[#allocation66_spill] sm:$0xff]  ;;  %v5437_v33 = vld [vmem:[#allocation4 + $0x90] sm:$0x3] }
 0x585   : > { %v5597_v36 = vmul.f32 %v13092_v20, %v5522_v48  ;;  %v5069_v28 = vmul.f32 %v13082_v30, %v11439_v58  ;;  %v5108_v59 = vmul.f32 %v13083_v63, %v11439_v58  ;;  %v5110_v27 = vmul.f32 %v13083_v63, %v5087_v49  ;;  %v13095_v2 = vld [vmem:[#allocation70_spill] sm:$0xff] }
 0x586   : > { %5840 = vmatmul.bf16.gmra.mxu0 %v5730_v23  ;;  %v11667_v12 = vmul.f32 %v13093_v4, %v5524_v45  ;;  %v5083_v47 = vadd.f32 %v5067_v21, %v5042_v16  ;;  %v5209_v43 = vmul.f32 %v13084_v37, %v11405_v38  ;;  %v5211_v25 = vmul.f32 %v13084_v37, %v5186_v9  ;;  %v5408_v16 = vld [vmem:[#allocation4 + $0x80] sm:$0x3] }
 0x587   : > { %v5642_v20 = vrot.slane %v5597_v36, 2  ;;  %v5085_v57 = vadd.f32 %v5069_v28, %v5044_v13  ;;  %v5238_v30 = vmul.f32 %v13086_v56, %v11439_v58  ;;  %v5240_v6 = vmul.f32 %v13086_v56, %v5215_v61  ;;  %v5484_v61 = vld [vmem:[#allocation4 + $0xa0] sm:$0x3] }
 0x588   : > { %v5646_v63 = vrot.slane %v11667_v12, 2  ;;  %v5124_v39 = vadd.f32 %v5108_v59, %v5083_v47  ;;  %v5299_v18 = vmul.f32 %v11212_v50, %v5087_v49  ;;  %v5301_v4 = vmul.f32 %v11212_v50, %v5276_v19  ;;  %v5902_v12 = vld [vmem:[%s13099_s3 + $0x10] sm:$0xff] }
 0x589   : > { %v13096_v34 = vrot.slane %v13095_v2, 6  ;;  %v13097_v35 = vrot.slane %v11541_v7, 2  ;;  %v5256_v56 = vadd.f32 %v5238_v30, %v5209_v43  ;;  %v5258_v14 = vadd.f32 %v5240_v6, %v5211_v25  ;;  %v8412_v2 = vld [vmem:[#allocation4] sm:$0xff] }
 0x58a   : > { %v5647_v50 = vsel %vm1531_vm1, %v5642_v20, %v5646_v63  ;;  %v5126_v13 = vadd.f32 %v5110_v27, %v5085_v57  ;;  %v5180_v9 = vmul.f32 %v11678_v42, %v5124_v39  ;;  %v5431_v7 = vmul.f32 %v13087_v32, %v11405_v38  ;;  %4991 = vst.msk [vmem:[#allocation4 + $0xa8] sm:$0x3] %vm4990_vm15, %v8412_v2 }
 0x58b   : > { %v11684_v37 = vsel %vm5561_vm12, %v13096_v34, %v13094_v54  ;;  %v5643_v26 = vsel %vm1531_vm1, %v13097_v35, %v5642_v20  ;;  %v5683_v23 = vadd.f32 %v5647_v50, %v5401_v60  ;;  %v5317_v45 = vadd.f32 %v5299_v18, %v5256_v56  ;;  %6105 = vst.msk [vmem:[#allocation5 + $0xa8] sm:$0x3] %vm4990_vm15, %v8412_v2  ;;  %v5216_v50 = vld [vmem:[#allocation4 + $0x98] sm:$0x1] }
 0x58c   : > { %v5681_v48 = vadd.f32 %v5643_v26, %v5399_v8  ;;  %v5319_v21 = vadd.f32 %v5301_v4, %v5258_v14  ;;  %v5433_v28 = vmul.f32 %v13087_v32, %v5408_v16  ;;  %v5460_v59 = vmul.f32 %v13088_v53, %v11439_v58  ;;  %v11700_v8 = vpop.permute.xlu2 %5165  ;;  %v5088_v16 = vld [vmem:[#allocation4 + $0x98] sm:$0xff] }
 0x58d   : > { %v5462_v19 = vmul.f32 %v13088_v53, %v5437_v33  ;;  %v5705_v27 = vadd.f32 %v11384_v24, %v5683_v23  ;;  %v5366_v60 = vrot.slane %v5317_v45, 1  ;;  %v5507_v43 = vmul.f32 %v11219_v22, %v5087_v49  ;;  %v5187_v49 = vld [vmem:[#allocation4 + $0x88] sm:$0x1] }
 0x58e   : > { %v5703_v36 = vadd.f32 %v11384_v24, %v5681_v48  ;;  %v5370_v47 = vrot.slane %v5319_v21, 1  ;;  %v5182_v38 = vmul.f32 %v11700_v8, %v5126_v13  ;;  %v5478_v25 = vadd.f32 %v5460_v59, %v5431_v7 }
 0x58f   : > { %v5480_v20 = vadd.f32 %v5462_v19, %v5433_v28  ;;  %v5509_v57 = vmul.f32 %v11219_v22, %v5484_v61  ;;  %v5721_v30 = vmax.f32 %v5705_v27, 0.0  ;;  %v13098_v58 = vrot.slane %v11569_v17, 1  ;;  %v5438_v27 = vld [vmem:[#allocation4 + $0x98] sm:$0x3] }
 0x590   : > { %v5719_v32 = vmax.f32 %v5703_v36, 0.0  ;;  %v5371_v6 = vsel %vm5339_vm14, %v5366_v60, %v5370_v47  ;;  %v5525_v18 = vadd.f32 %v5507_v43, %v5478_v25  ;;  %v5043_v35 = vmul.f32 %v11479_v5, %v13089_v11  ;;  %v5409_v36 = vld [vmem:[#allocation4 + $0x88] sm:$0x3] }
 0x591   : > { %v5367_v53 = vsel %vm5339_vm14, %v13098_v58, %v5366_v60  ;;  %v5527_v4 = vadd.f32 %v5509_v57, %v5480_v20  ;;  %v5045_v22 = vmul.f32 %v13089_v11, %v11592_v44  ;;  %v5068_v17 = vmul.f32 %v11162_v29, %v11592_v44  ;;  %v5485_v25 = vld [vmem:[#allocation4 + $0xa8] sm:$0x3] }
 0x592   : > { %v5402_v39 = vadd.f32 %v5367_v53, %v5180_v9  ;;  %v5731_v34 = vpack.c.bf16 %v5721_v30, %v5719_v32  ;;  %v5600_v26 = vmul.f32 %v11684_v37, %v5525_v18  ;;  %v5070_v14 = vmul.f32 %v11603_v62, %v11162_v29 }
 0x593   : > { %v5602_v56 = vmul.f32 %v13094_v54, %v5527_v4  ;;  %v5109_v33 = vmul.f32 %v11603_v62, %v11210_v15  ;;  %v5404_v5 = vadd.f32 %v5371_v6, %v5182_v38  ;;  %v5084_v11 = vadd.f32 %v5068_v17, %v5043_v35  ;;  %v5277_v38 = vld [vmem:[#allocation4 + $0xa8] sm:$0x1] }
 0x594   : > { %8020 = vmatmul.msk.bf16.gmra.mxu1 %vm3111_vm5, %v5731_v34  ;;  %v5210_v48 = vmul.f32 %v11173_v10, %v11592_v44  ;;  %v5212_v13 = vmul.f32 %v11173_v10, %v5187_v49  ;;  %v5648_v9 = vrot.slane %v5600_v26, 2  ;;  %v5086_v45 = vadd.f32 %v5070_v14, %v5045_v22 }
 0x595   : > { %v5652_v23 = vrot.slane %v5602_v56, 2  ;;  %v5239_v29 = vmul.f32 %v11603_v62, %v11192_v31  ;;  %v5111_v21 = vmul.f32 %v11210_v15, %v5088_v16  ;;  %v5125_v7 = vadd.f32 %v5109_v33, %v5084_v11 }
 0x596   : > { %v5241_v61 = vmul.f32 %v11192_v31, %v5216_v50  ;;  %v5649_v28 = vsel %vm1531_vm1, %v5644_v51, %v5648_v9  ;;  %v5300_v10 = vmul.f32 %v11217_v3, %v5088_v16  ;;  %v5432_v15 = vmul.f32 %v11195_v41, %v11592_v44 }
 0x597   : > { %v5653_v59 = vsel %vm1531_vm1, %v5648_v9, %v5652_v23  ;;  %v5257_v19 = vadd.f32 %v5239_v29, %v5210_v48  ;;  %v5684_v60 = vadd.f32 %v5649_v28, %v5402_v39  ;;  %v5127_v31 = vadd.f32 %v5111_v21, %v5086_v45  ;;  %v8024_v9 = vld [vmem:[%s13099_s3] sm:$0xf]  ;;  %v8226_v23 = vld [vmem:[%s13099_s3 + $0x4] sm:$0xf0]  ;;  %v8225_v21 = vld [vmem:[%s13099_s3 + $0x4] sm:$0xf] }
 0x598   : > { %v5686_v47 = vadd.f32 %v5653_v59, %v5404_v5  ;;  %v5259_v43 = vadd.f32 %v5241_v61, %v5212_v13  ;;  %v5302_v20 = vmul.f32 %v11217_v3, %v5277_v38  ;;  %v5434_v51 = vmul.f32 %v11195_v41, %v5409_v36  ;;  %v8372_v59 = vld [vmem:[%s13100_s2] ss:$0 sm:$0xff]  ;;  %s13107_s2 = sld [smem:[#allocation31_spill]] }
 0x599   : > { %v5318_v0 = vadd.f32 %v5300_v10, %v5257_v19  ;;  %v5706_v57 = vadd.f32 %v11239_v46, %v5684_v60  ;;  %v5461_v30 = vmul.f32 %v11205_v52, %v11603_v62  ;;  %v5463_v58 = vmul.f32 %v11205_v52, %v5438_v27 }
 0x59a   : > { %v5708_v32 = vadd.f32 %v11239_v46, %v5686_v47  ;;  %v5320_v53 = vadd.f32 %v5302_v20, %v5259_v43  ;;  %v5508_v44 = vmul.f32 %v11221_v1, %v5088_v16  ;;  %v5510_v39 = vmul.f32 %v11221_v1, %v5485_v25  ;;  %v13101_v43 = vld [vmem:[#allocation96_spill] sm:$0xff] }
 0x59b   : > { %v5368_v6 = vrot.slane %v5318_v0, 1  ;;  %v5722_v18 = vmax.f32 %v5706_v57, 0.0  ;;  %v5479_v4 = vadd.f32 %v5461_v30, %v5432_v15  ;;  %v5481_v2 = vadd.f32 %v5463_v58, %v5434_v51  ;;  %v13102_v15 = vld [vmem:[#allocation83_spill] sm:$0xff] }
 0x59c   : > { %v5724_v3 = vmax.f32 %v5708_v32, 0.0  ;;  %v5183_v41 = vmul.f32 %v11700_v8, %v5127_v31  ;;  %v5372_v49 = vrot.slane %v5320_v53, 1  ;;  %v5181_v35 = vmul.f32 %v11678_v42, %v5125_v7 }
 0x59d   : > { %v5369_v46 = vsel %vm5339_vm14, %v5364_v55, %v5368_v6  ;;  %v5526_v62 = vadd.f32 %v5508_v44, %v5479_v4  ;;  %v5528_v52 = vadd.f32 %v5510_v39, %v5481_v2  ;;  %v5916_v11 = vunpack.c.l.b16 %v5902_v12  ;;  %v13103_v39 = vld [vmem:[#allocation79_spill] sm:$0xff] }
 0x59e   : > { %v5732_v34 = vpack.c.bf16 %v5724_v3, %v5722_v18  ;;  %v5373_v22 = vsel %vm5339_vm14, %v5368_v6, %v5372_v49  ;;  %v5403_v26 = vadd.f32 %v5369_v46, %v5181_v35  ;;  %v5917_v13 = vunpack.c.h.b16 %v5902_v12  ;;  %v13104_v3 = vld [vmem:[#allocation97_spill] sm:$0xff] }
 0x59f   : > { %v5601_v1 = vmul.f32 %v11684_v37, %v5526_v62  ;;  %v5603_v17 = vmul.f32 %v13094_v54, %v5528_v52  ;;  %v5405_v8 = vadd.f32 %v5373_v22, %v5183_v41  ;;  %v8025_v45 = vor.u32 %v8226_v23, %v8024_v9 }
 0x5a0   : > { %5845 = vmatmul.bf16.gmra.mxu0 %v5732_v34  ;;  %v5921_v29 = vpack.c.b16 %v5917_v13, %v5917_v13  ;;  %v5880_v38 = vunpack.c.l.bf16 %v13101_v43  ;;  %v5881_v25 = vunpack.c.l.bf16 %v13102_v15  ;;  %v5882_v18 = vunpack.c.l.bf16 %v13103_v39  ;;  %v13109_v13 = vld [vmem:[#allocation74_spill] sm:$0xff] }
 0x5a1   : > { %v5650_v56 = vrot.slane %v5601_v1, 2  ;;  %v5654_v14 = vrot.slane %v5603_v17, 2  ;;  %v5883_v4 = vunpack.c.l.bf16 %v13104_v3  ;;  %v5887_v9 = vunpack.c.l.bf16 %v13109_v13 }
 0x5a2   : > { %v5940_v7 = vsel %vm4817_vm8, %v5921_v29, 0 }
 0x5a3   : > { %v5651_v40 = vsel %vm1531_vm1, %v5646_v63, %v5650_v56  ;;  %v5655_v55 = vsel %vm1531_vm1, %v5650_v56, %v5654_v14  ;;  %v5920_v63 = vpack.c.b16 %v5916_v11, %v5916_v11  ;;  %5977 = vmatpush.bf16.msra.mxu2 %v5940_v7  ;;  %v13106_v56 = vld [vmem:[#allocation75_spill] sm:$0xff] }
 0x5a4   : > { %v5685_v42 = vadd.f32 %v5651_v40, %v5403_v26  ;;  %v5687_v16 = vadd.f32 %v5655_v55, %v5405_v8  ;;  %v13105_v26 = vld [vmem:[#allocation78_spill] sm:$0xff]  ;;  %v5885_v14 = vunpack.c.l.bf16 %v13106_v56 }
 0x5a5   : > { %v5937_v48 = vsel %vm4817_vm8, %v5920_v63, 0  ;;  %v5884_v8 = vunpack.c.l.bf16 %v13105_v26  ;;  %v13108_v63 = vld [vmem:[#allocation81_spill] sm:$0xff] }
 0x5a6   : > { %v5707_v33 = vadd.f32 %v11384_v24, %v5685_v42  ;;  %v5709_v37 = vadd.f32 %v11384_v24, %v5687_v16  ;;  %5948 = vmatpush.bf16.msra.mxu3 %v5937_v48  ;;  %v8026_v24 = vld [vmem:[%s13099_s3 + $0x8] sm:$0xf0]  ;;  %v5886_v48 = vunpack.c.l.bf16 %v13108_v63  ;;  %s13132_s3 = sld [smem:[#allocation33_spill]] }
 0x5a7   : > { %v8029_v61 = vor.u32 %v8225_v21, %v8026_v24  ;;  %v5903_v24 = vld [vmem:[%s13107_s2] sm:$0x3]  ;;  %s13114_s2 = sld [smem:[#allocation32_spill]] }
 0x5a8   : > { %v5723_v54 = vmax.f32 %v5707_v33, 0.0  ;;  %v5725_v50 = vmax.f32 %v5709_v37, 0.0  ;;  %v11786_v7 = vperm.slane %v5903_v24, 0 }
 0x5a9   : > { %5978 = vmatpush.bf16.msra.mxu2 %v8029_v61  ;;  %v11788_v61 = vperm.slane %v5903_v24, 1 }
 0x5aa   : > { %v5733_v5 = vpack.c.bf16 %v5725_v50, %v5723_v54  ;;  %5949 = vmatpush.bf16.msra.mxu3 %v8025_v45 }
 0x5ac   : > { %8021 = vmatmul.msk.bf16.gmra.mxu1 %vm3111_vm5, %v5733_v5 }
 0x5c8   : > { %v5831_v36 = vpop.f32.mrf.mxu0 }
 0x5c9   : > { %v5832_v10 = vadd.f32 %v8372_v59, %v5831_v36 }
 0x5d0   : > { %v5833_v19 = vpop.f32.mrf.mxu0 }
 0x5d1   : > { %v5834_v60 = vadd.f32 %v8372_v59, %v5833_v19 }
 0x5da   : > { %v5860_v28 = vpop.f32.mrf.mxu1 }
 0x5db   : > { %v5861_v27 = vadd.f32 %v5860_v28, %v5832_v10 }
 0x5dd   : > { %v5888_v20 = vadd.f32 %v5880_v38, %v5861_v27 }
 0x5e2   : > { %v5862_v47 = vpop.f32.mrf.mxu1 }
 0x5e3   : > { %v5863_v31 = vadd.f32 %v5862_v47, %v5834_v60  ;;  %v11792_v60 = vpop.permute.xlu1 %6668 }
 0x5e5   : > { %v5889_v0 = vadd.f32 %v5881_v25, %v5863_v31 }
 0x5e7   : > { %v5896_v51 = vpack.c.bf16 %v5889_v0, %v5888_v20 }
 0x5e9   : > { %8030 = vmatmul.msk.bf16.vlgmr.msra.gmra.mxu3 %vm4804_vm9, %v5896_v51  ;;  %8034 = vmatmul.msk.bf16.vlgmr.msra.gmra.mxu2 %vm4804_vm9, %v5896_v51  ;;  %v6665_v51 = vpop.permute.xlu0 %6664 }
 0x5ea   : > { %v5836_v57 = vpop.f32.mrf.mxu0 }
 0x5eb   : > { %v5837_v58 = vadd.f32 %v8372_v59, %v5836_v57 }
 0x5f2   : > { %v5838_v30 = vpop.f32.mrf.mxu0 }
 0x5f3   : > { %v5839_v6 = vadd.f32 %v8372_v59, %v5838_v30  ;;  %v11797_v30 = vpop.permute.xlu1 %6279 }
 0x5f4   : > { %13110 = vst [vmem:[#allocation65_spill] sm:$0xff] %v11797_v30 }
 0x5f6   : > { %v5865_v32 = vpop.f32.mrf.mxu1 }
 0x5f7   : > { %v5866_v53 = vadd.f32 %v5865_v32, %v5837_v58 }
 0x5f9   : > { %v5890_v41 = vadd.f32 %v5882_v18, %v5866_v53 }
 0x5fe   : > { %v5867_v44 = vpop.f32.mrf.mxu1 }
 0x5ff   : > { %v5868_v2 = vadd.f32 %v5867_v44, %v5839_v6  ;;  %v11805_v6 = vpop.permute.xlu0 %6274  ;;  %v11807_v44 = vpop.permute.xlu1 %6264 }
 0x600   : > { %13112 = vst [vmem:[#allocation86_spill] sm:$0xff] %v11805_v6 }
 0x601   : > { %v5891_v49 = vadd.f32 %v5883_v4, %v5868_v2 }
 0x603   : > { %v5897_v34 = vpack.c.bf16 %v5891_v49, %v5890_v41  ;;  %v5841_v46 = vpop.f32.mrf.mxu0  ;;  %v6673_v49 = vpop.permute.xlu2 %6672 }
 0x604   : > { %v5842_v35 = vadd.f32 %v8372_v59, %v5841_v46 }
 0x605   : > { %8031 = vmatmul.msk.bf16.gmra.mxu3 %vm4804_vm9, %v5897_v34  ;;  %8035 = vmatmul.msk.bf16.gmra.mxu2 %vm4804_vm9, %v5897_v34 }
 0x607   : > { %v6661_v34 = vpop.permute.xlu0 %6660 }
 0x60b   : > { %v5843_v52 = vpop.f32.mrf.mxu0 }
 0x60c   : > { %v5844_v1 = vadd.f32 %v8372_v59, %v5843_v52  ;;  %v6653_v52 = vpop.permute.xlu1 %6652 }
 0x60d   : > { %v6677_v63 = vrot.slane %v6653_v52, 6 }
 0x611   : > { %v5870_v62 = vpop.f32.mrf.mxu1 }
 0x612   : > { %v5871_v22 = vadd.f32 %v5870_v62, %v5842_v35 }
 0x614   : > { %v5892_v55 = vadd.f32 %v5884_v8, %v5871_v22  ;;  %v6645_v13 = vpop.permute.xlu1 %6644 }
 0x619   : > { %v5872_v17 = vpop.f32.mrf.mxu1 }
 0x61a   : > { %v5873_v40 = vadd.f32 %v5872_v17, %v5844_v1 }
 0x61c   : > { %v5893_v42 = vadd.f32 %v5885_v14, %v5873_v40 }
 0x61d   : > { %v5846_v33 = vpop.f32.mrf.mxu0 }
 0x61e   : > { %v5898_v16 = vpack.c.bf16 %v5893_v42, %v5892_v55  ;;  %v5847_v50 = vadd.f32 %v8372_v59, %v5846_v33  ;;  %v6657_v42 = vpop.permute.xlu2 %6656 }
 0x620   : > { %8032 = vmatmul.msk.bf16.gmra.mxu3 %vm4804_vm9, %v5898_v16  ;;  %8036 = vmatmul.msk.bf16.gmra.mxu2 %vm4804_vm9, %v5898_v16  ;;  %v11822_v16 = vpop.permute.xlu0 %6648 }
 0x621   : > { %13115 = vst [vmem:[#allocation91_spill] sm:$0xff] %v11822_v16 }
 0x625   : > { %v5848_v54 = vpop.f32.mrf.mxu0 }
 0x626   : > { %v5849_v12 = vadd.f32 %v8372_v59, %v5848_v54  ;;  %v6685_v54 = vrot.slane %v11792_v60, 6 }
 0x629   : > { %v5875_v37 = vpop.f32.mrf.mxu1 }
 0x62a   : > { %v5876_v5 = vadd.f32 %v5875_v37, %v5847_v50  ;;  %v6683_v50 = vrot.slane %v6665_v51, 6 }
 0x62c   : > { %v5894_v45 = vadd.f32 %v5886_v48, %v5876_v5  ;;  %v6681_v5 = vrot.slane %v6661_v34, 6  ;;  %v12762_v48 = vrot.slane %v11822_v16, 6 }
 0x631   : > { %v5877_v11 = vpop.f32.mrf.mxu1 }
 0x632   : > { %v5878_v23 = vadd.f32 %v5877_v11, %v5849_v12  ;;  %v11831_v12 = vrot.slane %v6673_v49, 6  ;;  %v6679_v11 = vrot.slane %v6657_v42, 6 }
 0x634   : > { %v5895_v29 = vadd.f32 %v5887_v9, %v5878_v23  ;;  %13116 = vst [vmem:[#allocation85_spill] sm:$0xff] %v11831_v12  ;;  %v6138_v9 = vld [vmem:[%s13114_s2] sm:$0x3]  ;;  %v8038_v23 = vld [vmem:[%s13114_s2 + $0x6] sm:$0x3]  ;;  %v11842_v24 = vsel %vm5561_vm12, %v6685_v54, %v11831_v12 }
 0x635   : > { %13117 = vst [vmem:[#allocation63_spill] sm:$0xff] %v11842_v24  ;;  %v11857_v60 = vperm.slane %v6138_v9, 0 }
 0x636   : > { %v5899_v21 = vpack.c.bf16 %v5895_v29, %v5894_v45  ;;  %v8039_v45 = vld [vmem:[%s13114_s2 + $0xc] sm:$0x3]  ;;  %v8040_v29 = vld [vmem:[%s13114_s2 + $0x2] sm:$0x3] }
 0x637   : > { %13121 = vst [vmem:[#allocation93_spill] sm:$0xff] %v11857_v60  ;;  %v11897_v49 = vperm.slane %v8039_v45, 1 }
 0x638   : > { %8033 = vmatmul.msk.bf16.gmra.mxu3 %vm4804_vm9, %v5899_v21  ;;  %8037 = vmatmul.msk.bf16.gmra.mxu2 %vm4804_vm9, %v5899_v21  ;;  %v8041_v21 = vld [vmem:[%s13114_s2 + $0x8] sm:$0x3] }
 0x639   : > { %13136 = vst [vmem:[#allocation56_spill] sm:$0xff] %v11897_v49 }
 0x66c   : > { %v5951_v36 = vpop.f32.mrf.mxu3  ;;  %v5980_v28 = vpop.f32.mrf.mxu2 }
 0x66d   : > { %v5952_v59 = vadd.f32 %v5951_v36, %v11786_v7  ;;  %v5981_v19 = vadd.f32 %v5980_v28, %v11788_v61  ;;  %v11845_v36 = vsel %vm5561_vm12, %v6683_v50, %v6685_v54  ;;  %v11848_v28 = vsel %vm5561_vm12, %v6679_v11, %v6681_v5 }
 0x66e   : > { %13118 = vst [vmem:[#allocation89_spill] sm:$0xff] %v11845_v36  ;;  %v6390_v36 = vld [vmem:[#allocation5 + $0xa0] sm:$0x1] }
 0x66f   : > { %v6000_v10 = vmax.f32 %v5952_v59, 0.0  ;;  %v6001_v27 = vmax.f32 %v5981_v19, 0.0  ;;  %v11851_v59 = vsel %vm5561_vm12, %v6681_v5, %v6683_v50  ;;  %v8043_v19 = vld [vmem:[%s13114_s2 + $0x4] sm:$0x3] }
 0x670   : > { %13119 = vst [vmem:[#allocation61_spill] sm:$0xff] %v11851_v59  ;;  %v11877_v51 = vperm.slane %v8043_v19, 0 }
 0x671   : > { %v6036_v47 = vrot.slane %v6000_v10, 7  ;;  %v6037_v43 = vrot.slane %v6001_v27, 7  ;;  %v8044_v10 = vld [vmem:[%s13114_s2 + $0xa] sm:$0x3]  ;;  %v11855_v27 = vrot.slane %v6645_v13, 6 }
 0x672   : > { %13128 = vst [vmem:[#allocation52_spill] sm:$0xff] %v11877_v51 }
 0x673   : > { %6084 = vst [vmem:[#allocation5 + $0x10] sm:$0xfe] %v6036_v47 }
 0x674   : > { %6085 = vst.msk [vmem:[#allocation5 + $0x18] sm:$0xfe] %vm4969_vm10, %v6037_v43  ;;  %v5953_v38 = vpop.f32.mrf.mxu3  ;;  %v5982_v15 = vpop.f32.mrf.mxu2 }
 0x675   : > { %v5954_v25 = vadd.f32 %v5953_v38, %v11786_v7  ;;  %v5983_v31 = vadd.f32 %v5982_v15, %v11788_v61  ;;  %13120 = vst [vmem:[#allocation87_spill] sm:$0xff] %v11855_v27  ;;  %v11864_v38 = vsel %vm5561_vm12, %v6677_v63, %v6679_v11  ;;  %v11869_v15 = vsel %vm5561_vm12, %v12762_v48, %v6677_v63 }
 0x676   : > { %13124 = vst [vmem:[#allocation84_spill] sm:$0xff] %v11864_v38 }
 0x677   : > { %v6002_v20 = vmax.f32 %v5954_v25, 0.0  ;;  %v6003_v0 = vmax.f32 %v5983_v31, 0.0  ;;  %13125 = vst [vmem:[#allocation92_spill] sm:$0xff] %v11869_v15  ;;  %v11871_v25 = vperm.slane %v8040_v29, 0  ;;  %v11873_v31 = vperm.slane %v8041_v21, 0 }
 0x679   : > { %v6038_v57 = vrot.slane %v6002_v20, 7  ;;  %v6040_v32 = vrot.slane %v6003_v0, 7  ;;  %13126 = vst [vmem:[#allocation60_spill] sm:$0xff] %v11871_v25  ;;  %v8042_v20 = vld [vmem:[%s13114_s2 + $0xe] sm:$0x3] }
 0x67a   : > { %13127 = vst [vmem:[#allocation54_spill] sm:$0xff] %v11873_v31  ;;  %v8045_v0 = vld [vmem:[%s13114_s2 + $0x10] sm:$0x3]  ;;  %v11899_v34 = vperm.slane %v8042_v20, 1  ;;  %s13227_s2 = sld [smem:[#allocation36_spill]] }
 0x67b   : > { %v11800_v58 = vsel %vm4919_vm13, %v6036_v47, %v6038_v57  ;;  %v6041_v53 = vsel %vm4919_vm13, %v6037_v43, %v6040_v32  ;;  %v11859_v47 = vperm.slane %v8038_v23, 0  ;;  %v11861_v43 = vperm.slane %v8039_v45, 0 }
 0x67c   : > { %13111 = vst [vmem:[#allocation55_spill] sm:$0xff] %v11800_v58  ;;  %v11901_v52 = vperm.slane %v8045_v0, 1  ;;  %v6313_v42 = vmul.f32 %v11871_v25, %v11800_v58 }
 0x67d   : > { %6086 = vst [vmem:[#allocation5 + $0x20] sm:$0xff] %v11800_v58 }
 0x67e   : > { %6087 = vst.msk [vmem:[#allocation5 + $0x28] sm:$0xff] %vm3111_vm5, %v6041_v53  ;;  %v11883_v53 = vperm.slane %v8038_v23, 1 }
 0x67f   : > { %13122 = vst [vmem:[#allocation53_spill] sm:$0xff] %v11859_v47 }
 0x680   : > { %13123 = vst [vmem:[#allocation58_spill] sm:$0xff] %v11861_v43 }
 0x681   : > { %13131 = vst [vmem:[#allocation59_spill] sm:$0xff] %v11883_v53 }
 0x688   : > { %v5956_v39 = vpop.f32.mrf.mxu3  ;;  %v5985_v18 = vpop.f32.mrf.mxu2 }
 0x689   : > { %v5957_v3 = vadd.f32 %v5956_v39, %v11786_v7  ;;  %v5986_v4 = vadd.f32 %v5985_v18, %v11788_v61  ;;  %v11885_v39 = vperm.slane %v8040_v29, 1  ;;  %v11887_v18 = vperm.slane %v8041_v21, 1 }
 0x68b   : > { %v6004_v2 = vmax.f32 %v5957_v3, 0.0  ;;  %v6005_v41 = vmax.f32 %v5986_v4, 0.0  ;;  %v11889_v3 = vperm.slane %v8043_v19, 1  ;;  %v11891_v4 = vperm.slane %v8044_v10, 1 }
 0x68d   : > { %v6042_v46 = vrot.slane %v6004_v2, 7  ;;  %v6044_v62 = vrot.slane %v6005_v41, 7  ;;  %13133 = vst [vmem:[#allocation50_spill] sm:$0xff] %v11889_v3  ;;  %v11893_v2 = vperm.slane %v8042_v20, 0  ;;  %v11895_v41 = vperm.slane %v8045_v0, 0 }
 0x68f   : > { %v11812_v35 = vsel %vm4919_vm13, %v6038_v57, %v6042_v46  ;;  %v6045_v22 = vsel %vm4919_vm13, %v6040_v32, %v6044_v62  ;;  %v11879_v57 = vperm.slane %v8044_v10, 0  ;;  %v11881_v32 = vperm.slane %v6138_v9, 1  ;;  %13134 = vst [vmem:[#allocation49_spill] sm:$0xff] %v11893_v2 }
 0x690   : > { %13113 = vst [vmem:[#allocation62_spill] sm:$0xff] %v11812_v35  ;;  %v5958_v1 = vpop.f32.mrf.mxu3  ;;  %v5987_v17 = vpop.f32.mrf.mxu2  ;;  %v6150_v54 = vmul.f32 %v11857_v60, %v11812_v35  ;;  %v6315_v50 = vmul.f32 %v11871_v25, %v11812_v35  ;;  %v6536_v5 = vmul.f32 %v11877_v51, %v11812_v35 }
 0x691   : > { %6089 = vst.msk [vmem:[#allocation5 + $0x38] sm:$0xff] %vm3111_vm5, %v6045_v22  ;;  %v5959_v26 = vadd.f32 %v5958_v1, %v11786_v7  ;;  %v5988_v8 = vadd.f32 %v5987_v17, %v11788_v61  ;;  %v6148_v22 = vmul.f32 %v11857_v60, %v11800_v58  ;;  %v6173_v1 = vmul.f32 %v11859_v47, %v11812_v35 }
 0x692   : > { %13129 = vst [vmem:[#allocation64_spill] sm:$0xff] %v11879_v57  ;;  %v6342_v17 = vmul.f32 %v11873_v31, %v11812_v35  ;;  %v6563_v11 = vmul.f32 %v11879_v57, %v11812_v35 }
 0x693   : > { %v6006_v56 = vmax.f32 %v5959_v26, 0.0  ;;  %v6007_v14 = vmax.f32 %v5988_v8, 0.0  ;;  %13130 = vst [vmem:[#allocation57_spill] sm:$0xff] %v11881_v32  ;;  %v11909_v26 = vpop.permute.xlu2 %6269  ;;  %v6189_v21 = vadd.f32 %v6173_v1, %v6148_v22 }
 0x694   : > { %13135 = vst [vmem:[#allocation94_spill] sm:$0xff] %v11895_v41  ;;  %v6360_v19 = vadd.f32 %v6342_v17, %v6313_v42 }
 0x695   : > { %v11818_v40 = vrot.slane %v6006_v56, 7  ;;  %v11820_v55 = vrot.slane %v6007_v14, 7  ;;  %v6800_v14 = vld [vmem:[%s13132_s3] sm:$0x3]  ;;  %s13221_s3 = sld [smem:[#allocation37_spill]] }
 0x696   : > { %v11930_v45 = vperm.slane %v6800_v14, 0  ;;  %v11950_v27 = vperm.slane %v6800_v14, 1 }
 0x697   : > { %v11826_v33 = vsel %vm4919_vm13, %v6042_v46, %v11818_v40  ;;  %v6049_v37 = vsel %vm4919_vm13, %v6044_v62, %v11820_v55 }
 0x698   : > { %6091 = vst.msk [vmem:[#allocation5 + $0x48] sm:$0xff] %vm3111_vm5, %v6049_v37  ;;  %v6534_v37 = vmul.f32 %v11877_v51, %v11800_v58  ;;  %v6152_v9 = vmul.f32 %v11857_v60, %v11826_v33  ;;  %v6317_v23 = vmul.f32 %v11871_v25, %v11826_v33  ;;  %v6538_v29 = vmul.f32 %v11877_v51, %v11826_v33 }
 0x699   : > { %13137 = vst [vmem:[#allocation48_spill] sm:$0xff] %v11930_v45  ;;  %v6175_v0 = vmul.f32 %v11859_v47, %v11826_v33  ;;  %v6610_v42 = vmul.f32 %v11895_v41, %v11826_v33 }
 0x69a   : > { %v6581_v48 = vadd.f32 %v6563_v11, %v6534_v37  ;;  %13138 = vst [vmem:[#allocation47_spill] sm:$0xff] %v11950_v27 }
 0x69b   : > { %v6191_v17 = vadd.f32 %v6175_v0, %v6150_v54  ;;  %v11965_v45 = vpop.permute.xlu2 %6254 }
 0x69c   : > { %13140 = vst [vmem:[#allocation51_spill] sm:$0xff] %v11965_v45 }
 0x69f   : > { %v11954_v58 = vld [vmem:[#allocation5 + $0x48] sm:$0xff] }
 0x6a0   : > { %13139 = vst [vmem:[#allocation95_spill] sm:$0xff] %v11954_v58  ;;  %v6153_v27 = vmul.f32 %v11881_v32, %v11954_v58  ;;  %v6539_v12 = vmul.f32 %v11889_v3, %v11954_v58 }
 0x6a3   : > { %v5961_v46 = vpop.f32.mrf.mxu3  ;;  %v5990_v62 = vpop.f32.mrf.mxu2 }
 0x6a4   : > { %v5962_v8 = vadd.f32 %v5961_v46, %v11786_v7  ;;  %v5991_v56 = vadd.f32 %v5990_v62, %v11788_v61  ;;  %v6214_v46 = vmul.f32 %v11861_v43, %v11826_v33  ;;  %v6344_v62 = vmul.f32 %v11873_v31, %v11826_v33 }
 0x6a6   : > { %v6008_v63 = vmax.f32 %v5962_v8, 0.0  ;;  %v6009_v13 = vmax.f32 %v5991_v56, 0.0  ;;  %v6403_v8 = vmul.f32 %v11893_v2, %v11826_v33  ;;  %v6565_v56 = vmul.f32 %v11879_v57, %v11826_v33 }
 0x6a7   : > { %v6230_v37 = vadd.f32 %v6214_v46, %v6189_v21 }
 0x6a8   : > { %v6050_v10 = vrot.slane %v6008_v63, 7  ;;  %v6052_v20 = vrot.slane %v6009_v13, 7 }
 0x6aa   : > { %v6051_v22 = vsel %vm4919_vm13, %v11818_v40, %v6050_v10  ;;  %v6053_v1 = vsel %vm4919_vm13, %v11820_v55, %v6052_v20 }
 0x6ab   : > { %v5963_v63 = vpop.f32.mrf.mxu3  ;;  %v5992_v13 = vpop.f32.mrf.mxu2  ;;  %v6154_v16 = vmul.f32 %v11857_v60, %v6051_v22  ;;  %v6177_v35 = vmul.f32 %v11859_v47, %v6051_v22  ;;  %6093 = vst.msk [vmem:[#allocation5 + $0x58] sm:$0xff] %vm3111_vm5, %v6053_v1  ;;  %v6319_v54 = vmul.f32 %v11871_v25, %v6051_v22  ;;  %v6346_v33 = vmul.f32 %v11873_v31, %v6051_v22 }
 0x6ac   : > { %v5964_v40 = vadd.f32 %v5963_v63, %v11786_v7  ;;  %v5993_v55 = vadd.f32 %v5992_v13, %v11788_v61  ;;  %v6540_v14 = vmul.f32 %v11877_v51, %v6051_v22  ;;  %v6567_v0 = vmul.f32 %v11879_v57, %v6051_v22 }
 0x6ad   : > { %v6193_v11 = vadd.f32 %v6177_v35, %v6152_v9  ;;  %v6364_v1 = vadd.f32 %v6346_v33, %v6317_v23  ;;  %v6318_v63 = vmul.f32 %v11885_v39, %v11954_v58  ;;  %v11972_v35 = vmul.f32 %v11965_v45, %v6230_v37 }
 0x6ae   : > { %v6010_v21 = vmax.f32 %v5964_v40, 0.0  ;;  %v6011_v46 = vmax.f32 %v5993_v55, 0.0  ;;  %v6585_v13 = vadd.f32 %v6567_v0, %v6538_v29  ;;  %v11974_v9 = vadd.f32 %v6403_v8, %v6360_v19 }
 0x6af   : > { %v6216_v40 = vmul.f32 %v11861_v43, %v6051_v22  ;;  %v6405_v23 = vmul.f32 %v11893_v2, %v6051_v22  ;;  %v6362_v55 = vadd.f32 %v6344_v62, %v6315_v50  ;;  %v6583_v29 = vadd.f32 %v6565_v56, %v6536_v5 }
 0x6b0   : > { %13141 = vst [vmem:[#allocation46_spill] sm:$0xff] %v11974_v9  ;;  %v11976_v24 = vrot.slane %v6010_v21, 7  ;;  %v11978_v30 = vrot.slane %v6011_v46, 7  ;;  %v6612_v0 = vmul.f32 %v11895_v41, %v6051_v22  ;;  %v6628_v21 = vadd.f32 %v6610_v42, %v6581_v48 }
 0x6b1   : > { %v6232_v8 = vadd.f32 %v6216_v40, %v6191_v17  ;;  %v11997_v5 = vadd.f32 %v6405_v23, %v6362_v55 }
 0x6b2   : > { %v6055_v37 = vsel %vm4919_vm13, %v6050_v10, %v11976_v24  ;;  %v6057_v19 = vsel %vm4919_vm13, %v6052_v20, %v11978_v30  ;;  %v11995_v62 = vld [vmem:[#allocation5 + $0x58] sm:$0xff] }
 0x6b3   : > { %v11989_v46 = vmul.f32 %v11857_v60, %v6055_v37  ;;  %v11992_v45 = vmul.f32 %v11871_v25, %v6055_v37  ;;  %v6179_v50 = vmul.f32 %v11859_v47, %v6055_v37  ;;  %13142 = vst [vmem:[#allocation68_spill] sm:$0xff] %v11995_v62  ;;  %v6218_v10 = vmul.f32 %v11861_v43, %v6055_v37 }
 0x6b4   : > { %6095 = vst.msk [vmem:[#allocation5 + $0x68] sm:$0xff] %vm3111_vm5, %v6057_v19  ;;  %v6348_v20 = vmul.f32 %v11873_v31, %v6055_v37  ;;  %v6407_v48 = vmul.f32 %v11893_v2, %v6055_v37  ;;  %v6569_v56 = vmul.f32 %v11879_v57, %v6055_v37  ;;  %v12005_v22 = vmul.f32 %v11877_v51, %v6055_v37 }
 0x6b5   : > { %v12007_v17 = vadd.f32 %v6179_v50, %v6154_v16  ;;  %v6614_v42 = vmul.f32 %v11895_v41, %v6055_v37  ;;  %v6178_v40 = vmul.f32 %v11883_v53, %v11995_v62  ;;  %v6234_v23 = vadd.f32 %v6218_v10, %v6193_v11  ;;  %v12031_v50 = vld [vmem:[#allocation5 + $0x28] sm:$0xff] }
 0x6b6   : > { %v12012_v55 = vadd.f32 %v6348_v20, %v6319_v54  ;;  %v12014_v19 = vadd.f32 %v6407_v48, %v6364_v1  ;;  %v6155_v33 = vmul.f32 %v11881_v32, %v11995_v62  ;;  %v12018_v6 = vadd.f32 %v6569_v56, %v6540_v14  ;;  %13145 = vst [vmem:[#allocation76_spill] sm:$0xff] %v12031_v50  ;;  %v12033_v14 = vpop.permute.xlu0 %6259 }
 0x6b7   : > { %v6632_v58 = vadd.f32 %v6614_v42, %v6585_v13  ;;  %v6194_v59 = vadd.f32 %v6178_v40, %v6153_v27  ;;  %v6347_v16 = vmul.f32 %v11887_v18, %v11995_v62  ;;  %v12023_v37 = vmul.f32 %v11893_v2, %v6390_v36  ;;  %13146 = vst [vmem:[#allocation88_spill] sm:$0xff] %v12033_v14  ;;  %v12047_v40 = vld [vmem:[#allocation5 + $0x38] sm:$0xff] }
 0x6b8   : > { %v12026_v11 = vmul.f32 %v11807_v44, %v6234_v23  ;;  %v6320_v1 = vmul.f32 %v11885_v39, %v11995_v62  ;;  %v6541_v36 = vmul.f32 %v11889_v3, %v11995_v62  ;;  %v6568_v10 = vmul.f32 %v11891_v4, %v11995_v62  ;;  %13148 = vst [vmem:[#allocation90_spill] sm:$0xff] %v12047_v40 }
 0x6b9   : > { %13143 = vst [vmem:[#allocation69_spill] sm:$0xff] %v12023_v37  ;;  %v12036_v27 = vmul.f32 %v11848_v28, %v6632_v58  ;;  %v6365_v13 = vadd.f32 %v6347_v16, %v6318_v63  ;;  %v6288_v20 = vmul.f32 %v12033_v14, %v6232_v8  ;;  %v6463_v48 = vrot.slane %v11997_v5, 1 }
 0x6ba   : > { %13144 = vst [vmem:[#allocation72_spill] sm:$0xff] %v12026_v11  ;;  %v6630_v56 = vadd.f32 %v6612_v0, %v6583_v29  ;;  %v12045_v42 = vmul.f32 %v11869_v15, %v6628_v21  ;;  %v6586_v63 = vadd.f32 %v6568_v10, %v6539_v12  ;;  %v12052_v16 = vmul.f32 %v11881_v32, %v12031_v50  ;;  %v6597_v15 = vld [vmem:[#allocation5 + $0xa0] sm:$0x3] }
 0x6bb   : > { %13147 = vst [vmem:[#allocation80_spill] sm:$0xff] %v12036_v27  ;;  %v6135_v23 = vld [vmem:[#allocation5 + $0x68] sm:$0xff]  ;;  %v12056_v54 = vmul.f32 %v11881_v32, %v12047_v40  ;;  %v5966_v8 = vpop.f32.mrf.mxu3  ;;  %v5995_v5 = vpop.f32.mrf.mxu2  ;;  %v12067_v12 = vmul.f32 %v11883_v53, %v12047_v40  ;;  %v12074_v62 = vmul.f32 %v11895_v41, %v6597_v15  ;;  %v13155_v40 = vrot.slane %v11974_v9, 1 }
 0x6bc   : > { %13149 = vst [vmem:[#allocation67_spill] sm:$0xff] %v12052_v16  ;;  %v12059_v29 = vmul.f32 %v11881_v32, %v6135_v23  ;;  %v12062_v0 = vmul.f32 %v11885_v39, %v6135_v23  ;;  %v6180_v21 = vmul.f32 %v11883_v53, %v6135_v23  ;;  %v5967_v10 = vadd.f32 %v5966_v8, %v11786_v7 }
 0x6bd   : > { %13150 = vst [vmem:[#allocation73_spill] sm:$0xff] %v12056_v54  ;;  %v5996_v58 = vadd.f32 %v5995_v5, %v11788_v61  ;;  %v6219_v14 = vmul.f32 %v11897_v49, %v6135_v23  ;;  %v6349_v50 = vmul.f32 %v11887_v18, %v6135_v23  ;;  %v12077_v54 = vmul.f32 %v11889_v3, %v6135_v23 }
 0x6be   : > { %13151 = vst [vmem:[#allocation82_spill] sm:$0xff] %v12062_v0  ;;  %v6408_v16 = vmul.f32 %v11899_v34, %v6135_v23  ;;  %v6012_v8 = vmax.f32 %v5967_v10, 0.0  ;;  %v12083_v5 = vadd.f32 %v6180_v21, %v6155_v33  ;;  %v6570_v11 = vmul.f32 %v11891_v4, %v6135_v23  ;;  %v6391_v10 = vld [vmem:[#allocation5 + $0xa8] sm:$0x1] }
 0x6bf   : > { %13152 = vst [vmem:[#allocation71_spill] sm:$0xff] %v12067_v12  ;;  %v6464_v12 = vsel %vm5339_vm14, %v13155_v40, %v6463_v48  ;;  %v6013_v27 = vmax.f32 %v5996_v58, 0.0  ;;  %v6235_v37 = vadd.f32 %v6219_v14, %v6194_v59  ;;  %v12085_v49 = vadd.f32 %v6349_v50, %v6320_v1 }
 0x6c0   : > { %13153 = vst [vmem:[#allocation77_spill] sm:$0xff] %v12074_v62  ;;  %v6615_v15 = vmul.f32 %v11901_v52, %v6135_v23  ;;  %v13156_v62 = vrot.slane %v12014_v19, 1  ;;  %v6058_v0 = vrot.slane %v6012_v8, 7  ;;  %v12092_v9 = vadd.f32 %v6408_v16, %v6365_v13 }
 0x6c1   : > { %13154 = vst [vmem:[#allocation66_spill] sm:$0xff] %v12077_v54  ;;  %v6060_v3 = vrot.slane %v6013_v27, 7  ;;  %v12095_v40 = vadd.f32 %v6464_v12, %v11972_v35  ;;  %v12098_v33 = vmul.f32 %v11807_v44, %v6235_v37  ;;  %v12100_v59 = vadd.f32 %v6570_v11, %v6541_v36 }
 0x6c2   : > { %v6468_v54 = vsel %vm5339_vm14, %v6463_v48, %v13156_v62  ;;  %13157 = vst [vmem:[#allocation70_spill] sm:$0xff] %v12092_v9  ;;  %v6633_v1 = vadd.f32 %v6615_v15, %v6586_v63  ;;  %v6059_v14 = vsel %vm4919_vm13, %v11976_v24, %v6058_v0  ;;  %v12110_v13 = vmul.f32 %v11864_v38, %v6630_v56 }
 0x6c3   : > { %13158 = vst [vmem:[#allocation96_spill] sm:$0xff] %v12098_v33  ;;  %v12102_v50 = vadd.f32 %v6468_v54, %v6288_v20  ;;  %v6061_v62 = vsel %vm4919_vm13, %v11978_v30, %v6060_v3  ;;  %v5968_v35 = vpop.f32.mrf.mxu3  ;;  %v5997_v48 = vpop.f32.mrf.mxu2  ;;  %v6158_v44 = vmul.f32 %v11857_v60, %v6059_v14  ;;  %v6181_v37 = vmul.f32 %v11859_v47, %v6059_v14 }
 0x6c4   : > { %v6350_v11 = vmul.f32 %v11873_v31, %v6059_v14  ;;  %6097 = vst.msk [vmem:[#allocation5 + $0x78] sm:$0xff] %vm3111_vm5, %v6061_v62  ;;  %v5969_v24 = vadd.f32 %v5968_v35, %v11786_v7  ;;  %v5998_v30 = vadd.f32 %v5997_v48, %v11788_v61  ;;  %v6323_v36 = vmul.f32 %v11871_v25, %v6059_v14  ;;  %v6598_v7 = vld [vmem:[#allocation5 + $0xa8] sm:$0x3] }
 0x6c5   : > { %13159 = vst [vmem:[#allocation83_spill] sm:$0xff] %v12102_v50  ;;  %v6571_v20 = vmul.f32 %v11879_v57, %v6059_v14  ;;  %v6197_v56 = vadd.f32 %v6181_v37, %v11989_v46  ;;  %v6544_v23 = vmul.f32 %v11877_v51, %v6059_v14  ;;  %v6220_v58 = vmul.f32 %v11861_v43, %v6059_v14 }
 0x6c6   : > { %v6409_v63 = vmul.f32 %v11893_v2, %v6059_v14  ;;  %v6014_v16 = vmax.f32 %v5969_v24, 0.0  ;;  %v6015_v21 = vmax.f32 %v5998_v30, 0.0  ;;  %v6368_v12 = vadd.f32 %v6350_v11, %v11992_v45  ;;  %v13161_v30 = vld [vmem:[#allocation61_spill] sm:$0xff]  ;;  %v13164_v11 = vld [vmem:[#allocation86_spill] sm:$0xff] }
 0x6c7   : > { %v6616_v61 = vmul.f32 %v11895_v41, %v6059_v14  ;;  %v6589_v8 = vadd.f32 %v6571_v20, %v12005_v22  ;;  %v12129_v15 = vmul.f32 %v11899_v34, %v6391_v10  ;;  %v6236_v46 = vadd.f32 %v6220_v58, %v12007_v17 }
 0x6c8   : > { %v6427_v62 = vadd.f32 %v6409_v63, %v12012_v55  ;;  %v6062_v35 = vrot.slane %v6014_v16, 7  ;;  %v6064_v48 = vrot.slane %v6015_v21, 7  ;;  %v12135_v24 = vmul.f32 %v11848_v28, %v6633_v1 }
 0x6c9   : > { %v6634_v37 = vadd.f32 %v6616_v61, %v12018_v6  ;;  %v12138_v45 = vmul.f32 %v11901_v52, %v6598_v7  ;;  %v12141_v14 = vmul.f32 %v11909_v26, %v6236_v46  ;;  %v13162_v6 = vld [vmem:[#allocation95_spill] sm:$0xff] }
 0x6ca   : > { %13160 = vst [vmem:[#allocation79_spill] sm:$0xff] %v12135_v24  ;;  %v6471_v22 = vrot.slane %v6427_v62, 1  ;;  %v6063_v17 = vsel %vm4919_vm13, %v6058_v0, %v6062_v35  ;;  %v6065_v55 = vsel %vm4919_vm13, %v6060_v3, %v6064_v48  ;;  %v12151_v28 = vmul.f32 %v11883_v53, %v13162_v6  ;;  %v13171_v24 = vld [vmem:[#allocation65_spill] sm:$0xff] }
 0x6cb   : > { %6100 = vst [vmem:[#allocation5 + $0x90] sm:$0x1] %v6062_v35  ;;  %v12147_v20 = vmul.f32 %v13161_v30, %v6634_v37  ;;  %v6183_v1 = vmul.f32 %v11859_v47, %v6063_v17  ;;  %v6222_v58 = vmul.f32 %v11861_v43, %v6063_v17  ;;  %v6352_v63 = vmul.f32 %v11873_v31, %v6063_v17  ;;  %v12157_v0 = vld [vmem:[#allocation5 + $0x78] sm:$0xff] }
 0x6cc   : > { %13163 = vst [vmem:[#allocation97_spill] sm:$0xff] %v12151_v28  ;;  %v6411_v16 = vmul.f32 %v11893_v2, %v6063_v17  ;;  %v6573_v3 = vmul.f32 %v11879_v57, %v6063_v17  ;;  %v6618_v21 = vmul.f32 %v11895_v41, %v6063_v17  ;;  %v6182_v10 = vmul.f32 %v11883_v53, %v12157_v0 }
 0x6cd   : > { %6098 = vst [vmem:[#allocation5 + $0x80] sm:$0xff] %v6063_v17  ;;  %v6199_v61 = vadd.f32 %v6183_v1, %v6158_v44  ;;  %v6238_v46 = vadd.f32 %v6222_v58, %v6197_v56  ;;  %v6159_v35 = vmul.f32 %v11881_v32, %v12157_v0  ;;  %v6370_v37 = vadd.f32 %v6352_v63, %v6323_v36  ;;  %v13165_v44 = vld [vmem:[#allocation89_spill] sm:$0xff] }
 0x6ce   : > { %6099 = vst.msk [vmem:[#allocation5 + $0x88] sm:$0xff] %vm3111_vm5, %v6065_v55  ;;  %v6429_v62 = vadd.f32 %v6411_v16, %v6368_v12  ;;  %v6591_v27 = vadd.f32 %v6573_v3, %v6544_v23  ;;  %v6636_v55 = vadd.f32 %v6618_v21, %v6589_v8  ;;  %v6198_v54 = vadd.f32 %v6182_v10, %v12059_v29  ;;  %v13166_v12 = vld [vmem:[#allocation50_spill] sm:$0xff]  ;;  %v13169_v10 = vld [vmem:[#allocation72_spill] sm:$0xff] }
 0x6cf   : > { %6101 = vst.msk [vmem:[#allocation5 + $0x98] sm:$0x1] %vm4901_vm11, %v6064_v48  ;;  %v6294_v17 = vmul.f32 %v13164_v11, %v6238_v46  ;;  %v6324_v47 = vmul.f32 %v11885_v39, %v12157_v0  ;;  %v6351_v48 = vmul.f32 %v11887_v18, %v12157_v0  ;;  %v12179_v1 = vmul.f32 %v13166_v12, %v12157_v0  ;;  %v13168_v16 = vld [vmem:[#allocation82_spill] sm:$0xff] }
 0x6d0   : > { %v6475_v38 = vrot.slane %v6429_v62, 1  ;;  %v12175_v56 = vmul.f32 %v13165_v44, %v6636_v55  ;;  %v12183_v36 = vmul.f32 %v11891_v4, %v12157_v0  ;;  %v13167_v29 = vrot.slane %v12014_v19, 1 }
 0x6d1   : > { %v6369_v3 = vadd.f32 %v6351_v48, %v13168_v16 }
 0x6d2   : > { %v6472_v23 = vsel %vm5339_vm14, %v13167_v29, %v6471_v22  ;;  %v6201_v8 = vld [vmem:[#allocation5 + $0x90] sm:$0xff]  ;;  %v12190_v21 = vsel %vm5339_vm14, %v6471_v22, %v6475_v38 }
 0x6d3   : > { %v6329_v58 = vld [vmem:[#allocation5 + $0x90] sm:$0x1]  ;;  %v12193_v46 = vadd.f32 %v6472_v23, %v13169_v10  ;;  %v6224_v55 = vmul.f32 %v11861_v43, %v6201_v8  ;;  %v6413_v29 = vmul.f32 %v11893_v2, %v6201_v8  ;;  %v6620_v16 = vmul.f32 %v11895_v41, %v6201_v8  ;;  %v13170_v10 = vld [vmem:[#allocation56_spill] sm:$0xff] }
 0x6d4   : > { %v6550_v63 = vld [vmem:[#allocation5 + $0x90] sm:$0x3]  ;;  %v6300_v7 = vld [vmem:[#allocation5 + $0x80] sm:$0x1]  ;;  %v6354_v19 = vmul.f32 %v11873_v31, %v6329_v58  ;;  %v12205_v62 = vmul.f32 %v13170_v10, %v12157_v0 }
 0x6d5   : > { %v6521_v32 = vld [vmem:[#allocation5 + $0x80] sm:$0x3]  ;;  %v6575_v60 = vmul.f32 %v11879_v57, %v6550_v63  ;;  %v6325_v48 = vmul.f32 %v11871_v25, %v6300_v7  ;;  %v6161_v23 = vld [vmem:[#allocation5 + $0x88] sm:$0xff]  ;;  %v6240_v43 = vadd.f32 %v6224_v55, %v6199_v61  ;;  %v6431_v28 = vadd.f32 %v6413_v29, %v6370_v37 }
 0x6d6   : > { %v6546_v22 = vmul.f32 %v11877_v51, %v6521_v32  ;;  %v6184_v58 = vmul.f32 %v11883_v53, %v6161_v23  ;;  %v6202_v31 = vld [vmem:[#allocation5 + $0x98] sm:$0xff]  ;;  %v6223_v2 = vmul.f32 %v13170_v10, %v6161_v23  ;;  %v6638_v57 = vadd.f32 %v6620_v16, %v6591_v27  ;;  %v6301_v32 = vld [vmem:[#allocation5 + $0x88] sm:$0x1] }
 0x6d7   : > { %v6372_v6 = vadd.f32 %v6354_v19, %v6325_v48  ;;  %v6756_v7 = vrot.slane %v12175_v56, 2  ;;  %v6479_v51 = vrot.slane %v6431_v28, 1  ;;  %v6225_v41 = vmul.f32 %v13170_v10, %v6202_v31  ;;  %v13172_v61 = vld [vmem:[#allocation69_spill] sm:$0xff]  ;;  %v13174_v53 = vld [vmem:[#allocation63_spill] sm:$0xff] }
 0x6d8   : > { %v6593_v63 = vadd.f32 %v6575_v60, %v6546_v22  ;;  %v6200_v8 = vadd.f32 %v6184_v58, %v6159_v35  ;;  %v6239_v25 = vadd.f32 %v6223_v2, %v6198_v54  ;;  %v6296_v33 = vmul.f32 %v13171_v24, %v6240_v43  ;;  %v13173_v55 = vld [vmem:[#allocation77_spill] sm:$0xff]  ;;  %v6330_v50 = vld [vmem:[#allocation5 + $0x98] sm:$0x1] }
 0x6d9   : > { %v6433_v37 = vadd.f32 %v13172_v61, %v6372_v6  ;;  %v6712_v9 = vmul.f32 %v13174_v53, %v6638_v57  ;;  %v6480_v60 = vsel %vm5339_vm14, %v6475_v38, %v6479_v51  ;;  %v6326_v19 = vmul.f32 %v11885_v39, %v6301_v32  ;;  %v13175_v22 = vld [vmem:[#allocation85_spill] sm:$0xff] }
 0x6da   : > { %v6640_v29 = vadd.f32 %v13173_v55, %v6593_v63  ;;  %v6241_v27 = vadd.f32 %v6225_v41, %v6200_v8  ;;  %v6353_v28 = vmul.f32 %v11887_v18, %v6161_v23  ;;  %v6515_v48 = vadd.f32 %v6480_v60, %v6294_v17  ;;  %v6522_v58 = vld [vmem:[#allocation5 + $0x88] sm:$0x3]  ;;  %v13176_v55 = vld [vmem:[#allocation48_spill] sm:$0xff] }
 0x6db   : > { %v6483_v35 = vrot.slane %v6433_v37, 1  ;;  %v6760_v54 = vrot.slane %v6712_v9, 2  ;;  %v6295_v43 = vmul.f32 %v13164_v11, %v6239_v25  ;;  %v6355_v6 = vmul.f32 %v11887_v18, %v6330_v50  ;;  %v6551_v25 = vld [vmem:[#allocation5 + $0x98] sm:$0x3] }
 0x6dc   : > { %v6714_v2 = vmul.f32 %v13175_v22, %v6640_v29  ;;  %v6371_v16 = vadd.f32 %v6353_v28, %v6324_v47  ;;  %v6412_v57 = vmul.f32 %v11899_v34, %v6161_v23  ;;  %v6414_v17 = vmul.f32 %v11899_v34, %v6202_v31 }
 0x6dd   : > { %v6484_v38 = vsel %vm5339_vm14, %v6479_v51, %v6483_v35  ;;  %v6761_v41 = vsel %vm1531_vm1, %v6756_v7, %v6760_v54  ;;  %v6373_v9 = vadd.f32 %v6355_v6, %v6326_v19  ;;  %v6547_v11 = vmul.f32 %v13166_v12, %v6522_v58 }
 0x6de   : > { %v6764_v63 = vrot.slane %v6714_v2, 2  ;;  %v6517_v32 = vadd.f32 %v6484_v38, %v6296_v33  ;;  %v6796_v8 = vadd.f32 %v6761_v41, %v6515_v48  ;;  %v12227_v61 = vadd.f32 %v6412_v57, %v6369_v3 }
 0x6df   : > { %v6432_v50 = vadd.f32 %v6414_v17, %v6371_v16  ;;  %v6574_v51 = vmul.f32 %v11891_v4, %v6161_v23  ;;  %v6297_v60 = vmul.f32 %v13171_v24, %v6241_v27  ;;  %v6434_v28 = vadd.f32 %v12129_v15, %v6373_v9 }
 0x6e0   : > { %v6765_v47 = vsel %vm1531_vm1, %v6760_v54, %v6764_v63  ;;  %v6818_v29 = vadd.f32 %v13176_v55, %v6796_v8  ;;  %v6477_v33 = vrot.slane %v12227_v61, 1  ;;  %v6576_v3 = vmul.f32 %v11891_v4, %v6551_v25  ;;  %v13177_v54 = vld [vmem:[#allocation66_spill] sm:$0xff] }
 0x6e1   : > { %v6798_v37 = vadd.f32 %v6765_v47, %v6517_v32  ;;  %v6481_v19 = vrot.slane %v6432_v50, 1  ;;  %v6592_v35 = vadd.f32 %v6574_v51, %v12179_v1  ;;  %v6485_v2 = vrot.slane %v6434_v28, 1 }
 0x6e2   : > { %v6590_v6 = vadd.f32 %v12183_v36, %v13177_v54  ;;  %v6619_v16 = vmul.f32 %v11901_v52, %v6161_v23  ;;  %v6594_v24 = vadd.f32 %v6576_v3, %v6547_v11  ;;  %v6621_v15 = vmul.f32 %v11901_v52, %v6202_v31  ;;  %v13179_v23 = vld [vmem:[#allocation80_spill] sm:$0xff] }
 0x6e3   : > { %v6820_v48 = vadd.f32 %v13176_v55, %v6798_v37  ;;  %v6482_v57 = vsel %vm5339_vm14, %v6477_v33, %v6481_v19  ;;  %v6513_v27 = vadd.f32 %v12190_v21, %v12141_v14  ;;  %v6834_v58 = vmax.f32 %v6818_v29, 0.0 }
 0x6e4   : > { %v6486_v1 = vsel %vm5339_vm14, %v6481_v19, %v6485_v2  ;;  %v6637_v41 = vadd.f32 %v6619_v16, %v6590_v6  ;;  %v6516_v63 = vadd.f32 %v6482_v57, %v6295_v43  ;;  %v6639_v17 = vadd.f32 %v6621_v15, %v6592_v35 }
 0x6e5   : > { %v6836_v38 = vmax.f32 %v6820_v48, 0.0  ;;  %v6641_v32 = vadd.f32 %v12138_v45, %v6594_v24  ;;  %v13178_v36 = vrot.slane %v12147_v20, 2  ;;  %v13180_v8 = vrot.slane %v13179_v23, 2  ;;  %v13186_v24 = vld [vmem:[#allocation83_spill] sm:$0xff] }
 0x6e6   : > { %v6711_v31 = vmul.f32 %v13165_v44, %v6637_v41  ;;  %v6518_v25 = vadd.f32 %v6486_v1, %v6297_v60  ;;  %v6713_v45 = vmul.f32 %v13174_v53, %v6639_v17  ;;  %v6237_v44 = vadd.f32 %v12205_v62, %v12083_v5  ;;  %v13188_v1 = vld [vmem:[#allocation70_spill] sm:$0xff]  ;;  %v13190_v17 = vld [vmem:[#allocation96_spill] sm:$0xff] }
 0x6e7   : > { %v6753_v9 = vsel %vm1531_vm1, %v13180_v8, %v13178_v36  ;;  %v6844_v61 = vpack.c.bf16 %v6836_v38, %v6834_v58  ;;  %v13181_v14 = vmov %v13178_v36  ;;  %v6715_v47 = vmul.f32 %v13175_v22, %v6641_v32 }
 0x6e8   : > { %v6757_v21 = vsel %vm1531_vm1, %v13181_v14, %v6756_v7  ;;  %v6792_v43 = vadd.f32 %v6753_v9, %v12193_v46  ;;  %v6410_v56 = vmul.f32 %v11899_v34, %v12157_v0  ;;  %v6617_v20 = vmul.f32 %v11901_v52, %v12157_v0  ;;  %v13191_v9 = vld [vmem:[#allocation67_spill] sm:$0xff] }
 0x6e9   : > { %v6794_v50 = vadd.f32 %v6757_v21, %v6513_v27  ;;  %6861 = vmatpush.bf16.msra.mxu0 %v6844_v61  ;;  %v6758_v7 = vrot.slane %v6711_v31, 2  ;;  %v6762_v46 = vrot.slane %v6713_v45, 2  ;;  %v6766_v51 = vrot.slane %v6715_v47, 2  ;;  %v13187_v27 = vld [vmem:[#allocation47_spill] sm:$0xff] }
 0x6ea   : > { %v6814_v11 = vadd.f32 %v13176_v55, %v6792_v43  ;;  %v6428_v22 = vadd.f32 %v6410_v56, %v12085_v49  ;;  %v6635_v29 = vadd.f32 %v6617_v20, %v12100_v59  ;;  %v13182_v60 = vrot.slane %v12110_v13, 2  ;;  %v13192_v61 = vld [vmem:[#allocation71_spill] sm:$0xff]  ;;  %v13196_v20 = vld [vmem:[#allocation73_spill] sm:$0xff] }
 0x6eb   : > { %v6816_v53 = vadd.f32 %v13176_v55, %v6794_v50  ;;  %v13183_v5 = vrot.slane %v12045_v42, 2  ;;  %v6763_v28 = vsel %vm1531_vm1, %v6758_v7, %v6762_v46  ;;  %v6767_v0 = vsel %vm1531_vm1, %v6762_v46, %v6766_v51  ;;  %v13193_v14 = vld [vmem:[#allocation79_spill] sm:$0xff]  ;;  %v13197_v46 = vld [vmem:[#allocation97_spill] sm:$0xff] }
 0x6ec   : > { %v6830_v37 = vmax.f32 %v6814_v11, 0.0  ;;  %v13184_v3 = vmov %v13180_v8  ;;  %v13185_v35 = vmov %v13182_v60  ;;  %v6797_v49 = vadd.f32 %v6763_v28, %v6516_v63  ;;  %v13195_v45 = vld [vmem:[#allocation95_spill] sm:$0xff]  ;;  %v13200_v28 = vld [vmem:[#allocation90_spill] sm:$0xff] }
 0x6ed   : > { %v6745_v62 = vsel %vm1531_vm1, %v13183_v5, %v13182_v60  ;;  %v6832_v19 = vmax.f32 %v6816_v53, 0.0  ;;  %v6749_v48 = vsel %vm1531_vm1, %v13185_v35, %v13184_v3  ;;  %v6799_v2 = vadd.f32 %v6767_v0, %v6518_v25  ;;  %v13198_v53 = vld [vmem:[#allocation68_spill] sm:$0xff] }
 0x6ee   : > { %v6473_v59 = vrot.slane %v6428_v22, 1  ;;  %v6709_v54 = vmul.f32 %v13161_v30, %v6635_v29  ;;  %v6293_v16 = vmul.f32 %v11909_v26, %v6237_v44  ;;  %v6788_v57 = vadd.f32 %v6745_v62, %v12095_v40  ;;  %v13199_v29 = vld [vmem:[#allocation76_spill] sm:$0xff] }
 0x6ef   : > { %v6842_v6 = vpack.c.bf16 %v6832_v19, %v6830_v37  ;;  %v6790_v15 = vadd.f32 %v6749_v48, %v13186_v24  ;;  %v6819_v58 = vadd.f32 %v13187_v27, %v6797_v49  ;;  %v6821_v38 = vadd.f32 %v13187_v27, %v6799_v2 }
 0x6f0   : > { %v13189_v13 = vrot.slane %v13188_v1, 1  ;;  %v6478_v63 = vsel %vm5339_vm14, %v6473_v59, %v6477_v33  ;;  %v6754_v36 = vrot.slane %v6709_v54, 2  ;;  %v6810_v26 = vadd.f32 %v13176_v55, %v6788_v57 }
 0x6f1   : > { %6862 = vmatpush.bf16.msra.mxu0 %v6842_v6  ;;  %v6514_v32 = vadd.f32 %v6478_v63, %v6293_v16  ;;  %v6835_v40 = vmax.f32 %v6819_v58, 0.0  ;;  %v6837_v23 = vmax.f32 %v6821_v38, 0.0  ;;  %v6812_v8 = vadd.f32 %v13176_v55, %v6790_v15  ;;  %v13201_v6 = vld [vmem:[#allocation51_spill] sm:$0xff]  ;;  %v6124_v58 = vld [vmem:[#allocation5 + $0x10] sm:$0xff] }
 0x6f2   : > { %v6474_v41 = vsel %vm5339_vm14, %v13189_v13, %v6473_v59  ;;  %v6190_v31 = vadd.f32 %v13192_v61, %v13191_v9  ;;  %v13194_v21 = vrot.slane %v13193_v14, 2  ;;  %v6759_v33 = vsel %vm1531_vm1, %v6754_v36, %v6758_v7 }
 0x6f3   : > { %v6512_v30 = vadd.f32 %v6474_v41, %v13190_v17  ;;  %v6826_v25 = vmax.f32 %v6810_v26, 0.0  ;;  %v6215_v47 = vmul.f32 %v13170_v10, %v13195_v45  ;;  %v6845_v50 = vpack.c.bf16 %v6837_v23, %v6835_v40  ;;  %v13202_v26 = vld [vmem:[#allocation93_spill] sm:$0xff]  ;;  %v13203_v23 = vld [vmem:[#allocation88_spill] sm:$0xff] }
 0x6f4   : > { %v6755_v43 = vsel %vm1531_vm1, %v13194_v21, %v6754_v36  ;;  %v6795_v44 = vadd.f32 %v6759_v33, %v6514_v32  ;;  %v6828_v56 = vmax.f32 %v6812_v8, 0.0  ;;  %v6192_v51 = vadd.f32 %v13197_v46, %v13196_v20  ;;  %v12338_v36 = vld [vmem:[#allocation4] sm:$0xff]  ;;  %v6298_v21 = vld [vmem:[#allocation5] sm:$0xfe] }
 0x6f5   : > { %v6793_v11 = vadd.f32 %v6755_v43, %v6512_v30  ;;  %v6217_v37 = vmul.f32 %v13170_v10, %v13198_v53  ;;  %v6231_v22 = vadd.f32 %v6215_v47, %v6190_v31  ;;  %v6314_v60 = vmul.f32 %v11885_v39, %v13199_v29  ;;  %6875 = vmatpush.bf16.msra.mxu1 %v6845_v50  ;;  %v13205_v47 = vld [vmem:[#allocation55_spill] sm:$0xff]  ;;  %v13207_v46 = vld [vmem:[#allocation62_spill] sm:$0xff] }
 0x6f6   : > { %v6817_v5 = vadd.f32 %v13187_v27, %v6795_v44  ;;  %v6840_v62 = vpack.c.bf16 %v6828_v56, %v6826_v25  ;;  %v6343_v0 = vmul.f32 %v11887_v18, %v13200_v28  ;;  %v6316_v3 = vmul.f32 %v11885_v39, %v13200_v28  ;;  %v13204_v25 = vld [vmem:[#allocation53_spill] sm:$0xff]  ;;  %v13206_v56 = vld [vmem:[#allocation58_spill] sm:$0xff]  ;;  %7093 = vst.msk [vmem:[#allocation6 + $0x28] sm:$0xe0] %vm7086_vm4, %v12338_v36 }
 0x6f7   : > { %v6815_v7 = vadd.f32 %v13187_v27, %v6793_v11  ;;  %v6233_v19 = vadd.f32 %v6217_v37, %v6192_v51  ;;  %v6345_v35 = vmul.f32 %v11887_v18, %v13195_v45  ;;  %v6404_v48 = vmul.f32 %v11899_v34, %v13195_v45 }
 0x6f8   : > { %v6833_v2 = vmax.f32 %v6817_v5, 0.0  ;;  %6863 = vmatpush.bf16.msra.mxu0 %v6840_v62  ;;  %v6361_v59 = vadd.f32 %v6343_v0, %v6314_v60  ;;  %v6406_v54 = vmul.f32 %v11899_v34, %v13198_v53  ;;  %v6287_v16 = vmul.f32 %v13201_v6, %v6231_v22  ;;  %v13209_v5 = vld [vmem:[#allocation60_spill] sm:$0xff] }
 0x6f9   : > { %v6831_v49 = vmax.f32 %v6815_v7, 0.0  ;;  %v6363_v57 = vadd.f32 %v6345_v35, %v6316_v3  ;;  %v6535_v24 = vmul.f32 %v13166_v12, %v13199_v29  ;;  %v6537_v15 = vmul.f32 %v13166_v12, %v13200_v28  ;;  %v6374_v0 = vld [vmem:[#allocation5 + $0x20] sm:$0xfe]  ;;  %v13212_v35 = vld [vmem:[#allocation87_spill] sm:$0xff] }
 0x6fa   : > { %v12328_v13 = vadd.f32 %v6404_v48, %v6361_v59  ;;  %v6564_v41 = vmul.f32 %v11891_v4, %v13200_v28  ;;  %v6566_v63 = vmul.f32 %v11891_v4, %v13195_v45  ;;  %v6611_v30 = vmul.f32 %v11901_v52, %v13195_v45  ;;  %v13214_v59 = vld [vmem:[#allocation84_spill] sm:$0xff] }
 0x6fb   : > { %v6843_v38 = vpack.c.bf16 %v6833_v2, %v6831_v49  ;;  %v6424_v17 = vadd.f32 %v6406_v54, %v6363_v57  ;;  %v6613_v32 = vmul.f32 %v11901_v52, %v13198_v53  ;;  %v6144_v40 = vmul.f32 %v12338_v36, %v13202_v26  ;;  %v6327_v53 = vld [vmem:[#allocation5 + $0x10] sm:$0xfe]  ;;  %v13213_v49 = vld [vmem:[#allocation92_spill] sm:$0xff] }
 0x6fc   : > { %v6289_v8 = vmul.f32 %v13203_v23, %v6233_v19  ;;  %v6582_v9 = vadd.f32 %v6564_v41, %v6535_v24  ;;  %v6584_v61 = vadd.f32 %v6566_v63, %v6537_v15  ;;  %v6146_v31 = vmul.f32 %v13202_v26, %v6124_v58  ;;  %v13210_v19 = vld [vmem:[#allocation91_spill] sm:$0xff]  ;;  %v13215_v15 = vld [vmem:[#allocation54_spill] sm:$0xff]  ;;  %v6519_v41 = vld [vmem:[#allocation5] sm:$0xfc] }
 0x6fd   : > { %6876 = vmatpush.bf16.msra.mxu1 %v6843_v38  ;;  %v6461_v43 = vrot.slane %v12328_v13, 1  ;;  %v6465_v33 = vrot.slane %v6424_v17, 1  ;;  %v6169_v45 = vmul.f32 %v13204_v25, %v6124_v58  ;;  %v6171_v50 = vmul.f32 %v13204_v25, %v13205_v47 }
 0x6fe   : > { %v6629_v11 = vadd.f32 %v6611_v30, %v6582_v9  ;;  %v6631_v44 = vadd.f32 %v6613_v32, %v6584_v61  ;;  %v6210_v20 = vmul.f32 %v13206_v56, %v13205_v47  ;;  %v6212_v51 = vmul.f32 %v13206_v56, %v13207_v46  ;;  %v13216_v32 = vld [vmem:[#allocation49_spill] sm:$0xff]  ;;  %v6595_v61 = vld [vmem:[#allocation5 + $0x20] sm:$0xfc] }
 0x6ff   : > { %v6466_v37 = vsel %vm5339_vm14, %v6461_v43, %v6465_v33  ;;  %v13208_v22 = vrot.slane %v13188_v1, 1  ;;  %v6185_v7 = vadd.f32 %v6169_v45, %v6144_v40  ;;  %v6309_v62 = vmul.f32 %v13209_v5, %v6298_v21  ;;  %v13218_v45 = vld [vmem:[#allocation52_spill] sm:$0xff] }
 0x700   : > { %v13211_v3 = vrot.slane %v13210_v19, 6  ;;  %v12366_v2 = vmul.f32 %v13213_v49, %v6629_v11  ;;  %v6705_v54 = vmul.f32 %v13214_v59, %v6631_v44  ;;  %v6187_v6 = vadd.f32 %v6171_v50, %v6146_v31 }
 0x701   : > { %v6470_v60 = vsel %vm5339_vm14, %v6465_v33, %v13208_v22  ;;  %v6508_v57 = vadd.f32 %v6466_v37, %v6287_v16  ;;  %v6311_v24 = vmul.f32 %v13209_v5, %v6124_v58  ;;  %v6338_v38 = vmul.f32 %v13215_v15, %v6327_v53  ;;  %v8414_v37 = vld [vmem:[#allocation5 + $0x20] sm:$0xff]  ;;  %v6125_v5 = vld [vmem:[#allocation5 + $0x18] sm:$0xff] }
 0x702   : > { %v12363_v48 = vsel %vm5561_vm12, %v13212_v35, %v13211_v3  ;;  %v6510_v1 = vadd.f32 %v6470_v60, %v6289_v8  ;;  %v6742_v63 = vrot.slane %v12366_v2, 2  ;;  %v6746_v17 = vrot.slane %v6705_v54, 2  ;;  %v6548_v8 = vld [vmem:[#allocation5 + $0x10] sm:$0xfc]  ;;  %v8229_v2 = vld [vmem:[%s13221_s3 + $0x8] sm:$0xff] }
 0x703   : > { %v6340_v30 = vmul.f32 %v13215_v15, %v13205_v47  ;;  %v6399_v26 = vmul.f32 %v13216_v32, %v6374_v0  ;;  %v6226_v40 = vadd.f32 %v6210_v20, %v6185_v7  ;;  %v6228_v23 = vadd.f32 %v6212_v51, %v6187_v6  ;;  %v13219_v51 = vld [vmem:[#allocation64_spill] sm:$0xff]  ;;  %v13220_v60 = vld [vmem:[#allocation94_spill] sm:$0xff] }
 0x704   : > { %v6356_v9 = vadd.f32 %v6338_v38, %v6309_v62  ;;  %v6401_v16 = vmul.f32 %v13216_v32, %v13207_v46  ;;  %v6747_v31 = vsel %vm1531_vm1, %v6742_v63, %v6746_v17  ;;  %v13217_v21 = vrot.slane %v13193_v14, 2  ;;  %v6123_v14 = vld [vmem:[#allocation5 + $0x8] sm:$0xff]  ;;  %v12388_v62 = vpop.permute.xlu2 %6244  ;;  %v13223_v38 = vld [vmem:[#allocation59_spill] sm:$0xff] }
 0x705   : > { %v6358_v25 = vadd.f32 %v6340_v30, %v6311_v24  ;;  %v6530_v47 = vmul.f32 %v13218_v45, %v6519_v41  ;;  %v6789_v50 = vadd.f32 %v6747_v31, %v6508_v57  ;;  %v6532_v56 = vmul.f32 %v13218_v45, %v6124_v58  ;;  %v13222_v24 = vld [vmem:[#allocation57_spill] sm:$0xff]  ;;  %v12398_v30 = vpop.permute.xlu0 %6249  ;;  %v8234_v45 = vld [vmem:[%s13221_s3 + $0x30] sm:$0xff] }
 0x706   : > { %v6751_v33 = vsel %vm1531_vm1, %v6746_v17, %v13217_v21  ;;  %v6417_v44 = vadd.f32 %v6399_v26, %v6356_v9  ;;  %v6559_v53 = vmul.f32 %v13219_v51, %v6548_v8  ;;  %v6561_v22 = vmul.f32 %v8414_v37, %v13219_v51  ;;  %v8235_v17 = vld [vmem:[%s13221_s3 + $0x38] sm:$0xff]  ;;  %v13224_v26 = vld [vmem:[#allocation46_spill] sm:$0xff]  ;;  %v6299_v8 = vld [vmem:[#allocation5 + $0x8] sm:$0xfe] }
 0x707   : > { %v6791_v11 = vadd.f32 %v6751_v33, %v6510_v1  ;;  %v6419_v20 = vadd.f32 %v6401_v16, %v6358_v25  ;;  %v6606_v7 = vmul.f32 %v13220_v60, %v6595_v61  ;;  %v6811_v0 = vadd.f32 %v13187_v27, %v6789_v50  ;;  %v6328_v25 = vld [vmem:[#allocation5 + $0x18] sm:$0xfe]  ;;  %6966 = vmatpush.bf16.msrb.mxu3 %v8235_v17 }
 0x708   : > { %v6453_v3 = vrot.slane %v6417_v44, 1  ;;  %v6608_v58 = vmul.f32 %v13220_v60, %v13207_v46  ;;  %v6282_v49 = vmul.f32 %v12388_v62, %v6226_v40  ;;  %v6577_v54 = vadd.f32 %v6559_v53, %v6530_v47 }
 0x709   : > { %v6813_v19 = vadd.f32 %v13187_v27, %v6791_v11  ;;  %v6454_v59 = vrot.slane %v6419_v20, 1  ;;  %v6579_v6 = vadd.f32 %v6561_v22, %v6532_v56  ;;  %v6827_v57 = vmax.f32 %v6811_v0, 0.0  ;;  %v6375_v56 = vld [vmem:[#allocation5 + $0x28] sm:$0xfe] }
 0x70a   : > { %v6145_v15 = vmul.f32 %v13222_v24, %v6123_v14  ;;  %v6170_v41 = vmul.f32 %v13223_v38, %v6125_v5  ;;  %v13225_v9 = vrot.slane %v13224_v26, 1  ;;  %v6624_v40 = vadd.f32 %v6606_v7, %v6577_v54 }
 0x70b   : > { %v6829_v1 = vmax.f32 %v6813_v19, 0.0  ;;  %v6455_v32 = vsel %vm5339_vm14, %v6453_v3, %v6454_v59  ;;  %v6626_v16 = vadd.f32 %v6608_v58, %v6579_v6  ;;  %v6284_v31 = vmul.f32 %v12398_v30, %v6228_v23  ;;  %v6520_v58 = vld [vmem:[#allocation5 + $0x8] sm:$0xfc]  ;;  %6967 = vmatpush.bf16.msrb.mxu3 %v8234_v45 }
 0x70c   : > { %v6460_v46 = vsel %vm5339_vm14, %v6454_v59, %v13225_v9  ;;  %v6147_v21 = vmul.f32 %v13222_v24, %v6125_v5  ;;  %v6172_v33 = vmul.f32 %v13223_v38, %v13199_v29  ;;  %v6503_v47 = vadd.f32 %v6455_v32, %v6282_v49  ;;  %v6549_v49 = vld [vmem:[#allocation5 + $0x18] sm:$0xfc]  ;;  %v6596_v38 = vld [vmem:[#allocation5 + $0x28] sm:$0xfc] }
 0x70d   : > { %v6841_v61 = vpack.c.bf16 %v6829_v1, %v6827_v57  ;;  %v6698_v50 = vmul.f32 %v13212_v35, %v6624_v40  ;;  %v6700_v11 = vmul.f32 %v12363_v48, %v6626_v16  ;;  %v6211_v44 = vmul.f32 %v13170_v10, %v13199_v29  ;;  %v8232_v40 = vld [vmem:[%s13221_s3 + $0x20] sm:$0xff] }
 0x70e   : > { %v6505_v23 = vadd.f32 %v6460_v46, %v6284_v31  ;;  %v6186_v20 = vadd.f32 %v6170_v41, %v6145_v15  ;;  %v6213_v51 = vmul.f32 %v13170_v10, %v13200_v28  ;;  %v6310_v53 = vmul.f32 %v11885_v39, %v6299_v8  ;;  %v8233_v10 = vld [vmem:[%s13221_s3 + $0x28] sm:$0xff] }
 0x70f   : > { %6877 = vmatpush.bf16.msra.mxu1 %v6841_v61  ;;  %v6734_v37 = vrot.slane %v6698_v50, 2  ;;  %v6735_v22 = vrot.slane %v6700_v11, 2  ;;  %v6188_v60 = vadd.f32 %v6172_v33, %v6147_v21  ;;  %v6339_v7 = vmul.f32 %v11887_v18, %v6328_v25  ;;  %6968 = vmatpush.bf16.msrb.mxu3 %v8233_v10 }
 0x710   : > { %v6312_v14 = vmul.f32 %v11885_v39, %v6125_v5  ;;  %v6341_v0 = vmul.f32 %v11887_v18, %v13199_v29  ;;  %v6400_v19 = vmul.f32 %v11899_v34, %v6375_v56  ;;  %v6402_v3 = vmul.f32 %v11899_v34, %v13200_v28 }
 0x711   : > { %v6736_v59 = vsel %vm1531_vm1, %v6734_v37, %v6735_v22  ;;  %v13226_v54 = vrot.slane %v12045_v42, 2  ;;  %v6227_v57 = vadd.f32 %v6211_v44, %v6186_v20  ;;  %v6357_v39 = vadd.f32 %v6339_v7, %v6310_v53  ;;  %v8236_v7 = vld [vmem:[%s13221_s3 + $0x40] sm:$0xff] }
 0x712   : > { %v6784_v1 = vadd.f32 %v6736_v59, %v6503_v47  ;;  %v6229_v24 = vadd.f32 %v6213_v51, %v6188_v60  ;;  %v6359_v15 = vadd.f32 %v6341_v0, %v6312_v14  ;;  %v6531_v34 = vmul.f32 %v13166_v12, %v6520_v58  ;;  %v8231_v47 = vld [vmem:[%s13221_s3 + $0x18] sm:$0xff]  ;;  %v8230_v60 = vld [vmem:[%s13221_s3 + $0x10] sm:$0xff] }
 0x713   : > { %v6741_v6 = vsel %vm1531_vm1, %v6735_v22, %v13226_v54  ;;  %v6418_v41 = vadd.f32 %v6400_v19, %v6357_v39  ;;  %v6533_v17 = vmul.f32 %v13166_v12, %v6125_v5  ;;  %v6560_v32 = vmul.f32 %v11891_v4, %v6549_v49  ;;  %6969 = vmatpush.bf16.msrb.mxu3 %v8232_v40 }
 0x714   : > { %v6786_v18 = vadd.f32 %v6741_v6, %v6505_v23  ;;  %v6806_v26 = vadd.f32 %v13176_v55, %v6784_v1  ;;  %v6420_v9 = vadd.f32 %v6402_v3, %v6359_v15  ;;  %v6562_v46 = vmul.f32 %v11891_v4, %v13199_v29 }
 0x715   : > { %v6456_v16 = vrot.slane %v6418_v41, 1  ;;  %v6578_v8 = vadd.f32 %v6560_v32, %v6531_v34  ;;  %v6607_v61 = vmul.f32 %v11901_v52, %v6596_v38  ;;  %v6609_v12 = vmul.f32 %v11901_v52, %v13200_v28  ;;  %v8227_v28 = vld [vmem:[%s13227_s2] sm:$0xff]  ;;  %s13228_s2 = sld [smem:[#allocation39_spill]] }
 0x716   : > { %v6808_v42 = vadd.f32 %v13176_v55, %v6786_v18  ;;  %v6822_v5 = vmax.f32 %v6806_v26, 0.0  ;;  %v6457_v21 = vrot.slane %v6420_v9, 1  ;;  %v6580_v33 = vadd.f32 %v6562_v46, %v6533_v17  ;;  %v8373_v34 = vld [vmem:[%s13229_s5] ss:$0 sm:$0xff]  ;;  %s13232_s5 = sld [smem:[#allocation41_spill]] }
 0x717   : > { %v6625_v55 = vadd.f32 %v6607_v61, %v6578_v8  ;;  %v6283_v50 = vmul.f32 %v12388_v62, %v6227_v57  ;;  %v6285_v11 = vmul.f32 %v12398_v30, %v6229_v24  ;;  %6970 = vmatpush.bf16.msrb.mxu3 %v8231_v47 }
 0x718   : > { %v6824_v31 = vmax.f32 %v6808_v42, 0.0  ;;  %v6458_v45 = vsel %vm5339_vm14, %v6456_v16, %v6457_v21  ;;  %v6462_v4 = vsel %vm5339_vm14, %v6457_v21, %v6461_v43  ;;  %v6627_v29 = vadd.f32 %v6609_v12, %v6580_v33  ;;  %v7000_v21 = vld [vmem:[%s13231_s6] sm:$0x3]  ;;  %s13233_s6 = sld [smem:[#allocation42_spill]] }
 0x719   : > { %v6699_v52 = vmul.f32 %v13212_v35, %v6625_v55  ;;  %v6504_v56 = vadd.f32 %v6458_v45, %v6283_v50  ;;  %v6506_v23 = vadd.f32 %v6462_v4, %v6285_v11  ;;  %v7002_v45 = vperm.slane %v7000_v21, 0 }
 0x71a   : > { %v6838_v25 = vpack.c.bf16 %v6824_v31, %v6822_v5  ;;  %v6701_v44 = vmul.f32 %v12363_v48, %v6627_v29  ;;  %v7003_v4 = vperm.slane %v7000_v21, 1 }
 0x71b   : > { %v6737_v13 = vrot.slane %v6699_v52, 2  ;;  %6971 = vmatpush.bf16.msrb.mxu3 %v8230_v60  ;;  %v8099_v49 = vld [vmem:[%s13228_s2 + $0x10] sm:$0xf]  ;;  %v8240_v10 = vld [vmem:[%s13228_s2 + $0x14] sm:$0xf0] }
 0x71c   : > { %6864 = vmatpush.bf16.msra.mxu0 %v6838_v25  ;;  %v6738_v20 = vrot.slane %v6701_v44, 2  ;;  %v8239_v59 = vld [vmem:[%s13228_s2 + $0x14] sm:$0xf]  ;;  %v8100_v54 = vor.u32 %v8240_v10, %v8099_v49  ;;  %v8101_v6 = vld [vmem:[%s13228_s2 + $0x18] sm:$0xf0] }
 0x71d   : > { %v8091_v57 = vld [vmem:[%s13228_s2] sm:$0xf]  ;;  %v8238_v39 = vld [vmem:[%s13228_s2 + $0x4] sm:$0xf0]  ;;  %v8104_v1 = vor.u32 %v8239_v59, %v8101_v6  ;;  %v8237_v18 = vld [vmem:[%s13228_s2 + $0x4] sm:$0xf] }
 0x71e   : > { %v6739_v43 = vsel %vm1531_vm1, %v6737_v13, %v6738_v20  ;;  %v6743_v35 = vsel %vm1531_vm1, %v6738_v20, %v6742_v63  ;;  %v8228_v63 = vld [vmem:[%s13221_s3] sm:$0xff]  ;;  %v8093_v24 = vld [vmem:[%s13228_s2 + $0x8] sm:$0xf0]  ;;  %v8092_v15 = vor.u32 %v8238_v39, %v8091_v57  ;;  %s13230_s3 = sld [smem:[#allocation45_spill]]  ;;  %v7390_v20 = vpop.permute.xlu2 %7389  ;;  %v8110_v59 = vld [vmem:[%s13232_s5 + $0x8] sm:$0x3] }
 0x71f   : > { %8050 = vmatmul.msk.bf16.vlgmr.msra.gmra.mxu0 %vm6853_vm2, %v8227_v28  ;;  %v6785_v62 = vadd.f32 %v6739_v43, %v6504_v56  ;;  %v6787_v48 = vadd.f32 %v6743_v35, %v6506_v23  ;;  %6972 = vmatpush.bf16.msrb.mxu3 %v8229_v2  ;;  %v8096_v38 = vor.u32 %v8237_v18, %v8093_v24  ;;  %v7386_v43 = vpop.permute.xlu1 %7385  ;;  %v7253_v57 = vld [vmem:[#allocation6 + $0x30] sm:$0x1]  ;;  %v8111_v39 = vld [vmem:[%s13232_s5 + $0xe] sm:$0x3]  ;;  %v8113_v24 = vld [vmem:[%s13232_s5 + $0xa] sm:$0x3] }
 0x720   : > { %6987 = vmatpush.bf16.msrb.mxu0 %v8236_v7  ;;  %v7322_v21 = vperm.slane %v8113_v24, 0 }
 0x721   : > { %v6807_v30 = vadd.f32 %v13187_v27, %v6785_v62  ;;  %v6809_v51 = vadd.f32 %v13187_v27, %v6787_v48 }
 0x723   : > { %v6823_v53 = vmax.f32 %v6807_v30, 0.0  ;;  %v6825_v37 = vmax.f32 %v6809_v51, 0.0  ;;  %6973 = vmatpush.bf16.msrb.mxu3 %v8228_v63  ;;  %v12494_v30 = vld [vmem:[%s13232_s5] sm:$0x3]  ;;  %v8107_v51 = vld [vmem:[%s13232_s5 + $0x6] sm:$0x3] }
 0x724   : > { %7054 = vmatpush.bf16.msra.mxu0 %v8104_v1  ;;  %v8248_v31 = vld [vmem:[%s13230_s3 + $0x38] sm:$0xff]  ;;  %v8247_v55 = vld [vmem:[%s13230_s3 + $0x30] sm:$0xff]  ;;  %v8246_v29 = vld [vmem:[%s13230_s3 + $0x28] sm:$0xff] }
 0x725   : > { %v6839_v22 = vpack.c.bf16 %v6825_v37, %v6823_v53  ;;  %v8252_v33 = vld [vmem:[%s13230_s3 + $0x58] sm:$0xff]  ;;  %v8251_v25 = vld [vmem:[%s13230_s3 + $0x50] sm:$0xff]  ;;  %v8250_v11 = vld [vmem:[%s13230_s3 + $0x48] sm:$0xff]  ;;  %v12500_v37 = vrot.slane %v7390_v20, 6 }
 0x726   : > { %v8245_v23 = vld [vmem:[%s13230_s3 + $0x20] sm:$0xff]  ;;  %v8244_v48 = vld [vmem:[%s13230_s3 + $0x18] sm:$0xff]  ;;  %v12498_v53 = vld [vmem:[%s13232_s5 + $0xc] sm:$0x3] }
 0x727   : > { %6878 = vmatpush.bf16.msra.mxu1 %v6839_v22  ;;  %7564 = vmatpush.bf16.msra.mxu3 %v8252_v33  ;;  %v8249_v13 = vld [vmem:[%s13230_s3 + $0x40] sm:$0xff]  ;;  %v12502_v22 = vrot.slane %v7386_v43, 6  ;;  %v7161_v49 = vperm.slane %v12498_v53, 0  ;;  %v7162_v10 = vperm.slane %v12498_v53, 1 }
 0x728   : > { %7055 = vmatpush.bf16.msra.mxu0 %v8096_v38 }
 0x72a   : > { %8051 = vmatmul.msk.bf16.vlgmr.msra.gmra.mxu1 %vm6853_vm2, %v8227_v28 }
 0x72b   : > { %7040 = vmatpush.bf16.msrb.mxu1 %v8100_v54  ;;  %7565 = vmatpush.bf16.msra.mxu3 %v8251_v25 }
 0x72f   : > { %7041 = vmatpush.bf16.msrb.mxu1 %v8092_v15  ;;  %7566 = vmatpush.bf16.msra.mxu3 %v8250_v11  ;;  %v12523_v15 = vld [vmem:[%s13232_s5 + $0x10] sm:$0x3] }
 0x730   : > { %v12545_v33 = vperm.slane %v12523_v15, 0 }
 0x733   : > { %7546 = vmatpush.bf16.msra.mxu1 %v8248_v31  ;;  %7567 = vmatpush.bf16.msra.mxu3 %v8249_v13 }
 0x737   : > { %7547 = vmatpush.bf16.msra.mxu1 %v8247_v55 }
 0x73b   : > { %7548 = vmatpush.bf16.msra.mxu1 %v8246_v29 }
 0x73f   : > { %7549 = vmatpush.bf16.msra.mxu1 %v8245_v23 }
 0x743   : > { %7550 = vmatpush.bf16.msra.mxu1 %v8244_v48 }
 0x79c   : > { %v6866_v27 = vpop.f32.mrf.mxu0 }
 0x7a4   : > { %v6868_v14 = vpop.f32.mrf.mxu0 }
 0x7a5   : > { %v6885_v0 = vpack.c.bf16 %v6868_v14, %v6866_v27  ;;  %v8243_v27 = vld [vmem:[%s13230_s3 + $0x10] sm:$0xff]  ;;  %v7107_v14 = vperm.slane %v12494_v30, 0 }
 0x7a6   : > { %7551 = vmatpush.bf16.msra.mxu1 %v8243_v27 }
 0x7a7   : > { %6974 = vmatmul.bf16.vlgmr.msrb.gmra.mxu3 %v6885_v0  ;;  %v6880_v19 = vpop.f32.mrf.mxu1  ;;  %v7108_v0 = vperm.slane %v12494_v30, 1 }
 0x7af   : > { %v6882_v3 = vpop.f32.mrf.mxu1 }
 0x7b0   : > { %v6886_v58 = vpack.c.bf16 %v6882_v3, %v6880_v19  ;;  %v8109_v19 = vld [vmem:[%s13232_s5 + $0x2] sm:$0x3]  ;;  %v12509_v3 = vperm.slane %v8107_v51, 0 }
 0x7b1   : > { %v12517_v1 = vperm.slane %v8109_v19, 0  ;;  %v12519_v18 = vperm.slane %v8109_v19, 1 }
 0x7b2   : > { %8088 = vmatmul.msk.bf16.vlgmr.msrb.gmra.mxu0 %vm3111_vm5, %v6886_v58  ;;  %vm7067_vm5 = vcmask 520192   ;;  %v12511_v58 = vperm.slane %v8107_v51, 1 }
 0x7b3   : > { %7068 = vst.msk [vmem:[#allocation6 + $0x8] sm:$0x1f] %vm7067_vm5, %v12338_v36 }
 0x82a   : > { %v6975_v41 = vpop.f32.mrf.mxu3 }
 0x82b   : > { %v6976_v32 = vadd.f32 %v8373_v34, %v6975_v41 }
 0x82f   : > { %v6989_v17 = vpop.f32.mrf.mxu0 }
 0x830   : > { %v6990_v42 = vadd.f32 %v6989_v17, %v6976_v32  ;;  %v12527_v17 = vperm.slane %v8110_v59, 1  ;;  %v12530_v32 = vld [vmem:[%s13232_s5 + $0x4] sm:$0x3] }
 0x832   : > { %v6977_v26 = vpop.f32.mrf.mxu3  ;;  %v12471_v40 = vpack.c.bf16 %v6990_v42, %v6990_v42 }
 0x833   : > { %v6978_v9 = vadd.f32 %v8373_v34, %v6977_v26  ;;  %v12525_v34 = vperm.slane %v8110_v59, 0  ;;  %v12535_v26 = vsel %vm5561_vm12, %v12502_v22, %v12500_v37 }
 0x834   : > { %v7008_v61 = vunpack.c.l.b16 %v12471_v40 }
 0x837   : > { %v6991_v46 = vpop.f32.mrf.mxu0 }
 0x838   : > { %v6992_v16 = vadd.f32 %v6991_v46, %v6978_v9  ;;  %v12537_v9 = vperm.slane %v8111_v39, 0  ;;  %v12539_v46 = vperm.slane %v8111_v39, 1 }
 0x83a   : > { %v12473_v8 = vpack.c.bf16 %v6992_v16, %v6992_v16  ;;  %v7362_v16 = vld [vmem:[#allocation6 + $0x30] sm:$0x3]  ;;  %v12552_v29 = vmul.f32 %v12537_v9, %v7253_v57 }
 0x83c   : > { %v7009_v12 = vunpack.c.l.b16 %v12473_v8 }
 0x83e   : > { %v7010_v5 = vpack.c.b16 %v7009_v12, %v7008_v61 }
 0x840   : > { %8105 = vmatmul.msk.bf16.vlgmr.msrb.gmra.mxu1 %vm1658_vm3, %v7010_v5  ;;  %8106 = vmatmul.msk.bf16.vlgmr.msra.gmra.mxu0 %vm1658_vm3, %v7010_v5  ;;  %v8242_v5 = vld [vmem:[%s13230_s3 + $0x8] sm:$0xff] }
 0x841   : > { %7552 = vmatpush.bf16.msra.mxu1 %v8242_v5 }
 0x8bd   : > { %v7043_v47 = vpop.f32.mrf.mxu1  ;;  %v7057_v50 = vpop.f32.mrf.mxu0 }
 0x8be   : > { %v7044_v52 = vadd.f32 %v7043_v47, %v7002_v45  ;;  %v7058_v28 = vadd.f32 %v7057_v50, %v7003_v4  ;;  %v7305_v47 = vperm.slane %v12530_v32, 0 }
 0x8c0   : > { %v7062_v44 = vmax.f32 %v7044_v52, 0.0  ;;  %v7063_v56 = vmax.f32 %v7058_v28, 0.0  ;;  %v12560_v28 = vperm.slane %v8113_v24, 1 }
 0x8c2   : > { %v7073_v35 = vrot.slane %v7062_v44, 3  ;;  %v7074_v62 = vrot.slane %v7063_v56, 3  ;;  %v12563_v44 = vmul.f32 %v12545_v33, %v7362_v16 }
 0x8c4   : > { %7085 = vst [vmem:[#allocation6] sm:$0xe0] %v7073_v35 }
 0x8c5   : > { %7087 = vst.msk [vmem:[#allocation6 + $0x8] sm:$0xe0] %vm7086_vm4, %v7074_v62  ;;  %v7045_v60 = vpop.f32.mrf.mxu1  ;;  %v7059_v2 = vpop.f32.mrf.mxu0 }
 0x8c6   : > { %v7046_v63 = vadd.f32 %v7045_v60, %v7002_v45  ;;  %v7060_v7 = vadd.f32 %v7059_v2, %v7003_v4 }
 0x8c8   : > { %v7064_v54 = vmax.f32 %v7046_v63, 0.0  ;;  %v7065_v6 = vmax.f32 %v7060_v7, 0.0 }
 0x8ca   : > { %v7075_v38 = vrot.slane %v7064_v54, 3  ;;  %v7077_v41 = vrot.slane %v7065_v6, 3 }
 0x8cb   : > { %v7115_v42 = vld [vmem:[#allocation6] sm:$0xf0] }
 0x8cc   : > { %v7076_v61 = vsel %vm1530_vm0, %v7073_v35, %v7075_v38  ;;  %7090 = vst [vmem:[#allocation6 + $0x20] sm:$0x1f] %v7075_v38  ;;  %v7078_v12 = vsel %vm1530_vm0, %v7074_v62, %v7077_v41  ;;  %v7101_v31 = vld [vmem:[#allocation6] sm:$0xff]  ;;  %v7126_v55 = vmul.f32 %v12509_v3, %v7115_v42  ;;  %v7116_v56 = vld [vmem:[#allocation6 + $0x8] sm:$0xf0]  ;;  %v8241_v35 = vld [vmem:[%s13230_s3] sm:$0xff] }
 0x8cd   : > { %7088 = vst [vmem:[#allocation6 + $0x10] sm:$0xff] %v7076_v61  ;;  %v12549_v25 = vmul.f32 %v12509_v3, %v7076_v61  ;;  %v7187_v45 = vld [vmem:[#allocation6] sm:$0xfe]  ;;  %v12558_v11 = vmul.f32 %v12525_v34, %v7076_v61  ;;  %v7111_v23 = vmul.f32 %v7107_v14, %v7101_v31  ;;  %v7113_v13 = vmul.f32 %v7107_v14, %v7076_v61  ;;  %v7102_v27 = vld [vmem:[#allocation6 + $0x8] sm:$0xff]  ;;  %s8255_s3 = sshll.u32 %s8785_s0, 4  ;;  %s8435_s0 = scalar_lea.hbm %s8762_s4, 32 }
 0x8ce   : > { %v7204_v4 = vld [vmem:[#allocation6] sm:$0xe0]  ;;  %7089 = vst.msk [vmem:[#allocation6 + $0x18] sm:$0xff] %vm6853_vm2, %v7078_v12  ;;  %v7138_v20 = vrot.slane %v7126_v55, 4  ;;  %v7328_v2 = vmul.f32 %v7322_v21, %v7076_v61  ;;  %v7198_v7 = vmul.f32 %v12517_v1, %v7187_v45  ;;  %vm7095_vm0 = vcmask 517120   ;;  %7553 = vmatpush.bf16.msra.mxu1 %v8241_v35  ;;  %s7632_s8 = scalar_lea.hbm %s8762_s4, %s8255_s3 }
 0x8cf   : > { %v7215_v50 = vmul.f32 %v12525_v34, %v7204_v4  ;;  %v7315_v52 = vld [vmem:[#allocation6] sm:$0xc0]  ;;  %7091 = vst.msk [vmem:[#allocation6 + $0x28] sm:$0x1f] %vm7067_vm5, %v7077_v41  ;;  %v7139_v43 = vrot.slane %v12549_v25, 4  ;;  %v7228_v48 = vrot.slane %v12558_v11, 4  ;;  %v12572_v19 = vmul.f32 %v12511_v58, %v7116_v56 }
 0x8d0   : > { %v7298_v51 = vld [vmem:[#allocation6] sm:$0xfc]  ;;  %v7326_v60 = vmul.f32 %v7322_v21, %v7315_v52  ;;  %v7339_v6 = vrot.slane %v7328_v2, 4  ;;  %7096 = vst.msk [vmem:[#allocation6 + $0x38] sm:$0x3] %vm7095_vm0, %v12338_v36  ;;  %v7165_v24 = vmul.f32 %v7161_v49, %v7076_v61  ;;  %v7200_v41 = vmul.f32 %v12517_v1, %v7076_v61  ;;  %s7635_s12 = sshll.u32 %s7632_s8, 4  ;;  %s7636_s12 = int_to_ptr.hbm [resolvable:$true] %s7635_s12 }
 0x8d1   : > { %v7227_v62 = vrot.slane %v7215_v50, 4  ;;  %v7140_v63 = vsel %vm4817_vm8, %v7138_v20, %v7139_v43  ;;  %v7309_v42 = vmul.f32 %v7305_v47, %v7298_v51  ;;  %v7141_v16 = vrot.slane %v12572_v19, 4  ;;  %s8429_s14 = sshra.s32 %s7636_s12, 4  ;;  %s8430_s14 = int_to_ptr.hbm [resolvable:$true] %s8429_s14 }
 0x8d2   : > { %v7152_v14 = vadd.f32 %v7140_v63, %v7111_v23  ;;  %v7338_v54 = vrot.slane %v7326_v60, 4  ;;  %v7311_v45 = vmul.f32 %v7305_v47, %v7076_v61  ;;  %v12583_v36 = vmul.f32 %v7108_v0, %v7102_v27  ;;  %s8431_s16 = scalar_lea.hbm %s8430_s14, 16  ;;  %p8436_p0 = scmp.lt.s32.totalorder %s8430_s14, %s8762_s4 }
 0x8d3   : > { %v7229_v59 = vsel %vm4817_vm8, %v7227_v62, %v7228_v48  ;;  %v7117_v57 = vld [vmem:[#allocation6 + $0x20] sm:$0xf]  ;;  %p8432_p11 = scmp.ne.s32.totalorder %s8430_s14, %s8431_s16  ;;  %p8437_p1 = scmp.lt.s32.totalorder %s8435_s0, %s8431_s16 }
 0x8d4   : > { %v7156_v39 = vld [vmem:[#allocation6 + $0x20] sm:$0xff]  ;;  %v7130_v12 = vmul.f32 %v12509_v3, %v7117_v57  ;;  %v7243_v31 = vadd.f32 %v7229_v59, %v7198_v7  ;;  %v7249_v55 = vld [vmem:[#allocation6 + $0x10] sm:$0xfe]  ;;  %v7169_v50 = vadd.f32 %v7165_v24, %v7152_v14  ;;  %v7340_v61 = vsel %vm4817_vm8, %v7338_v54, %v7339_v6 }
 0x8d5   : > { %v7189_v38 = vld [vmem:[#allocation6 + $0x20] sm:$0x1]  ;;  %v7167_v4 = vmul.f32 %v7161_v49, %v7156_v39  ;;  %v7262_v52 = vmul.f32 %v12537_v9, %v7249_v55  ;;  %v7360_v23 = vld [vmem:[#allocation6 + $0x10] sm:$0xfc]  ;;  %v7264_v51 = vmul.f32 %v12537_v9, %v7156_v39  ;;  %v12593_v49 = vld [vmem:[#allocation6 + $0x18] sm:$0xff]  ;;  %v7354_v27 = vadd.f32 %v7340_v61, %v7309_v42  ;;  %v12602_v42 = vpop.permute.xlu1 %7180  ;;  %p8433_p12 = pnand %p8432_p11, %p8802_p5  ;;  %p8438_p2 = por %p8437_p1, %p8436_p0 }
 0x8d6   : > { %v7206_v5 = vld [vmem:[#allocation6 + $0x20] sm:$0x1f]  ;;  %v7144_v3 = vrot.slane %v7130_v12, 4  ;;  %v7202_v20 = vmul.f32 %v12517_v1, %v7189_v38  ;;  %v7371_v2 = vmul.f32 %v12545_v33, %v7360_v23  ;;  %v7118_v14 = vld [vmem:[#allocation6 + $0x28] sm:$0xf]  ;;  %v7373_v54 = vmul.f32 %v12545_v33, %v7156_v39 }
 0x8d7   : > { %v7300_v25 = vld [vmem:[#allocation6 + $0x20] sm:$0x3]  ;;  %v7219_v11 = vmul.f32 %v12525_v34, %v7206_v5  ;;  %v7268_v63 = vadd.f32 %v7262_v52, %v7243_v31  ;;  %v7218_v19 = vmul.f32 %v12527_v17, %v12593_v49  ;;  %v7361_v53 = vld [vmem:[#allocation6 + $0x18] sm:$0xfc]  ;;  %p8434_p13 = pneg %p8433_p12 }
 0x8d8   : > { %v7317_v56 = vld [vmem:[#allocation6 + $0x20] sm:$0x3f]  ;;  %v7313_v60 = vmul.f32 %v7305_v47, %v7300_v25  ;;  %v7145_v34 = vsel %vm4817_vm8, %v7139_v43, %v7144_v3  ;;  %v7377_v24 = vadd.f32 %v7371_v2, %v7354_v27  ;;  %v7129_v43 = vmul.f32 %v12511_v58, %v12593_v49  ;;  %v12608_v25 = vpop.permute.xlu0 %7175  ;;  %v12614_v3 = vld [vmem:[%s13233_s6] sm:$0x3]  ;;  %s1341_s6 = sand.u32 1, %s8469_s10  }
 0x8d9   : > { %v7330_v35 = vmul.f32 %v7322_v21, %v7317_v56  ;;  %v7233_v62 = vrot.slane %v7219_v11, 4  ;;  %v7154_v59 = vadd.f32 %v7145_v34, %v7113_v13  ;;  %v7205_v13 = vld [vmem:[#allocation6 + $0x8] sm:$0xe0]  ;;  %v7183_v56 = vmul.f32 %v12608_v25, %v7169_v50  ;;  %s7747_s2 = sshll.u32 %s1341_s6, 4  ;;  %s7621_s13 = scalar_lea.sflag [#allocation8], %s1341_s6 }
 0x8da   : > { %v7397_v33 = vmul.f32 %v12502_v22, %v7377_v24  ;;  %v7114_v27 = vmul.f32 %v7108_v0, %v12593_v49  ;;  %v7201_v0 = vmul.f32 %v12519_v18, %v12593_v49  ;;  %s1343_s5 = scalar_lea.vmem [#allocation7], %s7747_s2  ;;  %p8439_p3 = pnand %p8438_p2, %p8434_p13 }
 0x8db   : > { %v7344_v7 = vrot.slane %v7330_v35, 4  ;;  %v7234_v1 = vsel %vm4817_vm8, %v7228_v48, %v7233_v62  ;;  %v7247_v21 = vadd.f32 %v7233_v62, %v7202_v20  ;;  %v7171_v38 = vadd.f32 %v7167_v4, %v7154_v59  ;;  %s7633_s9 = sshll.u32 %s1343_s5, 4  ;;  %s7634_s9 = int_to_ptr.vmem [resolvable:$true] %s7633_s9 }
 0x8dc   : > { %v7245_v57 = vadd.f32 %v7234_v1, %v7200_v41  ;;  %v7409_v23 = vrot.slane %v7397_v33, 2  ;;  %v7216_v20 = vmul.f32 %v12527_v17, %v7205_v13 }
 0x8dd   : > { %v7345_v9 = vsel %vm4817_vm8, %v7339_v6, %v7344_v7  ;;  %v7358_v47 = vadd.f32 %v7344_v7, %v7313_v60  ;;  %v7272_v12 = vadd.f32 %v12552_v29, %v7247_v21  ;;  %v7131_v6 = vmul.f32 %v12511_v58, %v7118_v14  ;;  %v7188_v58 = vld [vmem:[#allocation6 + $0x8] sm:$0xfe]  ;;  %v7190_v14 = vld [vmem:[#allocation6 + $0x28] sm:$0x1] }
 0x8de   : > { %v7356_v5 = vadd.f32 %v7345_v9, %v7311_v45  ;;  %v7270_v31 = vadd.f32 %v7264_v51, %v7245_v57  ;;  %v7185_v39 = vmul.f32 %v12602_v42, %v7171_v38  ;;  %v7142_v29 = vrot.slane %v7129_v43, 4  ;;  %v7207_v60 = vld [vmem:[#allocation6 + $0x28] sm:$0x1f]  ;;  %v7250_v9 = vld [vmem:[#allocation6 + $0x18] sm:$0xfe] }
 0x8df   : > { %v7381_v48 = vadd.f32 %v12563_v44, %v7358_v47  ;;  %v7286_v41 = vrot.slane %v7272_v12, 1  ;;  %v7280_v45 = vrot.slane %v7268_v63, 1  ;;  %v7146_v52 = vrot.slane %v7131_v6, 4  ;;  %v7254_v38 = vld [vmem:[#allocation6 + $0x38] sm:$0x1] }
 0x8e0   : > { %v7379_v55 = vadd.f32 %v7373_v54, %v7356_v5  ;;  %v7281_v4 = vrot.slane %v7270_v31, 1  ;;  %v7143_v51 = vsel %vm4817_vm8, %v7141_v16, %v7142_v29  ;;  %v7429_v7 = vperm.slane %v12614_v3, 0  ;;  %v7157_v54 = vld [vmem:[#allocation6 + $0x28] sm:$0xff] }
 0x8e1   : > { %v7401_v11 = vmul.f32 %v12500_v37, %v7381_v48  ;;  %v7147_v63 = vsel %vm4817_vm8, %v7142_v29, %v7146_v52  ;;  %v7199_v59 = vmul.f32 %v12519_v18, %v7188_v58  ;;  %v7153_v21 = vadd.f32 %v7143_v51, %v12583_v36  ;;  %v7301_v51 = vld [vmem:[#allocation6 + $0x28] sm:$0x3] }
 0x8e2   : > { %v7399_v44 = vmul.f32 %v12535_v26, %v7379_v55  ;;  %v7282_v35 = vsel %vm5339_vm14, %v7280_v45, %v7281_v4  ;;  %v7287_v61 = vsel %vm5339_vm14, %v7281_v4, %v7286_v41  ;;  %v7220_v57 = vmul.f32 %v12527_v17, %v7207_v60  ;;  %v7316_v17 = vld [vmem:[#allocation6 + $0x8] sm:$0xc0]  ;;  %v7363_v60 = vld [vmem:[#allocation6 + $0x38] sm:$0x3] }
 0x8e3   : > { %v7415_v62 = vrot.slane %v7401_v11, 2  ;;  %v7294_v2 = vadd.f32 %v7282_v35, %v7183_v56  ;;  %v7296_v50 = vadd.f32 %v7287_v61, %v7185_v39  ;;  %v7155_v30 = vadd.f32 %v7147_v63, %v7114_v27  ;;  %v7318_v11 = vld [vmem:[#allocation6 + $0x28] sm:$0x3f] }
 0x8e4   : > { %v7410_v34 = vrot.slane %v7399_v44, 2  ;;  %v7203_v12 = vmul.f32 %v12519_v18, %v7190_v14  ;;  %v7230_v5 = vrot.slane %v7216_v20, 4  ;;  %v7231_v43 = vrot.slane %v7218_v19, 4 }
 0x8e5   : > { %v7235_v13 = vrot.slane %v7220_v57, 4  ;;  %v7263_v36 = vmul.f32 %v12539_v46, %v7250_v9  ;;  %v7265_v33 = vmul.f32 %v12539_v46, %v7157_v54  ;;  %v7267_v55 = vmul.f32 %v12539_v46, %v7254_v38 }
 0x8e6   : > { %v7411_v16 = vsel %vm1531_vm1, %v7409_v23, %v7410_v34  ;;  %v7416_v1 = vsel %vm1531_vm1, %v7410_v34, %v7415_v62  ;;  %v7232_v6 = vsel %vm4817_vm8, %v7230_v5, %v7231_v43  ;;  %v7306_v52 = vperm.slane %v12530_v32, 1  ;;  %v7299_v62 = vld [vmem:[#allocation6 + $0x8] sm:$0xfc] }
 0x8e7   : > { %v7423_v47 = vadd.f32 %v7411_v16, %v7294_v2  ;;  %v7425_v24 = vadd.f32 %v7416_v1, %v7296_v50  ;;  %v7236_v39 = vsel %vm4817_vm8, %v7231_v43, %v7235_v13  ;;  %v7248_v41 = vadd.f32 %v7235_v13, %v7203_v12 }
 0x8e8   : > { %v7244_v18 = vadd.f32 %v7232_v6, %v7199_v59  ;;  %v7246_v4 = vadd.f32 %v7236_v39, %v7201_v0  ;;  %v7368_v56 = vperm.slane %v12523_v15, 1  ;;  %v7166_v44 = vmul.f32 %v7162_v10, %v12593_v49 }
 0x8e9   : > { %v7433_v31 = vadd.f32 %v7429_v7, %v7423_v47  ;;  %v7435_v48 = vadd.f32 %v7429_v7, %v7425_v24  ;;  %v7168_v23 = vmul.f32 %v7162_v10, %v7157_v54  ;;  %v7327_v46 = vmul.f32 %v12560_v28, %v7316_v17 }
 0x8ea   : > { %v7269_v20 = vadd.f32 %v7263_v36, %v7244_v18  ;;  %v7271_v35 = vadd.f32 %v7265_v33, %v7246_v4  ;;  %v7273_v61 = vadd.f32 %v7267_v55, %v7248_v41  ;;  %v7329_v32 = vmul.f32 %v12560_v28, %v12593_v49  ;;  %v8254_v4 = vld [vmem:[%s8752_s19 + $0x8] sm:$0xff] }
 0x8eb   : > { %v7437_v29 = vmax.f32 %v7433_v31, 0.0  ;;  %v7439_v45 = vmax.f32 %v7435_v48, 0.0  ;;  %v7331_v15 = vmul.f32 %v12560_v28, %v7318_v11  ;;  %v7170_v2 = vadd.f32 %v7166_v44, %v7153_v21  ;;  %7608 = vmatpush.bf16.msrb.mxu0 %v8254_v4  ;;  %v8253_v11 = vld [vmem:[%s8752_s19] sm:$0xff] }
 0x8ec   : > { %v7172_v50 = vadd.f32 %v7168_v23, %v7155_v30  ;;  %v7283_v34 = vrot.slane %v7269_v20, 1  ;;  %v7284_v10 = vrot.slane %v7271_v35, 1  ;;  %v7341_v63 = vrot.slane %v7327_v46, 4 }
 0x8ed   : > { %v7441_v58 = vpack.c.bf16 %v7439_v45, %v7437_v29  ;;  %v7342_v7 = vrot.slane %v7329_v32, 4  ;;  %v7346_v27 = vrot.slane %v7331_v15, 4  ;;  %v7310_v14 = vmul.f32 %v7306_v52, %v7299_v62 }
 0x8ee   : > { %v7312_v59 = vmul.f32 %v7306_v52, %v12593_v49  ;;  %v7314_v19 = vmul.f32 %v7306_v52, %v7301_v51  ;;  %v7376_v16 = vmul.f32 %v7368_v56, %v7363_v60  ;;  %v7288_v1 = vrot.slane %v7273_v61, 1  ;;  %v8375_v60 = vld [vmem:[%s8757_s27] ss:$0 sm:$0xff] }
 0x8ef   : > { %7554 = vmatmul.bf16.vlgmr.msra.gmra.mxu1 %v7441_v58  ;;  %v7343_v57 = vsel %vm4817_vm8, %v7341_v63, %v7342_v7  ;;  %v7347_v28 = vsel %vm4817_vm8, %v7342_v7, %v7346_v27  ;;  %v7372_v9 = vmul.f32 %v7368_v56, %v7361_v53  ;;  %v7374_v30 = vmul.f32 %v7368_v56, %v7157_v54  ;;  %v8374_v56 = vld [vmem:[%s8747_s24] ss:$0 sm:$0xff] }
 0x8f0   : > { %v7355_v47 = vadd.f32 %v7343_v57, %v7310_v14  ;;  %v7357_v21 = vadd.f32 %v7347_v28, %v7312_v59  ;;  %v7359_v24 = vadd.f32 %v7346_v27, %v7314_v19  ;;  %v7184_v0 = vmul.f32 %v12608_v25, %v7170_v2  ;;  %7609 = vmatpush.bf16.msrb.mxu0 %v8253_v11 }
 0x8f1   : > { %v7186_v38 = vmul.f32 %v12602_v42, %v7172_v50  ;;  %v7285_v12 = vsel %vm5339_vm14, %v7283_v34, %v7284_v10  ;;  %v7289_v49 = vsel %vm5339_vm14, %v7284_v10, %v7288_v1  ;;  %v7430_v6 = vperm.slane %v12614_v3, 1 }
 0x8f2   : > { %v7378_v5 = vadd.f32 %v7372_v9, %v7355_v47  ;;  %v7380_v43 = vadd.f32 %v7374_v30, %v7357_v21  ;;  %v7382_v13 = vadd.f32 %v7376_v16, %v7359_v24  ;;  %v7295_v33 = vadd.f32 %v7285_v12, %v7184_v0 }
 0x8f3   : > { %v7297_v54 = vadd.f32 %v7289_v49, %v7186_v38  ;;  %v7574_v46 = vunpack.c.l.bf16 %v12471_v40  ;;  %v7575_v61 = vunpack.c.l.bf16 %v12473_v8 }
 0x8f4   : > { %v7398_v31 = vmul.f32 %v12502_v22, %v7378_v5  ;;  %v7400_v48 = vmul.f32 %v12535_v26, %v7380_v43  ;;  %v7402_v36 = vmul.f32 %v12500_v37, %v7382_v13 }
 0x8f6   : > { %v7412_v17 = vrot.slane %v7398_v31, 2  ;;  %v7413_v25 = vrot.slane %v7400_v48, 2  ;;  %v7417_v42 = vrot.slane %v7402_v36, 2 }
 0x8f8   : > { %v7414_v39 = vsel %vm1531_vm1, %v7412_v17, %v7413_v25  ;;  %v7418_v41 = vsel %vm1531_vm1, %v7413_v25, %v7417_v42 }
 0x8f9   : > { %v7424_v55 = vadd.f32 %v7414_v39, %v7295_v33  ;;  %v7426_v22 = vadd.f32 %v7418_v41, %v7297_v54 }
 0x8fb   : > { %v7434_v29 = vadd.f32 %v7430_v6, %v7424_v55  ;;  %v7436_v26 = vadd.f32 %v7430_v6, %v7426_v22 }
 0x8fd   : > { %v7438_v45 = vmax.f32 %v7434_v29, 0.0  ;;  %v7440_v37 = vmax.f32 %v7436_v26, 0.0 }
 0x8ff   : > { %v7442_v18 = vpack.c.bf16 %v7440_v37, %v7438_v45 }
 0x901   : > { %8163 = vmatmul.msk.bf16.vlgmr.msra.gmra.mxu3 %vm6853_vm2, %v7442_v18 }
 0x96c   : > { %v7555_v3 = vpop.f32.mrf.mxu1 }
 0x96d   : > { %v7556_v23 = vadd.f32 %v8374_v56, %v7555_v3 }
 0x974   : > { %v7557_v44 = vpop.f32.mrf.mxu1 }
 0x975   : > { %v7558_v20 = vadd.f32 %v8374_v56, %v7557_v44 }
 0x984   : > { %v7569_v52 = vpop.f32.mrf.mxu3 }
 0x985   : > { %v7570_v58 = vadd.f32 %v7569_v52, %v7556_v23 }
 0x987   : > { %v7576_v51 = vadd.f32 %v7574_v46, %v7570_v58 }
 0x98c   : > { %v7571_v35 = vpop.f32.mrf.mxu3 }
 0x98d   : > { %v7572_v62 = vadd.f32 %v7571_v35, %v7558_v20 }
 0x98f   : > { %v7577_v32 = vadd.f32 %v7575_v61, %v7572_v62 }
 0x991   : > { %v7578_v15 = vpack.c.bf16 %v7577_v32, %v7576_v51 }
 0x993   : > { %8172 = vmatmul.msk.bf16.vlgmr.msrb.gmra.mxu0 %vm1658_vm3, %v7578_v15 }
 0xa10   : > { %v7611_v2 = vpop.f32.mrf.mxu0 }
 0xa11   : > { %v7612_v50 = vadd.f32 %v8375_v60, %v7611_v2 }
 0xa13   : > { %v7616_v34 = vmax.f32 %v7612_v50, 0.0 }
 0xa15   : > { %7618 = vst [vmem:[%s1343_s5] sm:$0xff] %v7616_v34 }
 0xa18   : > { %v7613_v40 = vpop.f32.mrf.mxu0 }
 0xa19   : > { %v7614_v8 = vadd.f32 %v8375_v60, %v7613_v40 }
 0xa1b   : > { %v7617_v53 = vmax.f32 %v7614_v8, 0.0 }
 0xa1d   : > { %7619 = vst [vmem:[%s1343_s5 + $0x8] sm:$0xff] %v7617_v53 }
 0xa1e   : > { %8442 = shalt.err (!%p8439_p3)
}
 0xa1f   : > { %s8527_s8 = smov 128   ;;  %s8528_s3 = smov 8  }
 0xa20   : > { %8256 = dma.vmem_to_hbm [thread:$0]  (%p8802_p5), %s7634_s9, 256, %s7636_s12, %s7621_s13, %s8527_s8, %s8527_s8, %s8528_s3  }
 0xa21 PF: > { %p8262_p4 = scmp.ge.s32.totalorder %s8477_s15, 2  ;;  %s7650_s2 = sand.u32 1, %s8465_s7  }
 0xa22   : > { %s7651_s5 = scalar_lea.sflag [#allocation8], %s7650_s2 }
 0xa23   : > { %p8259_p7 = pnand %p8262_p4, %p8806_p6 }
 0xa25   : > { %p8260_p8 = pneg %p8259_p7 }
 0xa27   : > { %8460 = dma.done.wait (%p8260_p8), %s7651_s5, 256  }
 0xa28   : > { %8462 = vsyncadd (%p8260_p8), %s7651_s5, 4294967040  ;;  %p101_p9 = scmp.ge.s32.totalorder %s8789_s18, 4   ;;  %s13234_s7 = smov %s8469_s10 }
 0xa29   : > { %s13235_s10 = smov %s8473_s11  ;;  %s13236_s11 = smov %s8800_s26 }
 0xa2a   : > { %s13237_s15 = smov %s8789_s18  ;;  %103 = sbr.rel (!%p101_p9) target bundleno = 88 (0x58), region = 320 }
 0xa2f   :  { %7657 = vsyncpa [#allocation8], 1 }
 0xa30   :  { %7659 = vsyncpa [#allocation8 + $0x1], 1 }

</bundles_post_ra>
